<compile_context>
chip_gen: v5e
topology: v5e:2x2
jax: 0.10.0
libtpu: 0.0.40
codegen_flags: <defaults>
</compile_context>

<pallas_src>
import functools

import jax
import jax.numpy as jnp
from jax.experimental import pallas as pl
from jax.experimental.pallas import tpu as pltpu

# --- promonet-style constants (scaled down for a small synthetic test) -------
LRELU_SLOPE = 0.1
HIFIGAN_UPSAMPLE_INITIAL_SIZE = 32
HIFIGAN_UPSAMPLE_RATES = (8, 2)
HIFIGAN_UPSAMPLE_KERNEL_SIZES = (16, 4)
HIFIGAN_RESBLOCK_KERNEL_SIZES = (3, 7, 11)
HIFIGAN_RESBLOCK_DILATION_SIZES = ((1, 3, 5), (1, 3, 5), (1, 3, 5))

MATMUL_DTYPE = jnp.bfloat16     # MXU input dtype (f32 accumulate) + scratch dtype
ACT_DTYPE = jnp.bfloat16        # inter-kernel activation dtype (review item 5)
_CH_ALIGN = 8                   # pad input channel counts to sublane multiple
_SLAB_MAX_ROWS = 128            # im2col slab only when K*Cin <= this (item 3)


# -----------------------------------------------------------------------------
# In-kernel helpers
# -----------------------------------------------------------------------------
def _lrelu(v):
    return jnp.where(v >= 0, v, LRELU_SLOPE * v)


def _zero_halo(xpad_ref, halo, T):
    """Zero ONLY the halo columns; the interior [halo:halo+T] is always fully
    overwritten by every conv (review item 1)."""
    C, W = xpad_ref.shape
    xpad_ref[:, :halo] = jnp.zeros((C, halo), xpad_ref.dtype)
    xpad_ref[:, halo + T:] = jnp.zeros((C, W - halo - T), xpad_ref.dtype)


def _transpose_mxu(x):
    """(A, B) -> (B, A) f32 via an MXU identity matmul.

    Layout-safe relayout used for the time-major <-> channels-major hand-off
    (exact for bf16 inputs; negligible flops at these tile sizes).
    TODO(synk): replace with a native jnp.transpose where Mosaic supports it.
    """
    A, B = x.shape
    eye = (jax.lax.broadcasted_iota(jnp.int32, (B, B), 0) ==
           jax.lax.broadcasted_iota(jnp.int32, (B, B), 1)).astype(MATMUL_DTYPE)
    return jax.lax.dot_general(eye, x.astype(MATMUL_DTYPE),
                               (((1,), (1,)), ((), ())),
                               preferred_element_type=jnp.float32)


def _shifted_matmul(xpad_ref, w_ref, offsets, T, C):
    """Contract a packed (Cout, n*C) weight against n time-shifted windows of
    the bf16 haloed scratch.  Single im2col slab when n*C is small, otherwise
    n accumulated matmuls (review item 3)."""
    xp = xpad_ref[...]                       # bf16, loaded once per conv
    w = w_ref[...]                           # bf16 packed weight
    n = len(offsets)
    if n * C <= _SLAB_MAX_ROWS:
        slab = jnp.concatenate([xp[:, o:o + T] for o in offsets], axis=0)
        return jnp.dot(w, slab, preferred_element_type=jnp.float32)
    y = jnp.zeros((w.shape[0], T), jnp.float32)
    for i, o in enumerate(offsets):
        y = y + jnp.dot(w[:, i * C:(i + 1) * C], xp[:, o:o + T],
                        preferred_element_type=jnp.float32)
    return y


def _dilated_conv(xpad_ref, w_ref, b_ref, v, *, T, halo, K, d, pre_lrelu=True):
    """Dilated 'same' Conv1d on a (C, T) f32 value.

    Writes v (optionally LeakyReLU'd), cast once to bf16, into the interior of
    the zero-haloed bf16 scratch; the halo stays zero, so LeakyReLU(0)=0 keeps
    the fused activation exact under zero padding.
    """
    pad = d * (K - 1) // 2
    if pre_lrelu:
        v = _lrelu(v)
    xpad_ref[:, halo:halo + T] = v.astype(xpad_ref.dtype)
    C = xpad_ref.shape[0]
    offsets = tuple(halo - pad + k * d for k in range(K))
    y = _shifted_matmul(xpad_ref, w_ref, offsets, T, C)
    if b_ref is not None:
        y = y + b_ref[...]
    return y


def _upsample_conv(xpad_ref, w_ref, b_ref, v, *, T, halo, shifts):
    """LeakyReLU -> polyphase weight-normed ConvTranspose1d.

    Returns the phase-major (stride*Cout, T) f32 result; the caller transposes
    it to time-major before the lane-dense store.
    """
    xpad_ref[:, halo:halo + T] = _lrelu(v).astype(xpad_ref.dtype)
    C = xpad_ref.shape[0]
    offsets = tuple(halo - j for j in shifts)
    y = _shifted_matmul(xpad_ref, w_ref, offsets, T, C)
    return y + b_ref[...]


def _res_stage(xpad_ref, wb, x0, *, blocks, T, halo):
    """Full ResidualBlock stage (3 Blocks + average), VMEM-resident."""
    acc = None
    idx = 0
    for K, dils in blocks:
        xb = x0
        for d in dils:
            xt = _dilated_conv(xpad_ref, wb[idx], wb[idx + 1], xb,
                               T=T, halo=halo, K=K, d=d)
            xt = _dilated_conv(xpad_ref, wb[idx + 2], wb[idx + 3], xt,
                               T=T, halo=halo, K=K, d=1)
            idx += 4
            xb = xb + xt
        acc = xb if acc is None else acc + xb
    # TODO(synk): stack the three first-conv weights (same x0) into one
    # (3*Cout, 11*Cin) matmul to improve MXU row fill at small Cout.
    return acc * (1.0 / len(blocks))


# -----------------------------------------------------------------------------
# Pallas kernels (3 total)
# -----------------------------------------------------------------------------
def _input_up_kernel(x_ref, g_ref, wf_ref, bf_ref, ws_ref, bs_ref,
                     uw_ref, ub_ref, o_ref, xin_ref, xup_ref,
                     *, T, Kf, halo_in, halo_up, shifts):
    """h = feature_conv(x) + speaker_conv(g); then LeakyReLU -> ConvT (stage 0).

    Output is time-major (T, stride*Cout) so the inter-kernel de-interleave is
    a free row-major reshape in XLA.
    """
    _zero_halo(xin_ref, halo_in, T)
    _zero_halo(xup_ref, halo_up, T)
    h = _dilated_conv(xin_ref, wf_ref, bf_ref, x_ref[0],
                      T=T, halo=halo_in, K=Kf, d=1, pre_lrelu=False)
    h = h + jnp.dot(ws_ref[...], g_ref[0].astype(MATMUL_DTYPE),
                    preferred_element_type=jnp.float32)
    h = h + bs_ref[...]
    y = _upsample_conv(xup_ref, uw_ref, ub_ref, h, T=T, halo=halo_up,
                       shifts=shifts)
    o_ref[0] = _transpose_mxu(y).astype(o_ref.dtype)        # (T, stride*Cout)


def _stage_up_kernel(x_ref, *rest, blocks, T, halo, shifts, n_wb):
    """Residual stage i, then LeakyReLU -> polyphase ConvT for stage i+1."""
    wb = rest[:n_wb]
    uw_ref, ub_ref, o_ref, xpad_ref = rest[n_wb:n_wb + 4]
    _zero_halo(xpad_ref, halo, T)
    x0 = _transpose_mxu(x_ref[0])                            # (C, T) f32
    h = _res_stage(xpad_ref, wb, x0, blocks=blocks, T=T, halo=halo)
    y = _upsample_conv(xpad_ref, uw_ref, ub_ref, h, T=T, halo=halo,
                       shifts=shifts)
    o_ref[0] = _transpose_mxu(y).astype(o_ref.dtype)         # (T, stride*Cout)


def _stage_out_kernel(x_ref, *rest, blocks, T, halo, Kout, n_wb):
    """Residual stage, then LeakyReLU -> Conv1d(C,1,7,bias=False) -> Tanh."""
    wb = rest[:n_wb]
    wo_ref, o_ref, xpad_ref = rest[n_wb:n_wb + 3]
    _zero_halo(xpad_ref, halo, T)
    x0 = _transpose_mxu(x_ref[0])                            # (C, T) f32
    h = _res_stage(xpad_ref, wb, x0, blocks=blocks, T=T, halo=halo)
    y = _dilated_conv(xpad_ref, wo_ref, None, h, T=T, halo=halo, K=Kout, d=1,
                      pre_lrelu=True)
    o_ref[0] = jnp.tanh(y).astype(o_ref.dtype)               # (1, T)


# -----------------------------------------------------------------------------
# Wrappers (pallas_call plumbing)
# -----------------------------------------------------------------------------
def _cparams():
    return pltpu.CompilerParams(dimension_semantics=("parallel",))


def _stage_blocks():
    return tuple((K, tuple(dils))
                 for K, dils in zip(HIFIGAN_RESBLOCK_KERNEL_SIZES,
                                    HIFIGAN_RESBLOCK_DILATION_SIZES))


def _res_halo(blocks):
    return max(d * (K - 1) // 2 for K, dils in blocks for d in dils)


def _pad_channels_input(a, mult=_CH_ALIGN):
    pad = (-a.shape[1]) % mult
    if pad:
        a = jnp.pad(a, ((0, 0), (0, pad), (0, 0)))
    return a


def _ct_shifts(kernel_size, stride):
    """Input-time shifts needed by the polyphase transposed conv."""
    p = (kernel_size - stride) // 2
    return tuple(sorted({(k - r - p) // stride
                         for r in range(stride)
                         for k in range(kernel_size)
                         if (k - r - p) % stride == 0}))


def input_and_upsample(x, g, params):
    """pallas_call 1: input feature/speaker convs fused with upsample 0."""
    x = _pad_channels_input(x)
    g = _pad_channels_input(g)
    B, Cxp, T = x.shape
    Cgp = g.shape[1]
    wf, bf = params['feat_w'], params['feat_b']
    ws, bs = params['spk_w'], params['spk_b']
    uw, ub = params['ups'][0]['up_w'], params['ups'][0]['up_b']
    C0 = wf.shape[0]
    Kf = wf.shape[1] // Cxp
    halo_in = (Kf - 1) // 2
    shifts = _ct_shifts(HIFIGAN_UPSAMPLE_KERNEL_SIZES[0],
                        HIFIGAN_UPSAMPLE_RATES[0])
    halo_up = max(abs(j) for j in shifts)
    SCout = uw.shape[0]
    kern = functools.partial(_input_up_kernel, T=T, Kf=Kf, halo_in=halo_in,
                             halo_up=halo_up, shifts=shifts)
    return pl.pallas_call(
        kern,
        grid=(B,),
        in_specs=[pl.BlockSpec((1, Cxp, T), lambda b: (b, 0, 0)),
                  pl.BlockSpec((1, Cgp, T), lambda b: (b, 0, 0))]
                 + [pl.BlockSpec(a.shape, lambda b: (0, 0))
                    for a in (wf, bf, ws, bs, uw, ub)],
        out_specs=pl.BlockSpec((1, T, SCout), lambda b: (b, 0, 0)),
        out_shape=jax.ShapeDtypeStruct((B, T, SCout), ACT_DTYPE),
        scratch_shapes=[pltpu.VMEM((Cxp, T + 2 * halo_in), MATMUL_DTYPE),
                        pltpu.VMEM((C0, T + 2 * halo_up), MATMUL_DTYPE)],
        compiler_params=_cparams(),
    )(x, g, wf, bf, ws, bs, uw, ub)


def residual_and_upsample(h, res_w, res_b, up_w, up_b, up_kernel, up_rate):
    """pallas_call 2: residual stage fused with the next transposed conv."""
    B, Tup, C = h.shape
    blocks = _stage_blocks()
    halo = _res_halo(blocks)
    shifts = _ct_shifts(up_kernel, up_rate)
    assert max(abs(j) for j in shifts) <= halo
    SCout = up_w.shape[0]
    n_wb = sum(4 * len(dils) for _, dils in blocks)
    assert 2 * len(res_w) == n_wb
    kern = functools.partial(_stage_up_kernel, blocks=blocks, T=Tup, halo=halo,
                             shifts=shifts, n_wb=n_wb)
    in_specs = [pl.BlockSpec((1, Tup, C), lambda b: (b, 0, 0))]
    args = [h]
    for w, bias in zip(res_w, res_b):
        in_specs += [pl.BlockSpec(w.shape, lambda b: (0, 0)),
                     pl.BlockSpec(bias.shape, lambda b: (0, 0))]
        args += [w, bias]
    in_specs += [pl.BlockSpec(up_w.shape, lambda b: (0, 0)),
                 pl.BlockSpec(up_b.shape, lambda b: (0, 0))]
    args += [up_w, up_b]
    return pl.pallas_call(
        kern,
        grid=(B,),
        in_specs=in_specs,
        out_specs=pl.BlockSpec((1, Tup, SCout), lambda b: (b, 0, 0)),
        out_shape=jax.ShapeDtypeStruct((B, Tup, SCout), ACT_DTYPE),
        scratch_shapes=[pltpu.VMEM((C, Tup + 2 * halo), MATMUL_DTYPE)],
        compiler_params=_cparams(),
    )(*args)


def residual_and_output(h, res_w, res_b, out_w):
    """pallas_call 3: last residual stage fused with the output conv + tanh."""
    B, Tup, C = h.shape
    blocks = _stage_blocks()
    halo = _res_halo(blocks)
    Kout = out_w.shape[1] // C
    assert (Kout - 1) // 2 <= halo
    n_wb = sum(4 * len(dils) for _, dils in blocks)
    kern = functools.partial(_stage_out_kernel, blocks=blocks, T=Tup, halo=halo,
                             Kout=Kout, n_wb=n_wb)
    in_specs = [pl.BlockSpec((1, Tup, C), lambda b: (b, 0, 0))]
    args = [h]
    for w, bias in zip(res_w, res_b):
        in_specs += [pl.BlockSpec(w.shape, lambda b: (0, 0)),
                     pl.BlockSpec(bias.shape, lambda b: (0, 0))]
        args += [w, bias]
    in_specs += [pl.BlockSpec(out_w.shape, lambda b: (0, 0))]
    args += [out_w]
    return pl.pallas_call(
        kern,
        grid=(B,),
        in_specs=in_specs,
        out_specs=pl.BlockSpec((1, 1, Tup), lambda b: (b, 0, 0)),
        out_shape=jax.ShapeDtypeStruct((B, 1, Tup), jnp.float32),
        scratch_shapes=[pltpu.VMEM((C, Tup + 2 * halo), MATMUL_DTYPE)],
        compiler_params=_cparams(),
    )(*args)


# -----------------------------------------------------------------------------
# Host-side weight packing (PyTorch layouts -> kernel layouts)
# -----------------------------------------------------------------------------
def _pack_conv_weight(w_pt, pad_cin_to=None):
    """PyTorch Conv1d weight (Cout, Cin, K) -> packed (Cout, K*Cin) bf16."""
    Cout, Cin, K = w_pt.shape
    if pad_cin_to is not None and Cin % pad_cin_to:
        w_pt = jnp.pad(w_pt, ((0, 0), (0, (-Cin) % pad_cin_to), (0, 0)))
        Cin = w_pt.shape[1]
    return (jnp.transpose(w_pt, (0, 2, 1))
            .reshape(Cout, K * Cin).astype(MATMUL_DTYPE))


def _pack_convtranspose(w_pt, b, kernel_size, stride):
    """PyTorch ConvTranspose1d weight (Cin, Cout, K) -> polyphase-packed
    (stride*Cout, n_shifts*Cin) bf16 weight and (stride*Cout, 1) f32 bias."""
    Cin, Cout, K = w_pt.shape
    p = (K - stride) // 2
    shifts = _ct_shifts(K, stride)
    W = jnp.zeros((stride * Cout, len(shifts) * Cin), jnp.float32)
    for r in range(stride):
        for ji, j in enumerate(shifts):
            k = r + p + j * stride
            if 0 <= k < K:
                W = W.at[r * Cout:(r + 1) * Cout,
                         ji * Cin:(ji + 1) * Cin].set(w_pt[:, :, k].T)
    b_all = jnp.tile(b.reshape(1, Cout), (stride, 1)).reshape(stride * Cout, 1)
    return W.astype(MATMUL_DTYPE), b_all.astype(jnp.float32)


# -----------------------------------------------------------------------------
# Parameter construction (deterministic, synthetic)
# -----------------------------------------------------------------------------
def init_params(key, initial_channel, gin_channels):
    keys = iter(jax.random.split(key, 256))

    def normal(shape, std=0.01):
        return std * jax.random.normal(next(keys), shape, jnp.float32)

    C0 = HIFIGAN_UPSAMPLE_INITIAL_SIZE
    params = {
        'feat_w': _pack_conv_weight(normal((C0, initial_channel, 7), 0.05),
                                    pad_cin_to=_CH_ALIGN),
        'feat_b': normal((C0, 1), 0.05),
        'spk_w': _pack_conv_weight(normal((C0, gin_channels, 1), 0.05),
                                   pad_cin_to=_CH_ALIGN),
        'spk_b': normal((C0, 1), 0.05),
        'ups': [],
    }
    for i, (uk, ur) in enumerate(zip(HIFIGAN_UPSAMPLE_KERNEL_SIZES,
                                     HIFIGAN_UPSAMPLE_RATES)):
        cin = C0 // (2 ** i)
        cout = C0 // (2 ** (i + 1))
        up_w, up_b = _pack_convtranspose(
            normal((cin, cout, uk), 0.01),   # PyTorch ConvTranspose1d layout
            normal((cout,), 0.01), uk, ur)
        stage = {'up_w': up_w, 'up_b': up_b, 'res_w': [], 'res_b': []}
        for K, dils in zip(HIFIGAN_RESBLOCK_KERNEL_SIZES,
                           HIFIGAN_RESBLOCK_DILATION_SIZES):
            for _d in dils:
                for _conv in range(2):       # convs1[j] then convs2[j]
                    stage['res_w'].append(
                        _pack_conv_weight(normal((cout, cout, K), 0.01)))
                    stage['res_b'].append(normal((cout, 1), 0.01))
        params['ups'].append(stage)
    c_final = C0 // (2 ** len(HIFIGAN_UPSAMPLE_RATES))
    params['out_w'] = _pack_conv_weight(normal((1, c_final, 7), 0.05))
    return params


# -----------------------------------------------------------------------------
# Forward pass (HiFiGAN.forward): 3 pallas_calls + 2 free (bitcast) reshapes
# -----------------------------------------------------------------------------
def hifigan_forward(params, x, g, p=None):
    # x, g: PyTorch NCT layout (B, C, T).  `p` is accepted but unused,
    # matching HiFiGAN.forward.
    B = x.shape[0]
    rates = HIFIGAN_UPSAMPLE_RATES
    kernels = HIFIGAN_UPSAMPLE_KERNEL_SIZES
    n = len(params['ups'])

    u = input_and_upsample(x, g, params)              # (B, T, rates[0]*C1)
    for i in range(n):
        c_out = HIFIGAN_UPSAMPLE_INITIAL_SIZE // (2 ** (i + 1))
        # Free row-major reshape: (B, T, stride*Cout) -> (B, T*stride, Cout).
        h = u.reshape(B, u.shape[1] * rates[i], c_out)
        stage = params['ups'][i]
        if i + 1 < n:
            nxt = params['ups'][i + 1]
            u = residual_and_upsample(h, stage['res_w'], stage['res_b'],
                                      nxt['up_w'], nxt['up_b'],
                                      kernels[i + 1], rates[i + 1])
        else:
            u = residual_and_output(h, stage['res_w'], stage['res_b'],
                                    params['out_w'])
    return u                                          # (B, 1, T_out), NCT


# -----------------------------------------------------------------------------
if __name__ == "__main__":
    key = jax.random.PRNGKey(0)
    kp, kx, kg = jax.random.split(key, 3)

    B, Cin, Cg, T = 2, 4, 4, 8
    params = init_params(kp, Cin, Cg)
    x = jax.random.normal(kx, (B, Cin, T), jnp.float32)
    g = jax.random.normal(kg, (B, Cg, T), jnp.float32)

    y = jax.jit(hifigan_forward)(params, x, g)
    jax.block_until_ready(y)

    total_up = 1
    for r in HIFIGAN_UPSAMPLE_RATES:
        total_up *= r
    assert y.shape == (B, 1, T * total_up), y.shape
    assert bool(jnp.all(jnp.isfinite(y)))
    print("KERNEL_OK")
</pallas_src>

<mosaic_0001>
module attributes {stable_mosaic.version = 11 : i64} {
  func.func @_input_up_kernel(%arg0: i32, %arg1: memref<1x8x8xf32, #tpu.memory_space<vmem>>, %arg2: memref<1x8x8xf32, #tpu.memory_space<vmem>>, %arg3: memref<32x56xbf16, #tpu.memory_space<vmem>>, %arg4: memref<32x1xf32, #tpu.memory_space<vmem>>, %arg5: memref<32x8xbf16, #tpu.memory_space<vmem>>, %arg6: memref<32x1xf32, #tpu.memory_space<vmem>>, %arg7: memref<128x96xbf16, #tpu.memory_space<vmem>>, %arg8: memref<128x1xf32, #tpu.memory_space<vmem>>, %arg9: memref<1x8x128xbf16, #tpu.memory_space<vmem>>, %arg10: memref<8x14xbf16, #tpu.memory_space<vmem>>, %arg11: memref<32x10xbf16, #tpu.memory_space<vmem>>) attributes {dimension_semantics = [#tpu.dimension_semantics<parallel>], iteration_bounds = array<i64: 2>, scalar_prefetch = 0 : i64, scratch_operands = 2 : i64, tpu.core_type = #tpu.core_type<tc>, window_params = [{transform_indices = @transform_0, window_bounds = array<i64: 1, 8, 8>}, {transform_indices = @transform_1, window_bounds = array<i64: 1, 8, 8>}, {pipeline_mode = #tpu.pipeline_mode<synchronous>, transform_indices = @transform_2, window_bounds = array<i64: 32, 56>}, {pipeline_mode = #tpu.pipeline_mode<synchronous>, transform_indices = @transform_3, window_bounds = array<i64: 32, 1>}, {pipeline_mode = #tpu.pipeline_mode<synchronous>, transform_indices = @transform_4, window_bounds = array<i64: 32, 8>}, {pipeline_mode = #tpu.pipeline_mode<synchronous>, transform_indices = @transform_5, window_bounds = array<i64: 32, 1>}, {pipeline_mode = #tpu.pipeline_mode<synchronous>, transform_indices = @transform_6, window_bounds = array<i64: 128, 96>}, {pipeline_mode = #tpu.pipeline_mode<synchronous>, transform_indices = @transform_7, window_bounds = array<i64: 128, 1>}, {transform_indices = @transform_8, window_bounds = array<i64: 1, 8, 128>}]} {
    %cst = arith.constant 0.000000e+00 : bf16
    %0 = vector.broadcast %cst : bf16 to vector<8x3xbf16>
    %c0 = arith.constant 0 : index
    %c0_0 = arith.constant 0 : index
    %1 = vector.load %arg10[%c0, %c0_0] : memref<8x14xbf16, #tpu.memory_space<vmem>>, vector<8x3xbf16>
    tpu.vector_store %arg10[%c0, %c0_0], %0 {strides = array<i32>} : memref<8x14xbf16, #tpu.memory_space<vmem>>, vector<8x3xbf16>,
    %cst_1 = arith.constant 0.000000e+00 : bf16
    %2 = vector.broadcast %cst_1 : bf16 to vector<8x3xbf16>
    %c0_2 = arith.constant 0 : index
    %c11 = arith.constant 11 : index
    %3 = vector.load %arg10[%c0_2, %c11] : memref<8x14xbf16, #tpu.memory_space<vmem>>, vector<8x3xbf16>
    tpu.vector_store %arg10[%c0_2, %c11], %2 {strides = array<i32>} : memref<8x14xbf16, #tpu.memory_space<vmem>>, vector<8x3xbf16>,
    %cst_3 = arith.constant 0.000000e+00 : bf16
    %4 = vector.broadcast %cst_3 : bf16 to vector<32x1xbf16>
    %c0_4 = arith.constant 0 : index
    %c0_5 = arith.constant 0 : index
    %5 = vector.load %arg11[%c0_4, %c0_5] : memref<32x10xbf16, #tpu.memory_space<vmem>>, vector<32x1xbf16>
    tpu.vector_store %arg11[%c0_4, %c0_5], %4 {strides = array<i32>} : memref<32x10xbf16, #tpu.memory_space<vmem>>, vector<32x1xbf16>,
    %cst_6 = arith.constant 0.000000e+00 : bf16
    %6 = vector.broadcast %cst_6 : bf16 to vector<32x1xbf16>
    %c0_7 = arith.constant 0 : index
    %c9 = arith.constant 9 : index
    %7 = vector.load %arg11[%c0_7, %c9] : memref<32x10xbf16, #tpu.memory_space<vmem>>, vector<32x1xbf16>
    tpu.vector_store %arg11[%c0_7, %c9], %6 {strides = array<i32>} : memref<32x10xbf16, #tpu.memory_space<vmem>>, vector<32x1xbf16>,
    %c0_8 = arith.constant 0 : index
    %c0_9 = arith.constant 0 : index
    %c0_10 = arith.constant 0 : index
    %8 = vector.load %arg1[%c0_8, %c0_9, %c0_10] : memref<1x8x8xf32, #tpu.memory_space<vmem>>, vector<1x8x8xf32>
    %9 = vector.shape_cast %8 : vector<1x8x8xf32> to vector<8x8xf32>
    %10 = arith.truncf %9 : vector<8x8xf32> to vector<8x8xbf16>
    %c0_11 = arith.constant 0 : index
    %c3 = arith.constant 3 : index
    %11 = vector.load %arg10[%c0_11, %c3] : memref<8x14xbf16, #tpu.memory_space<vmem>>, vector<8x8xbf16>
    tpu.vector_store %arg10[%c0_11, %c3], %10 {strides = array<i32>} : memref<8x14xbf16, #tpu.memory_space<vmem>>, vector<8x8xbf16>,
    %c0_12 = arith.constant 0 : index
    %c0_13 = arith.constant 0 : index
    %12 = vector.load %arg10[%c0_12, %c0_13] : memref<8x14xbf16, #tpu.memory_space<vmem>>, vector<8x14xbf16>
    %c0_14 = arith.constant 0 : index
    %c0_15 = arith.constant 0 : index
    %13 = vector.load %arg3[%c0_14, %c0_15] : memref<32x56xbf16, #tpu.memory_space<vmem>>, vector<32x56xbf16>
    %14 = vector.extract_strided_slice %12 {offsets = [0, 0], sizes = [8, 8], strides = [1, 1]} : vector<8x14xbf16> to vector<8x8xbf16>
    %15 = vector.extract_strided_slice %12 {offsets = [0, 1], sizes = [8, 8], strides = [1, 1]} : vector<8x14xbf16> to vector<8x8xbf16>
    %16 = vector.extract_strided_slice %12 {offsets = [0, 2], sizes = [8, 8], strides = [1, 1]} : vector<8x14xbf16> to vector<8x8xbf16>
    %17 = vector.extract_strided_slice %12 {offsets = [0, 3], sizes = [8, 8], strides = [1, 1]} : vector<8x14xbf16> to vector<8x8xbf16>
    %18 = vector.extract_strided_slice %12 {offsets = [0, 4], sizes = [8, 8], strides = [1, 1]} : vector<8x14xbf16> to vector<8x8xbf16>
    %19 = vector.extract_strided_slice %12 {offsets = [0, 5], sizes = [8, 8], strides = [1, 1]} : vector<8x14xbf16> to vector<8x8xbf16>
    %20 = vector.extract_strided_slice %12 {offsets = [0, 6], sizes = [8, 8], strides = [1, 1]} : vector<8x14xbf16> to vector<8x8xbf16>
    %21 = tpu.concatenate %14, %15, %16, %17, %18, %19, %20 in 0 : vector<8x8xbf16>, vector<8x8xbf16>, vector<8x8xbf16>, vector<8x8xbf16>, vector<8x8xbf16>, vector<8x8xbf16>, vector<8x8xbf16> -> vector<56x8xbf16>
    %cst_16 = arith.constant dense<0.000000e+00> : vector<32x8xf32>
    %22 = tpu.matmul %13, %21, %cst_16 {dimension_numbers = #tpu.dot_dimension_numbers<[1], [0], [0], [1], [0, 0, 1, 1], [], []>} : vector<32x56xbf16>, vector<56x8xbf16>, vector<32x8xf32> -> vector<32x8xf32>
    %c0_17 = arith.constant 0 : index
    %c0_18 = arith.constant 0 : index
    %23 = vector.load %arg4[%c0_17, %c0_18] : memref<32x1xf32, #tpu.memory_space<vmem>>, vector<32x1xf32>
    %24 = vector.broadcast %23 : vector<32x1xf32> to vector<32x8xf32>
    %25 = arith.addf %22, %24 : vector<32x8xf32>
    %c0_19 = arith.constant 0 : index
    %c0_20 = arith.constant 0 : index
    %26 = vector.load %arg5[%c0_19, %c0_20] : memref<32x8xbf16, #tpu.memory_space<vmem>>, vector<32x8xbf16>
    %c0_21 = arith.constant 0 : index
    %c0_22 = arith.constant 0 : index
    %c0_23 = arith.constant 0 : index
    %27 = vector.load %arg2[%c0_21, %c0_22, %c0_23] : memref<1x8x8xf32, #tpu.memory_space<vmem>>, vector<1x8x8xf32>
    %28 = vector.shape_cast %27 : vector<1x8x8xf32> to vector<8x8xf32>
    %29 = arith.truncf %28 : vector<8x8xf32> to vector<8x8xbf16>
    %cst_24 = arith.constant dense<0.000000e+00> : vector<32x8xf32>
    %30 = tpu.matmul %26, %29, %cst_24 {dimension_numbers = #tpu.dot_dimension_numbers<[1], [0], [0], [1], [0, 0, 1, 1], [], []>} : vector<32x8xbf16>, vector<8x8xbf16>, vector<32x8xf32> -> vector<32x8xf32>
    %31 = arith.addf %25, %30 : vector<32x8xf32>
    %c0_25 = arith.constant 0 : index
    %c0_26 = arith.constant 0 : index
    %32 = vector.load %arg6[%c0_25, %c0_26] : memref<32x1xf32, #tpu.memory_space<vmem>>, vector<32x1xf32>
    %33 = vector.broadcast %32 : vector<32x1xf32> to vector<32x8xf32>
    %34 = arith.addf %31, %33 : vector<32x8xf32>
    %cst_27 = arith.constant 0.000000e+00 : f32
    %35 = vector.broadcast %cst_27 : f32 to vector<32x8xf32>
    %36 = arith.cmpf oge, %34, %35 : vector<32x8xf32>
    %cst_28 = arith.constant 1.000000e-01 : f32
    %37 = vector.broadcast %cst_28 : f32 to vector<32x8xf32>
    %38 = arith.mulf %37, %34 : vector<32x8xf32>
    %39 = arith.select %36, %34, %38 : vector<32x8xi1>, vector<32x8xf32>
    %40 = arith.truncf %39 : vector<32x8xf32> to vector<32x8xbf16>
    %c0_29 = arith.constant 0 : index
    %c1 = arith.constant 1 : index
    %41 = vector.load %arg11[%c0_29, %c1] : memref<32x10xbf16, #tpu.memory_space<vmem>>, vector<32x8xbf16>
    tpu.vector_store %arg11[%c0_29, %c1], %40 {strides = array<i32>} : memref<32x10xbf16, #tpu.memory_space<vmem>>, vector<32x8xbf16>,
    %c0_30 = arith.constant 0 : index
    %c0_31 = arith.constant 0 : index
    %42 = vector.load %arg11[%c0_30, %c0_31] : memref<32x10xbf16, #tpu.memory_space<vmem>>, vector<32x10xbf16>
    %c0_32 = arith.constant 0 : index
    %c0_33 = arith.constant 0 : index
    %43 = vector.load %arg7[%c0_32, %c0_33] : memref<128x96xbf16, #tpu.memory_space<vmem>>, vector<128x96xbf16>
    %44 = vector.extract_strided_slice %42 {offsets = [0, 2], sizes = [32, 8], strides = [1, 1]} : vector<32x10xbf16> to vector<32x8xbf16>
    %45 = vector.extract_strided_slice %42 {offsets = [0, 1], sizes = [32, 8], strides = [1, 1]} : vector<32x10xbf16> to vector<32x8xbf16>
    %46 = vector.extract_strided_slice %42 {offsets = [0, 0], sizes = [32, 8], strides = [1, 1]} : vector<32x10xbf16> to vector<32x8xbf16>
    %47 = tpu.concatenate %44, %45, %46 in 0 : vector<32x8xbf16>, vector<32x8xbf16>, vector<32x8xbf16> -> vector<96x8xbf16>
    %cst_34 = arith.constant dense<0.000000e+00> : vector<128x8xf32>
    %48 = tpu.matmul %43, %47, %cst_34 {dimension_numbers = #tpu.dot_dimension_numbers<[1], [0], [0], [1], [0, 0, 1, 1], [], []>} : vector<128x96xbf16>, vector<96x8xbf16>, vector<128x8xf32> -> vector<128x8xf32>
    %c0_35 = arith.constant 0 : index
    %c0_36 = arith.constant 0 : index
    %49 = vector.load %arg8[%c0_35, %c0_36] : memref<128x1xf32, #tpu.memory_space<vmem>>, vector<128x1xf32>
    %50 = vector.broadcast %49 : vector<128x1xf32> to vector<128x8xf32>
    %51 = arith.addf %48, %50 : vector<128x8xf32>
    %52 = tpu.iota {dimensions = array<i32: 0>} : vector<8x8xi32>
    %53 = tpu.iota {dimensions = array<i32: 1>} : vector<8x8xi32>
    %54 = arith.cmpi eq, %52, %53 : vector<8x8xi32>
    %55 = arith.extui %54 : vector<8x8xi1> to vector<8x8xi32>
    %56 = arith.sitofp %55 : vector<8x8xi32> to vector<8x8xf32>
    %57 = arith.truncf %56 : vector<8x8xf32> to vector<8x8xbf16>
    %58 = arith.truncf %51 : vector<128x8xf32> to vector<128x8xbf16>
    %cst_37 = arith.constant dense<0.000000e+00> : vector<8x128xf32>
    %59 = tpu.matmul %57, %58, %cst_37 {dimension_numbers = #tpu.dot_dimension_numbers<[1], [1], [0], [0], [0, 0, 1, 0], [], []>} : vector<8x8xbf16>, vector<128x8xbf16>, vector<8x128xf32> -> vector<8x128xf32>
    %60 = arith.truncf %59 : vector<8x128xf32> to vector<8x128xbf16>
    %c0_38 = arith.constant 0 : index
    %c0_39 = arith.constant 0 : index
    %c0_40 = arith.constant 0 : index
    %61 = vector.load %arg9[%c0_38, %c0_39, %c0_40] : memref<1x8x128xbf16, #tpu.memory_space<vmem>>, vector<1x8x128xbf16>
    %62 = vector.shape_cast %61 : vector<1x8x128xbf16> to vector<8x128xbf16>
    %63 = vector.shape_cast %60 : vector<8x128xbf16> to vector<1x8x128xbf16>
    tpu.vector_store %arg9[%c0_38, %c0_39, %c0_40], %63 {strides = array<i32>} : memref<1x8x128xbf16, #tpu.memory_space<vmem>>, vector<1x8x128xbf16>,
    return
  }
  func.func @transform_0(%arg0: i32) -> (i32, i32, i32) {
    %c0_i32 = arith.constant 0 : i32
    %c0_i32_0 = arith.constant 0 : i32
    %c0_i32_1 = arith.constant 0 : i32
    return %arg0, %c0_i32, %c0_i32_0 : i32, i32, i32
  }
  func.func @transform_1(%arg0: i32) -> (i32, i32, i32) {
    %c0_i32 = arith.constant 0 : i32
    %c0_i32_0 = arith.constant 0 : i32
    %c0_i32_1 = arith.constant 0 : i32
    return %arg0, %c0_i32, %c0_i32_0 : i32, i32, i32
  }
  func.func @transform_2(%arg0: i32) -> (i32, i32) {
    %c0_i32 = arith.constant 0 : i32
    %c0_i32_0 = arith.constant 0 : i32
    %c0_i32_1 = arith.constant 0 : i32
    return %c0_i32, %c0_i32_0 : i32, i32
  }
  func.func @transform_3(%arg0: i32) -> (i32, i32) {
    %c0_i32 = arith.constant 0 : i32
    %c0_i32_0 = arith.constant 0 : i32
    %c0_i32_1 = arith.constant 0 : i32
    return %c0_i32, %c0_i32_0 : i32, i32
  }
  func.func @transform_4(%arg0: i32) -> (i32, i32) {
    %c0_i32 = arith.constant 0 : i32
    %c0_i32_0 = arith.constant 0 : i32
    %c0_i32_1 = arith.constant 0 : i32
    return %c0_i32, %c0_i32_0 : i32, i32
  }
  func.func @transform_5(%arg0: i32) -> (i32, i32) {
    %c0_i32 = arith.constant 0 : i32
    %c0_i32_0 = arith.constant 0 : i32
    %c0_i32_1 = arith.constant 0 : i32
    return %c0_i32, %c0_i32_0 : i32, i32
  }
  func.func @transform_6(%arg0: i32) -> (i32, i32) {
    %c0_i32 = arith.constant 0 : i32
    %c0_i32_0 = arith.constant 0 : i32
    %c0_i32_1 = arith.constant 0 : i32
    return %c0_i32, %c0_i32_0 : i32, i32
  }
  func.func @transform_7(%arg0: i32) -> (i32, i32) {
    %c0_i32 = arith.constant 0 : i32
    %c0_i32_0 = arith.constant 0 : i32
    %c0_i32_1 = arith.constant 0 : i32
    return %c0_i32, %c0_i32_0 : i32, i32
  }
  func.func @transform_8(%arg0: i32) -> (i32, i32, i32) {
    %c0_i32 = arith.constant 0 : i32
    %c0_i32_0 = arith.constant 0 : i32
    %c0_i32_1 = arith.constant 0 : i32
    return %arg0, %c0_i32, %c0_i32_0 : i32, i32, i32
  }
}

module attributes {stable_mosaic.version = 11 : i64} {
  func.func @_stage_up_kernel(%arg0: i32, %arg1: memref<1x64x16xbf16, #tpu.memory_space<vmem>>, %arg2: memref<16x48xbf16, #tpu.memory_space<vmem>>, %arg3: memref<16x1xf32, #tpu.memory_space<vmem>>, %arg4: memref<16x48xbf16, #tpu.memory_space<vmem>>, %arg5: memref<16x1xf32, #tpu.memory_space<vmem>>, %arg6: memref<16x48xbf16, #tpu.memory_space<vmem>>, %arg7: memref<16x1xf32, #tpu.memory_space<vmem>>, %arg8: memref<16x48xbf16, #tpu.memory_space<vmem>>, %arg9: memref<16x1xf32, #tpu.memory_space<vmem>>, %arg10: memref<16x48xbf16, #tpu.memory_space<vmem>>, %arg11: memref<16x1xf32, #tpu.memory_space<vmem>>, %arg12: memref<16x48xbf16, #tpu.memory_space<vmem>>, %arg13: memref<16x1xf32, #tpu.memory_space<vmem>>, %arg14: memref<16x112xbf16, #tpu.memory_space<vmem>>, %arg15: memref<16x1xf32, #tpu.memory_space<vmem>>, %arg16: memref<16x112xbf16, #tpu.memory_space<vmem>>, %arg17: memref<16x1xf32, #tpu.memory_space<vmem>>, %arg18: memref<16x112xbf16, #tpu.memory_space<vmem>>, %arg19: memref<16x1xf32, #tpu.memory_space<vmem>>, %arg20: memref<16x112xbf16, #tpu.memory_space<vmem>>, %arg21: memref<16x1xf32, #tpu.memory_space<vmem>>, %arg22: memref<16x112xbf16, #tpu.memory_space<vmem>>, %arg23: memref<16x1xf32, #tpu.memory_space<vmem>>, %arg24: memref<16x112xbf16, #tpu.memory_space<vmem>>, %arg25: memref<16x1xf32, #tpu.memory_space<vmem>>, %arg26: memref<16x176xbf16, #tpu.memory_space<vmem>>, %arg27: memref<16x1xf32, #tpu.memory_space<vmem>>, %arg28: memref<16x176xbf16, #tpu.memory_space<vmem>>, %arg29: memref<16x1xf32, #tpu.memory_space<vmem>>, %arg30: memref<16x176xbf16, #tpu.memory_space<vmem>>, %arg31: memref<16x1xf32, #tpu.memory_space<vmem>>, %arg32: memref<16x176xbf16, #tpu.memory_space<vmem>>, %arg33: memref<16x1xf32, #tpu.memory_space<vmem>>, %arg34: memref<16x176xbf16, #tpu.memory_space<vmem>>, %arg35: memref<16x1xf32, #tpu.memory_space<vmem>>, %arg36: memref<16x176xbf16, #tpu.memory_space<vmem>>, %arg37: memref<16x1xf32, #tpu.memory_space<vmem>>, %arg38: memref<16x48xbf16, #tpu.memory_space<vmem>>, %arg39: memref<16x1xf32, #tpu.memory_space<vmem>>, %arg40: memref<1x64x16xbf16, #tpu.memory_space<vmem>>, %arg41: memref<16x114xbf16, #tpu.memory_space<vmem>>) attributes {dimension_semantics = [#tpu.dimension_semantics<parallel>], iteration_bounds = array<i64: 2>, scalar_prefetch = 0 : i64, scratch_operands = 1 : i64, tpu.core_type = #tpu.core_type<tc>, window_params = [{transform_indices = @transform_0, window_bounds = array<i64: 1, 64, 16>}, {pipeline_mode = #tpu.pipeline_mode<synchronous>, transform_indices = @transform_1, window_bounds = array<i64: 16, 48>}, {pipeline_mode = #tpu.pipeline_mode<synchronous>, transform_indices = @transform_2, window_bounds = array<i64: 16, 1>}, {pipeline_mode = #tpu.pipeline_mode<synchronous>, transform_indices = @transform_3, window_bounds = array<i64: 16, 48>}, {pipeline_mode = #tpu.pipeline_mode<synchronous>, transform_indices = @transform_4, window_bounds = array<i64: 16, 1>}, {pipeline_mode = #tpu.pipeline_mode<synchronous>, transform_indices = @transform_5, window_bounds = array<i64: 16, 48>}, {pipeline_mode = #tpu.pipeline_mode<synchronous>, transform_indices = @transform_6, window_bounds = array<i64: 16, 1>}, {pipeline_mode = #tpu.pipeline_mode<synchronous>, transform_indices = @transform_7, window_bounds = array<i64: 16, 48>}, {pipeline_mode = #tpu.pipeline_mode<synchronous>, transform_indices = @transform_8, window_bounds = array<i64: 16, 1>}, {pipeline_mode = #tpu.pipeline_mode<synchronous>, transform_indices = @transform_9, window_bounds = array<i64: 16, 48>}, {pipeline_mode = #tpu.pipeline_mode<synchronous>, transform_indices = @transform_10, window_bounds = array<i64: 16, 1>}, {pipeline_mode = #tpu.pipeline_mode<synchronous>, transform_indices = @transform_11, window_bounds = array<i64: 16, 48>}, {pipeline_mode = #tpu.pipeline_mode<synchronous>, transform_indices = @transform_12, window_bounds = array<i64: 16, 1>}, {pipeline_mode = #tpu.pipeline_mode<synchronous>, transform_indices = @transform_13, window_bounds = array<i64: 16, 112>}, {pipeline_mode = #tpu.pipeline_mode<synchronous>, transform_indices = @transform_14, window_bounds = array<i64: 16, 1>}, {pipeline_mode = #tpu.pipeline_mode<synchronous>, transform_indices = @transform_15, window_bounds = array<i64: 16, 112>}, {pipeline_mode = #tpu.pipeline_mode<synchronous>, transform_indices = @transform_16, window_bounds = array<i64: 16, 1>}, {pipeline_mode = #tpu.pipeline_mode<synchronous>, transform_indices = @transform_17, window_bounds = array<i64: 16, 112>}, {pipeline_mode = #tpu.pipeline_mode<synchronous>, transform_indices = @transform_18, window_bounds = array<i64: 16, 1>}, {pipeline_mode = #tpu.pipeline_mode<synchronous>, transform_indices = @transform_19, window_bounds = array<i64: 16, 112>}, {pipeline_mode = #tpu.pipeline_mode<synchronous>, transform_indices = @transform_20, window_bounds = array<i64: 16, 1>}, {pipeline_mode = #tpu.pipeline_mode<synchronous>, transform_indices = @transform_21, window_bounds = array<i64: 16, 112>}, {pipeline_mode = #tpu.pipeline_mode<synchronous>, transform_indices = @transform_22, window_bounds = array<i64: 16, 1>}, {pipeline_mode = #tpu.pipeline_mode<synchronous>, transform_indices = @transform_23, window_bounds = array<i64: 16, 112>}, {pipeline_mode = #tpu.pipeline_mode<synchronous>, transform_indices = @transform_24, window_bounds = array<i64: 16, 1>}, {pipeline_mode = #tpu.pipeline_mode<synchronous>, transform_indices = @transform_25, window_bounds = array<i64: 16, 176>}, {pipeline_mode = #tpu.pipeline_mode<synchronous>, transform_indices = @transform_26, window_bounds = array<i64: 16, 1>}, {pipeline_mode = #tpu.pipeline_mode<synchronous>, transform_indices = @transform_27, window_bounds = array<i64: 16, 176>}, {pipeline_mode = #tpu.pipeline_mode<synchronous>, transform_indices = @transform_28, window_bounds = array<i64: 16, 1>}, {pipeline_mode = #tpu.pipeline_mode<synchronous>, transform_indices = @transform_29, window_bounds = array<i64: 16, 176>}, {pipeline_mode = #tpu.pipeline_mode<synchronous>, transform_indices = @transform_30, window_bounds = array<i64: 16, 1>}, {pipeline_mode = #tpu.pipeline_mode<synchronous>, transform_indices = @transform_31, window_bounds = array<i64: 16, 176>}, {pipeline_mode = #tpu.pipeline_mode<synchronous>, transform_indices = @transform_32, window_bounds = array<i64: 16, 1>}, {pipeline_mode = #tpu.pipeline_mode<synchronous>, transform_indices = @transform_33, window_bounds = array<i64: 16, 176>}, {pipeline_mode = #tpu.pipeline_mode<synchronous>, transform_indices = @transform_34, window_bounds = array<i64: 16, 1>}, {pipeline_mode = #tpu.pipeline_mode<synchronous>, transform_indices = @transform_35, window_bounds = array<i64: 16, 176>}, {pipeline_mode = #tpu.pipeline_mode<synchronous>, transform_indices = @transform_36, window_bounds = array<i64: 16, 1>}, {pipeline_mode = #tpu.pipeline_mode<synchronous>, transform_indices = @transform_37, window_bounds = array<i64: 16, 48>}, {pipeline_mode = #tpu.pipeline_mode<synchronous>, transform_indices = @transform_38, window_bounds = array<i64: 16, 1>}, {transform_indices = @transform_39, window_bounds = array<i64: 1, 64, 16>}]} {
    %cst = arith.constant 0.000000e+00 : bf16
    %0 = vector.broadcast %cst : bf16 to vector<16x25xbf16>
    %c0 = arith.constant 0 : index
    %c0_0 = arith.constant 0 : index
    %1 = vector.load %arg41[%c0, %c0_0] : memref<16x114xbf16, #tpu.memory_space<vmem>>, vector<16x25xbf16>
    tpu.vector_store %arg41[%c0, %c0_0], %0 {strides = array<i32>} : memref<16x114xbf16, #tpu.memory_space<vmem>>, vector<16x25xbf16>,
    %cst_1 = arith.constant 0.000000e+00 : bf16
    %2 = vector.broadcast %cst_1 : bf16 to vector<16x25xbf16>
    %c0_2 = arith.constant 0 : index
    %c89 = arith.constant 89 : index
    %3 = vector.load %arg41[%c0_2, %c89] : memref<16x114xbf16, #tpu.memory_space<vmem>>, vector<16x25xbf16>
    tpu.vector_store %arg41[%c0_2, %c89], %2 {strides = array<i32>} : memref<16x114xbf16, #tpu.memory_space<vmem>>, vector<16x25xbf16>,
    %c0_3 = arith.constant 0 : index
    %c0_4 = arith.constant 0 : index
    %c0_5 = arith.constant 0 : index
    %4 = vector.load %arg1[%c0_3, %c0_4, %c0_5] : memref<1x64x16xbf16, #tpu.memory_space<vmem>>, vector<1x64x16xbf16>
    %5 = vector.shape_cast %4 : vector<1x64x16xbf16> to vector<64x16xbf16>
    %6 = tpu.iota {dimensions = array<i32: 0>} : vector<16x16xi32>
    %7 = tpu.iota {dimensions = array<i32: 1>} : vector<16x16xi32>
    %8 = arith.cmpi eq, %6, %7 : vector<16x16xi32>
    %9 = arith.extui %8 : vector<16x16xi1> to vector<16x16xi32>
    %10 = arith.sitofp %9 : vector<16x16xi32> to vector<16x16xf32>
    %11 = arith.truncf %10 : vector<16x16xf32> to vector<16x16xbf16>
    %cst_6 = arith.constant dense<0.000000e+00> : vector<16x64xf32>
    %12 = tpu.matmul %11, %5, %cst_6 {dimension_numbers = #tpu.dot_dimension_numbers<[1], [1], [0], [0], [0, 0, 1, 0], [], []>} : vector<16x16xbf16>, vector<64x16xbf16>, vector<16x64xf32> -> vector<16x64xf32>
    %cst_7 = arith.constant 0.000000e+00 : f32
    %13 = vector.broadcast %cst_7 : f32 to vector<16x64xf32>
    %14 = arith.cmpf oge, %12, %13 : vector<16x64xf32>
    %cst_8 = arith.constant 1.000000e-01 : f32
    %15 = vector.broadcast %cst_8 : f32 to vector<16x64xf32>
    %16 = arith.mulf %15, %12 : vector<16x64xf32>
    %17 = arith.select %14, %12, %16 : vector<16x64xi1>, vector<16x64xf32>
    %18 = arith.truncf %17 : vector<16x64xf32> to vector<16x64xbf16>
    %c0_9 = arith.constant 0 : index
    %c25 = arith.constant 25 : index
    %19 = vector.load %arg41[%c0_9, %c25] : memref<16x114xbf16, #tpu.memory_space<vmem>>, vector<16x64xbf16>
    tpu.vector_store %arg41[%c0_9, %c25], %18 {strides = array<i32>} : memref<16x114xbf16, #tpu.memory_space<vmem>>, vector<16x64xbf16>,
    %c0_10 = arith.constant 0 : index
    %c0_11 = arith.constant 0 : index
    %20 = vector.load %arg41[%c0_10, %c0_11] : memref<16x114xbf16, #tpu.memory_space<vmem>>, vector<16x114xbf16>
    %c0_12 = arith.constant 0 : index
    %c0_13 = arith.constant 0 : index
    %21 = vector.load %arg2[%c0_12, %c0_13] : memref<16x48xbf16, #tpu.memory_space<vmem>>, vector<16x48xbf16>
    %22 = vector.extract_strided_slice %20 {offsets = [0, 24], sizes = [16, 64], strides = [1, 1]} : vector<16x114xbf16> to vector<16x64xbf16>
    %23 = vector.extract_strided_slice %20 {offsets = [0, 25], sizes = [16, 64], strides = [1, 1]} : vector<16x114xbf16> to vector<16x64xbf16>
    %24 = vector.extract_strided_slice %20 {offsets = [0, 26], sizes = [16, 64], strides = [1, 1]} : vector<16x114xbf16> to vector<16x64xbf16>
    %25 = tpu.concatenate %22, %23, %24 in 0 : vector<16x64xbf16>, vector<16x64xbf16>, vector<16x64xbf16> -> vector<48x64xbf16>
    %cst_14 = arith.constant dense<0.000000e+00> : vector<16x64xf32>
    %26 = tpu.matmul %21, %25, %cst_14 {dimension_numbers = #tpu.dot_dimension_numbers<[1], [0], [0], [1], [0, 0, 1, 1], [], []>} : vector<16x48xbf16>, vector<48x64xbf16>, vector<16x64xf32> -> vector<16x64xf32>
    %c0_15 = arith.constant 0 : index
    %c0_16 = arith.constant 0 : index
    %27 = vector.load %arg3[%c0_15, %c0_16] : memref<16x1xf32, #tpu.memory_space<vmem>>, vector<16x1xf32>
    %28 = vector.broadcast %27 : vector<16x1xf32> to vector<16x64xf32>
    %29 = arith.addf %26, %28 : vector<16x64xf32>
    %cst_17 = arith.constant 0.000000e+00 : f32
    %30 = vector.broadcast %cst_17 : f32 to vector<16x64xf32>
    %31 = arith.cmpf oge, %29, %30 : vector<16x64xf32>
    %cst_18 = arith.constant 1.000000e-01 : f32
    %32 = vector.broadcast %cst_18 : f32 to vector<16x64xf32>
    %33 = arith.mulf %32, %29 : vector<16x64xf32>
    %34 = arith.select %31, %29, %33 : vector<16x64xi1>, vector<16x64xf32>
    %35 = arith.truncf %34 : vector<16x64xf32> to vector<16x64xbf16>
    %c0_19 = arith.constant 0 : index
    %c25_20 = arith.constant 25 : index
    %36 = vector.load %arg41[%c0_19, %c25_20] : memref<16x114xbf16, #tpu.memory_space<vmem>>, vector<16x64xbf16>
    tpu.vector_store %arg41[%c0_19, %c25_20], %35 {strides = array<i32>} : memref<16x114xbf16, #tpu.memory_space<vmem>>, vector<16x64xbf16>,
    %c0_21 = arith.constant 0 : index
    %c0_22 = arith.constant 0 : index
    %37 = vector.load %arg41[%c0_21, %c0_22] : memref<16x114xbf16, #tpu.memory_space<vmem>>, vector<16x114xbf16>
    %c0_23 = arith.constant 0 : index
    %c0_24 = arith.constant 0 : index
    %38 = vector.load %arg4[%c0_23, %c0_24] : memref<16x48xbf16, #tpu.memory_space<vmem>>, vector<16x48xbf16>
    %39 = vector.extract_strided_slice %37 {offsets = [0, 24], sizes = [16, 64], strides = [1, 1]} : vector<16x114xbf16> to vector<16x64xbf16>
    %40 = vector.extract_strided_slice %37 {offsets = [0, 25], sizes = [16, 64], strides = [1, 1]} : vector<16x114xbf16> to vector<16x64xbf16>
    %41 = vector.extract_strided_slice %37 {offsets = [0, 26], sizes = [16, 64], strides = [1, 1]} : vector<16x114xbf16> to vector<16x64xbf16>
    %42 = tpu.concatenate %39, %40, %41 in 0 : vector<16x64xbf16>, vector<16x64xbf16>, vector<16x64xbf16> -> vector<48x64xbf16>
    %cst_25 = arith.constant dense<0.000000e+00> : vector<16x64xf32>
    %43 = tpu.matmul %38, %42, %cst_25 {dimension_numbers = #tpu.dot_dimension_numbers<[1], [0], [0], [1], [0, 0, 1, 1], [], []>} : vector<16x48xbf16>, vector<48x64xbf16>, vector<16x64xf32> -> vector<16x64xf32>
    %c0_26 = arith.constant 0 : index
    %c0_27 = arith.constant 0 : index
    %44 = vector.load %arg5[%c0_26, %c0_27] : memref<16x1xf32, #tpu.memory_space<vmem>>, vector<16x1xf32>
    %45 = vector.broadcast %44 : vector<16x1xf32> to vector<16x64xf32>
    %46 = arith.addf %43, %45 : vector<16x64xf32>
    %47 = arith.addf %12, %46 : vector<16x64xf32>
    %cst_28 = arith.constant 0.000000e+00 : f32
    %48 = vector.broadcast %cst_28 : f32 to vector<16x64xf32>
    %49 = arith.cmpf oge, %47, %48 : vector<16x64xf32>
    %cst_29 = arith.constant 1.000000e-01 : f32
    %50 = vector.broadcast %cst_29 : f32 to vector<16x64xf32>
    %51 = arith.mulf %50, %47 : vector<16x64xf32>
    %52 = arith.select %49, %47, %51 : vector<16x64xi1>, vector<16x64xf32>
    %53 = arith.truncf %52 : vector<16x64xf32> to vector<16x64xbf16>
    %c0_30 = arith.constant 0 : index
    %c25_31 = arith.constant 25 : index
    %54 = vector.load %arg41[%c0_30, %c25_31] : memref<16x114xbf16, #tpu.memory_space<vmem>>, vector<16x64xbf16>
    tpu.vector_store %arg41[%c0_30, %c25_31], %53 {strides = array<i32>} : memref<16x114xbf16, #tpu.memory_space<vmem>>, vector<16x64xbf16>,
    %c0_32 = arith.constant 0 : index
    %c0_33 = arith.constant 0 : index
    %55 = vector.load %arg41[%c0_32, %c0_33] : memref<16x114xbf16, #tpu.memory_space<vmem>>, vector<16x114xbf16>
    %c0_34 = arith.constant 0 : index
    %c0_35 = arith.constant 0 : index
    %56 = vector.load %arg6[%c0_34, %c0_35] : memref<16x48xbf16, #tpu.memory_space<vmem>>, vector<16x48xbf16>
    %57 = vector.extract_strided_slice %55 {offsets = [0, 22], sizes = [16, 64], strides = [1, 1]} : vector<16x114xbf16> to vector<16x64xbf16>
    %58 = vector.extract_strided_slice %55 {offsets = [0, 25], sizes = [16, 64], strides = [1, 1]} : vector<16x114xbf16> to vector<16x64xbf16>
    %59 = vector.extract_strided_slice %55 {offsets = [0, 28], sizes = [16, 64], strides = [1, 1]} : vector<16x114xbf16> to vector<16x64xbf16>
    %60 = tpu.concatenate %57, %58, %59 in 0 : vector<16x64xbf16>, vector<16x64xbf16>, vector<16x64xbf16> -> vector<48x64xbf16>
    %cst_36 = arith.constant dense<0.000000e+00> : vector<16x64xf32>
    %61 = tpu.matmul %56, %60, %cst_36 {dimension_numbers = #tpu.dot_dimension_numbers<[1], [0], [0], [1], [0, 0, 1, 1], [], []>} : vector<16x48xbf16>, vector<48x64xbf16>, vector<16x64xf32> -> vector<16x64xf32>
    %c0_37 = arith.constant 0 : index
    %c0_38 = arith.constant 0 : index
    %62 = vector.load %arg7[%c0_37, %c0_38] : memref<16x1xf32, #tpu.memory_space<vmem>>, vector<16x1xf32>
    %63 = vector.broadcast %62 : vector<16x1xf32> to vector<16x64xf32>
    %64 = arith.addf %61, %63 : vector<16x64xf32>
    %cst_39 = arith.constant 0.000000e+00 : f32
    %65 = vector.broadcast %cst_39 : f32 to vector<16x64xf32>
    %66 = arith.cmpf oge, %64, %65 : vector<16x64xf32>
    %cst_40 = arith.constant 1.000000e-01 : f32
    %67 = vector.broadcast %cst_40 : f32 to vector<16x64xf32>
    %68 = arith.mulf %67, %64 : vector<16x64xf32>
    %69 = arith.select %66, %64, %68 : vector<16x64xi1>, vector<16x64xf32>
    %70 = arith.truncf %69 : vector<16x64xf32> to vector<16x64xbf16>
    %c0_41 = arith.constant 0 : index
    %c25_42 = arith.constant 25 : index
    %71 = vector.load %arg41[%c0_41, %c25_42] : memref<16x114xbf16, #tpu.memory_space<vmem>>, vector<16x64xbf16>
    tpu.vector_store %arg41[%c0_41, %c25_42], %70 {strides = array<i32>} : memref<16x114xbf16, #tpu.memory_space<vmem>>, vector<16x64xbf16>,
    %c0_43 = arith.constant 0 : index
    %c0_44 = arith.constant 0 : index
    %72 = vector.load %arg41[%c0_43, %c0_44] : memref<16x114xbf16, #tpu.memory_space<vmem>>, vector<16x114xbf16>
    %c0_45 = arith.constant 0 : index
    %c0_46 = arith.constant 0 : index
    %73 = vector.load %arg8[%c0_45, %c0_46] : memref<16x48xbf16, #tpu.memory_space<vmem>>, vector<16x48xbf16>
    %74 = vector.extract_strided_slice %72 {offsets = [0, 24], sizes = [16, 64], strides = [1, 1]} : vector<16x114xbf16> to vector<16x64xbf16>
    %75 = vector.extract_strided_slice %72 {offsets = [0, 25], sizes = [16, 64], strides = [1, 1]} : vector<16x114xbf16> to vector<16x64xbf16>
    %76 = vector.extract_strided_slice %72 {offsets = [0, 26], sizes = [16, 64], strides = [1, 1]} : vector<16x114xbf16> to vector<16x64xbf16>
    %77 = tpu.concatenate %74, %75, %76 in 0 : vector<16x64xbf16>, vector<16x64xbf16>, vector<16x64xbf16> -> vector<48x64xbf16>
    %cst_47 = arith.constant dense<0.000000e+00> : vector<16x64xf32>
    %78 = tpu.matmul %73, %77, %cst_47 {dimension_numbers = #tpu.dot_dimension_numbers<[1], [0], [0], [1], [0, 0, 1, 1], [], []>} : vector<16x48xbf16>, vector<48x64xbf16>, vector<16x64xf32> -> vector<16x64xf32>
    %c0_48 = arith.constant 0 : index
    %c0_49 = arith.constant 0 : index
    %79 = vector.load %arg9[%c0_48, %c0_49] : memref<16x1xf32, #tpu.memory_space<vmem>>, vector<16x1xf32>
    %80 = vector.broadcast %79 : vector<16x1xf32> to vector<16x64xf32>
    %81 = arith.addf %78, %80 : vector<16x64xf32>
    %82 = arith.addf %47, %81 : vector<16x64xf32>
    %cst_50 = arith.constant 0.000000e+00 : f32
    %83 = vector.broadcast %cst_50 : f32 to vector<16x64xf32>
    %84 = arith.cmpf oge, %82, %83 : vector<16x64xf32>
    %cst_51 = arith.constant 1.000000e-01 : f32
    %85 = vector.broadcast %cst_51 : f32 to vector<16x64xf32>
    %86 = arith.mulf %85, %82 : vector<16x64xf32>
    %87 = arith.select %84, %82, %86 : vector<16x64xi1>, vector<16x64xf32>
    %88 = arith.truncf %87 : vector<16x64xf32> to vector<16x64xbf16>
    %c0_52 = arith.constant 0 : index
    %c25_53 = arith.constant 25 : index
    %89 = vector.load %arg41[%c0_52, %c25_53] : memref<16x114xbf16, #tpu.memory_space<vmem>>, vector<16x64xbf16>
    tpu.vector_store %arg41[%c0_52, %c25_53], %88 {strides = array<i32>} : memref<16x114xbf16, #tpu.memory_space<vmem>>, vector<16x64xbf16>,
    %c0_54 = arith.constant 0 : index
    %c0_55 = arith.constant 0 : index
    %90 = vector.load %arg41[%c0_54, %c0_55] : memref<16x114xbf16, #tpu.memory_space<vmem>>, vector<16x114xbf16>
    %c0_56 = arith.constant 0 : index
    %c0_57 = arith.constant 0 : index
    %91 = vector.load %arg10[%c0_56, %c0_57] : memref<16x48xbf16, #tpu.memory_space<vmem>>, vector<16x48xbf16>
    %92 = vector.extract_strided_slice %90 {offsets = [0, 20], sizes = [16, 64], strides = [1, 1]} : vector<16x114xbf16> to vector<16x64xbf16>
    %93 = vector.extract_strided_slice %90 {offsets = [0, 25], sizes = [16, 64], strides = [1, 1]} : vector<16x114xbf16> to vector<16x64xbf16>
    %94 = vector.extract_strided_slice %90 {offsets = [0, 30], sizes = [16, 64], strides = [1, 1]} : vector<16x114xbf16> to vector<16x64xbf16>
    %95 = tpu.concatenate %92, %93, %94 in 0 : vector<16x64xbf16>, vector<16x64xbf16>, vector<16x64xbf16> -> vector<48x64xbf16>
    %cst_58 = arith.constant dense<0.000000e+00> : vector<16x64xf32>
    %96 = tpu.matmul %91, %95, %cst_58 {dimension_numbers = #tpu.dot_dimension_numbers<[1], [0], [0], [1], [0, 0, 1, 1], [], []>} : vector<16x48xbf16>, vector<48x64xbf16>, vector<16x64xf32> -> vector<16x64xf32>
    %c0_59 = arith.constant 0 : index
    %c0_60 = arith.constant 0 : index
    %97 = vector.load %arg11[%c0_59, %c0_60] : memref<16x1xf32, #tpu.memory_space<vmem>>, vector<16x1xf32>
    %98 = vector.broadcast %97 : vector<16x1xf32> to vector<16x64xf32>
    %99 = arith.addf %96, %98 : vector<16x64xf32>
    %cst_61 = arith.constant 0.000000e+00 : f32
    %100 = vector.broadcast %cst_61 : f32 to vector<16x64xf32>
    %101 = arith.cmpf oge, %99, %100 : vector<16x64xf32>
    %cst_62 = arith.constant 1.000000e-01 : f32
    %102 = vector.broadcast %cst_62 : f32 to vector<16x64xf32>
    %103 = arith.mulf %102, %99 : vector<16x64xf32>
    %104 = arith.select %101, %99, %103 : vector<16x64xi1>, vector<16x64xf32>
    %105 = arith.truncf %104 : vector<16x64xf32> to vector<16x64xbf16>
    %c0_63 = arith.constant 0 : index
    %c25_64 = arith.constant 25 : index
    %106 = vector.load %arg41[%c0_63, %c25_64] : memref<16x114xbf16, #tpu.memory_space<vmem>>, vector<16x64xbf16>
    tpu.vector_store %arg41[%c0_63, %c25_64], %105 {strides = array<i32>} : memref<16x114xbf16, #tpu.memory_space<vmem>>, vector<16x64xbf16>,
    %c0_65 = arith.constant 0 : index
    %c0_66 = arith.constant 0 : index
    %107 = vector.load %arg41[%c0_65, %c0_66] : memref<16x114xbf16, #tpu.memory_space<vmem>>, vector<16x114xbf16>
    %c0_67 = arith.constant 0 : index
    %c0_68 = arith.constant 0 : index
    %108 = vector.load %arg12[%c0_67, %c0_68] : memref<16x48xbf16, #tpu.memory_space<vmem>>, vector<16x48xbf16>
    %109 = vector.extract_strided_slice %107 {offsets = [0, 24], sizes = [16, 64], strides = [1, 1]} : vector<16x114xbf16> to vector<16x64xbf16>
    %110 = vector.extract_strided_slice %107 {offsets = [0, 25], sizes = [16, 64], strides = [1, 1]} : vector<16x114xbf16> to vector<16x64xbf16>
    %111 = vector.extract_strided_slice %107 {offsets = [0, 26], sizes = [16, 64], strides = [1, 1]} : vector<16x114xbf16> to vector<16x64xbf16>
    %112 = tpu.concatenate %109, %110, %111 in 0 : vector<16x64xbf16>, vector<16x64xbf16>, vector<16x64xbf16> -> vector<48x64xbf16>
    %cst_69 = arith.constant dense<0.000000e+00> : vector<16x64xf32>
    %113 = tpu.matmul %108, %112, %cst_69 {dimension_numbers = #tpu.dot_dimension_numbers<[1], [0], [0], [1], [0, 0, 1, 1], [], []>} : vector<16x48xbf16>, vector<48x64xbf16>, vector<16x64xf32> -> vector<16x64xf32>
    %c0_70 = arith.constant 0 : index
    %c0_71 = arith.constant 0 : index
    %114 = vector.load %arg13[%c0_70, %c0_71] : memref<16x1xf32, #tpu.memory_space<vmem>>, vector<16x1xf32>
    %115 = vector.broadcast %114 : vector<16x1xf32> to vector<16x64xf32>
    %116 = arith.addf %113, %115 : vector<16x64xf32>
    %117 = arith.addf %82, %116 : vector<16x64xf32>
    %cst_72 = arith.constant 0.000000e+00 : f32
    %118 = vector.broadcast %cst_72 : f32 to vector<16x64xf32>
    %119 = arith.cmpf oge, %12, %118 : vector<16x64xf32>
    %cst_73 = arith.constant 1.000000e-01 : f32
    %120 = vector.broadcast %cst_73 : f32 to vector<16x64xf32>
    %121 = arith.mulf %120, %12 : vector<16x64xf32>
    %122 = arith.select %119, %12, %121 : vector<16x64xi1>, vector<16x64xf32>
    %123 = arith.truncf %122 : vector<16x64xf32> to vector<16x64xbf16>
    %c0_74 = arith.constant 0 : index
    %c25_75 = arith.constant 25 : index
    %124 = vector.load %arg41[%c0_74, %c25_75] : memref<16x114xbf16, #tpu.memory_space<vmem>>, vector<16x64xbf16>
    tpu.vector_store %arg41[%c0_74, %c25_75], %123 {strides = array<i32>} : memref<16x114xbf16, #tpu.memory_space<vmem>>, vector<16x64xbf16>,
    %c0_76 = arith.constant 0 : index
    %c0_77 = arith.constant 0 : index
    %125 = vector.load %arg41[%c0_76, %c0_77] : memref<16x114xbf16, #tpu.memory_space<vmem>>, vector<16x114xbf16>
    %c0_78 = arith.constant 0 : index
    %c0_79 = arith.constant 0 : index
    %126 = vector.load %arg14[%c0_78, %c0_79] : memref<16x112xbf16, #tpu.memory_space<vmem>>, vector<16x112xbf16>
    %127 = vector.extract_strided_slice %125 {offsets = [0, 22], sizes = [16, 64], strides = [1, 1]} : vector<16x114xbf16> to vector<16x64xbf16>
    %128 = vector.extract_strided_slice %125 {offsets = [0, 23], sizes = [16, 64], strides = [1, 1]} : vector<16x114xbf16> to vector<16x64xbf16>
    %129 = vector.extract_strided_slice %125 {offsets = [0, 24], sizes = [16, 64], strides = [1, 1]} : vector<16x114xbf16> to vector<16x64xbf16>
    %130 = vector.extract_strided_slice %125 {offsets = [0, 25], sizes = [16, 64], strides = [1, 1]} : vector<16x114xbf16> to vector<16x64xbf16>
    %131 = vector.extract_strided_slice %125 {offsets = [0, 26], sizes = [16, 64], strides = [1, 1]} : vector<16x114xbf16> to vector<16x64xbf16>
    %132 = vector.extract_strided_slice %125 {offsets = [0, 27], sizes = [16, 64], strides = [1, 1]} : vector<16x114xbf16> to vector<16x64xbf16>
    %133 = vector.extract_strided_slice %125 {offsets = [0, 28], sizes = [16, 64], strides = [1, 1]} : vector<16x114xbf16> to vector<16x64xbf16>
    %134 = tpu.concatenate %127, %128, %129, %130, %131, %132, %133 in 0 : vector<16x64xbf16>, vector<16x64xbf16>, vector<16x64xbf16>, vector<16x64xbf16>, vector<16x64xbf16>, vector<16x64xbf16>, vector<16x64xbf16> -> vector<112x64xbf16>
    %cst_80 = arith.constant dense<0.000000e+00> : vector<16x64xf32>
    %135 = tpu.matmul %126, %134, %cst_80 {dimension_numbers = #tpu.dot_dimension_numbers<[1], [0], [0], [1], [0, 0, 1, 1], [], []>} : vector<16x112xbf16>, vector<112x64xbf16>, vector<16x64xf32> -> vector<16x64xf32>
    %c0_81 = arith.constant 0 : index
    %c0_82 = arith.constant 0 : index
    %136 = vector.load %arg15[%c0_81, %c0_82] : memref<16x1xf32, #tpu.memory_space<vmem>>, vector<16x1xf32>
    %137 = vector.broadcast %136 : vector<16x1xf32> to vector<16x64xf32>
    %138 = arith.addf %135, %137 : vector<16x64xf32>
    %cst_83 = arith.constant 0.000000e+00 : f32
    %139 = vector.broadcast %cst_83 : f32 to vector<16x64xf32>
    %140 = arith.cmpf oge, %138, %139 : vector<16x64xf32>
    %cst_84 = arith.constant 1.000000e-01 : f32
    %141 = vector.broadcast %cst_84 : f32 to vector<16x64xf32>
    %142 = arith.mulf %141, %138 : vector<16x64xf32>
    %143 = arith.select %140, %138, %142 : vector<16x64xi1>, vector<16x64xf32>
    %144 = arith.truncf %143 : vector<16x64xf32> to vector<16x64xbf16>
    %c0_85 = arith.constant 0 : index
    %c25_86 = arith.constant 25 : index
    %145 = vector.load %arg41[%c0_85, %c25_86] : memref<16x114xbf16, #tpu.memory_space<vmem>>, vector<16x64xbf16>
    tpu.vector_store %arg41[%c0_85, %c25_86], %144 {strides = array<i32>} : memref<16x114xbf16, #tpu.memory_space<vmem>>, vector<16x64xbf16>,
    %c0_87 = arith.constant 0 : index
    %c0_88 = arith.constant 0 : index
    %146 = vector.load %arg41[%c0_87, %c0_88] : memref<16x114xbf16, #tpu.memory_space<vmem>>, vector<16x114xbf16>
    %c0_89 = arith.constant 0 : index
    %c0_90 = arith.constant 0 : index
    %147 = vector.load %arg16[%c0_89, %c0_90] : memref<16x112xbf16, #tpu.memory_space<vmem>>, vector<16x112xbf16>
    %148 = vector.extract_strided_slice %146 {offsets = [0, 22], sizes = [16, 64], strides = [1, 1]} : vector<16x114xbf16> to vector<16x64xbf16>
    %149 = vector.extract_strided_slice %146 {offsets = [0, 23], sizes = [16, 64], strides = [1, 1]} : vector<16x114xbf16> to vector<16x64xbf16>
    %150 = vector.extract_strided_slice %146 {offsets = [0, 24], sizes = [16, 64], strides = [1, 1]} : vector<16x114xbf16> to vector<16x64xbf16>
    %151 = vector.extract_strided_slice %146 {offsets = [0, 25], sizes = [16, 64], strides = [1, 1]} : vector<16x114xbf16> to vector<16x64xbf16>
    %152 = vector.extract_strided_slice %146 {offsets = [0, 26], sizes = [16, 64], strides = [1, 1]} : vector<16x114xbf16> to vector<16x64xbf16>
    %153 = vector.extract_strided_slice %146 {offsets = [0, 27], sizes = [16, 64], strides = [1, 1]} : vector<16x114xbf16> to vector<16x64xbf16>
    %154 = vector.extract_strided_slice %146 {offsets = [0, 28], sizes = [16, 64], strides = [1, 1]} : vector<16x114xbf16> to vector<16x64xbf16>
    %155 = tpu.concatenate %148, %149, %150, %151, %152, %153, %154 in 0 : vector<16x64xbf16>, vector<16x64xbf16>, vector<16x64xbf16>, vector<16x64xbf16>, vector<16x64xbf16>, vector<16x64xbf16>, vector<16x64xbf16> -> vector<112x64xbf16>
    %cst_91 = arith.constant dense<0.000000e+00> : vector<16x64xf32>
    %156 = tpu.matmul %147, %155, %cst_91 {dimension_numbers = #tpu.dot_dimension_numbers<[1], [0], [0], [1], [0, 0, 1, 1], [], []>} : vector<16x112xbf16>, vector<112x64xbf16>, vector<16x64xf32> -> vector<16x64xf32>
    %c0_92 = arith.constant 0 : index
    %c0_93 = arith.constant 0 : index
    %157 = vector.load %arg17[%c0_92, %c0_93] : memref<16x1xf32, #tpu.memory_space<vmem>>, vector<16x1xf32>
    %158 = vector.broadcast %157 : vector<16x1xf32> to vector<16x64xf32>
    %159 = arith.addf %156, %158 : vector<16x64xf32>
    %160 = arith.addf %12, %159 : vector<16x64xf32>
    %cst_94 = arith.constant 0.000000e+00 : f32
    %161 = vector.broadcast %cst_94 : f32 to vector<16x64xf32>
    %162 = arith.cmpf oge, %160, %161 : vector<16x64xf32>
    %cst_95 = arith.constant 1.000000e-01 : f32
    %163 = vector.broadcast %cst_95 : f32 to vector<16x64xf32>
    %164 = arith.mulf %163, %160 : vector<16x64xf32>
    %165 = arith.select %162, %160, %164 : vector<16x64xi1>, vector<16x64xf32>
    %166 = arith.truncf %165 : vector<16x64xf32> to vector<16x64xbf16>
    %c0_96 = arith.constant 0 : index
    %c25_97 = arith.constant 25 : index
    %167 = vector.load %arg41[%c0_96, %c25_97] : memref<16x114xbf16, #tpu.memory_space<vmem>>, vector<16x64xbf16>
    tpu.vector_store %arg41[%c0_96, %c25_97], %166 {strides = array<i32>} : memref<16x114xbf16, #tpu.memory_space<vmem>>, vector<16x64xbf16>,
    %c0_98 = arith.constant 0 : index
    %c0_99 = arith.constant 0 : index
    %168 = vector.load %arg41[%c0_98, %c0_99] : memref<16x114xbf16, #tpu.memory_space<vmem>>, vector<16x114xbf16>
    %c0_100 = arith.constant 0 : index
    %c0_101 = arith.constant 0 : index
    %169 = vector.load %arg18[%c0_100, %c0_101] : memref<16x112xbf16, #tpu.memory_space<vmem>>, vector<16x112xbf16>
    %170 = vector.extract_strided_slice %168 {offsets = [0, 16], sizes = [16, 64], strides = [1, 1]} : vector<16x114xbf16> to vector<16x64xbf16>
    %171 = vector.extract_strided_slice %168 {offsets = [0, 19], sizes = [16, 64], strides = [1, 1]} : vector<16x114xbf16> to vector<16x64xbf16>
    %172 = vector.extract_strided_slice %168 {offsets = [0, 22], sizes = [16, 64], strides = [1, 1]} : vector<16x114xbf16> to vector<16x64xbf16>
    %173 = vector.extract_strided_slice %168 {offsets = [0, 25], sizes = [16, 64], strides = [1, 1]} : vector<16x114xbf16> to vector<16x64xbf16>
    %174 = vector.extract_strided_slice %168 {offsets = [0, 28], sizes = [16, 64], strides = [1, 1]} : vector<16x114xbf16> to vector<16x64xbf16>
    %175 = vector.extract_strided_slice %168 {offsets = [0, 31], sizes = [16, 64], strides = [1, 1]} : vector<16x114xbf16> to vector<16x64xbf16>
    %176 = vector.extract_strided_slice %168 {offsets = [0, 34], sizes = [16, 64], strides = [1, 1]} : vector<16x114xbf16> to vector<16x64xbf16>
    %177 = tpu.concatenate %170, %171, %172, %173, %174, %175, %176 in 0 : vector<16x64xbf16>, vector<16x64xbf16>, vector<16x64xbf16>, vector<16x64xbf16>, vector<16x64xbf16>, vector<16x64xbf16>, vector<16x64xbf16> -> vector<112x64xbf16>
    %cst_102 = arith.constant dense<0.000000e+00> : vector<16x64xf32>
    %178 = tpu.matmul %169, %177, %cst_102 {dimension_numbers = #tpu.dot_dimension_numbers<[1], [0], [0], [1], [0, 0, 1, 1], [], []>} : vector<16x112xbf16>, vector<112x64xbf16>, vector<16x64xf32> -> vector<16x64xf32>
    %c0_103 = arith.constant 0 : index
    %c0_104 = arith.constant 0 : index
    %179 = vector.load %arg19[%c0_103, %c0_104] : memref<16x1xf32, #tpu.memory_space<vmem>>, vector<16x1xf32>
    %180 = vector.broadcast %179 : vector<16x1xf32> to vector<16x64xf32>
    %181 = arith.addf %178, %180 : vector<16x64xf32>
    %cst_105 = arith.constant 0.000000e+00 : f32
    %182 = vector.broadcast %cst_105 : f32 to vector<16x64xf32>
    %183 = arith.cmpf oge, %181, %182 : vector<16x64xf32>
    %cst_106 = arith.constant 1.000000e-01 : f32
    %184 = vector.broadcast %cst_106 : f32 to vector<16x64xf32>
    %185 = arith.mulf %184, %181 : vector<16x64xf32>
    %186 = arith.select %183, %181, %185 : vector<16x64xi1>, vector<16x64xf32>
    %187 = arith.truncf %186 : vector<16x64xf32> to vector<16x64xbf16>
    %c0_107 = arith.constant 0 : index
    %c25_108 = arith.constant 25 : index
    %188 = vector.load %arg41[%c0_107, %c25_108] : memref<16x114xbf16, #tpu.memory_space<vmem>>, vector<16x64xbf16>
    tpu.vector_store %arg41[%c0_107, %c25_108], %187 {strides = array<i32>} : memref<16x114xbf16, #tpu.memory_space<vmem>>, vector<16x64xbf16>,
    %c0_109 = arith.constant 0 : index
    %c0_110 = arith.constant 0 : index
    %189 = vector.load %arg41[%c0_109, %c0_110] : memref<16x114xbf16, #tpu.memory_space<vmem>>, vector<16x114xbf16>
    %c0_111 = arith.constant 0 : index
    %c0_112 = arith.constant 0 : index
    %190 = vector.load %arg20[%c0_111, %c0_112] : memref<16x112xbf16, #tpu.memory_space<vmem>>, vector<16x112xbf16>
    %191 = vector.extract_strided_slice %189 {offsets = [0, 22], sizes = [16, 64], strides = [1, 1]} : vector<16x114xbf16> to vector<16x64xbf16>
    %192 = vector.extract_strided_slice %189 {offsets = [0, 23], sizes = [16, 64], strides = [1, 1]} : vector<16x114xbf16> to vector<16x64xbf16>
    %193 = vector.extract_strided_slice %189 {offsets = [0, 24], sizes = [16, 64], strides = [1, 1]} : vector<16x114xbf16> to vector<16x64xbf16>
    %194 = vector.extract_strided_slice %189 {offsets = [0, 25], sizes = [16, 64], strides = [1, 1]} : vector<16x114xbf16> to vector<16x64xbf16>
    %195 = vector.extract_strided_slice %189 {offsets = [0, 26], sizes = [16, 64], strides = [1, 1]} : vector<16x114xbf16> to vector<16x64xbf16>
    %196 = vector.extract_strided_slice %189 {offsets = [0, 27], sizes = [16, 64], strides = [1, 1]} : vector<16x114xbf16> to vector<16x64xbf16>
    %197 = vector.extract_strided_slice %189 {offsets = [0, 28], sizes = [16, 64], strides = [1, 1]} : vector<16x114xbf16> to vector<16x64xbf16>
    %198 = tpu.concatenate %191, %192, %193, %194, %195, %196, %197 in 0 : vector<16x64xbf16>, vector<16x64xbf16>, vector<16x64xbf16>, vector<16x64xbf16>, vector<16x64xbf16>, vector<16x64xbf16>, vector<16x64xbf16> -> vector<112x64xbf16>
    %cst_113 = arith.constant dense<0.000000e+00> : vector<16x64xf32>
    %199 = tpu.matmul %190, %198, %cst_113 {dimension_numbers = #tpu.dot_dimension_numbers<[1], [0], [0], [1], [0, 0, 1, 1], [], []>} : vector<16x112xbf16>, vector<112x64xbf16>, vector<16x64xf32> -> vector<16x64xf32>
    %c0_114 = arith.constant 0 : index
    %c0_115 = arith.constant 0 : index
    %200 = vector.load %arg21[%c0_114, %c0_115] : memref<16x1xf32, #tpu.memory_space<vmem>>, vector<16x1xf32>
    %201 = vector.broadcast %200 : vector<16x1xf32> to vector<16x64xf32>
    %202 = arith.addf %199, %201 : vector<16x64xf32>
    %203 = arith.addf %160, %202 : vector<16x64xf32>
    %cst_116 = arith.constant 0.000000e+00 : f32
    %204 = vector.broadcast %cst_116 : f32 to vector<16x64xf32>
    %205 = arith.cmpf oge, %203, %204 : vector<16x64xf32>
    %cst_117 = arith.constant 1.000000e-01 : f32
    %206 = vector.broadcast %cst_117 : f32 to vector<16x64xf32>
    %207 = arith.mulf %206, %203 : vector<16x64xf32>
    %208 = arith.select %205, %203, %207 : vector<16x64xi1>, vector<16x64xf32>
    %209 = arith.truncf %208 : vector<16x64xf32> to vector<16x64xbf16>
    %c0_118 = arith.constant 0 : index
    %c25_119 = arith.constant 25 : index
    %210 = vector.load %arg41[%c0_118, %c25_119] : memref<16x114xbf16, #tpu.memory_space<vmem>>, vector<16x64xbf16>
    tpu.vector_store %arg41[%c0_118, %c25_119], %209 {strides = array<i32>} : memref<16x114xbf16, #tpu.memory_space<vmem>>, vector<16x64xbf16>,
    %c0_120 = arith.constant 0 : index
    %c0_121 = arith.constant 0 : index
    %211 = vector.load %arg41[%c0_120, %c0_121] : memref<16x114xbf16, #tpu.memory_space<vmem>>, vector<16x114xbf16>
    %c0_122 = arith.constant 0 : index
    %c0_123 = arith.constant 0 : index
    %212 = vector.load %arg22[%c0_122, %c0_123] : memref<16x112xbf16, #tpu.memory_space<vmem>>, vector<16x112xbf16>
    %213 = vector.extract_strided_slice %211 {offsets = [0, 10], sizes = [16, 64], strides = [1, 1]} : vector<16x114xbf16> to vector<16x64xbf16>
    %214 = vector.extract_strided_slice %211 {offsets = [0, 15], sizes = [16, 64], strides = [1, 1]} : vector<16x114xbf16> to vector<16x64xbf16>
    %215 = vector.extract_strided_slice %211 {offsets = [0, 20], sizes = [16, 64], strides = [1, 1]} : vector<16x114xbf16> to vector<16x64xbf16>
    %216 = vector.extract_strided_slice %211 {offsets = [0, 25], sizes = [16, 64], strides = [1, 1]} : vector<16x114xbf16> to vector<16x64xbf16>
    %217 = vector.extract_strided_slice %211 {offsets = [0, 30], sizes = [16, 64], strides = [1, 1]} : vector<16x114xbf16> to vector<16x64xbf16>
    %218 = vector.extract_strided_slice %211 {offsets = [0, 35], sizes = [16, 64], strides = [1, 1]} : vector<16x114xbf16> to vector<16x64xbf16>
    %219 = vector.extract_strided_slice %211 {offsets = [0, 40], sizes = [16, 64], strides = [1, 1]} : vector<16x114xbf16> to vector<16x64xbf16>
    %220 = tpu.concatenate %213, %214, %215, %216, %217, %218, %219 in 0 : vector<16x64xbf16>, vector<16x64xbf16>, vector<16x64xbf16>, vector<16x64xbf16>, vector<16x64xbf16>, vector<16x64xbf16>, vector<16x64xbf16> -> vector<112x64xbf16>
    %cst_124 = arith.constant dense<0.000000e+00> : vector<16x64xf32>
    %221 = tpu.matmul %212, %220, %cst_124 {dimension_numbers = #tpu.dot_dimension_numbers<[1], [0], [0], [1], [0, 0, 1, 1], [], []>} : vector<16x112xbf16>, vector<112x64xbf16>, vector<16x64xf32> -> vector<16x64xf32>
    %c0_125 = arith.constant 0 : index
    %c0_126 = arith.constant 0 : index
    %222 = vector.load %arg23[%c0_125, %c0_126] : memref<16x1xf32, #tpu.memory_space<vmem>>, vector<16x1xf32>
    %223 = vector.broadcast %222 : vector<16x1xf32> to vector<16x64xf32>
    %224 = arith.addf %221, %223 : vector<16x64xf32>
    %cst_127 = arith.constant 0.000000e+00 : f32
    %225 = vector.broadcast %cst_127 : f32 to vector<16x64xf32>
    %226 = arith.cmpf oge, %224, %225 : vector<16x64xf32>
    %cst_128 = arith.constant 1.000000e-01 : f32
    %227 = vector.broadcast %cst_128 : f32 to vector<16x64xf32>
    %228 = arith.mulf %227, %224 : vector<16x64xf32>
    %229 = arith.select %226, %224, %228 : vector<16x64xi1>, vector<16x64xf32>
    %230 = arith.truncf %229 : vector<16x64xf32> to vector<16x64xbf16>
    %c0_129 = arith.constant 0 : index
    %c25_130 = arith.constant 25 : index
    %231 = vector.load %arg41[%c0_129, %c25_130] : memref<16x114xbf16, #tpu.memory_space<vmem>>, vector<16x64xbf16>
    tpu.vector_store %arg41[%c0_129, %c25_130], %230 {strides = array<i32>} : memref<16x114xbf16, #tpu.memory_space<vmem>>, vector<16x64xbf16>,
    %c0_131 = arith.constant 0 : index
    %c0_132 = arith.constant 0 : index
    %232 = vector.load %arg41[%c0_131, %c0_132] : memref<16x114xbf16, #tpu.memory_space<vmem>>, vector<16x114xbf16>
    %c0_133 = arith.constant 0 : index
    %c0_134 = arith.constant 0 : index
    %233 = vector.load %arg24[%c0_133, %c0_134] : memref<16x112xbf16, #tpu.memory_space<vmem>>, vector<16x112xbf16>
    %234 = vector.extract_strided_slice %232 {offsets = [0, 22], sizes = [16, 64], strides = [1, 1]} : vector<16x114xbf16> to vector<16x64xbf16>
    %235 = vector.extract_strided_slice %232 {offsets = [0, 23], sizes = [16, 64], strides = [1, 1]} : vector<16x114xbf16> to vector<16x64xbf16>
    %236 = vector.extract_strided_slice %232 {offsets = [0, 24], sizes = [16, 64], strides = [1, 1]} : vector<16x114xbf16> to vector<16x64xbf16>
    %237 = vector.extract_strided_slice %232 {offsets = [0, 25], sizes = [16, 64], strides = [1, 1]} : vector<16x114xbf16> to vector<16x64xbf16>
    %238 = vector.extract_strided_slice %232 {offsets = [0, 26], sizes = [16, 64], strides = [1, 1]} : vector<16x114xbf16> to vector<16x64xbf16>
    %239 = vector.extract_strided_slice %232 {offsets = [0, 27], sizes = [16, 64], strides = [1, 1]} : vector<16x114xbf16> to vector<16x64xbf16>
    %240 = vector.extract_strided_slice %232 {offsets = [0, 28], sizes = [16, 64], strides = [1, 1]} : vector<16x114xbf16> to vector<16x64xbf16>
    %241 = tpu.concatenate %234, %235, %236, %237, %238, %239, %240 in 0 : vector<16x64xbf16>, vector<16x64xbf16>, vector<16x64xbf16>, vector<16x64xbf16>, vector<16x64xbf16>, vector<16x64xbf16>, vector<16x64xbf16> -> vector<112x64xbf16>
    %cst_135 = arith.constant dense<0.000000e+00> : vector<16x64xf32>
    %242 = tpu.matmul %233, %241, %cst_135 {dimension_numbers = #tpu.dot_dimension_numbers<[1], [0], [0], [1], [0, 0, 1, 1], [], []>} : vector<16x112xbf16>, vector<112x64xbf16>, vector<16x64xf32> -> vector<16x64xf32>
    %c0_136 = arith.constant 0 : index
    %c0_137 = arith.constant 0 : index
    %243 = vector.load %arg25[%c0_136, %c0_137] : memref<16x1xf32, #tpu.memory_space<vmem>>, vector<16x1xf32>
    %244 = vector.broadcast %243 : vector<16x1xf32> to vector<16x64xf32>
    %245 = arith.addf %242, %244 : vector<16x64xf32>
    %246 = arith.addf %203, %245 : vector<16x64xf32>
    %247 = arith.addf %117, %246 : vector<16x64xf32>
    %cst_138 = arith.constant 0.000000e+00 : f32
    %248 = vector.broadcast %cst_138 : f32 to vector<16x64xf32>
    %249 = arith.cmpf oge, %12, %248 : vector<16x64xf32>
    %cst_139 = arith.constant 1.000000e-01 : f32
    %250 = vector.broadcast %cst_139 : f32 to vector<16x64xf32>
    %251 = arith.mulf %250, %12 : vector<16x64xf32>
    %252 = arith.select %249, %12, %251 : vector<16x64xi1>, vector<16x64xf32>
    %253 = arith.truncf %252 : vector<16x64xf32> to vector<16x64xbf16>
    %c0_140 = arith.constant 0 : index
    %c25_141 = arith.constant 25 : index
    %254 = vector.load %arg41[%c0_140, %c25_141] : memref<16x114xbf16, #tpu.memory_space<vmem>>, vector<16x64xbf16>
    tpu.vector_store %arg41[%c0_140, %c25_141], %253 {strides = array<i32>} : memref<16x114xbf16, #tpu.memory_space<vmem>>, vector<16x64xbf16>,
    %c0_142 = arith.constant 0 : index
    %c0_143 = arith.constant 0 : index
    %255 = vector.load %arg41[%c0_142, %c0_143] : memref<16x114xbf16, #tpu.memory_space<vmem>>, vector<16x114xbf16>
    %c0_144 = arith.constant 0 : index
    %c0_145 = arith.constant 0 : index
    %256 = vector.load %arg26[%c0_144, %c0_145] : memref<16x176xbf16, #tpu.memory_space<vmem>>, vector<16x176xbf16>
    %cst_146 = arith.constant 0.000000e+00 : f32
    %257 = vector.broadcast %cst_146 : f32 to vector<16x64xf32>
    %258 = vector.extract_strided_slice %256 {offsets = [0, 0], sizes = [16, 16], strides = [1, 1]} : vector<16x176xbf16> to vector<16x16xbf16>
    %259 = vector.extract_strided_slice %255 {offsets = [0, 20], sizes = [16, 64], strides = [1, 1]} : vector<16x114xbf16> to vector<16x64xbf16>
    %cst_147 = arith.constant dense<0.000000e+00> : vector<16x64xf32>
    %260 = tpu.matmul %258, %259, %cst_147 {dimension_numbers = #tpu.dot_dimension_numbers<[1], [0], [0], [1], [0, 0, 1, 1], [], []>} : vector<16x16xbf16>, vector<16x64xbf16>, vector<16x64xf32> -> vector<16x64xf32>
    %261 = arith.addf %257, %260 : vector<16x64xf32>
    %262 = vector.extract_strided_slice %256 {offsets = [0, 16], sizes = [16, 16], strides = [1, 1]} : vector<16x176xbf16> to vector<16x16xbf16>
    %263 = vector.extract_strided_slice %255 {offsets = [0, 21], sizes = [16, 64], strides = [1, 1]} : vector<16x114xbf16> to vector<16x64xbf16>
    %cst_148 = arith.constant dense<0.000000e+00> : vector<16x64xf32>
    %264 = tpu.matmul %262, %263, %cst_148 {dimension_numbers = #tpu.dot_dimension_numbers<[1], [0], [0], [1], [0, 0, 1, 1], [], []>} : vector<16x16xbf16>, vector<16x64xbf16>, vector<16x64xf32> -> vector<16x64xf32>
    %265 = arith.addf %261, %264 : vector<16x64xf32>
    %266 = vector.extract_strided_slice %256 {offsets = [0, 32], sizes = [16, 16], strides = [1, 1]} : vector<16x176xbf16> to vector<16x16xbf16>
    %267 = vector.extract_strided_slice %255 {offsets = [0, 22], sizes = [16, 64], strides = [1, 1]} : vector<16x114xbf16> to vector<16x64xbf16>
    %cst_149 = arith.constant dense<0.000000e+00> : vector<16x64xf32>
    %268 = tpu.matmul %266, %267, %cst_149 {dimension_numbers = #tpu.dot_dimension_numbers<[1], [0], [0], [1], [0, 0, 1, 1], [], []>} : vector<16x16xbf16>, vector<16x64xbf16>, vector<16x64xf32> -> vector<16x64xf32>
    %269 = arith.addf %265, %268 : vector<16x64xf32>
    %270 = vector.extract_strided_slice %256 {offsets = [0, 48], sizes = [16, 16], strides = [1, 1]} : vector<16x176xbf16> to vector<16x16xbf16>
    %271 = vector.extract_strided_slice %255 {offsets = [0, 23], sizes = [16, 64], strides = [1, 1]} : vector<16x114xbf16> to vector<16x64xbf16>
    %cst_150 = arith.constant dense<0.000000e+00> : vector<16x64xf32>
    %272 = tpu.matmul %270, %271, %cst_150 {dimension_numbers = #tpu.dot_dimension_numbers<[1], [0], [0], [1], [0, 0, 1, 1], [], []>} : vector<16x16xbf16>, vector<16x64xbf16>, vector<16x64xf32> -> vector<16x64xf32>
    %273 = arith.addf %269, %272 : vector<16x64xf32>
    %274 = vector.extract_strided_slice %256 {offsets = [0, 64], sizes = [16, 16], strides = [1, 1]} : vector<16x176xbf16> to vector<16x16xbf16>
    %275 = vector.extract_strided_slice %255 {offsets = [0, 24], sizes = [16, 64], strides = [1, 1]} : vector<16x114xbf16> to vector<16x64xbf16>
    %cst_151 = arith.constant dense<0.000000e+00> : vector<16x64xf32>
    %276 = tpu.matmul %274, %275, %cst_151 {dimension_numbers = #tpu.dot_dimension_numbers<[1], [0], [0], [1], [0, 0, 1, 1], [], []>} : vector<16x16xbf16>, vector<16x64xbf16>, vector<16x64xf32> -> vector<16x64xf32>
    %277 = arith.addf %273, %276 : vector<16x64xf32>
    %278 = vector.extract_strided_slice %256 {offsets = [0, 80], sizes = [16, 16], strides = [1, 1]} : vector<16x176xbf16> to vector<16x16xbf16>
    %279 = vector.extract_strided_slice %255 {offsets = [0, 25], sizes = [16, 64], strides = [1, 1]} : vector<16x114xbf16> to vector<16x64xbf16>
    %cst_152 = arith.constant dense<0.000000e+00> : vector<16x64xf32>
    %280 = tpu.matmul %278, %279, %cst_152 {dimension_numbers = #tpu.dot_dimension_numbers<[1], [0], [0], [1], [0, 0, 1, 1], [], []>} : vector<16x16xbf16>, vector<16x64xbf16>, vector<16x64xf32> -> vector<16x64xf32>
    %281 = arith.addf %277, %280 : vector<16x64xf32>
    %282 = vector.extract_strided_slice %256 {offsets = [0, 96], sizes = [16, 16], strides = [1, 1]} : vector<16x176xbf16> to vector<16x16xbf16>
    %283 = vector.extract_strided_slice %255 {offsets = [0, 26], sizes = [16, 64], strides = [1, 1]} : vector<16x114xbf16> to vector<16x64xbf16>
    %cst_153 = arith.constant dense<0.000000e+00> : vector<16x64xf32>
    %284 = tpu.matmul %282, %283, %cst_153 {dimension_numbers = #tpu.dot_dimension_numbers<[1], [0], [0], [1], [0, 0, 1, 1], [], []>} : vector<16x16xbf16>, vector<16x64xbf16>, vector<16x64xf32> -> vector<16x64xf32>
    %285 = arith.addf %281, %284 : vector<16x64xf32>
    %286 = vector.extract_strided_slice %256 {offsets = [0, 112], sizes = [16, 16], strides = [1, 1]} : vector<16x176xbf16> to vector<16x16xbf16>
    %287 = vector.extract_strided_slice %255 {offsets = [0, 27], sizes = [16, 64], strides = [1, 1]} : vector<16x114xbf16> to vector<16x64xbf16>
    %cst_154 = arith.constant dense<0.000000e+00> : vector<16x64xf32>
    %288 = tpu.matmul %286, %287, %cst_154 {dimension_numbers = #tpu.dot_dimension_numbers<[1], [0], [0], [1], [0, 0, 1, 1], [], []>} : vector<16x16xbf16>, vector<16x64xbf16>, vector<16x64xf32> -> vector<16x64xf32>
    %289 = arith.addf %285, %288 : vector<16x64xf32>
    %290 = vector.extract_strided_slice %256 {offsets = [0, 128], sizes = [16, 16], strides = [1, 1]} : vector<16x176xbf16> to vector<16x16xbf16>
    %291 = vector.extract_strided_slice %255 {offsets = [0, 28], sizes = [16, 64], strides = [1, 1]} : vector<16x114xbf16> to vector<16x64xbf16>
    %cst_155 = arith.constant dense<0.000000e+00> : vector<16x64xf32>
    %292 = tpu.matmul %290, %291, %cst_155 {dimension_numbers = #tpu.dot_dimension_numbers<[1], [0], [0], [1], [0, 0, 1, 1], [], []>} : vector<16x16xbf16>, vector<16x64xbf16>, vector<16x64xf32> -> vector<16x64xf32>
    %293 = arith.addf %289, %292 : vector<16x64xf32>
    %294 = vector.extract_strided_slice %256 {offsets = [0, 144], sizes = [16, 16], strides = [1, 1]} : vector<16x176xbf16> to vector<16x16xbf16>
    %295 = vector.extract_strided_slice %255 {offsets = [0, 29], sizes = [16, 64], strides = [1, 1]} : vector<16x114xbf16> to vector<16x64xbf16>
    %cst_156 = arith.constant dense<0.000000e+00> : vector<16x64xf32>
    %296 = tpu.matmul %294, %295, %cst_156 {dimension_numbers = #tpu.dot_dimension_numbers<[1], [0], [0], [1], [0, 0, 1, 1], [], []>} : vector<16x16xbf16>, vector<16x64xbf16>, vector<16x64xf32> -> vector<16x64xf32>
    %297 = arith.addf %293, %296 : vector<16x64xf32>
    %298 = vector.extract_strided_slice %256 {offsets = [0, 160], sizes = [16, 16], strides = [1, 1]} : vector<16x176xbf16> to vector<16x16xbf16>
    %299 = vector.extract_strided_slice %255 {offsets = [0, 30], sizes = [16, 64], strides = [1, 1]} : vector<16x114xbf16> to vector<16x64xbf16>
    %cst_157 = arith.constant dense<0.000000e+00> : vector<16x64xf32>
    %300 = tpu.matmul %298, %299, %cst_157 {dimension_numbers = #tpu.dot_dimension_numbers<[1], [0], [0], [1], [0, 0, 1, 1], [], []>} : vector<16x16xbf16>, vector<16x64xbf16>, vector<16x64xf32> -> vector<16x64xf32>
    %301 = arith.addf %297, %300 : vector<16x64xf32>
    %c0_158 = arith.constant 0 : index
    %c0_159 = arith.constant 0 : index
    %302 = vector.load %arg27[%c0_158, %c0_159] : memref<16x1xf32, #tpu.memory_space<vmem>>, vector<16x1xf32>
    %303 = vector.broadcast %302 : vector<16x1xf32> to vector<16x64xf32>
    %304 = arith.addf %301, %303 : vector<16x64xf32>
    %cst_160 = arith.constant 0.000000e+00 : f32
    %305 = vector.broadcast %cst_160 : f32 to vector<16x64xf32>
    %306 = arith.cmpf oge, %304, %305 : vector<16x64xf32>
    %cst_161 = arith.constant 1.000000e-01 : f32
    %307 = vector.broadcast %cst_161 : f32 to vector<16x64xf32>
    %308 = arith.mulf %307, %304 : vector<16x64xf32>
    %309 = arith.select %306, %304, %308 : vector<16x64xi1>, vector<16x64xf32>
    %310 = arith.truncf %309 : vector<16x64xf32> to vector<16x64xbf16>
    %c0_162 = arith.constant 0 : index
    %c25_163 = arith.constant 25 : index
    %311 = vector.load %arg41[%c0_162, %c25_163] : memref<16x114xbf16, #tpu.memory_space<vmem>>, vector<16x64xbf16>
    tpu.vector_store %arg41[%c0_162, %c25_163], %310 {strides = array<i32>} : memref<16x114xbf16, #tpu.memory_space<vmem>>, vector<16x64xbf16>,
    %c0_164 = arith.constant 0 : index
    %c0_165 = arith.constant 0 : index
    %312 = vector.load %arg41[%c0_164, %c0_165] : memref<16x114xbf16, #tpu.memory_space<vmem>>, vector<16x114xbf16>
    %c0_166 = arith.constant 0 : index
    %c0_167 = arith.constant 0 : index
    %313 = vector.load %arg28[%c0_166, %c0_167] : memref<16x176xbf16, #tpu.memory_space<vmem>>, vector<16x176xbf16>
    %cst_168 = arith.constant 0.000000e+00 : f32
    %314 = vector.broadcast %cst_168 : f32 to vector<16x64xf32>
    %315 = vector.extract_strided_slice %313 {offsets = [0, 0], sizes = [16, 16], strides = [1, 1]} : vector<16x176xbf16> to vector<16x16xbf16>
    %316 = vector.extract_strided_slice %312 {offsets = [0, 20], sizes = [16, 64], strides = [1, 1]} : vector<16x114xbf16> to vector<16x64xbf16>
    %cst_169 = arith.constant dense<0.000000e+00> : vector<16x64xf32>
    %317 = tpu.matmul %315, %316, %cst_169 {dimension_numbers = #tpu.dot_dimension_numbers<[1], [0], [0], [1], [0, 0, 1, 1], [], []>} : vector<16x16xbf16>, vector<16x64xbf16>, vector<16x64xf32> -> vector<16x64xf32>
    %318 = arith.addf %314, %317 : vector<16x64xf32>
    %319 = vector.extract_strided_slice %313 {offsets = [0, 16], sizes = [16, 16], strides = [1, 1]} : vector<16x176xbf16> to vector<16x16xbf16>
    %320 = vector.extract_strided_slice %312 {offsets = [0, 21], sizes = [16, 64], strides = [1, 1]} : vector<16x114xbf16> to vector<16x64xbf16>
    %cst_170 = arith.constant dense<0.000000e+00> : vector<16x64xf32>
    %321 = tpu.matmul %319, %320, %cst_170 {dimension_numbers = #tpu.dot_dimension_numbers<[1], [0], [0], [1], [0, 0, 1, 1], [], []>} : vector<16x16xbf16>, vector<16x64xbf16>, vector<16x64xf32> -> vector<16x64xf32>
    %322 = arith.addf %318, %321 : vector<16x64xf32>
    %323 = vector.extract_strided_slice %313 {offsets = [0, 32], sizes = [16, 16], strides = [1, 1]} : vector<16x176xbf16> to vector<16x16xbf16>
    %324 = vector.extract_strided_slice %312 {offsets = [0, 22], sizes = [16, 64], strides = [1, 1]} : vector<16x114xbf16> to vector<16x64xbf16>
    %cst_171 = arith.constant dense<0.000000e+00> : vector<16x64xf32>
    %325 = tpu.matmul %323, %324, %cst_171 {dimension_numbers = #tpu.dot_dimension_numbers<[1], [0], [0], [1], [0, 0, 1, 1], [], []>} : vector<16x16xbf16>, vector<16x64xbf16>, vector<16x64xf32> -> vector<16x64xf32>
    %326 = arith.addf %322, %325 : vector<16x64xf32>
    %327 = vector.extract_strided_slice %313 {offsets = [0, 48], sizes = [16, 16], strides = [1, 1]} : vector<16x176xbf16> to vector<16x16xbf16>
    %328 = vector.extract_strided_slice %312 {offsets = [0, 23], sizes = [16, 64], strides = [1, 1]} : vector<16x114xbf16> to vector<16x64xbf16>
    %cst_172 = arith.constant dense<0.000000e+00> : vector<16x64xf32>
    %329 = tpu.matmul %327, %328, %cst_172 {dimension_numbers = #tpu.dot_dimension_numbers<[1], [0], [0], [1], [0, 0, 1, 1], [], []>} : vector<16x16xbf16>, vector<16x64xbf16>, vector<16x64xf32> -> vector<16x64xf32>
    %330 = arith.addf %326, %329 : vector<16x64xf32>
    %331 = vector.extract_strided_slice %313 {offsets = [0, 64], sizes = [16, 16], strides = [1, 1]} : vector<16x176xbf16> to vector<16x16xbf16>
    %332 = vector.extract_strided_slice %312 {offsets = [0, 24], sizes = [16, 64], strides = [1, 1]} : vector<16x114xbf16> to vector<16x64xbf16>
    %cst_173 = arith.constant dense<0.000000e+00> : vector<16x64xf32>
    %333 = tpu.matmul %331, %332, %cst_173 {dimension_numbers = #tpu.dot_dimension_numbers<[1], [0], [0], [1], [0, 0, 1, 1], [], []>} : vector<16x16xbf16>, vector<16x64xbf16>, vector<16x64xf32> -> vector<16x64xf32>
    %334 = arith.addf %330, %333 : vector<16x64xf32>
    %335 = vector.extract_strided_slice %313 {offsets = [0, 80], sizes = [16, 16], strides = [1, 1]} : vector<16x176xbf16> to vector<16x16xbf16>
    %336 = vector.extract_strided_slice %312 {offsets = [0, 25], sizes = [16, 64], strides = [1, 1]} : vector<16x114xbf16> to vector<16x64xbf16>
    %cst_174 = arith.constant dense<0.000000e+00> : vector<16x64xf32>
    %337 = tpu.matmul %335, %336, %cst_174 {dimension_numbers = #tpu.dot_dimension_numbers<[1], [0], [0], [1], [0, 0, 1, 1], [], []>} : vector<16x16xbf16>, vector<16x64xbf16>, vector<16x64xf32> -> vector<16x64xf32>
    %338 = arith.addf %334, %337 : vector<16x64xf32>
    %339 = vector.extract_strided_slice %313 {offsets = [0, 96], sizes = [16, 16], strides = [1, 1]} : vector<16x176xbf16> to vector<16x16xbf16>
    %340 = vector.extract_strided_slice %312 {offsets = [0, 26], sizes = [16, 64], strides = [1, 1]} : vector<16x114xbf16> to vector<16x64xbf16>
    %cst_175 = arith.constant dense<0.000000e+00> : vector<16x64xf32>
    %341 = tpu.matmul %339, %340, %cst_175 {dimension_numbers = #tpu.dot_dimension_numbers<[1], [0], [0], [1], [0, 0, 1, 1], [], []>} : vector<16x16xbf16>, vector<16x64xbf16>, vector<16x64xf32> -> vector<16x64xf32>
    %342 = arith.addf %338, %341 : vector<16x64xf32>
    %343 = vector.extract_strided_slice %313 {offsets = [0, 112], sizes = [16, 16], strides = [1, 1]} : vector<16x176xbf16> to vector<16x16xbf16>
    %344 = vector.extract_strided_slice %312 {offsets = [0, 27], sizes = [16, 64], strides = [1, 1]} : vector<16x114xbf16> to vector<16x64xbf16>
    %cst_176 = arith.constant dense<0.000000e+00> : vector<16x64xf32>
    %345 = tpu.matmul %343, %344, %cst_176 {dimension_numbers = #tpu.dot_dimension_numbers<[1], [0], [0], [1], [0, 0, 1, 1], [], []>} : vector<16x16xbf16>, vector<16x64xbf16>, vector<16x64xf32> -> vector<16x64xf32>
    %346 = arith.addf %342, %345 : vector<16x64xf32>
    %347 = vector.extract_strided_slice %313 {offsets = [0, 128], sizes = [16, 16], strides = [1, 1]} : vector<16x176xbf16> to vector<16x16xbf16>
    %348 = vector.extract_strided_slice %312 {offsets = [0, 28], sizes = [16, 64], strides = [1, 1]} : vector<16x114xbf16> to vector<16x64xbf16>
    %cst_177 = arith.constant dense<0.000000e+00> : vector<16x64xf32>
    %349 = tpu.matmul %347, %348, %cst_177 {dimension_numbers = #tpu.dot_dimension_numbers<[1], [0], [0], [1], [0, 0, 1, 1], [], []>} : vector<16x16xbf16>, vector<16x64xbf16>, vector<16x64xf32> -> vector<16x64xf32>
    %350 = arith.addf %346, %349 : vector<16x64xf32>
    %351 = vector.extract_strided_slice %313 {offsets = [0, 144], sizes = [16, 16], strides = [1, 1]} : vector<16x176xbf16> to vector<16x16xbf16>
    %352 = vector.extract_strided_slice %312 {offsets = [0, 29], sizes = [16, 64], strides = [1, 1]} : vector<16x114xbf16> to vector<16x64xbf16>
    %cst_178 = arith.constant dense<0.000000e+00> : vector<16x64xf32>
    %353 = tpu.matmul %351, %352, %cst_178 {dimension_numbers = #tpu.dot_dimension_numbers<[1], [0], [0], [1], [0, 0, 1, 1], [], []>} : vector<16x16xbf16>, vector<16x64xbf16>, vector<16x64xf32> -> vector<16x64xf32>
    %354 = arith.addf %350, %353 : vector<16x64xf32>
    %355 = vector.extract_strided_slice %313 {offsets = [0, 160], sizes = [16, 16], strides = [1, 1]} : vector<16x176xbf16> to vector<16x16xbf16>
    %356 = vector.extract_strided_slice %312 {offsets = [0, 30], sizes = [16, 64], strides = [1, 1]} : vector<16x114xbf16> to vector<16x64xbf16>
    %cst_179 = arith.constant dense<0.000000e+00> : vector<16x64xf32>
    %357 = tpu.matmul %355, %356, %cst_179 {dimension_numbers = #tpu.dot_dimension_numbers<[1], [0], [0], [1], [0, 0, 1, 1], [], []>} : vector<16x16xbf16>, vector<16x64xbf16>, vector<16x64xf32> -> vector<16x64xf32>
    %358 = arith.addf %354, %357 : vector<16x64xf32>
    %c0_180 = arith.constant 0 : index
    %c0_181 = arith.constant 0 : index
    %359 = vector.load %arg29[%c0_180, %c0_181] : memref<16x1xf32, #tpu.memory_space<vmem>>, vector<16x1xf32>
    %360 = vector.broadcast %359 : vector<16x1xf32> to vector<16x64xf32>
    %361 = arith.addf %358, %360 : vector<16x64xf32>
    %362 = arith.addf %12, %361 : vector<16x64xf32>
    %cst_182 = arith.constant 0.000000e+00 : f32
    %363 = vector.broadcast %cst_182 : f32 to vector<16x64xf32>
    %364 = arith.cmpf oge, %362, %363 : vector<16x64xf32>
    %cst_183 = arith.constant 1.000000e-01 : f32
    %365 = vector.broadcast %cst_183 : f32 to vector<16x64xf32>
    %366 = arith.mulf %365, %362 : vector<16x64xf32>
    %367 = arith.select %364, %362, %366 : vector<16x64xi1>, vector<16x64xf32>
    %368 = arith.truncf %367 : vector<16x64xf32> to vector<16x64xbf16>
    %c0_184 = arith.constant 0 : index
    %c25_185 = arith.constant 25 : index
    %369 = vector.load %arg41[%c0_184, %c25_185] : memref<16x114xbf16, #tpu.memory_space<vmem>>, vector<16x64xbf16>
    tpu.vector_store %arg41[%c0_184, %c25_185], %368 {strides = array<i32>} : memref<16x114xbf16, #tpu.memory_space<vmem>>, vector<16x64xbf16>,
    %c0_186 = arith.constant 0 : index
    %c0_187 = arith.constant 0 : index
    %370 = vector.load %arg41[%c0_186, %c0_187] : memref<16x114xbf16, #tpu.memory_space<vmem>>, vector<16x114xbf16>
    %c0_188 = arith.constant 0 : index
    %c0_189 = arith.constant 0 : index
    %371 = vector.load %arg30[%c0_188, %c0_189] : memref<16x176xbf16, #tpu.memory_space<vmem>>, vector<16x176xbf16>
    %cst_190 = arith.constant 0.000000e+00 : f32
    %372 = vector.broadcast %cst_190 : f32 to vector<16x64xf32>
    %373 = vector.extract_strided_slice %371 {offsets = [0, 0], sizes = [16, 16], strides = [1, 1]} : vector<16x176xbf16> to vector<16x16xbf16>
    %374 = vector.extract_strided_slice %370 {offsets = [0, 10], sizes = [16, 64], strides = [1, 1]} : vector<16x114xbf16> to vector<16x64xbf16>
    %cst_191 = arith.constant dense<0.000000e+00> : vector<16x64xf32>
    %375 = tpu.matmul %373, %374, %cst_191 {dimension_numbers = #tpu.dot_dimension_numbers<[1], [0], [0], [1], [0, 0, 1, 1], [], []>} : vector<16x16xbf16>, vector<16x64xbf16>, vector<16x64xf32> -> vector<16x64xf32>
    %376 = arith.addf %372, %375 : vector<16x64xf32>
    %377 = vector.extract_strided_slice %371 {offsets = [0, 16], sizes = [16, 16], strides = [1, 1]} : vector<16x176xbf16> to vector<16x16xbf16>
    %378 = vector.extract_strided_slice %370 {offsets = [0, 13], sizes = [16, 64], strides = [1, 1]} : vector<16x114xbf16> to vector<16x64xbf16>
    %cst_192 = arith.constant dense<0.000000e+00> : vector<16x64xf32>
    %379 = tpu.matmul %377, %378, %cst_192 {dimension_numbers = #tpu.dot_dimension_numbers<[1], [0], [0], [1], [0, 0, 1, 1], [], []>} : vector<16x16xbf16>, vector<16x64xbf16>, vector<16x64xf32> -> vector<16x64xf32>
    %380 = arith.addf %376, %379 : vector<16x64xf32>
    %381 = vector.extract_strided_slice %371 {offsets = [0, 32], sizes = [16, 16], strides = [1, 1]} : vector<16x176xbf16> to vector<16x16xbf16>
    %382 = vector.extract_strided_slice %370 {offsets = [0, 16], sizes = [16, 64], strides = [1, 1]} : vector<16x114xbf16> to vector<16x64xbf16>
    %cst_193 = arith.constant dense<0.000000e+00> : vector<16x64xf32>
    %383 = tpu.matmul %381, %382, %cst_193 {dimension_numbers = #tpu.dot_dimension_numbers<[1], [0], [0], [1], [0, 0, 1, 1], [], []>} : vector<16x16xbf16>, vector<16x64xbf16>, vector<16x64xf32> -> vector<16x64xf32>
    %384 = arith.addf %380, %383 : vector<16x64xf32>
    %385 = vector.extract_strided_slice %371 {offsets = [0, 48], sizes = [16, 16], strides = [1, 1]} : vector<16x176xbf16> to vector<16x16xbf16>
    %386 = vector.extract_strided_slice %370 {offsets = [0, 19], sizes = [16, 64], strides = [1, 1]} : vector<16x114xbf16> to vector<16x64xbf16>
    %cst_194 = arith.constant dense<0.000000e+00> : vector<16x64xf32>
    %387 = tpu.matmul %385, %386, %cst_194 {dimension_numbers = #tpu.dot_dimension_numbers<[1], [0], [0], [1], [0, 0, 1, 1], [], []>} : vector<16x16xbf16>, vector<16x64xbf16>, vector<16x64xf32> -> vector<16x64xf32>
    %388 = arith.addf %384, %387 : vector<16x64xf32>
    %389 = vector.extract_strided_slice %371 {offsets = [0, 64], sizes = [16, 16], strides = [1, 1]} : vector<16x176xbf16> to vector<16x16xbf16>
    %390 = vector.extract_strided_slice %370 {offsets = [0, 22], sizes = [16, 64], strides = [1, 1]} : vector<16x114xbf16> to vector<16x64xbf16>
    %cst_195 = arith.constant dense<0.000000e+00> : vector<16x64xf32>
    %391 = tpu.matmul %389, %390, %cst_195 {dimension_numbers = #tpu.dot_dimension_numbers<[1], [0], [0], [1], [0, 0, 1, 1], [], []>} : vector<16x16xbf16>, vector<16x64xbf16>, vector<16x64xf32> -> vector<16x64xf32>
    %392 = arith.addf %388, %391 : vector<16x64xf32>
    %393 = vector.extract_strided_slice %371 {offsets = [0, 80], sizes = [16, 16], strides = [1, 1]} : vector<16x176xbf16> to vector<16x16xbf16>
    %394 = vector.extract_strided_slice %370 {offsets = [0, 25], sizes = [16, 64], strides = [1, 1]} : vector<16x114xbf16> to vector<16x64xbf16>
    %cst_196 = arith.constant dense<0.000000e+00> : vector<16x64xf32>
    %395 = tpu.matmul %393, %394, %cst_196 {dimension_numbers = #tpu.dot_dimension_numbers<[1], [0], [0], [1], [0, 0, 1, 1], [], []>} : vector<16x16xbf16>, vector<16x64xbf16>, vector<16x64xf32> -> vector<16x64xf32>
    %396 = arith.addf %392, %395 : vector<16x64xf32>
    %397 = vector.extract_strided_slice %371 {offsets = [0, 96], sizes = [16, 16], strides = [1, 1]} : vector<16x176xbf16> to vector<16x16xbf16>
    %398 = vector.extract_strided_slice %370 {offsets = [0, 28], sizes = [16, 64], strides = [1, 1]} : vector<16x114xbf16> to vector<16x64xbf16>
    %cst_197 = arith.constant dense<0.000000e+00> : vector<16x64xf32>
    %399 = tpu.matmul %397, %398, %cst_197 {dimension_numbers = #tpu.dot_dimension_numbers<[1], [0], [0], [1], [0, 0, 1, 1], [], []>} : vector<16x16xbf16>, vector<16x64xbf16>, vector<16x64xf32> -> vector<16x64xf32>
    %400 = arith.addf %396, %399 : vector<16x64xf32>
    %401 = vector.extract_strided_slice %371 {offsets = [0, 112], sizes = [16, 16], strides = [1, 1]} : vector<16x176xbf16> to vector<16x16xbf16>
    %402 = vector.extract_strided_slice %370 {offsets = [0, 31], sizes = [16, 64], strides = [1, 1]} : vector<16x114xbf16> to vector<16x64xbf16>
    %cst_198 = arith.constant dense<0.000000e+00> : vector<16x64xf32>
    %403 = tpu.matmul %401, %402, %cst_198 {dimension_numbers = #tpu.dot_dimension_numbers<[1], [0], [0], [1], [0, 0, 1, 1], [], []>} : vector<16x16xbf16>, vector<16x64xbf16>, vector<16x64xf32> -> vector<16x64xf32>
    %404 = arith.addf %400, %403 : vector<16x64xf32>
    %405 = vector.extract_strided_slice %371 {offsets = [0, 128], sizes = [16, 16], strides = [1, 1]} : vector<16x176xbf16> to vector<16x16xbf16>
    %406 = vector.extract_strided_slice %370 {offsets = [0, 34], sizes = [16, 64], strides = [1, 1]} : vector<16x114xbf16> to vector<16x64xbf16>
    %cst_199 = arith.constant dense<0.000000e+00> : vector<16x64xf32>
    %407 = tpu.matmul %405, %406, %cst_199 {dimension_numbers = #tpu.dot_dimension_numbers<[1], [0], [0], [1], [0, 0, 1, 1], [], []>} : vector<16x16xbf16>, vector<16x64xbf16>, vector<16x64xf32> -> vector<16x64xf32>
    %408 = arith.addf %404, %407 : vector<16x64xf32>
    %409 = vector.extract_strided_slice %371 {offsets = [0, 144], sizes = [16, 16], strides = [1, 1]} : vector<16x176xbf16> to vector<16x16xbf16>
    %410 = vector.extract_strided_slice %370 {offsets = [0, 37], sizes = [16, 64], strides = [1, 1]} : vector<16x114xbf16> to vector<16x64xbf16>
    %cst_200 = arith.constant dense<0.000000e+00> : vector<16x64xf32>
    %411 = tpu.matmul %409, %410, %cst_200 {dimension_numbers = #tpu.dot_dimension_numbers<[1], [0], [0], [1], [0, 0, 1, 1], [], []>} : vector<16x16xbf16>, vector<16x64xbf16>, vector<16x64xf32> -> vector<16x64xf32>
    %412 = arith.addf %408, %411 : vector<16x64xf32>
    %413 = vector.extract_strided_slice %371 {offsets = [0, 160], sizes = [16, 16], strides = [1, 1]} : vector<16x176xbf16> to vector<16x16xbf16>
    %414 = vector.extract_strided_slice %370 {offsets = [0, 40], sizes = [16, 64], strides = [1, 1]} : vector<16x114xbf16> to vector<16x64xbf16>
    %cst_201 = arith.constant dense<0.000000e+00> : vector<16x64xf32>
    %415 = tpu.matmul %413, %414, %cst_201 {dimension_numbers = #tpu.dot_dimension_numbers<[1], [0], [0], [1], [0, 0, 1, 1], [], []>} : vector<16x16xbf16>, vector<16x64xbf16>, vector<16x64xf32> -> vector<16x64xf32>
    %416 = arith.addf %412, %415 : vector<16x64xf32>
    %c0_202 = arith.constant 0 : index
    %c0_203 = arith.constant 0 : index
    %417 = vector.load %arg31[%c0_202, %c0_203] : memref<16x1xf32, #tpu.memory_space<vmem>>, vector<16x1xf32>
    %418 = vector.broadcast %417 : vector<16x1xf32> to vector<16x64xf32>
    %419 = arith.addf %416, %418 : vector<16x64xf32>
    %cst_204 = arith.constant 0.000000e+00 : f32
    %420 = vector.broadcast %cst_204 : f32 to vector<16x64xf32>
    %421 = arith.cmpf oge, %419, %420 : vector<16x64xf32>
    %cst_205 = arith.constant 1.000000e-01 : f32
    %422 = vector.broadcast %cst_205 : f32 to vector<16x64xf32>
    %423 = arith.mulf %422, %419 : vector<16x64xf32>
    %424 = arith.select %421, %419, %423 : vector<16x64xi1>, vector<16x64xf32>
    %425 = arith.truncf %424 : vector<16x64xf32> to vector<16x64xbf16>
    %c0_206 = arith.constant 0 : index
    %c25_207 = arith.constant 25 : index
    %426 = vector.load %arg41[%c0_206, %c25_207] : memref<16x114xbf16, #tpu.memory_space<vmem>>, vector<16x64xbf16>
    tpu.vector_store %arg41[%c0_206, %c25_207], %425 {strides = array<i32>} : memref<16x114xbf16, #tpu.memory_space<vmem>>, vector<16x64xbf16>,
    %c0_208 = arith.constant 0 : index
    %c0_209 = arith.constant 0 : index
    %427 = vector.load %arg41[%c0_208, %c0_209] : memref<16x114xbf16, #tpu.memory_space<vmem>>, vector<16x114xbf16>
    %c0_210 = arith.constant 0 : index
    %c0_211 = arith.constant 0 : index
    %428 = vector.load %arg32[%c0_210, %c0_211] : memref<16x176xbf16, #tpu.memory_space<vmem>>, vector<16x176xbf16>
    %cst_212 = arith.constant 0.000000e+00 : f32
    %429 = vector.broadcast %cst_212 : f32 to vector<16x64xf32>
    %430 = vector.extract_strided_slice %428 {offsets = [0, 0], sizes = [16, 16], strides = [1, 1]} : vector<16x176xbf16> to vector<16x16xbf16>
    %431 = vector.extract_strided_slice %427 {offsets = [0, 20], sizes = [16, 64], strides = [1, 1]} : vector<16x114xbf16> to vector<16x64xbf16>
    %cst_213 = arith.constant dense<0.000000e+00> : vector<16x64xf32>
    %432 = tpu.matmul %430, %431, %cst_213 {dimension_numbers = #tpu.dot_dimension_numbers<[1], [0], [0], [1], [0, 0, 1, 1], [], []>} : vector<16x16xbf16>, vector<16x64xbf16>, vector<16x64xf32> -> vector<16x64xf32>
    %433 = arith.addf %429, %432 : vector<16x64xf32>
    %434 = vector.extract_strided_slice %428 {offsets = [0, 16], sizes = [16, 16], strides = [1, 1]} : vector<16x176xbf16> to vector<16x16xbf16>
    %435 = vector.extract_strided_slice %427 {offsets = [0, 21], sizes = [16, 64], strides = [1, 1]} : vector<16x114xbf16> to vector<16x64xbf16>
    %cst_214 = arith.constant dense<0.000000e+00> : vector<16x64xf32>
    %436 = tpu.matmul %434, %435, %cst_214 {dimension_numbers = #tpu.dot_dimension_numbers<[1], [0], [0], [1], [0, 0, 1, 1], [], []>} : vector<16x16xbf16>, vector<16x64xbf16>, vector<16x64xf32> -> vector<16x64xf32>
    %437 = arith.addf %433, %436 : vector<16x64xf32>
    %438 = vector.extract_strided_slice %428 {offsets = [0, 32], sizes = [16, 16], strides = [1, 1]} : vector<16x176xbf16> to vector<16x16xbf16>
    %439 = vector.extract_strided_slice %427 {offsets = [0, 22], sizes = [16, 64], strides = [1, 1]} : vector<16x114xbf16> to vector<16x64xbf16>
    %cst_215 = arith.constant dense<0.000000e+00> : vector<16x64xf32>
    %440 = tpu.matmul %438, %439, %cst_215 {dimension_numbers = #tpu.dot_dimension_numbers<[1], [0], [0], [1], [0, 0, 1, 1], [], []>} : vector<16x16xbf16>, vector<16x64xbf16>, vector<16x64xf32> -> vector<16x64xf32>
    %441 = arith.addf %437, %440 : vector<16x64xf32>
    %442 = vector.extract_strided_slice %428 {offsets = [0, 48], sizes = [16, 16], strides = [1, 1]} : vector<16x176xbf16> to vector<16x16xbf16>
    %443 = vector.extract_strided_slice %427 {offsets = [0, 23], sizes = [16, 64], strides = [1, 1]} : vector<16x114xbf16> to vector<16x64xbf16>
    %cst_216 = arith.constant dense<0.000000e+00> : vector<16x64xf32>
    %444 = tpu.matmul %442, %443, %cst_216 {dimension_numbers = #tpu.dot_dimension_numbers<[1], [0], [0], [1], [0, 0, 1, 1], [], []>} : vector<16x16xbf16>, vector<16x64xbf16>, vector<16x64xf32> -> vector<16x64xf32>
    %445 = arith.addf %441, %444 : vector<16x64xf32>
    %446 = vector.extract_strided_slice %428 {offsets = [0, 64], sizes = [16, 16], strides = [1, 1]} : vector<16x176xbf16> to vector<16x16xbf16>
    %447 = vector.extract_strided_slice %427 {offsets = [0, 24], sizes = [16, 64], strides = [1, 1]} : vector<16x114xbf16> to vector<16x64xbf16>
    %cst_217 = arith.constant dense<0.000000e+00> : vector<16x64xf32>
    %448 = tpu.matmul %446, %447, %cst_217 {dimension_numbers = #tpu.dot_dimension_numbers<[1], [0], [0], [1], [0, 0, 1, 1], [], []>} : vector<16x16xbf16>, vector<16x64xbf16>, vector<16x64xf32> -> vector<16x64xf32>
    %449 = arith.addf %445, %448 : vector<16x64xf32>
    %450 = vector.extract_strided_slice %428 {offsets = [0, 80], sizes = [16, 16], strides = [1, 1]} : vector<16x176xbf16> to vector<16x16xbf16>
    %451 = vector.extract_strided_slice %427 {offsets = [0, 25], sizes = [16, 64], strides = [1, 1]} : vector<16x114xbf16> to vector<16x64xbf16>
    %cst_218 = arith.constant dense<0.000000e+00> : vector<16x64xf32>
    %452 = tpu.matmul %450, %451, %cst_218 {dimension_numbers = #tpu.dot_dimension_numbers<[1], [0], [0], [1], [0, 0, 1, 1], [], []>} : vector<16x16xbf16>, vector<16x64xbf16>, vector<16x64xf32> -> vector<16x64xf32>
    %453 = arith.addf %449, %452 : vector<16x64xf32>
    %454 = vector.extract_strided_slice %428 {offsets = [0, 96], sizes = [16, 16], strides = [1, 1]} : vector<16x176xbf16> to vector<16x16xbf16>
    %455 = vector.extract_strided_slice %427 {offsets = [0, 26], sizes = [16, 64], strides = [1, 1]} : vector<16x114xbf16> to vector<16x64xbf16>
    %cst_219 = arith.constant dense<0.000000e+00> : vector<16x64xf32>
    %456 = tpu.matmul %454, %455, %cst_219 {dimension_numbers = #tpu.dot_dimension_numbers<[1], [0], [0], [1], [0, 0, 1, 1], [], []>} : vector<16x16xbf16>, vector<16x64xbf16>, vector<16x64xf32> -> vector<16x64xf32>
    %457 = arith.addf %453, %456 : vector<16x64xf32>
    %458 = vector.extract_strided_slice %428 {offsets = [0, 112], sizes = [16, 16], strides = [1, 1]} : vector<16x176xbf16> to vector<16x16xbf16>
    %459 = vector.extract_strided_slice %427 {offsets = [0, 27], sizes = [16, 64], strides = [1, 1]} : vector<16x114xbf16> to vector<16x64xbf16>
    %cst_220 = arith.constant dense<0.000000e+00> : vector<16x64xf32>
    %460 = tpu.matmul %458, %459, %cst_220 {dimension_numbers = #tpu.dot_dimension_numbers<[1], [0], [0], [1], [0, 0, 1, 1], [], []>} : vector<16x16xbf16>, vector<16x64xbf16>, vector<16x64xf32> -> vector<16x64xf32>
    %461 = arith.addf %457, %460 : vector<16x64xf32>
    %462 = vector.extract_strided_slice %428 {offsets = [0, 128], sizes = [16, 16], strides = [1, 1]} : vector<16x176xbf16> to vector<16x16xbf16>
    %463 = vector.extract_strided_slice %427 {offsets = [0, 28], sizes = [16, 64], strides = [1, 1]} : vector<16x114xbf16> to vector<16x64xbf16>
    %cst_221 = arith.constant dense<0.000000e+00> : vector<16x64xf32>
    %464 = tpu.matmul %462, %463, %cst_221 {dimension_numbers = #tpu.dot_dimension_numbers<[1], [0], [0], [1], [0, 0, 1, 1], [], []>} : vector<16x16xbf16>, vector<16x64xbf16>, vector<16x64xf32> -> vector<16x64xf32>
    %465 = arith.addf %461, %464 : vector<16x64xf32>
    %466 = vector.extract_strided_slice %428 {offsets = [0, 144], sizes = [16, 16], strides = [1, 1]} : vector<16x176xbf16> to vector<16x16xbf16>
    %467 = vector.extract_strided_slice %427 {offsets = [0, 29], sizes = [16, 64], strides = [1, 1]} : vector<16x114xbf16> to vector<16x64xbf16>
    %cst_222 = arith.constant dense<0.000000e+00> : vector<16x64xf32>
    %468 = tpu.matmul %466, %467, %cst_222 {dimension_numbers = #tpu.dot_dimension_numbers<[1], [0], [0], [1], [0, 0, 1, 1], [], []>} : vector<16x16xbf16>, vector<16x64xbf16>, vector<16x64xf32> -> vector<16x64xf32>
    %469 = arith.addf %465, %468 : vector<16x64xf32>
    %470 = vector.extract_strided_slice %428 {offsets = [0, 160], sizes = [16, 16], strides = [1, 1]} : vector<16x176xbf16> to vector<16x16xbf16>
    %471 = vector.extract_strided_slice %427 {offsets = [0, 30], sizes = [16, 64], strides = [1, 1]} : vector<16x114xbf16> to vector<16x64xbf16>
    %cst_223 = arith.constant dense<0.000000e+00> : vector<16x64xf32>
    %472 = tpu.matmul %470, %471, %cst_223 {dimension_numbers = #tpu.dot_dimension_numbers<[1], [0], [0], [1], [0, 0, 1, 1], [], []>} : vector<16x16xbf16>, vector<16x64xbf16>, vector<16x64xf32> -> vector<16x64xf32>
    %473 = arith.addf %469, %472 : vector<16x64xf32>
    %c0_224 = arith.constant 0 : index
    %c0_225 = arith.constant 0 : index
    %474 = vector.load %arg33[%c0_224, %c0_225] : memref<16x1xf32, #tpu.memory_space<vmem>>, vector<16x1xf32>
    %475 = vector.broadcast %474 : vector<16x1xf32> to vector<16x64xf32>
    %476 = arith.addf %473, %475 : vector<16x64xf32>
    %477 = arith.addf %362, %476 : vector<16x64xf32>
    %cst_226 = arith.constant 0.000000e+00 : f32
    %478 = vector.broadcast %cst_226 : f32 to vector<16x64xf32>
    %479 = arith.cmpf oge, %477, %478 : vector<16x64xf32>
    %cst_227 = arith.constant 1.000000e-01 : f32
    %480 = vector.broadcast %cst_227 : f32 to vector<16x64xf32>
    %481 = arith.mulf %480, %477 : vector<16x64xf32>
    %482 = arith.select %479, %477, %481 : vector<16x64xi1>, vector<16x64xf32>
    %483 = arith.truncf %482 : vector<16x64xf32> to vector<16x64xbf16>
    %c0_228 = arith.constant 0 : index
    %c25_229 = arith.constant 25 : index
    %484 = vector.load %arg41[%c0_228, %c25_229] : memref<16x114xbf16, #tpu.memory_space<vmem>>, vector<16x64xbf16>
    tpu.vector_store %arg41[%c0_228, %c25_229], %483 {strides = array<i32>} : memref<16x114xbf16, #tpu.memory_space<vmem>>, vector<16x64xbf16>,
    %c0_230 = arith.constant 0 : index
    %c0_231 = arith.constant 0 : index
    %485 = vector.load %arg41[%c0_230, %c0_231] : memref<16x114xbf16, #tpu.memory_space<vmem>>, vector<16x114xbf16>
    %c0_232 = arith.constant 0 : index
    %c0_233 = arith.constant 0 : index
    %486 = vector.load %arg34[%c0_232, %c0_233] : memref<16x176xbf16, #tpu.memory_space<vmem>>, vector<16x176xbf16>
    %cst_234 = arith.constant 0.000000e+00 : f32
    %487 = vector.broadcast %cst_234 : f32 to vector<16x64xf32>
    %488 = vector.extract_strided_slice %486 {offsets = [0, 0], sizes = [16, 16], strides = [1, 1]} : vector<16x176xbf16> to vector<16x16xbf16>
    %489 = vector.extract_strided_slice %485 {offsets = [0, 0], sizes = [16, 64], strides = [1, 1]} : vector<16x114xbf16> to vector<16x64xbf16>
    %cst_235 = arith.constant dense<0.000000e+00> : vector<16x64xf32>
    %490 = tpu.matmul %488, %489, %cst_235 {dimension_numbers = #tpu.dot_dimension_numbers<[1], [0], [0], [1], [0, 0, 1, 1], [], []>} : vector<16x16xbf16>, vector<16x64xbf16>, vector<16x64xf32> -> vector<16x64xf32>
    %491 = arith.addf %487, %490 : vector<16x64xf32>
    %492 = vector.extract_strided_slice %486 {offsets = [0, 16], sizes = [16, 16], strides = [1, 1]} : vector<16x176xbf16> to vector<16x16xbf16>
    %493 = vector.extract_strided_slice %485 {offsets = [0, 5], sizes = [16, 64], strides = [1, 1]} : vector<16x114xbf16> to vector<16x64xbf16>
    %cst_236 = arith.constant dense<0.000000e+00> : vector<16x64xf32>
    %494 = tpu.matmul %492, %493, %cst_236 {dimension_numbers = #tpu.dot_dimension_numbers<[1], [0], [0], [1], [0, 0, 1, 1], [], []>} : vector<16x16xbf16>, vector<16x64xbf16>, vector<16x64xf32> -> vector<16x64xf32>
    %495 = arith.addf %491, %494 : vector<16x64xf32>
    %496 = vector.extract_strided_slice %486 {offsets = [0, 32], sizes = [16, 16], strides = [1, 1]} : vector<16x176xbf16> to vector<16x16xbf16>
    %497 = vector.extract_strided_slice %485 {offsets = [0, 10], sizes = [16, 64], strides = [1, 1]} : vector<16x114xbf16> to vector<16x64xbf16>
    %cst_237 = arith.constant dense<0.000000e+00> : vector<16x64xf32>
    %498 = tpu.matmul %496, %497, %cst_237 {dimension_numbers = #tpu.dot_dimension_numbers<[1], [0], [0], [1], [0, 0, 1, 1], [], []>} : vector<16x16xbf16>, vector<16x64xbf16>, vector<16x64xf32> -> vector<16x64xf32>
    %499 = arith.addf %495, %498 : vector<16x64xf32>
    %500 = vector.extract_strided_slice %486 {offsets = [0, 48], sizes = [16, 16], strides = [1, 1]} : vector<16x176xbf16> to vector<16x16xbf16>
    %501 = vector.extract_strided_slice %485 {offsets = [0, 15], sizes = [16, 64], strides = [1, 1]} : vector<16x114xbf16> to vector<16x64xbf16>
    %cst_238 = arith.constant dense<0.000000e+00> : vector<16x64xf32>
    %502 = tpu.matmul %500, %501, %cst_238 {dimension_numbers = #tpu.dot_dimension_numbers<[1], [0], [0], [1], [0, 0, 1, 1], [], []>} : vector<16x16xbf16>, vector<16x64xbf16>, vector<16x64xf32> -> vector<16x64xf32>
    %503 = arith.addf %499, %502 : vector<16x64xf32>
    %504 = vector.extract_strided_slice %486 {offsets = [0, 64], sizes = [16, 16], strides = [1, 1]} : vector<16x176xbf16> to vector<16x16xbf16>
    %505 = vector.extract_strided_slice %485 {offsets = [0, 20], sizes = [16, 64], strides = [1, 1]} : vector<16x114xbf16> to vector<16x64xbf16>
    %cst_239 = arith.constant dense<0.000000e+00> : vector<16x64xf32>
    %506 = tpu.matmul %504, %505, %cst_239 {dimension_numbers = #tpu.dot_dimension_numbers<[1], [0], [0], [1], [0, 0, 1, 1], [], []>} : vector<16x16xbf16>, vector<16x64xbf16>, vector<16x64xf32> -> vector<16x64xf32>
    %507 = arith.addf %503, %506 : vector<16x64xf32>
    %508 = vector.extract_strided_slice %486 {offsets = [0, 80], sizes = [16, 16], strides = [1, 1]} : vector<16x176xbf16> to vector<16x16xbf16>
    %509 = vector.extract_strided_slice %485 {offsets = [0, 25], sizes = [16, 64], strides = [1, 1]} : vector<16x114xbf16> to vector<16x64xbf16>
    %cst_240 = arith.constant dense<0.000000e+00> : vector<16x64xf32>
    %510 = tpu.matmul %508, %509, %cst_240 {dimension_numbers = #tpu.dot_dimension_numbers<[1], [0], [0], [1], [0, 0, 1, 1], [], []>} : vector<16x16xbf16>, vector<16x64xbf16>, vector<16x64xf32> -> vector<16x64xf32>
    %511 = arith.addf %507, %510 : vector<16x64xf32>
    %512 = vector.extract_strided_slice %486 {offsets = [0, 96], sizes = [16, 16], strides = [1, 1]} : vector<16x176xbf16> to vector<16x16xbf16>
    %513 = vector.extract_strided_slice %485 {offsets = [0, 30], sizes = [16, 64], strides = [1, 1]} : vector<16x114xbf16> to vector<16x64xbf16>
    %cst_241 = arith.constant dense<0.000000e+00> : vector<16x64xf32>
    %514 = tpu.matmul %512, %513, %cst_241 {dimension_numbers = #tpu.dot_dimension_numbers<[1], [0], [0], [1], [0, 0, 1, 1], [], []>} : vector<16x16xbf16>, vector<16x64xbf16>, vector<16x64xf32> -> vector<16x64xf32>
    %515 = arith.addf %511, %514 : vector<16x64xf32>
    %516 = vector.extract_strided_slice %486 {offsets = [0, 112], sizes = [16, 16], strides = [1, 1]} : vector<16x176xbf16> to vector<16x16xbf16>
    %517 = vector.extract_strided_slice %485 {offsets = [0, 35], sizes = [16, 64], strides = [1, 1]} : vector<16x114xbf16> to vector<16x64xbf16>
    %cst_242 = arith.constant dense<0.000000e+00> : vector<16x64xf32>
    %518 = tpu.matmul %516, %517, %cst_242 {dimension_numbers = #tpu.dot_dimension_numbers<[1], [0], [0], [1], [0, 0, 1, 1], [], []>} : vector<16x16xbf16>, vector<16x64xbf16>, vector<16x64xf32> -> vector<16x64xf32>
    %519 = arith.addf %515, %518 : vector<16x64xf32>
    %520 = vector.extract_strided_slice %486 {offsets = [0, 128], sizes = [16, 16], strides = [1, 1]} : vector<16x176xbf16> to vector<16x16xbf16>
    %521 = vector.extract_strided_slice %485 {offsets = [0, 40], sizes = [16, 64], strides = [1, 1]} : vector<16x114xbf16> to vector<16x64xbf16>
    %cst_243 = arith.constant dense<0.000000e+00> : vector<16x64xf32>
    %522 = tpu.matmul %520, %521, %cst_243 {dimension_numbers = #tpu.dot_dimension_numbers<[1], [0], [0], [1], [0, 0, 1, 1], [], []>} : vector<16x16xbf16>, vector<16x64xbf16>, vector<16x64xf32> -> vector<16x64xf32>
    %523 = arith.addf %519, %522 : vector<16x64xf32>
    %524 = vector.extract_strided_slice %486 {offsets = [0, 144], sizes = [16, 16], strides = [1, 1]} : vector<16x176xbf16> to vector<16x16xbf16>
    %525 = vector.extract_strided_slice %485 {offsets = [0, 45], sizes = [16, 64], strides = [1, 1]} : vector<16x114xbf16> to vector<16x64xbf16>
    %cst_244 = arith.constant dense<0.000000e+00> : vector<16x64xf32>
    %526 = tpu.matmul %524, %525, %cst_244 {dimension_numbers = #tpu.dot_dimension_numbers<[1], [0], [0], [1], [0, 0, 1, 1], [], []>} : vector<16x16xbf16>, vector<16x64xbf16>, vector<16x64xf32> -> vector<16x64xf32>
    %527 = arith.addf %523, %526 : vector<16x64xf32>
    %528 = vector.extract_strided_slice %486 {offsets = [0, 160], sizes = [16, 16], strides = [1, 1]} : vector<16x176xbf16> to vector<16x16xbf16>
    %529 = vector.extract_strided_slice %485 {offsets = [0, 50], sizes = [16, 64], strides = [1, 1]} : vector<16x114xbf16> to vector<16x64xbf16>
    %cst_245 = arith.constant dense<0.000000e+00> : vector<16x64xf32>
    %530 = tpu.matmul %528, %529, %cst_245 {dimension_numbers = #tpu.dot_dimension_numbers<[1], [0], [0], [1], [0, 0, 1, 1], [], []>} : vector<16x16xbf16>, vector<16x64xbf16>, vector<16x64xf32> -> vector<16x64xf32>
    %531 = arith.addf %527, %530 : vector<16x64xf32>
    %c0_246 = arith.constant 0 : index
    %c0_247 = arith.constant 0 : index
    %532 = vector.load %arg35[%c0_246, %c0_247] : memref<16x1xf32, #tpu.memory_space<vmem>>, vector<16x1xf32>
    %533 = vector.broadcast %532 : vector<16x1xf32> to vector<16x64xf32>
    %534 = arith.addf %531, %533 : vector<16x64xf32>
    %cst_248 = arith.constant 0.000000e+00 : f32
    %535 = vector.broadcast %cst_248 : f32 to vector<16x64xf32>
    %536 = arith.cmpf oge, %534, %535 : vector<16x64xf32>
    %cst_249 = arith.constant 1.000000e-01 : f32
    %537 = vector.broadcast %cst_249 : f32 to vector<16x64xf32>
    %538 = arith.mulf %537, %534 : vector<16x64xf32>
    %539 = arith.select %536, %534, %538 : vector<16x64xi1>, vector<16x64xf32>
    %540 = arith.truncf %539 : vector<16x64xf32> to vector<16x64xbf16>
    %c0_250 = arith.constant 0 : index
    %c25_251 = arith.constant 25 : index
    %541 = vector.load %arg41[%c0_250, %c25_251] : memref<16x114xbf16, #tpu.memory_space<vmem>>, vector<16x64xbf16>
    tpu.vector_store %arg41[%c0_250, %c25_251], %540 {strides = array<i32>} : memref<16x114xbf16, #tpu.memory_space<vmem>>, vector<16x64xbf16>,
    %c0_252 = arith.constant 0 : index
    %c0_253 = arith.constant 0 : index
    %542 = vector.load %arg41[%c0_252, %c0_253] : memref<16x114xbf16, #tpu.memory_space<vmem>>, vector<16x114xbf16>
    %c0_254 = arith.constant 0 : index
    %c0_255 = arith.constant 0 : index
    %543 = vector.load %arg36[%c0_254, %c0_255] : memref<16x176xbf16, #tpu.memory_space<vmem>>, vector<16x176xbf16>
    %cst_256 = arith.constant 0.000000e+00 : f32
    %544 = vector.broadcast %cst_256 : f32 to vector<16x64xf32>
    %545 = vector.extract_strided_slice %543 {offsets = [0, 0], sizes = [16, 16], strides = [1, 1]} : vector<16x176xbf16> to vector<16x16xbf16>
    %546 = vector.extract_strided_slice %542 {offsets = [0, 20], sizes = [16, 64], strides = [1, 1]} : vector<16x114xbf16> to vector<16x64xbf16>
    %cst_257 = arith.constant dense<0.000000e+00> : vector<16x64xf32>
    %547 = tpu.matmul %545, %546, %cst_257 {dimension_numbers = #tpu.dot_dimension_numbers<[1], [0], [0], [1], [0, 0, 1, 1], [], []>} : vector<16x16xbf16>, vector<16x64xbf16>, vector<16x64xf32> -> vector<16x64xf32>
    %548 = arith.addf %544, %547 : vector<16x64xf32>
    %549 = vector.extract_strided_slice %543 {offsets = [0, 16], sizes = [16, 16], strides = [1, 1]} : vector<16x176xbf16> to vector<16x16xbf16>
    %550 = vector.extract_strided_slice %542 {offsets = [0, 21], sizes = [16, 64], strides = [1, 1]} : vector<16x114xbf16> to vector<16x64xbf16>
    %cst_258 = arith.constant dense<0.000000e+00> : vector<16x64xf32>
    %551 = tpu.matmul %549, %550, %cst_258 {dimension_numbers = #tpu.dot_dimension_numbers<[1], [0], [0], [1], [0, 0, 1, 1], [], []>} : vector<16x16xbf16>, vector<16x64xbf16>, vector<16x64xf32> -> vector<16x64xf32>
    %552 = arith.addf %548, %551 : vector<16x64xf32>
    %553 = vector.extract_strided_slice %543 {offsets = [0, 32], sizes = [16, 16], strides = [1, 1]} : vector<16x176xbf16> to vector<16x16xbf16>
    %554 = vector.extract_strided_slice %542 {offsets = [0, 22], sizes = [16, 64], strides = [1, 1]} : vector<16x114xbf16> to vector<16x64xbf16>
    %cst_259 = arith.constant dense<0.000000e+00> : vector<16x64xf32>
    %555 = tpu.matmul %553, %554, %cst_259 {dimension_numbers = #tpu.dot_dimension_numbers<[1], [0], [0], [1], [0, 0, 1, 1], [], []>} : vector<16x16xbf16>, vector<16x64xbf16>, vector<16x64xf32> -> vector<16x64xf32>
    %556 = arith.addf %552, %555 : vector<16x64xf32>
    %557 = vector.extract_strided_slice %543 {offsets = [0, 48], sizes = [16, 16], strides = [1, 1]} : vector<16x176xbf16> to vector<16x16xbf16>
    %558 = vector.extract_strided_slice %542 {offsets = [0, 23], sizes = [16, 64], strides = [1, 1]} : vector<16x114xbf16> to vector<16x64xbf16>
    %cst_260 = arith.constant dense<0.000000e+00> : vector<16x64xf32>
    %559 = tpu.matmul %557, %558, %cst_260 {dimension_numbers = #tpu.dot_dimension_numbers<[1], [0], [0], [1], [0, 0, 1, 1], [], []>} : vector<16x16xbf16>, vector<16x64xbf16>, vector<16x64xf32> -> vector<16x64xf32>
    %560 = arith.addf %556, %559 : vector<16x64xf32>
    %561 = vector.extract_strided_slice %543 {offsets = [0, 64], sizes = [16, 16], strides = [1, 1]} : vector<16x176xbf16> to vector<16x16xbf16>
    %562 = vector.extract_strided_slice %542 {offsets = [0, 24], sizes = [16, 64], strides = [1, 1]} : vector<16x114xbf16> to vector<16x64xbf16>
    %cst_261 = arith.constant dense<0.000000e+00> : vector<16x64xf32>
    %563 = tpu.matmul %561, %562, %cst_261 {dimension_numbers = #tpu.dot_dimension_numbers<[1], [0], [0], [1], [0, 0, 1, 1], [], []>} : vector<16x16xbf16>, vector<16x64xbf16>, vector<16x64xf32> -> vector<16x64xf32>
    %564 = arith.addf %560, %563 : vector<16x64xf32>
    %565 = vector.extract_strided_slice %543 {offsets = [0, 80], sizes = [16, 16], strides = [1, 1]} : vector<16x176xbf16> to vector<16x16xbf16>
    %566 = vector.extract_strided_slice %542 {offsets = [0, 25], sizes = [16, 64], strides = [1, 1]} : vector<16x114xbf16> to vector<16x64xbf16>
    %cst_262 = arith.constant dense<0.000000e+00> : vector<16x64xf32>
    %567 = tpu.matmul %565, %566, %cst_262 {dimension_numbers = #tpu.dot_dimension_numbers<[1], [0], [0], [1], [0, 0, 1, 1], [], []>} : vector<16x16xbf16>, vector<16x64xbf16>, vector<16x64xf32> -> vector<16x64xf32>
    %568 = arith.addf %564, %567 : vector<16x64xf32>
    %569 = vector.extract_strided_slice %543 {offsets = [0, 96], sizes = [16, 16], strides = [1, 1]} : vector<16x176xbf16> to vector<16x16xbf16>
    %570 = vector.extract_strided_slice %542 {offsets = [0, 26], sizes = [16, 64], strides = [1, 1]} : vector<16x114xbf16> to vector<16x64xbf16>
    %cst_263 = arith.constant dense<0.000000e+00> : vector<16x64xf32>
    %571 = tpu.matmul %569, %570, %cst_263 {dimension_numbers = #tpu.dot_dimension_numbers<[1], [0], [0], [1], [0, 0, 1, 1], [], []>} : vector<16x16xbf16>, vector<16x64xbf16>, vector<16x64xf32> -> vector<16x64xf32>
    %572 = arith.addf %568, %571 : vector<16x64xf32>
    %573 = vector.extract_strided_slice %543 {offsets = [0, 112], sizes = [16, 16], strides = [1, 1]} : vector<16x176xbf16> to vector<16x16xbf16>
    %574 = vector.extract_strided_slice %542 {offsets = [0, 27], sizes = [16, 64], strides = [1, 1]} : vector<16x114xbf16> to vector<16x64xbf16>
    %cst_264 = arith.constant dense<0.000000e+00> : vector<16x64xf32>
    %575 = tpu.matmul %573, %574, %cst_264 {dimension_numbers = #tpu.dot_dimension_numbers<[1], [0], [0], [1], [0, 0, 1, 1], [], []>} : vector<16x16xbf16>, vector<16x64xbf16>, vector<16x64xf32> -> vector<16x64xf32>
    %576 = arith.addf %572, %575 : vector<16x64xf32>
    %577 = vector.extract_strided_slice %543 {offsets = [0, 128], sizes = [16, 16], strides = [1, 1]} : vector<16x176xbf16> to vector<16x16xbf16>
    %578 = vector.extract_strided_slice %542 {offsets = [0, 28], sizes = [16, 64], strides = [1, 1]} : vector<16x114xbf16> to vector<16x64xbf16>
    %cst_265 = arith.constant dense<0.000000e+00> : vector<16x64xf32>
    %579 = tpu.matmul %577, %578, %cst_265 {dimension_numbers = #tpu.dot_dimension_numbers<[1], [0], [0], [1], [0, 0, 1, 1], [], []>} : vector<16x16xbf16>, vector<16x64xbf16>, vector<16x64xf32> -> vector<16x64xf32>
    %580 = arith.addf %576, %579 : vector<16x64xf32>
    %581 = vector.extract_strided_slice %543 {offsets = [0, 144], sizes = [16, 16], strides = [1, 1]} : vector<16x176xbf16> to vector<16x16xbf16>
    %582 = vector.extract_strided_slice %542 {offsets = [0, 29], sizes = [16, 64], strides = [1, 1]} : vector<16x114xbf16> to vector<16x64xbf16>
    %cst_266 = arith.constant dense<0.000000e+00> : vector<16x64xf32>
    %583 = tpu.matmul %581, %582, %cst_266 {dimension_numbers = #tpu.dot_dimension_numbers<[1], [0], [0], [1], [0, 0, 1, 1], [], []>} : vector<16x16xbf16>, vector<16x64xbf16>, vector<16x64xf32> -> vector<16x64xf32>
    %584 = arith.addf %580, %583 : vector<16x64xf32>
    %585 = vector.extract_strided_slice %543 {offsets = [0, 160], sizes = [16, 16], strides = [1, 1]} : vector<16x176xbf16> to vector<16x16xbf16>
    %586 = vector.extract_strided_slice %542 {offsets = [0, 30], sizes = [16, 64], strides = [1, 1]} : vector<16x114xbf16> to vector<16x64xbf16>
    %cst_267 = arith.constant dense<0.000000e+00> : vector<16x64xf32>
    %587 = tpu.matmul %585, %586, %cst_267 {dimension_numbers = #tpu.dot_dimension_numbers<[1], [0], [0], [1], [0, 0, 1, 1], [], []>} : vector<16x16xbf16>, vector<16x64xbf16>, vector<16x64xf32> -> vector<16x64xf32>
    %588 = arith.addf %584, %587 : vector<16x64xf32>
    %c0_268 = arith.constant 0 : index
    %c0_269 = arith.constant 0 : index
    %589 = vector.load %arg37[%c0_268, %c0_269] : memref<16x1xf32, #tpu.memory_space<vmem>>, vector<16x1xf32>
    %590 = vector.broadcast %589 : vector<16x1xf32> to vector<16x64xf32>
    %591 = arith.addf %588, %590 : vector<16x64xf32>
    %592 = arith.addf %477, %591 : vector<16x64xf32>
    %593 = arith.addf %247, %592 : vector<16x64xf32>
    %cst_270 = arith.constant 0.333333343 : f32
    %594 = vector.broadcast %cst_270 : f32 to vector<16x64xf32>
    %595 = arith.mulf %593, %594 : vector<16x64xf32>
    %cst_271 = arith.constant 0.000000e+00 : f32
    %596 = vector.broadcast %cst_271 : f32 to vector<16x64xf32>
    %597 = arith.cmpf oge, %595, %596 : vector<16x64xf32>
    %cst_272 = arith.constant 1.000000e-01 : f32
    %598 = vector.broadcast %cst_272 : f32 to vector<16x64xf32>
    %599 = arith.mulf %598, %595 : vector<16x64xf32>
    %600 = arith.select %597, %595, %599 : vector<16x64xi1>, vector<16x64xf32>
    %601 = arith.truncf %600 : vector<16x64xf32> to vector<16x64xbf16>
    %c0_273 = arith.constant 0 : index
    %c25_274 = arith.constant 25 : index
    %602 = vector.load %arg41[%c0_273, %c25_274] : memref<16x114xbf16, #tpu.memory_space<vmem>>, vector<16x64xbf16>
    tpu.vector_store %arg41[%c0_273, %c25_274], %601 {strides = array<i32>} : memref<16x114xbf16, #tpu.memory_space<vmem>>, vector<16x64xbf16>,
    %c0_275 = arith.constant 0 : index
    %c0_276 = arith.constant 0 : index
    %603 = vector.load %arg41[%c0_275, %c0_276] : memref<16x114xbf16, #tpu.memory_space<vmem>>, vector<16x114xbf16>
    %c0_277 = arith.constant 0 : index
    %c0_278 = arith.constant 0 : index
    %604 = vector.load %arg38[%c0_277, %c0_278] : memref<16x48xbf16, #tpu.memory_space<vmem>>, vector<16x48xbf16>
    %605 = vector.extract_strided_slice %603 {offsets = [0, 26], sizes = [16, 64], strides = [1, 1]} : vector<16x114xbf16> to vector<16x64xbf16>
    %606 = vector.extract_strided_slice %603 {offsets = [0, 25], sizes = [16, 64], strides = [1, 1]} : vector<16x114xbf16> to vector<16x64xbf16>
    %607 = vector.extract_strided_slice %603 {offsets = [0, 24], sizes = [16, 64], strides = [1, 1]} : vector<16x114xbf16> to vector<16x64xbf16>
    %608 = tpu.concatenate %605, %606, %607 in 0 : vector<16x64xbf16>, vector<16x64xbf16>, vector<16x64xbf16> -> vector<48x64xbf16>
    %cst_279 = arith.constant dense<0.000000e+00> : vector<16x64xf32>
    %609 = tpu.matmul %604, %608, %cst_279 {dimension_numbers = #tpu.dot_dimension_numbers<[1], [0], [0], [1], [0, 0, 1, 1], [], []>} : vector<16x48xbf16>, vector<48x64xbf16>, vector<16x64xf32> -> vector<16x64xf32>
    %c0_280 = arith.constant 0 : index
    %c0_281 = arith.constant 0 : index
    %610 = vector.load %arg39[%c0_280, %c0_281] : memref<16x1xf32, #tpu.memory_space<vmem>>, vector<16x1xf32>
    %611 = vector.broadcast %610 : vector<16x1xf32> to vector<16x64xf32>
    %612 = arith.addf %609, %611 : vector<16x64xf32>
    %613 = tpu.iota {dimensions = array<i32: 0>} : vector<64x64xi32>
    %614 = tpu.iota {dimensions = array<i32: 1>} : vector<64x64xi32>
    %615 = arith.cmpi eq, %613, %614 : vector<64x64xi32>
    %616 = arith.extui %615 : vector<64x64xi1> to vector<64x64xi32>
    %617 = arith.sitofp %616 : vector<64x64xi32> to vector<64x64xf32>
    %618 = arith.truncf %617 : vector<64x64xf32> to vector<64x64xbf16>
    %619 = arith.truncf %612 : vector<16x64xf32> to vector<16x64xbf16>
    %cst_282 = arith.constant dense<0.000000e+00> : vector<64x16xf32>
    %620 = tpu.matmul %618, %619, %cst_282 {dimension_numbers = #tpu.dot_dimension_numbers<[1], [1], [0], [0], [0, 0, 1, 0], [], []>} : vector<64x64xbf16>, vector<16x64xbf16>, vector<64x16xf32> -> vector<64x16xf32>
    %621 = arith.truncf %620 : vector<64x16xf32> to vector<64x16xbf16>
    %c0_283 = arith.constant 0 : index
    %c0_284 = arith.constant 0 : index
    %c0_285 = arith.constant 0 : index
    %622 = vector.load %arg40[%c0_283, %c0_284, %c0_285] : memref<1x64x16xbf16, #tpu.memory_space<vmem>>, vector<1x64x16xbf16>
    %623 = vector.shape_cast %622 : vector<1x64x16xbf16> to vector<64x16xbf16>
    %624 = vector.shape_cast %621 : vector<64x16xbf16> to vector<1x64x16xbf16>
    tpu.vector_store %arg40[%c0_283, %c0_284, %c0_285], %624 {strides = array<i32>} : memref<1x64x16xbf16, #tpu.memory_space<vmem>>, vector<1x64x16xbf16>,
    return
  }
  func.func @transform_0(%arg0: i32) -> (i32, i32, i32) {
    %c0_i32 = arith.constant 0 : i32
    %c0_i32_0 = arith.constant 0 : i32
    %c0_i32_1 = arith.constant 0 : i32
    return %arg0, %c0_i32, %c0_i32_0 : i32, i32, i32
  }
  func.func @transform_1(%arg0: i32) -> (i32, i32) {
    %c0_i32 = arith.constant 0 : i32
    %c0_i32_0 = arith.constant 0 : i32
    %c0_i32_1 = arith.constant 0 : i32
    return %c0_i32, %c0_i32_0 : i32, i32
  }
  func.func @transform_2(%arg0: i32) -> (i32, i32) {
    %c0_i32 = arith.constant 0 : i32
    %c0_i32_0 = arith.constant 0 : i32
    %c0_i32_1 = arith.constant 0 : i32
    return %c0_i32, %c0_i32_0 : i32, i32
  }
  func.func @transform_3(%arg0: i32) -> (i32, i32) {
    %c0_i32 = arith.constant 0 : i32
    %c0_i32_0 = arith.constant 0 : i32
    %c0_i32_1 = arith.constant 0 : i32
    return %c0_i32, %c0_i32_0 : i32, i32
  }
  func.func @transform_4(%arg0: i32) -> (i32, i32) {
    %c0_i32 = arith.constant 0 : i32
    %c0_i32_0 = arith.constant 0 : i32
    %c0_i32_1 = arith.constant 0 : i32
    return %c0_i32, %c0_i32_0 : i32, i32
  }
  func.func @transform_5(%arg0: i32) -> (i32, i32) {
    %c0_i32 = arith.constant 0 : i32
    %c0_i32_0 = arith.constant 0 : i32
    %c0_i32_1 = arith.constant 0 : i32
    return %c0_i32, %c0_i32_0 : i32, i32
  }
  func.func @transform_6(%arg0: i32) -> (i32, i32) {
    %c0_i32 = arith.constant 0 : i32
    %c0_i32_0 = arith.constant 0 : i32
    %c0_i32_1 = arith.constant 0 : i32
    return %c0_i32, %c0_i32_0 : i32, i32
  }
  func.func @transform_7(%arg0: i32) -> (i32, i32) {
    %c0_i32 = arith.constant 0 : i32
    %c0_i32_0 = arith.constant 0 : i32
    %c0_i32_1 = arith.constant 0 : i32
    return %c0_i32, %c0_i32_0 : i32, i32
  }
  func.func @transform_8(%arg0: i32) -> (i32, i32) {
    %c0_i32 = arith.constant 0 : i32
    %c0_i32_0 = arith.constant 0 : i32
    %c0_i32_1 = arith.constant 0 : i32
    return %c0_i32, %c0_i32_0 : i32, i32
  }
  func.func @transform_9(%arg0: i32) -> (i32, i32) {
    %c0_i32 = arith.constant 0 : i32
    %c0_i32_0 = arith.constant 0 : i32
    %c0_i32_1 = arith.constant 0 : i32
    return %c0_i32, %c0_i32_0 : i32, i32
  }
  func.func @transform_10(%arg0: i32) -> (i32, i32) {
    %c0_i32 = arith.constant 0 : i32
    %c0_i32_0 = arith.constant 0 : i32
    %c0_i32_1 = arith.constant 0 : i32
    return %c0_i32, %c0_i32_0 : i32, i32
  }
  func.func @transform_11(%arg0: i32) -> (i32, i32) {
    %c0_i32 = arith.constant 0 : i32
    %c0_i32_0 = arith.constant 0 : i32
    %c0_i32_1 = arith.constant 0 : i32
    return %c0_i32, %c0_i32_0 : i32, i32
  }
  func.func @transform_12(%arg0: i32) -> (i32, i32) {
    %c0_i32 = arith.constant 0 : i32
    %c0_i32_0 = arith.constant 0 : i32
    %c0_i32_1 = arith.constant 0 : i32
    return %c0_i32, %c0_i32_0 : i32, i32
  }
  func.func @transform_13(%arg0: i32) -> (i32, i32) {
    %c0_i32 = arith.constant 0 : i32
    %c0_i32_0 = arith.constant 0 : i32
    %c0_i32_1 = arith.constant 0 : i32
    return %c0_i32, %c0_i32_0 : i32, i32
  }
  func.func @transform_14(%arg0: i32) -> (i32, i32) {
    %c0_i32 = arith.constant 0 : i32
    %c0_i32_0 = arith.constant 0 : i32
    %c0_i32_1 = arith.constant 0 : i32
    return %c0_i32, %c0_i32_0 : i32, i32
  }
  func.func @transform_15(%arg0: i32) -> (i32, i32) {
    %c0_i32 = arith.constant 0 : i32
    %c0_i32_0 = arith.constant 0 : i32
    %c0_i32_1 = arith.constant 0 : i32
    return %c0_i32, %c0_i32_0 : i32, i32
  }
  func.func @transform_16(%arg0: i32) -> (i32, i32) {
    %c0_i32 = arith.constant 0 : i32
    %c0_i32_0 = arith.constant 0 : i32
    %c0_i32_1 = arith.constant 0 : i32
    return %c0_i32, %c0_i32_0 : i32, i32
  }
  func.func @transform_17(%arg0: i32) -> (i32, i32) {
    %c0_i32 = arith.constant 0 : i32
    %c0_i32_0 = arith.constant 0 : i32
    %c0_i32_1 = arith.constant 0 : i32
    return %c0_i32, %c0_i32_0 : i32, i32
  }
  func.func @transform_18(%arg0: i32) -> (i32, i32) {
    %c0_i32 = arith.constant 0 : i32
    %c0_i32_0 = arith.constant 0 : i32
    %c0_i32_1 = arith.constant 0 : i32
    return %c0_i32, %c0_i32_0 : i32, i32
  }
  func.func @transform_19(%arg0: i32) -> (i32, i32) {
    %c0_i32 = arith.constant 0 : i32
    %c0_i32_0 = arith.constant 0 : i32
    %c0_i32_1 = arith.constant 0 : i32
    return %c0_i32, %c0_i32_0 : i32, i32
  }
  func.func @transform_20(%arg0: i32) -> (i32, i32) {
    %c0_i32 = arith.constant 0 : i32
    %c0_i32_0 = arith.constant 0 : i32
    %c0_i32_1 = arith.constant 0 : i32
    return %c0_i32, %c0_i32_0 : i32, i32
  }
  func.func @transform_21(%arg0: i32) -> (i32, i32) {
    %c0_i32 = arith.constant 0 : i32
    %c0_i32_0 = arith.constant 0 : i32
    %c0_i32_1 = arith.constant 0 : i32
    return %c0_i32, %c0_i32_0 : i32, i32
  }
  func.func @transform_22(%arg0: i32) -> (i32, i32) {
    %c0_i32 = arith.constant 0 : i32
    %c0_i32_0 = arith.constant 0 : i32
    %c0_i32_1 = arith.constant 0 : i32
    return %c0_i32, %c0_i32_0 : i32, i32
  }
  func.func @transform_23(%arg0: i32) -> (i32, i32) {
    %c0_i32 = arith.constant 0 : i32
    %c0_i32_0 = arith.constant 0 : i32
    %c0_i32_1 = arith.constant 0 : i32
    return %c0_i32, %c0_i32_0 : i32, i32
  }
  func.func @transform_24(%arg0: i32) -> (i32, i32) {
    %c0_i32 = arith.constant 0 : i32
    %c0_i32_0 = arith.constant 0 : i32
    %c0_i32_1 = arith.constant 0 : i32
    return %c0_i32, %c0_i32_0 : i32, i32
  }
  func.func @transform_25(%arg0: i32) -> (i32, i32) {
    %c0_i32 = arith.constant 0 : i32
    %c0_i32_0 = arith.constant 0 : i32
    %c0_i32_1 = arith.constant 0 : i32
    return %c0_i32, %c0_i32_0 : i32, i32
  }
  func.func @transform_26(%arg0: i32) -> (i32, i32) {
    %c0_i32 = arith.constant 0 : i32
    %c0_i32_0 = arith.constant 0 : i32
    %c0_i32_1 = arith.constant 0 : i32
    return %c0_i32, %c0_i32_0 : i32, i32
  }
  func.func @transform_27(%arg0: i32) -> (i32, i32) {
    %c0_i32 = arith.constant 0 : i32
    %c0_i32_0 = arith.constant 0 : i32
    %c0_i32_1 = arith.constant 0 : i32
    return %c0_i32, %c0_i32_0 : i32, i32
  }
  func.func @transform_28(%arg0: i32) -> (i32, i32) {
    %c0_i32 = arith.constant 0 : i32
    %c0_i32_0 = arith.constant 0 : i32
    %c0_i32_1 = arith.constant 0 : i32
    return %c0_i32, %c0_i32_0 : i32, i32
  }
  func.func @transform_29(%arg0: i32) -> (i32, i32) {
    %c0_i32 = arith.constant 0 : i32
    %c0_i32_0 = arith.constant 0 : i32
    %c0_i32_1 = arith.constant 0 : i32
    return %c0_i32, %c0_i32_0 : i32, i32
  }
  func.func @transform_30(%arg0: i32) -> (i32, i32) {
    %c0_i32 = arith.constant 0 : i32
    %c0_i32_0 = arith.constant 0 : i32
    %c0_i32_1 = arith.constant 0 : i32
    return %c0_i32, %c0_i32_0 : i32, i32
  }
  func.func @transform_31(%arg0: i32) -> (i32, i32) {
    %c0_i32 = arith.constant 0 : i32
    %c0_i32_0 = arith.constant 0 : i32
    %c0_i32_1 = arith.constant 0 : i32
    return %c0_i32, %c0_i32_0 : i32, i32
  }
  func.func @transform_32(%arg0: i32) -> (i32, i32) {
    %c0_i32 = arith.constant 0 : i32
    %c0_i32_0 = arith.constant 0 : i32
    %c0_i32_1 = arith.constant 0 : i32
    return %c0_i32, %c0_i32_0 : i32, i32
  }
  func.func @transform_33(%arg0: i32) -> (i32, i32) {
    %c0_i32 = arith.constant 0 : i32
    %c0_i32_0 = arith.constant 0 : i32
    %c0_i32_1 = arith.constant 0 : i32
    return %c0_i32, %c0_i32_0 : i32, i32
  }
  func.func @transform_34(%arg0: i32) -> (i32, i32) {
    %c0_i32 = arith.constant 0 : i32
    %c0_i32_0 = arith.constant 0 : i32
    %c0_i32_1 = arith.constant 0 : i32
    return %c0_i32, %c0_i32_0 : i32, i32
  }
  func.func @transform_35(%arg0: i32) -> (i32, i32) {
    %c0_i32 = arith.constant 0 : i32
    %c0_i32_0 = arith.constant 0 : i32
    %c0_i32_1 = arith.constant 0 : i32
    return %c0_i32, %c0_i32_0 : i32, i32
  }
  func.func @transform_36(%arg0: i32) -> (i32, i32) {
    %c0_i32 = arith.constant 0 : i32
    %c0_i32_0 = arith.constant 0 : i32
    %c0_i32_1 = arith.constant 0 : i32
    return %c0_i32, %c0_i32_0 : i32, i32
  }
  func.func @transform_37(%arg0: i32) -> (i32, i32) {
    %c0_i32 = arith.constant 0 : i32
    %c0_i32_0 = arith.constant 0 : i32
    %c0_i32_1 = arith.constant 0 : i32
    return %c0_i32, %c0_i32_0 : i32, i32
  }
  func.func @transform_38(%arg0: i32) -> (i32, i32) {
    %c0_i32 = arith.constant 0 : i32
    %c0_i32_0 = arith.constant 0 : i32
    %c0_i32_1 = arith.constant 0 : i32
    return %c0_i32, %c0_i32_0 : i32, i32
  }
  func.func @transform_39(%arg0: i32) -> (i32, i32, i32) {
    %c0_i32 = arith.constant 0 : i32
    %c0_i32_0 = arith.constant 0 : i32
    %c0_i32_1 = arith.constant 0 : i32
    return %arg0, %c0_i32, %c0_i32_0 : i32, i32, i32
  }
}

module attributes {stable_mosaic.version = 11 : i64} {
  func.func @_stage_out_kernel(%arg0: i32, %arg1: memref<1x128x8xbf16, #tpu.memory_space<vmem>>, %arg2: memref<8x24xbf16, #tpu.memory_space<vmem>>, %arg3: memref<8x1xf32, #tpu.memory_space<vmem>>, %arg4: memref<8x24xbf16, #tpu.memory_space<vmem>>, %arg5: memref<8x1xf32, #tpu.memory_space<vmem>>, %arg6: memref<8x24xbf16, #tpu.memory_space<vmem>>, %arg7: memref<8x1xf32, #tpu.memory_space<vmem>>, %arg8: memref<8x24xbf16, #tpu.memory_space<vmem>>, %arg9: memref<8x1xf32, #tpu.memory_space<vmem>>, %arg10: memref<8x24xbf16, #tpu.memory_space<vmem>>, %arg11: memref<8x1xf32, #tpu.memory_space<vmem>>, %arg12: memref<8x24xbf16, #tpu.memory_space<vmem>>, %arg13: memref<8x1xf32, #tpu.memory_space<vmem>>, %arg14: memref<8x56xbf16, #tpu.memory_space<vmem>>, %arg15: memref<8x1xf32, #tpu.memory_space<vmem>>, %arg16: memref<8x56xbf16, #tpu.memory_space<vmem>>, %arg17: memref<8x1xf32, #tpu.memory_space<vmem>>, %arg18: memref<8x56xbf16, #tpu.memory_space<vmem>>, %arg19: memref<8x1xf32, #tpu.memory_space<vmem>>, %arg20: memref<8x56xbf16, #tpu.memory_space<vmem>>, %arg21: memref<8x1xf32, #tpu.memory_space<vmem>>, %arg22: memref<8x56xbf16, #tpu.memory_space<vmem>>, %arg23: memref<8x1xf32, #tpu.memory_space<vmem>>, %arg24: memref<8x56xbf16, #tpu.memory_space<vmem>>, %arg25: memref<8x1xf32, #tpu.memory_space<vmem>>, %arg26: memref<8x88xbf16, #tpu.memory_space<vmem>>, %arg27: memref<8x1xf32, #tpu.memory_space<vmem>>, %arg28: memref<8x88xbf16, #tpu.memory_space<vmem>>, %arg29: memref<8x1xf32, #tpu.memory_space<vmem>>, %arg30: memref<8x88xbf16, #tpu.memory_space<vmem>>, %arg31: memref<8x1xf32, #tpu.memory_space<vmem>>, %arg32: memref<8x88xbf16, #tpu.memory_space<vmem>>, %arg33: memref<8x1xf32, #tpu.memory_space<vmem>>, %arg34: memref<8x88xbf16, #tpu.memory_space<vmem>>, %arg35: memref<8x1xf32, #tpu.memory_space<vmem>>, %arg36: memref<8x88xbf16, #tpu.memory_space<vmem>>, %arg37: memref<8x1xf32, #tpu.memory_space<vmem>>, %arg38: memref<1x56xbf16, #tpu.memory_space<vmem>>, %arg39: memref<1x1x128xf32, #tpu.memory_space<vmem>>, %arg40: memref<8x178xbf16, #tpu.memory_space<vmem>>) attributes {dimension_semantics = [#tpu.dimension_semantics<parallel>], iteration_bounds = array<i64: 2>, scalar_prefetch = 0 : i64, scratch_operands = 1 : i64, tpu.core_type = #tpu.core_type<tc>, window_params = [{transform_indices = @transform_0, window_bounds = array<i64: 1, 128, 8>}, {pipeline_mode = #tpu.pipeline_mode<synchronous>, transform_indices = @transform_1, window_bounds = array<i64: 8, 24>}, {pipeline_mode = #tpu.pipeline_mode<synchronous>, transform_indices = @transform_2, window_bounds = array<i64: 8, 1>}, {pipeline_mode = #tpu.pipeline_mode<synchronous>, transform_indices = @transform_3, window_bounds = array<i64: 8, 24>}, {pipeline_mode = #tpu.pipeline_mode<synchronous>, transform_indices = @transform_4, window_bounds = array<i64: 8, 1>}, {pipeline_mode = #tpu.pipeline_mode<synchronous>, transform_indices = @transform_5, window_bounds = array<i64: 8, 24>}, {pipeline_mode = #tpu.pipeline_mode<synchronous>, transform_indices = @transform_6, window_bounds = array<i64: 8, 1>}, {pipeline_mode = #tpu.pipeline_mode<synchronous>, transform_indices = @transform_7, window_bounds = array<i64: 8, 24>}, {pipeline_mode = #tpu.pipeline_mode<synchronous>, transform_indices = @transform_8, window_bounds = array<i64: 8, 1>}, {pipeline_mode = #tpu.pipeline_mode<synchronous>, transform_indices = @transform_9, window_bounds = array<i64: 8, 24>}, {pipeline_mode = #tpu.pipeline_mode<synchronous>, transform_indices = @transform_10, window_bounds = array<i64: 8, 1>}, {pipeline_mode = #tpu.pipeline_mode<synchronous>, transform_indices = @transform_11, window_bounds = array<i64: 8, 24>}, {pipeline_mode = #tpu.pipeline_mode<synchronous>, transform_indices = @transform_12, window_bounds = array<i64: 8, 1>}, {pipeline_mode = #tpu.pipeline_mode<synchronous>, transform_indices = @transform_13, window_bounds = array<i64: 8, 56>}, {pipeline_mode = #tpu.pipeline_mode<synchronous>, transform_indices = @transform_14, window_bounds = array<i64: 8, 1>}, {pipeline_mode = #tpu.pipeline_mode<synchronous>, transform_indices = @transform_15, window_bounds = array<i64: 8, 56>}, {pipeline_mode = #tpu.pipeline_mode<synchronous>, transform_indices = @transform_16, window_bounds = array<i64: 8, 1>}, {pipeline_mode = #tpu.pipeline_mode<synchronous>, transform_indices = @transform_17, window_bounds = array<i64: 8, 56>}, {pipeline_mode = #tpu.pipeline_mode<synchronous>, transform_indices = @transform_18, window_bounds = array<i64: 8, 1>}, {pipeline_mode = #tpu.pipeline_mode<synchronous>, transform_indices = @transform_19, window_bounds = array<i64: 8, 56>}, {pipeline_mode = #tpu.pipeline_mode<synchronous>, transform_indices = @transform_20, window_bounds = array<i64: 8, 1>}, {pipeline_mode = #tpu.pipeline_mode<synchronous>, transform_indices = @transform_21, window_bounds = array<i64: 8, 56>}, {pipeline_mode = #tpu.pipeline_mode<synchronous>, transform_indices = @transform_22, window_bounds = array<i64: 8, 1>}, {pipeline_mode = #tpu.pipeline_mode<synchronous>, transform_indices = @transform_23, window_bounds = array<i64: 8, 56>}, {pipeline_mode = #tpu.pipeline_mode<synchronous>, transform_indices = @transform_24, window_bounds = array<i64: 8, 1>}, {pipeline_mode = #tpu.pipeline_mode<synchronous>, transform_indices = @transform_25, window_bounds = array<i64: 8, 88>}, {pipeline_mode = #tpu.pipeline_mode<synchronous>, transform_indices = @transform_26, window_bounds = array<i64: 8, 1>}, {pipeline_mode = #tpu.pipeline_mode<synchronous>, transform_indices = @transform_27, window_bounds = array<i64: 8, 88>}, {pipeline_mode = #tpu.pipeline_mode<synchronous>, transform_indices = @transform_28, window_bounds = array<i64: 8, 1>}, {pipeline_mode = #tpu.pipeline_mode<synchronous>, transform_indices = @transform_29, window_bounds = array<i64: 8, 88>}, {pipeline_mode = #tpu.pipeline_mode<synchronous>, transform_indices = @transform_30, window_bounds = array<i64: 8, 1>}, {pipeline_mode = #tpu.pipeline_mode<synchronous>, transform_indices = @transform_31, window_bounds = array<i64: 8, 88>}, {pipeline_mode = #tpu.pipeline_mode<synchronous>, transform_indices = @transform_32, window_bounds = array<i64: 8, 1>}, {pipeline_mode = #tpu.pipeline_mode<synchronous>, transform_indices = @transform_33, window_bounds = array<i64: 8, 88>}, {pipeline_mode = #tpu.pipeline_mode<synchronous>, transform_indices = @transform_34, window_bounds = array<i64: 8, 1>}, {pipeline_mode = #tpu.pipeline_mode<synchronous>, transform_indices = @transform_35, window_bounds = array<i64: 8, 88>}, {pipeline_mode = #tpu.pipeline_mode<synchronous>, transform_indices = @transform_36, window_bounds = array<i64: 8, 1>}, {pipeline_mode = #tpu.pipeline_mode<synchronous>, transform_indices = @transform_37, window_bounds = array<i64: 1, 56>}, {transform_indices = @transform_38, window_bounds = array<i64: 1, 1, 128>}]} {
    %cst = arith.constant 0.000000e+00 : bf16
    %0 = vector.broadcast %cst : bf16 to vector<8x25xbf16>
    %c0 = arith.constant 0 : index
    %c0_0 = arith.constant 0 : index
    %1 = vector.load %arg40[%c0, %c0_0] : memref<8x178xbf16, #tpu.memory_space<vmem>>, vector<8x25xbf16>
    tpu.vector_store %arg40[%c0, %c0_0], %0 {strides = array<i32>} : memref<8x178xbf16, #tpu.memory_space<vmem>>, vector<8x25xbf16>,
    %cst_1 = arith.constant 0.000000e+00 : bf16
    %2 = vector.broadcast %cst_1 : bf16 to vector<8x25xbf16>
    %c0_2 = arith.constant 0 : index
    %c153 = arith.constant 153 : index
    %3 = vector.load %arg40[%c0_2, %c153] : memref<8x178xbf16, #tpu.memory_space<vmem>>, vector<8x25xbf16>
    tpu.vector_store %arg40[%c0_2, %c153], %2 {strides = array<i32>} : memref<8x178xbf16, #tpu.memory_space<vmem>>, vector<8x25xbf16>,
    %c0_3 = arith.constant 0 : index
    %c0_4 = arith.constant 0 : index
    %c0_5 = arith.constant 0 : index
    %4 = vector.load %arg1[%c0_3, %c0_4, %c0_5] : memref<1x128x8xbf16, #tpu.memory_space<vmem>>, vector<1x128x8xbf16>
    %5 = vector.shape_cast %4 : vector<1x128x8xbf16> to vector<128x8xbf16>
    %6 = tpu.iota {dimensions = array<i32: 0>} : vector<8x8xi32>
    %7 = tpu.iota {dimensions = array<i32: 1>} : vector<8x8xi32>
    %8 = arith.cmpi eq, %6, %7 : vector<8x8xi32>
    %9 = arith.extui %8 : vector<8x8xi1> to vector<8x8xi32>
    %10 = arith.sitofp %9 : vector<8x8xi32> to vector<8x8xf32>
    %11 = arith.truncf %10 : vector<8x8xf32> to vector<8x8xbf16>
    %cst_6 = arith.constant dense<0.000000e+00> : vector<8x128xf32>
    %12 = tpu.matmul %11, %5, %cst_6 {dimension_numbers = #tpu.dot_dimension_numbers<[1], [1], [0], [0], [0, 0, 1, 0], [], []>} : vector<8x8xbf16>, vector<128x8xbf16>, vector<8x128xf32> -> vector<8x128xf32>
    %cst_7 = arith.constant 0.000000e+00 : f32
    %13 = vector.broadcast %cst_7 : f32 to vector<8x128xf32>
    %14 = arith.cmpf oge, %12, %13 : vector<8x128xf32>
    %cst_8 = arith.constant 1.000000e-01 : f32
    %15 = vector.broadcast %cst_8 : f32 to vector<8x128xf32>
    %16 = arith.mulf %15, %12 : vector<8x128xf32>
    %17 = arith.select %14, %12, %16 : vector<8x128xi1>, vector<8x128xf32>
    %18 = arith.truncf %17 : vector<8x128xf32> to vector<8x128xbf16>
    %c0_9 = arith.constant 0 : index
    %c25 = arith.constant 25 : index
    %19 = vector.load %arg40[%c0_9, %c25] : memref<8x178xbf16, #tpu.memory_space<vmem>>, vector<8x128xbf16>
    tpu.vector_store %arg40[%c0_9, %c25], %18 {strides = array<i32>} : memref<8x178xbf16, #tpu.memory_space<vmem>>, vector<8x128xbf16>,
    %c0_10 = arith.constant 0 : index
    %c0_11 = arith.constant 0 : index
    %20 = vector.load %arg40[%c0_10, %c0_11] : memref<8x178xbf16, #tpu.memory_space<vmem>>, vector<8x178xbf16>
    %c0_12 = arith.constant 0 : index
    %c0_13 = arith.constant 0 : index
    %21 = vector.load %arg2[%c0_12, %c0_13] : memref<8x24xbf16, #tpu.memory_space<vmem>>, vector<8x24xbf16>
    %22 = vector.extract_strided_slice %20 {offsets = [0, 24], sizes = [8, 128], strides = [1, 1]} : vector<8x178xbf16> to vector<8x128xbf16>
    %23 = vector.extract_strided_slice %20 {offsets = [0, 25], sizes = [8, 128], strides = [1, 1]} : vector<8x178xbf16> to vector<8x128xbf16>
    %24 = vector.extract_strided_slice %20 {offsets = [0, 26], sizes = [8, 128], strides = [1, 1]} : vector<8x178xbf16> to vector<8x128xbf16>
    %25 = tpu.concatenate %22, %23, %24 in 0 : vector<8x128xbf16>, vector<8x128xbf16>, vector<8x128xbf16> -> vector<24x128xbf16>
    %cst_14 = arith.constant dense<0.000000e+00> : vector<8x128xf32>
    %26 = tpu.matmul %21, %25, %cst_14 {dimension_numbers = #tpu.dot_dimension_numbers<[1], [0], [0], [1], [0, 0, 1, 1], [], []>} : vector<8x24xbf16>, vector<24x128xbf16>, vector<8x128xf32> -> vector<8x128xf32>
    %c0_15 = arith.constant 0 : index
    %c0_16 = arith.constant 0 : index
    %27 = vector.load %arg3[%c0_15, %c0_16] : memref<8x1xf32, #tpu.memory_space<vmem>>, vector<8x1xf32>
    %28 = vector.broadcast %27 : vector<8x1xf32> to vector<8x128xf32>
    %29 = arith.addf %26, %28 : vector<8x128xf32>
    %cst_17 = arith.constant 0.000000e+00 : f32
    %30 = vector.broadcast %cst_17 : f32 to vector<8x128xf32>
    %31 = arith.cmpf oge, %29, %30 : vector<8x128xf32>
    %cst_18 = arith.constant 1.000000e-01 : f32
    %32 = vector.broadcast %cst_18 : f32 to vector<8x128xf32>
    %33 = arith.mulf %32, %29 : vector<8x128xf32>
    %34 = arith.select %31, %29, %33 : vector<8x128xi1>, vector<8x128xf32>
    %35 = arith.truncf %34 : vector<8x128xf32> to vector<8x128xbf16>
    %c0_19 = arith.constant 0 : index
    %c25_20 = arith.constant 25 : index
    %36 = vector.load %arg40[%c0_19, %c25_20] : memref<8x178xbf16, #tpu.memory_space<vmem>>, vector<8x128xbf16>
    tpu.vector_store %arg40[%c0_19, %c25_20], %35 {strides = array<i32>} : memref<8x178xbf16, #tpu.memory_space<vmem>>, vector<8x128xbf16>,
    %c0_21 = arith.constant 0 : index
    %c0_22 = arith.constant 0 : index
    %37 = vector.load %arg40[%c0_21, %c0_22] : memref<8x178xbf16, #tpu.memory_space<vmem>>, vector<8x178xbf16>
    %c0_23 = arith.constant 0 : index
    %c0_24 = arith.constant 0 : index
    %38 = vector.load %arg4[%c0_23, %c0_24] : memref<8x24xbf16, #tpu.memory_space<vmem>>, vector<8x24xbf16>
    %39 = vector.extract_strided_slice %37 {offsets = [0, 24], sizes = [8, 128], strides = [1, 1]} : vector<8x178xbf16> to vector<8x128xbf16>
    %40 = vector.extract_strided_slice %37 {offsets = [0, 25], sizes = [8, 128], strides = [1, 1]} : vector<8x178xbf16> to vector<8x128xbf16>
    %41 = vector.extract_strided_slice %37 {offsets = [0, 26], sizes = [8, 128], strides = [1, 1]} : vector<8x178xbf16> to vector<8x128xbf16>
    %42 = tpu.concatenate %39, %40, %41 in 0 : vector<8x128xbf16>, vector<8x128xbf16>, vector<8x128xbf16> -> vector<24x128xbf16>
    %cst_25 = arith.constant dense<0.000000e+00> : vector<8x128xf32>
    %43 = tpu.matmul %38, %42, %cst_25 {dimension_numbers = #tpu.dot_dimension_numbers<[1], [0], [0], [1], [0, 0, 1, 1], [], []>} : vector<8x24xbf16>, vector<24x128xbf16>, vector<8x128xf32> -> vector<8x128xf32>
    %c0_26 = arith.constant 0 : index
    %c0_27 = arith.constant 0 : index
    %44 = vector.load %arg5[%c0_26, %c0_27] : memref<8x1xf32, #tpu.memory_space<vmem>>, vector<8x1xf32>
    %45 = vector.broadcast %44 : vector<8x1xf32> to vector<8x128xf32>
    %46 = arith.addf %43, %45 : vector<8x128xf32>
    %47 = arith.addf %12, %46 : vector<8x128xf32>
    %cst_28 = arith.constant 0.000000e+00 : f32
    %48 = vector.broadcast %cst_28 : f32 to vector<8x128xf32>
    %49 = arith.cmpf oge, %47, %48 : vector<8x128xf32>
    %cst_29 = arith.constant 1.000000e-01 : f32
    %50 = vector.broadcast %cst_29 : f32 to vector<8x128xf32>
    %51 = arith.mulf %50, %47 : vector<8x128xf32>
    %52 = arith.select %49, %47, %51 : vector<8x128xi1>, vector<8x128xf32>
    %53 = arith.truncf %52 : vector<8x128xf32> to vector<8x128xbf16>
    %c0_30 = arith.constant 0 : index
    %c25_31 = arith.constant 25 : index
    %54 = vector.load %arg40[%c0_30, %c25_31] : memref<8x178xbf16, #tpu.memory_space<vmem>>, vector<8x128xbf16>
    tpu.vector_store %arg40[%c0_30, %c25_31], %53 {strides = array<i32>} : memref<8x178xbf16, #tpu.memory_space<vmem>>, vector<8x128xbf16>,
    %c0_32 = arith.constant 0 : index
    %c0_33 = arith.constant 0 : index
    %55 = vector.load %arg40[%c0_32, %c0_33] : memref<8x178xbf16, #tpu.memory_space<vmem>>, vector<8x178xbf16>
    %c0_34 = arith.constant 0 : index
    %c0_35 = arith.constant 0 : index
    %56 = vector.load %arg6[%c0_34, %c0_35] : memref<8x24xbf16, #tpu.memory_space<vmem>>, vector<8x24xbf16>
    %57 = vector.extract_strided_slice %55 {offsets = [0, 22], sizes = [8, 128], strides = [1, 1]} : vector<8x178xbf16> to vector<8x128xbf16>
    %58 = vector.extract_strided_slice %55 {offsets = [0, 25], sizes = [8, 128], strides = [1, 1]} : vector<8x178xbf16> to vector<8x128xbf16>
    %59 = vector.extract_strided_slice %55 {offsets = [0, 28], sizes = [8, 128], strides = [1, 1]} : vector<8x178xbf16> to vector<8x128xbf16>
    %60 = tpu.concatenate %57, %58, %59 in 0 : vector<8x128xbf16>, vector<8x128xbf16>, vector<8x128xbf16> -> vector<24x128xbf16>
    %cst_36 = arith.constant dense<0.000000e+00> : vector<8x128xf32>
    %61 = tpu.matmul %56, %60, %cst_36 {dimension_numbers = #tpu.dot_dimension_numbers<[1], [0], [0], [1], [0, 0, 1, 1], [], []>} : vector<8x24xbf16>, vector<24x128xbf16>, vector<8x128xf32> -> vector<8x128xf32>
    %c0_37 = arith.constant 0 : index
    %c0_38 = arith.constant 0 : index
    %62 = vector.load %arg7[%c0_37, %c0_38] : memref<8x1xf32, #tpu.memory_space<vmem>>, vector<8x1xf32>
    %63 = vector.broadcast %62 : vector<8x1xf32> to vector<8x128xf32>
    %64 = arith.addf %61, %63 : vector<8x128xf32>
    %cst_39 = arith.constant 0.000000e+00 : f32
    %65 = vector.broadcast %cst_39 : f32 to vector<8x128xf32>
    %66 = arith.cmpf oge, %64, %65 : vector<8x128xf32>
    %cst_40 = arith.constant 1.000000e-01 : f32
    %67 = vector.broadcast %cst_40 : f32 to vector<8x128xf32>
    %68 = arith.mulf %67, %64 : vector<8x128xf32>
    %69 = arith.select %66, %64, %68 : vector<8x128xi1>, vector<8x128xf32>
    %70 = arith.truncf %69 : vector<8x128xf32> to vector<8x128xbf16>
    %c0_41 = arith.constant 0 : index
    %c25_42 = arith.constant 25 : index
    %71 = vector.load %arg40[%c0_41, %c25_42] : memref<8x178xbf16, #tpu.memory_space<vmem>>, vector<8x128xbf16>
    tpu.vector_store %arg40[%c0_41, %c25_42], %70 {strides = array<i32>} : memref<8x178xbf16, #tpu.memory_space<vmem>>, vector<8x128xbf16>,
    %c0_43 = arith.constant 0 : index
    %c0_44 = arith.constant 0 : index
    %72 = vector.load %arg40[%c0_43, %c0_44] : memref<8x178xbf16, #tpu.memory_space<vmem>>, vector<8x178xbf16>
    %c0_45 = arith.constant 0 : index
    %c0_46 = arith.constant 0 : index
    %73 = vector.load %arg8[%c0_45, %c0_46] : memref<8x24xbf16, #tpu.memory_space<vmem>>, vector<8x24xbf16>
    %74 = vector.extract_strided_slice %72 {offsets = [0, 24], sizes = [8, 128], strides = [1, 1]} : vector<8x178xbf16> to vector<8x128xbf16>
    %75 = vector.extract_strided_slice %72 {offsets = [0, 25], sizes = [8, 128], strides = [1, 1]} : vector<8x178xbf16> to vector<8x128xbf16>
    %76 = vector.extract_strided_slice %72 {offsets = [0, 26], sizes = [8, 128], strides = [1, 1]} : vector<8x178xbf16> to vector<8x128xbf16>
    %77 = tpu.concatenate %74, %75, %76 in 0 : vector<8x128xbf16>, vector<8x128xbf16>, vector<8x128xbf16> -> vector<24x128xbf16>
    %cst_47 = arith.constant dense<0.000000e+00> : vector<8x128xf32>
    %78 = tpu.matmul %73, %77, %cst_47 {dimension_numbers = #tpu.dot_dimension_numbers<[1], [0], [0], [1], [0, 0, 1, 1], [], []>} : vector<8x24xbf16>, vector<24x128xbf16>, vector<8x128xf32> -> vector<8x128xf32>
    %c0_48 = arith.constant 0 : index
    %c0_49 = arith.constant 0 : index
    %79 = vector.load %arg9[%c0_48, %c0_49] : memref<8x1xf32, #tpu.memory_space<vmem>>, vector<8x1xf32>
    %80 = vector.broadcast %79 : vector<8x1xf32> to vector<8x128xf32>
    %81 = arith.addf %78, %80 : vector<8x128xf32>
    %82 = arith.addf %47, %81 : vector<8x128xf32>
    %cst_50 = arith.constant 0.000000e+00 : f32
    %83 = vector.broadcast %cst_50 : f32 to vector<8x128xf32>
    %84 = arith.cmpf oge, %82, %83 : vector<8x128xf32>
    %cst_51 = arith.constant 1.000000e-01 : f32
    %85 = vector.broadcast %cst_51 : f32 to vector<8x128xf32>
    %86 = arith.mulf %85, %82 : vector<8x128xf32>
    %87 = arith.select %84, %82, %86 : vector<8x128xi1>, vector<8x128xf32>
    %88 = arith.truncf %87 : vector<8x128xf32> to vector<8x128xbf16>
    %c0_52 = arith.constant 0 : index
    %c25_53 = arith.constant 25 : index
    %89 = vector.load %arg40[%c0_52, %c25_53] : memref<8x178xbf16, #tpu.memory_space<vmem>>, vector<8x128xbf16>
    tpu.vector_store %arg40[%c0_52, %c25_53], %88 {strides = array<i32>} : memref<8x178xbf16, #tpu.memory_space<vmem>>, vector<8x128xbf16>,
    %c0_54 = arith.constant 0 : index
    %c0_55 = arith.constant 0 : index
    %90 = vector.load %arg40[%c0_54, %c0_55] : memref<8x178xbf16, #tpu.memory_space<vmem>>, vector<8x178xbf16>
    %c0_56 = arith.constant 0 : index
    %c0_57 = arith.constant 0 : index
    %91 = vector.load %arg10[%c0_56, %c0_57] : memref<8x24xbf16, #tpu.memory_space<vmem>>, vector<8x24xbf16>
    %92 = vector.extract_strided_slice %90 {offsets = [0, 20], sizes = [8, 128], strides = [1, 1]} : vector<8x178xbf16> to vector<8x128xbf16>
    %93 = vector.extract_strided_slice %90 {offsets = [0, 25], sizes = [8, 128], strides = [1, 1]} : vector<8x178xbf16> to vector<8x128xbf16>
    %94 = vector.extract_strided_slice %90 {offsets = [0, 30], sizes = [8, 128], strides = [1, 1]} : vector<8x178xbf16> to vector<8x128xbf16>
    %95 = tpu.concatenate %92, %93, %94 in 0 : vector<8x128xbf16>, vector<8x128xbf16>, vector<8x128xbf16> -> vector<24x128xbf16>
    %cst_58 = arith.constant dense<0.000000e+00> : vector<8x128xf32>
    %96 = tpu.matmul %91, %95, %cst_58 {dimension_numbers = #tpu.dot_dimension_numbers<[1], [0], [0], [1], [0, 0, 1, 1], [], []>} : vector<8x24xbf16>, vector<24x128xbf16>, vector<8x128xf32> -> vector<8x128xf32>
    %c0_59 = arith.constant 0 : index
    %c0_60 = arith.constant 0 : index
    %97 = vector.load %arg11[%c0_59, %c0_60] : memref<8x1xf32, #tpu.memory_space<vmem>>, vector<8x1xf32>
    %98 = vector.broadcast %97 : vector<8x1xf32> to vector<8x128xf32>
    %99 = arith.addf %96, %98 : vector<8x128xf32>
    %cst_61 = arith.constant 0.000000e+00 : f32
    %100 = vector.broadcast %cst_61 : f32 to vector<8x128xf32>
    %101 = arith.cmpf oge, %99, %100 : vector<8x128xf32>
    %cst_62 = arith.constant 1.000000e-01 : f32
    %102 = vector.broadcast %cst_62 : f32 to vector<8x128xf32>
    %103 = arith.mulf %102, %99 : vector<8x128xf32>
    %104 = arith.select %101, %99, %103 : vector<8x128xi1>, vector<8x128xf32>
    %105 = arith.truncf %104 : vector<8x128xf32> to vector<8x128xbf16>
    %c0_63 = arith.constant 0 : index
    %c25_64 = arith.constant 25 : index
    %106 = vector.load %arg40[%c0_63, %c25_64] : memref<8x178xbf16, #tpu.memory_space<vmem>>, vector<8x128xbf16>
    tpu.vector_store %arg40[%c0_63, %c25_64], %105 {strides = array<i32>} : memref<8x178xbf16, #tpu.memory_space<vmem>>, vector<8x128xbf16>,
    %c0_65 = arith.constant 0 : index
    %c0_66 = arith.constant 0 : index
    %107 = vector.load %arg40[%c0_65, %c0_66] : memref<8x178xbf16, #tpu.memory_space<vmem>>, vector<8x178xbf16>
    %c0_67 = arith.constant 0 : index
    %c0_68 = arith.constant 0 : index
    %108 = vector.load %arg12[%c0_67, %c0_68] : memref<8x24xbf16, #tpu.memory_space<vmem>>, vector<8x24xbf16>
    %109 = vector.extract_strided_slice %107 {offsets = [0, 24], sizes = [8, 128], strides = [1, 1]} : vector<8x178xbf16> to vector<8x128xbf16>
    %110 = vector.extract_strided_slice %107 {offsets = [0, 25], sizes = [8, 128], strides = [1, 1]} : vector<8x178xbf16> to vector<8x128xbf16>
    %111 = vector.extract_strided_slice %107 {offsets = [0, 26], sizes = [8, 128], strides = [1, 1]} : vector<8x178xbf16> to vector<8x128xbf16>
    %112 = tpu.concatenate %109, %110, %111 in 0 : vector<8x128xbf16>, vector<8x128xbf16>, vector<8x128xbf16> -> vector<24x128xbf16>
    %cst_69 = arith.constant dense<0.000000e+00> : vector<8x128xf32>
    %113 = tpu.matmul %108, %112, %cst_69 {dimension_numbers = #tpu.dot_dimension_numbers<[1], [0], [0], [1], [0, 0, 1, 1], [], []>} : vector<8x24xbf16>, vector<24x128xbf16>, vector<8x128xf32> -> vector<8x128xf32>
    %c0_70 = arith.constant 0 : index
    %c0_71 = arith.constant 0 : index
    %114 = vector.load %arg13[%c0_70, %c0_71] : memref<8x1xf32, #tpu.memory_space<vmem>>, vector<8x1xf32>
    %115 = vector.broadcast %114 : vector<8x1xf32> to vector<8x128xf32>
    %116 = arith.addf %113, %115 : vector<8x128xf32>
    %117 = arith.addf %82, %116 : vector<8x128xf32>
    %cst_72 = arith.constant 0.000000e+00 : f32
    %118 = vector.broadcast %cst_72 : f32 to vector<8x128xf32>
    %119 = arith.cmpf oge, %12, %118 : vector<8x128xf32>
    %cst_73 = arith.constant 1.000000e-01 : f32
    %120 = vector.broadcast %cst_73 : f32 to vector<8x128xf32>
    %121 = arith.mulf %120, %12 : vector<8x128xf32>
    %122 = arith.select %119, %12, %121 : vector<8x128xi1>, vector<8x128xf32>
    %123 = arith.truncf %122 : vector<8x128xf32> to vector<8x128xbf16>
    %c0_74 = arith.constant 0 : index
    %c25_75 = arith.constant 25 : index
    %124 = vector.load %arg40[%c0_74, %c25_75] : memref<8x178xbf16, #tpu.memory_space<vmem>>, vector<8x128xbf16>
    tpu.vector_store %arg40[%c0_74, %c25_75], %123 {strides = array<i32>} : memref<8x178xbf16, #tpu.memory_space<vmem>>, vector<8x128xbf16>,
    %c0_76 = arith.constant 0 : index
    %c0_77 = arith.constant 0 : index
    %125 = vector.load %arg40[%c0_76, %c0_77] : memref<8x178xbf16, #tpu.memory_space<vmem>>, vector<8x178xbf16>
    %c0_78 = arith.constant 0 : index
    %c0_79 = arith.constant 0 : index
    %126 = vector.load %arg14[%c0_78, %c0_79] : memref<8x56xbf16, #tpu.memory_space<vmem>>, vector<8x56xbf16>
    %127 = vector.extract_strided_slice %125 {offsets = [0, 22], sizes = [8, 128], strides = [1, 1]} : vector<8x178xbf16> to vector<8x128xbf16>
    %128 = vector.extract_strided_slice %125 {offsets = [0, 23], sizes = [8, 128], strides = [1, 1]} : vector<8x178xbf16> to vector<8x128xbf16>
    %129 = vector.extract_strided_slice %125 {offsets = [0, 24], sizes = [8, 128], strides = [1, 1]} : vector<8x178xbf16> to vector<8x128xbf16>
    %130 = vector.extract_strided_slice %125 {offsets = [0, 25], sizes = [8, 128], strides = [1, 1]} : vector<8x178xbf16> to vector<8x128xbf16>
    %131 = vector.extract_strided_slice %125 {offsets = [0, 26], sizes = [8, 128], strides = [1, 1]} : vector<8x178xbf16> to vector<8x128xbf16>
    %132 = vector.extract_strided_slice %125 {offsets = [0, 27], sizes = [8, 128], strides = [1, 1]} : vector<8x178xbf16> to vector<8x128xbf16>
    %133 = vector.extract_strided_slice %125 {offsets = [0, 28], sizes = [8, 128], strides = [1, 1]} : vector<8x178xbf16> to vector<8x128xbf16>
    %134 = tpu.concatenate %127, %128, %129, %130, %131, %132, %133 in 0 : vector<8x128xbf16>, vector<8x128xbf16>, vector<8x128xbf16>, vector<8x128xbf16>, vector<8x128xbf16>, vector<8x128xbf16>, vector<8x128xbf16> -> vector<56x128xbf16>
    %cst_80 = arith.constant dense<0.000000e+00> : vector<8x128xf32>
    %135 = tpu.matmul %126, %134, %cst_80 {dimension_numbers = #tpu.dot_dimension_numbers<[1], [0], [0], [1], [0, 0, 1, 1], [], []>} : vector<8x56xbf16>, vector<56x128xbf16>, vector<8x128xf32> -> vector<8x128xf32>
    %c0_81 = arith.constant 0 : index
    %c0_82 = arith.constant 0 : index
    %136 = vector.load %arg15[%c0_81, %c0_82] : memref<8x1xf32, #tpu.memory_space<vmem>>, vector<8x1xf32>
    %137 = vector.broadcast %136 : vector<8x1xf32> to vector<8x128xf32>
    %138 = arith.addf %135, %137 : vector<8x128xf32>
    %cst_83 = arith.constant 0.000000e+00 : f32
    %139 = vector.broadcast %cst_83 : f32 to vector<8x128xf32>
    %140 = arith.cmpf oge, %138, %139 : vector<8x128xf32>
    %cst_84 = arith.constant 1.000000e-01 : f32
    %141 = vector.broadcast %cst_84 : f32 to vector<8x128xf32>
    %142 = arith.mulf %141, %138 : vector<8x128xf32>
    %143 = arith.select %140, %138, %142 : vector<8x128xi1>, vector<8x128xf32>
    %144 = arith.truncf %143 : vector<8x128xf32> to vector<8x128xbf16>
    %c0_85 = arith.constant 0 : index
    %c25_86 = arith.constant 25 : index
    %145 = vector.load %arg40[%c0_85, %c25_86] : memref<8x178xbf16, #tpu.memory_space<vmem>>, vector<8x128xbf16>
    tpu.vector_store %arg40[%c0_85, %c25_86], %144 {strides = array<i32>} : memref<8x178xbf16, #tpu.memory_space<vmem>>, vector<8x128xbf16>,
    %c0_87 = arith.constant 0 : index
    %c0_88 = arith.constant 0 : index
    %146 = vector.load %arg40[%c0_87, %c0_88] : memref<8x178xbf16, #tpu.memory_space<vmem>>, vector<8x178xbf16>
    %c0_89 = arith.constant 0 : index
    %c0_90 = arith.constant 0 : index
    %147 = vector.load %arg16[%c0_89, %c0_90] : memref<8x56xbf16, #tpu.memory_space<vmem>>, vector<8x56xbf16>
    %148 = vector.extract_strided_slice %146 {offsets = [0, 22], sizes = [8, 128], strides = [1, 1]} : vector<8x178xbf16> to vector<8x128xbf16>
    %149 = vector.extract_strided_slice %146 {offsets = [0, 23], sizes = [8, 128], strides = [1, 1]} : vector<8x178xbf16> to vector<8x128xbf16>
    %150 = vector.extract_strided_slice %146 {offsets = [0, 24], sizes = [8, 128], strides = [1, 1]} : vector<8x178xbf16> to vector<8x128xbf16>
    %151 = vector.extract_strided_slice %146 {offsets = [0, 25], sizes = [8, 128], strides = [1, 1]} : vector<8x178xbf16> to vector<8x128xbf16>
    %152 = vector.extract_strided_slice %146 {offsets = [0, 26], sizes = [8, 128], strides = [1, 1]} : vector<8x178xbf16> to vector<8x128xbf16>
    %153 = vector.extract_strided_slice %146 {offsets = [0, 27], sizes = [8, 128], strides = [1, 1]} : vector<8x178xbf16> to vector<8x128xbf16>
    %154 = vector.extract_strided_slice %146 {offsets = [0, 28], sizes = [8, 128], strides = [1, 1]} : vector<8x178xbf16> to vector<8x128xbf16>
    %155 = tpu.concatenate %148, %149, %150, %151, %152, %153, %154 in 0 : vector<8x128xbf16>, vector<8x128xbf16>, vector<8x128xbf16>, vector<8x128xbf16>, vector<8x128xbf16>, vector<8x128xbf16>, vector<8x128xbf16> -> vector<56x128xbf16>
    %cst_91 = arith.constant dense<0.000000e+00> : vector<8x128xf32>
    %156 = tpu.matmul %147, %155, %cst_91 {dimension_numbers = #tpu.dot_dimension_numbers<[1], [0], [0], [1], [0, 0, 1, 1], [], []>} : vector<8x56xbf16>, vector<56x128xbf16>, vector<8x128xf32> -> vector<8x128xf32>
    %c0_92 = arith.constant 0 : index
    %c0_93 = arith.constant 0 : index
    %157 = vector.load %arg17[%c0_92, %c0_93] : memref<8x1xf32, #tpu.memory_space<vmem>>, vector<8x1xf32>
    %158 = vector.broadcast %157 : vector<8x1xf32> to vector<8x128xf32>
    %159 = arith.addf %156, %158 : vector<8x128xf32>
    %160 = arith.addf %12, %159 : vector<8x128xf32>
    %cst_94 = arith.constant 0.000000e+00 : f32
    %161 = vector.broadcast %cst_94 : f32 to vector<8x128xf32>
    %162 = arith.cmpf oge, %160, %161 : vector<8x128xf32>
    %cst_95 = arith.constant 1.000000e-01 : f32
    %163 = vector.broadcast %cst_95 : f32 to vector<8x128xf32>
    %164 = arith.mulf %163, %160 : vector<8x128xf32>
    %165 = arith.select %162, %160, %164 : vector<8x128xi1>, vector<8x128xf32>
    %166 = arith.truncf %165 : vector<8x128xf32> to vector<8x128xbf16>
    %c0_96 = arith.constant 0 : index
    %c25_97 = arith.constant 25 : index
    %167 = vector.load %arg40[%c0_96, %c25_97] : memref<8x178xbf16, #tpu.memory_space<vmem>>, vector<8x128xbf16>
    tpu.vector_store %arg40[%c0_96, %c25_97], %166 {strides = array<i32>} : memref<8x178xbf16, #tpu.memory_space<vmem>>, vector<8x128xbf16>,
    %c0_98 = arith.constant 0 : index
    %c0_99 = arith.constant 0 : index
    %168 = vector.load %arg40[%c0_98, %c0_99] : memref<8x178xbf16, #tpu.memory_space<vmem>>, vector<8x178xbf16>
    %c0_100 = arith.constant 0 : index
    %c0_101 = arith.constant 0 : index
    %169 = vector.load %arg18[%c0_100, %c0_101] : memref<8x56xbf16, #tpu.memory_space<vmem>>, vector<8x56xbf16>
    %170 = vector.extract_strided_slice %168 {offsets = [0, 16], sizes = [8, 128], strides = [1, 1]} : vector<8x178xbf16> to vector<8x128xbf16>
    %171 = vector.extract_strided_slice %168 {offsets = [0, 19], sizes = [8, 128], strides = [1, 1]} : vector<8x178xbf16> to vector<8x128xbf16>
    %172 = vector.extract_strided_slice %168 {offsets = [0, 22], sizes = [8, 128], strides = [1, 1]} : vector<8x178xbf16> to vector<8x128xbf16>
    %173 = vector.extract_strided_slice %168 {offsets = [0, 25], sizes = [8, 128], strides = [1, 1]} : vector<8x178xbf16> to vector<8x128xbf16>
    %174 = vector.extract_strided_slice %168 {offsets = [0, 28], sizes = [8, 128], strides = [1, 1]} : vector<8x178xbf16> to vector<8x128xbf16>
    %175 = vector.extract_strided_slice %168 {offsets = [0, 31], sizes = [8, 128], strides = [1, 1]} : vector<8x178xbf16> to vector<8x128xbf16>
    %176 = vector.extract_strided_slice %168 {offsets = [0, 34], sizes = [8, 128], strides = [1, 1]} : vector<8x178xbf16> to vector<8x128xbf16>
    %177 = tpu.concatenate %170, %171, %172, %173, %174, %175, %176 in 0 : vector<8x128xbf16>, vector<8x128xbf16>, vector<8x128xbf16>, vector<8x128xbf16>, vector<8x128xbf16>, vector<8x128xbf16>, vector<8x128xbf16> -> vector<56x128xbf16>
    %cst_102 = arith.constant dense<0.000000e+00> : vector<8x128xf32>
    %178 = tpu.matmul %169, %177, %cst_102 {dimension_numbers = #tpu.dot_dimension_numbers<[1], [0], [0], [1], [0, 0, 1, 1], [], []>} : vector<8x56xbf16>, vector<56x128xbf16>, vector<8x128xf32> -> vector<8x128xf32>
    %c0_103 = arith.constant 0 : index
    %c0_104 = arith.constant 0 : index
    %179 = vector.load %arg19[%c0_103, %c0_104] : memref<8x1xf32, #tpu.memory_space<vmem>>, vector<8x1xf32>
    %180 = vector.broadcast %179 : vector<8x1xf32> to vector<8x128xf32>
    %181 = arith.addf %178, %180 : vector<8x128xf32>
    %cst_105 = arith.constant 0.000000e+00 : f32
    %182 = vector.broadcast %cst_105 : f32 to vector<8x128xf32>
    %183 = arith.cmpf oge, %181, %182 : vector<8x128xf32>
    %cst_106 = arith.constant 1.000000e-01 : f32
    %184 = vector.broadcast %cst_106 : f32 to vector<8x128xf32>
    %185 = arith.mulf %184, %181 : vector<8x128xf32>
    %186 = arith.select %183, %181, %185 : vector<8x128xi1>, vector<8x128xf32>
    %187 = arith.truncf %186 : vector<8x128xf32> to vector<8x128xbf16>
    %c0_107 = arith.constant 0 : index
    %c25_108 = arith.constant 25 : index
    %188 = vector.load %arg40[%c0_107, %c25_108] : memref<8x178xbf16, #tpu.memory_space<vmem>>, vector<8x128xbf16>
    tpu.vector_store %arg40[%c0_107, %c25_108], %187 {strides = array<i32>} : memref<8x178xbf16, #tpu.memory_space<vmem>>, vector<8x128xbf16>,
    %c0_109 = arith.constant 0 : index
    %c0_110 = arith.constant 0 : index
    %189 = vector.load %arg40[%c0_109, %c0_110] : memref<8x178xbf16, #tpu.memory_space<vmem>>, vector<8x178xbf16>
    %c0_111 = arith.constant 0 : index
    %c0_112 = arith.constant 0 : index
    %190 = vector.load %arg20[%c0_111, %c0_112] : memref<8x56xbf16, #tpu.memory_space<vmem>>, vector<8x56xbf16>
    %191 = vector.extract_strided_slice %189 {offsets = [0, 22], sizes = [8, 128], strides = [1, 1]} : vector<8x178xbf16> to vector<8x128xbf16>
    %192 = vector.extract_strided_slice %189 {offsets = [0, 23], sizes = [8, 128], strides = [1, 1]} : vector<8x178xbf16> to vector<8x128xbf16>
    %193 = vector.extract_strided_slice %189 {offsets = [0, 24], sizes = [8, 128], strides = [1, 1]} : vector<8x178xbf16> to vector<8x128xbf16>
    %194 = vector.extract_strided_slice %189 {offsets = [0, 25], sizes = [8, 128], strides = [1, 1]} : vector<8x178xbf16> to vector<8x128xbf16>
    %195 = vector.extract_strided_slice %189 {offsets = [0, 26], sizes = [8, 128], strides = [1, 1]} : vector<8x178xbf16> to vector<8x128xbf16>
    %196 = vector.extract_strided_slice %189 {offsets = [0, 27], sizes = [8, 128], strides = [1, 1]} : vector<8x178xbf16> to vector<8x128xbf16>
    %197 = vector.extract_strided_slice %189 {offsets = [0, 28], sizes = [8, 128], strides = [1, 1]} : vector<8x178xbf16> to vector<8x128xbf16>
    %198 = tpu.concatenate %191, %192, %193, %194, %195, %196, %197 in 0 : vector<8x128xbf16>, vector<8x128xbf16>, vector<8x128xbf16>, vector<8x128xbf16>, vector<8x128xbf16>, vector<8x128xbf16>, vector<8x128xbf16> -> vector<56x128xbf16>
    %cst_113 = arith.constant dense<0.000000e+00> : vector<8x128xf32>
    %199 = tpu.matmul %190, %198, %cst_113 {dimension_numbers = #tpu.dot_dimension_numbers<[1], [0], [0], [1], [0, 0, 1, 1], [], []>} : vector<8x56xbf16>, vector<56x128xbf16>, vector<8x128xf32> -> vector<8x128xf32>
    %c0_114 = arith.constant 0 : index
    %c0_115 = arith.constant 0 : index
    %200 = vector.load %arg21[%c0_114, %c0_115] : memref<8x1xf32, #tpu.memory_space<vmem>>, vector<8x1xf32>
    %201 = vector.broadcast %200 : vector<8x1xf32> to vector<8x128xf32>
    %202 = arith.addf %199, %201 : vector<8x128xf32>
    %203 = arith.addf %160, %202 : vector<8x128xf32>
    %cst_116 = arith.constant 0.000000e+00 : f32
    %204 = vector.broadcast %cst_116 : f32 to vector<8x128xf32>
    %205 = arith.cmpf oge, %203, %204 : vector<8x128xf32>
    %cst_117 = arith.constant 1.000000e-01 : f32
    %206 = vector.broadcast %cst_117 : f32 to vector<8x128xf32>
    %207 = arith.mulf %206, %203 : vector<8x128xf32>
    %208 = arith.select %205, %203, %207 : vector<8x128xi1>, vector<8x128xf32>
    %209 = arith.truncf %208 : vector<8x128xf32> to vector<8x128xbf16>
    %c0_118 = arith.constant 0 : index
    %c25_119 = arith.constant 25 : index
    %210 = vector.load %arg40[%c0_118, %c25_119] : memref<8x178xbf16, #tpu.memory_space<vmem>>, vector<8x128xbf16>
    tpu.vector_store %arg40[%c0_118, %c25_119], %209 {strides = array<i32>} : memref<8x178xbf16, #tpu.memory_space<vmem>>, vector<8x128xbf16>,
    %c0_120 = arith.constant 0 : index
    %c0_121 = arith.constant 0 : index
    %211 = vector.load %arg40[%c0_120, %c0_121] : memref<8x178xbf16, #tpu.memory_space<vmem>>, vector<8x178xbf16>
    %c0_122 = arith.constant 0 : index
    %c0_123 = arith.constant 0 : index
    %212 = vector.load %arg22[%c0_122, %c0_123] : memref<8x56xbf16, #tpu.memory_space<vmem>>, vector<8x56xbf16>
    %213 = vector.extract_strided_slice %211 {offsets = [0, 10], sizes = [8, 128], strides = [1, 1]} : vector<8x178xbf16> to vector<8x128xbf16>
    %214 = vector.extract_strided_slice %211 {offsets = [0, 15], sizes = [8, 128], strides = [1, 1]} : vector<8x178xbf16> to vector<8x128xbf16>
    %215 = vector.extract_strided_slice %211 {offsets = [0, 20], sizes = [8, 128], strides = [1, 1]} : vector<8x178xbf16> to vector<8x128xbf16>
    %216 = vector.extract_strided_slice %211 {offsets = [0, 25], sizes = [8, 128], strides = [1, 1]} : vector<8x178xbf16> to vector<8x128xbf16>
    %217 = vector.extract_strided_slice %211 {offsets = [0, 30], sizes = [8, 128], strides = [1, 1]} : vector<8x178xbf16> to vector<8x128xbf16>
    %218 = vector.extract_strided_slice %211 {offsets = [0, 35], sizes = [8, 128], strides = [1, 1]} : vector<8x178xbf16> to vector<8x128xbf16>
    %219 = vector.extract_strided_slice %211 {offsets = [0, 40], sizes = [8, 128], strides = [1, 1]} : vector<8x178xbf16> to vector<8x128xbf16>
    %220 = tpu.concatenate %213, %214, %215, %216, %217, %218, %219 in 0 : vector<8x128xbf16>, vector<8x128xbf16>, vector<8x128xbf16>, vector<8x128xbf16>, vector<8x128xbf16>, vector<8x128xbf16>, vector<8x128xbf16> -> vector<56x128xbf16>
    %cst_124 = arith.constant dense<0.000000e+00> : vector<8x128xf32>
    %221 = tpu.matmul %212, %220, %cst_124 {dimension_numbers = #tpu.dot_dimension_numbers<[1], [0], [0], [1], [0, 0, 1, 1], [], []>} : vector<8x56xbf16>, vector<56x128xbf16>, vector<8x128xf32> -> vector<8x128xf32>
    %c0_125 = arith.constant 0 : index
    %c0_126 = arith.constant 0 : index
    %222 = vector.load %arg23[%c0_125, %c0_126] : memref<8x1xf32, #tpu.memory_space<vmem>>, vector<8x1xf32>
    %223 = vector.broadcast %222 : vector<8x1xf32> to vector<8x128xf32>
    %224 = arith.addf %221, %223 : vector<8x128xf32>
    %cst_127 = arith.constant 0.000000e+00 : f32
    %225 = vector.broadcast %cst_127 : f32 to vector<8x128xf32>
    %226 = arith.cmpf oge, %224, %225 : vector<8x128xf32>
    %cst_128 = arith.constant 1.000000e-01 : f32
    %227 = vector.broadcast %cst_128 : f32 to vector<8x128xf32>
    %228 = arith.mulf %227, %224 : vector<8x128xf32>
    %229 = arith.select %226, %224, %228 : vector<8x128xi1>, vector<8x128xf32>
    %230 = arith.truncf %229 : vector<8x128xf32> to vector<8x128xbf16>
    %c0_129 = arith.constant 0 : index
    %c25_130 = arith.constant 25 : index
    %231 = vector.load %arg40[%c0_129, %c25_130] : memref<8x178xbf16, #tpu.memory_space<vmem>>, vector<8x128xbf16>
    tpu.vector_store %arg40[%c0_129, %c25_130], %230 {strides = array<i32>} : memref<8x178xbf16, #tpu.memory_space<vmem>>, vector<8x128xbf16>,
    %c0_131 = arith.constant 0 : index
    %c0_132 = arith.constant 0 : index
    %232 = vector.load %arg40[%c0_131, %c0_132] : memref<8x178xbf16, #tpu.memory_space<vmem>>, vector<8x178xbf16>
    %c0_133 = arith.constant 0 : index
    %c0_134 = arith.constant 0 : index
    %233 = vector.load %arg24[%c0_133, %c0_134] : memref<8x56xbf16, #tpu.memory_space<vmem>>, vector<8x56xbf16>
    %234 = vector.extract_strided_slice %232 {offsets = [0, 22], sizes = [8, 128], strides = [1, 1]} : vector<8x178xbf16> to vector<8x128xbf16>
    %235 = vector.extract_strided_slice %232 {offsets = [0, 23], sizes = [8, 128], strides = [1, 1]} : vector<8x178xbf16> to vector<8x128xbf16>
    %236 = vector.extract_strided_slice %232 {offsets = [0, 24], sizes = [8, 128], strides = [1, 1]} : vector<8x178xbf16> to vector<8x128xbf16>
    %237 = vector.extract_strided_slice %232 {offsets = [0, 25], sizes = [8, 128], strides = [1, 1]} : vector<8x178xbf16> to vector<8x128xbf16>
    %238 = vector.extract_strided_slice %232 {offsets = [0, 26], sizes = [8, 128], strides = [1, 1]} : vector<8x178xbf16> to vector<8x128xbf16>
    %239 = vector.extract_strided_slice %232 {offsets = [0, 27], sizes = [8, 128], strides = [1, 1]} : vector<8x178xbf16> to vector<8x128xbf16>
    %240 = vector.extract_strided_slice %232 {offsets = [0, 28], sizes = [8, 128], strides = [1, 1]} : vector<8x178xbf16> to vector<8x128xbf16>
    %241 = tpu.concatenate %234, %235, %236, %237, %238, %239, %240 in 0 : vector<8x128xbf16>, vector<8x128xbf16>, vector<8x128xbf16>, vector<8x128xbf16>, vector<8x128xbf16>, vector<8x128xbf16>, vector<8x128xbf16> -> vector<56x128xbf16>
    %cst_135 = arith.constant dense<0.000000e+00> : vector<8x128xf32>
    %242 = tpu.matmul %233, %241, %cst_135 {dimension_numbers = #tpu.dot_dimension_numbers<[1], [0], [0], [1], [0, 0, 1, 1], [], []>} : vector<8x56xbf16>, vector<56x128xbf16>, vector<8x128xf32> -> vector<8x128xf32>
    %c0_136 = arith.constant 0 : index
    %c0_137 = arith.constant 0 : index
    %243 = vector.load %arg25[%c0_136, %c0_137] : memref<8x1xf32, #tpu.memory_space<vmem>>, vector<8x1xf32>
    %244 = vector.broadcast %243 : vector<8x1xf32> to vector<8x128xf32>
    %245 = arith.addf %242, %244 : vector<8x128xf32>
    %246 = arith.addf %203, %245 : vector<8x128xf32>
    %247 = arith.addf %117, %246 : vector<8x128xf32>
    %cst_138 = arith.constant 0.000000e+00 : f32
    %248 = vector.broadcast %cst_138 : f32 to vector<8x128xf32>
    %249 = arith.cmpf oge, %12, %248 : vector<8x128xf32>
    %cst_139 = arith.constant 1.000000e-01 : f32
    %250 = vector.broadcast %cst_139 : f32 to vector<8x128xf32>
    %251 = arith.mulf %250, %12 : vector<8x128xf32>
    %252 = arith.select %249, %12, %251 : vector<8x128xi1>, vector<8x128xf32>
    %253 = arith.truncf %252 : vector<8x128xf32> to vector<8x128xbf16>
    %c0_140 = arith.constant 0 : index
    %c25_141 = arith.constant 25 : index
    %254 = vector.load %arg40[%c0_140, %c25_141] : memref<8x178xbf16, #tpu.memory_space<vmem>>, vector<8x128xbf16>
    tpu.vector_store %arg40[%c0_140, %c25_141], %253 {strides = array<i32>} : memref<8x178xbf16, #tpu.memory_space<vmem>>, vector<8x128xbf16>,
    %c0_142 = arith.constant 0 : index
    %c0_143 = arith.constant 0 : index
    %255 = vector.load %arg40[%c0_142, %c0_143] : memref<8x178xbf16, #tpu.memory_space<vmem>>, vector<8x178xbf16>
    %c0_144 = arith.constant 0 : index
    %c0_145 = arith.constant 0 : index
    %256 = vector.load %arg26[%c0_144, %c0_145] : memref<8x88xbf16, #tpu.memory_space<vmem>>, vector<8x88xbf16>
    %257 = vector.extract_strided_slice %255 {offsets = [0, 20], sizes = [8, 128], strides = [1, 1]} : vector<8x178xbf16> to vector<8x128xbf16>
    %258 = vector.extract_strided_slice %255 {offsets = [0, 21], sizes = [8, 128], strides = [1, 1]} : vector<8x178xbf16> to vector<8x128xbf16>
    %259 = vector.extract_strided_slice %255 {offsets = [0, 22], sizes = [8, 128], strides = [1, 1]} : vector<8x178xbf16> to vector<8x128xbf16>
    %260 = vector.extract_strided_slice %255 {offsets = [0, 23], sizes = [8, 128], strides = [1, 1]} : vector<8x178xbf16> to vector<8x128xbf16>
    %261 = vector.extract_strided_slice %255 {offsets = [0, 24], sizes = [8, 128], strides = [1, 1]} : vector<8x178xbf16> to vector<8x128xbf16>
    %262 = vector.extract_strided_slice %255 {offsets = [0, 25], sizes = [8, 128], strides = [1, 1]} : vector<8x178xbf16> to vector<8x128xbf16>
    %263 = vector.extract_strided_slice %255 {offsets = [0, 26], sizes = [8, 128], strides = [1, 1]} : vector<8x178xbf16> to vector<8x128xbf16>
    %264 = vector.extract_strided_slice %255 {offsets = [0, 27], sizes = [8, 128], strides = [1, 1]} : vector<8x178xbf16> to vector<8x128xbf16>
    %265 = vector.extract_strided_slice %255 {offsets = [0, 28], sizes = [8, 128], strides = [1, 1]} : vector<8x178xbf16> to vector<8x128xbf16>
    %266 = vector.extract_strided_slice %255 {offsets = [0, 29], sizes = [8, 128], strides = [1, 1]} : vector<8x178xbf16> to vector<8x128xbf16>
    %267 = vector.extract_strided_slice %255 {offsets = [0, 30], sizes = [8, 128], strides = [1, 1]} : vector<8x178xbf16> to vector<8x128xbf16>
    %268 = tpu.concatenate %257, %258, %259, %260, %261, %262, %263, %264, %265, %266, %267 in 0 : vector<8x128xbf16>, vector<8x128xbf16>, vector<8x128xbf16>, vector<8x128xbf16>, vector<8x128xbf16>, vector<8x128xbf16>, vector<8x128xbf16>, vector<8x128xbf16>, vector<8x128xbf16>, vector<8x128xbf16>, vector<8x128xbf16> -> vector<88x128xbf16>
    %cst_146 = arith.constant dense<0.000000e+00> : vector<8x128xf32>
    %269 = tpu.matmul %256, %268, %cst_146 {dimension_numbers = #tpu.dot_dimension_numbers<[1], [0], [0], [1], [0, 0, 1, 1], [], []>} : vector<8x88xbf16>, vector<88x128xbf16>, vector<8x128xf32> -> vector<8x128xf32>
    %c0_147 = arith.constant 0 : index
    %c0_148 = arith.constant 0 : index
    %270 = vector.load %arg27[%c0_147, %c0_148] : memref<8x1xf32, #tpu.memory_space<vmem>>, vector<8x1xf32>
    %271 = vector.broadcast %270 : vector<8x1xf32> to vector<8x128xf32>
    %272 = arith.addf %269, %271 : vector<8x128xf32>
    %cst_149 = arith.constant 0.000000e+00 : f32
    %273 = vector.broadcast %cst_149 : f32 to vector<8x128xf32>
    %274 = arith.cmpf oge, %272, %273 : vector<8x128xf32>
    %cst_150 = arith.constant 1.000000e-01 : f32
    %275 = vector.broadcast %cst_150 : f32 to vector<8x128xf32>
    %276 = arith.mulf %275, %272 : vector<8x128xf32>
    %277 = arith.select %274, %272, %276 : vector<8x128xi1>, vector<8x128xf32>
    %278 = arith.truncf %277 : vector<8x128xf32> to vector<8x128xbf16>
    %c0_151 = arith.constant 0 : index
    %c25_152 = arith.constant 25 : index
    %279 = vector.load %arg40[%c0_151, %c25_152] : memref<8x178xbf16, #tpu.memory_space<vmem>>, vector<8x128xbf16>
    tpu.vector_store %arg40[%c0_151, %c25_152], %278 {strides = array<i32>} : memref<8x178xbf16, #tpu.memory_space<vmem>>, vector<8x128xbf16>,
    %c0_153 = arith.constant 0 : index
    %c0_154 = arith.constant 0 : index
    %280 = vector.load %arg40[%c0_153, %c0_154] : memref<8x178xbf16, #tpu.memory_space<vmem>>, vector<8x178xbf16>
    %c0_155 = arith.constant 0 : index
    %c0_156 = arith.constant 0 : index
    %281 = vector.load %arg28[%c0_155, %c0_156] : memref<8x88xbf16, #tpu.memory_space<vmem>>, vector<8x88xbf16>
    %282 = vector.extract_strided_slice %280 {offsets = [0, 20], sizes = [8, 128], strides = [1, 1]} : vector<8x178xbf16> to vector<8x128xbf16>
    %283 = vector.extract_strided_slice %280 {offsets = [0, 21], sizes = [8, 128], strides = [1, 1]} : vector<8x178xbf16> to vector<8x128xbf16>
    %284 = vector.extract_strided_slice %280 {offsets = [0, 22], sizes = [8, 128], strides = [1, 1]} : vector<8x178xbf16> to vector<8x128xbf16>
    %285 = vector.extract_strided_slice %280 {offsets = [0, 23], sizes = [8, 128], strides = [1, 1]} : vector<8x178xbf16> to vector<8x128xbf16>
    %286 = vector.extract_strided_slice %280 {offsets = [0, 24], sizes = [8, 128], strides = [1, 1]} : vector<8x178xbf16> to vector<8x128xbf16>
    %287 = vector.extract_strided_slice %280 {offsets = [0, 25], sizes = [8, 128], strides = [1, 1]} : vector<8x178xbf16> to vector<8x128xbf16>
    %288 = vector.extract_strided_slice %280 {offsets = [0, 26], sizes = [8, 128], strides = [1, 1]} : vector<8x178xbf16> to vector<8x128xbf16>
    %289 = vector.extract_strided_slice %280 {offsets = [0, 27], sizes = [8, 128], strides = [1, 1]} : vector<8x178xbf16> to vector<8x128xbf16>
    %290 = vector.extract_strided_slice %280 {offsets = [0, 28], sizes = [8, 128], strides = [1, 1]} : vector<8x178xbf16> to vector<8x128xbf16>
    %291 = vector.extract_strided_slice %280 {offsets = [0, 29], sizes = [8, 128], strides = [1, 1]} : vector<8x178xbf16> to vector<8x128xbf16>
    %292 = vector.extract_strided_slice %280 {offsets = [0, 30], sizes = [8, 128], strides = [1, 1]} : vector<8x178xbf16> to vector<8x128xbf16>
    %293 = tpu.concatenate %282, %283, %284, %285, %286, %287, %288, %289, %290, %291, %292 in 0 : vector<8x128xbf16>, vector<8x128xbf16>, vector<8x128xbf16>, vector<8x128xbf16>, vector<8x128xbf16>, vector<8x128xbf16>, vector<8x128xbf16>, vector<8x128xbf16>, vector<8x128xbf16>, vector<8x128xbf16>, vector<8x128xbf16> -> vector<88x128xbf16>
    %cst_157 = arith.constant dense<0.000000e+00> : vector<8x128xf32>
    %294 = tpu.matmul %281, %293, %cst_157 {dimension_numbers = #tpu.dot_dimension_numbers<[1], [0], [0], [1], [0, 0, 1, 1], [], []>} : vector<8x88xbf16>, vector<88x128xbf16>, vector<8x128xf32> -> vector<8x128xf32>
    %c0_158 = arith.constant 0 : index
    %c0_159 = arith.constant 0 : index
    %295 = vector.load %arg29[%c0_158, %c0_159] : memref<8x1xf32, #tpu.memory_space<vmem>>, vector<8x1xf32>
    %296 = vector.broadcast %295 : vector<8x1xf32> to vector<8x128xf32>
    %297 = arith.addf %294, %296 : vector<8x128xf32>
    %298 = arith.addf %12, %297 : vector<8x128xf32>
    %cst_160 = arith.constant 0.000000e+00 : f32
    %299 = vector.broadcast %cst_160 : f32 to vector<8x128xf32>
    %300 = arith.cmpf oge, %298, %299 : vector<8x128xf32>
    %cst_161 = arith.constant 1.000000e-01 : f32
    %301 = vector.broadcast %cst_161 : f32 to vector<8x128xf32>
    %302 = arith.mulf %301, %298 : vector<8x128xf32>
    %303 = arith.select %300, %298, %302 : vector<8x128xi1>, vector<8x128xf32>
    %304 = arith.truncf %303 : vector<8x128xf32> to vector<8x128xbf16>
    %c0_162 = arith.constant 0 : index
    %c25_163 = arith.constant 25 : index
    %305 = vector.load %arg40[%c0_162, %c25_163] : memref<8x178xbf16, #tpu.memory_space<vmem>>, vector<8x128xbf16>
    tpu.vector_store %arg40[%c0_162, %c25_163], %304 {strides = array<i32>} : memref<8x178xbf16, #tpu.memory_space<vmem>>, vector<8x128xbf16>,
    %c0_164 = arith.constant 0 : index
    %c0_165 = arith.constant 0 : index
    %306 = vector.load %arg40[%c0_164, %c0_165] : memref<8x178xbf16, #tpu.memory_space<vmem>>, vector<8x178xbf16>
    %c0_166 = arith.constant 0 : index
    %c0_167 = arith.constant 0 : index
    %307 = vector.load %arg30[%c0_166, %c0_167] : memref<8x88xbf16, #tpu.memory_space<vmem>>, vector<8x88xbf16>
    %308 = vector.extract_strided_slice %306 {offsets = [0, 10], sizes = [8, 128], strides = [1, 1]} : vector<8x178xbf16> to vector<8x128xbf16>
    %309 = vector.extract_strided_slice %306 {offsets = [0, 13], sizes = [8, 128], strides = [1, 1]} : vector<8x178xbf16> to vector<8x128xbf16>
    %310 = vector.extract_strided_slice %306 {offsets = [0, 16], sizes = [8, 128], strides = [1, 1]} : vector<8x178xbf16> to vector<8x128xbf16>
    %311 = vector.extract_strided_slice %306 {offsets = [0, 19], sizes = [8, 128], strides = [1, 1]} : vector<8x178xbf16> to vector<8x128xbf16>
    %312 = vector.extract_strided_slice %306 {offsets = [0, 22], sizes = [8, 128], strides = [1, 1]} : vector<8x178xbf16> to vector<8x128xbf16>
    %313 = vector.extract_strided_slice %306 {offsets = [0, 25], sizes = [8, 128], strides = [1, 1]} : vector<8x178xbf16> to vector<8x128xbf16>
    %314 = vector.extract_strided_slice %306 {offsets = [0, 28], sizes = [8, 128], strides = [1, 1]} : vector<8x178xbf16> to vector<8x128xbf16>
    %315 = vector.extract_strided_slice %306 {offsets = [0, 31], sizes = [8, 128], strides = [1, 1]} : vector<8x178xbf16> to vector<8x128xbf16>
    %316 = vector.extract_strided_slice %306 {offsets = [0, 34], sizes = [8, 128], strides = [1, 1]} : vector<8x178xbf16> to vector<8x128xbf16>
    %317 = vector.extract_strided_slice %306 {offsets = [0, 37], sizes = [8, 128], strides = [1, 1]} : vector<8x178xbf16> to vector<8x128xbf16>
    %318 = vector.extract_strided_slice %306 {offsets = [0, 40], sizes = [8, 128], strides = [1, 1]} : vector<8x178xbf16> to vector<8x128xbf16>
    %319 = tpu.concatenate %308, %309, %310, %311, %312, %313, %314, %315, %316, %317, %318 in 0 : vector<8x128xbf16>, vector<8x128xbf16>, vector<8x128xbf16>, vector<8x128xbf16>, vector<8x128xbf16>, vector<8x128xbf16>, vector<8x128xbf16>, vector<8x128xbf16>, vector<8x128xbf16>, vector<8x128xbf16>, vector<8x128xbf16> -> vector<88x128xbf16>
    %cst_168 = arith.constant dense<0.000000e+00> : vector<8x128xf32>
    %320 = tpu.matmul %307, %319, %cst_168 {dimension_numbers = #tpu.dot_dimension_numbers<[1], [0], [0], [1], [0, 0, 1, 1], [], []>} : vector<8x88xbf16>, vector<88x128xbf16>, vector<8x128xf32> -> vector<8x128xf32>
    %c0_169 = arith.constant 0 : index
    %c0_170 = arith.constant 0 : index
    %321 = vector.load %arg31[%c0_169, %c0_170] : memref<8x1xf32, #tpu.memory_space<vmem>>, vector<8x1xf32>
    %322 = vector.broadcast %321 : vector<8x1xf32> to vector<8x128xf32>
    %323 = arith.addf %320, %322 : vector<8x128xf32>
    %cst_171 = arith.constant 0.000000e+00 : f32
    %324 = vector.broadcast %cst_171 : f32 to vector<8x128xf32>
    %325 = arith.cmpf oge, %323, %324 : vector<8x128xf32>
    %cst_172 = arith.constant 1.000000e-01 : f32
    %326 = vector.broadcast %cst_172 : f32 to vector<8x128xf32>
    %327 = arith.mulf %326, %323 : vector<8x128xf32>
    %328 = arith.select %325, %323, %327 : vector<8x128xi1>, vector<8x128xf32>
    %329 = arith.truncf %328 : vector<8x128xf32> to vector<8x128xbf16>
    %c0_173 = arith.constant 0 : index
    %c25_174 = arith.constant 25 : index
    %330 = vector.load %arg40[%c0_173, %c25_174] : memref<8x178xbf16, #tpu.memory_space<vmem>>, vector<8x128xbf16>
    tpu.vector_store %arg40[%c0_173, %c25_174], %329 {strides = array<i32>} : memref<8x178xbf16, #tpu.memory_space<vmem>>, vector<8x128xbf16>,
    %c0_175 = arith.constant 0 : index
    %c0_176 = arith.constant 0 : index
    %331 = vector.load %arg40[%c0_175, %c0_176] : memref<8x178xbf16, #tpu.memory_space<vmem>>, vector<8x178xbf16>
    %c0_177 = arith.constant 0 : index
    %c0_178 = arith.constant 0 : index
    %332 = vector.load %arg32[%c0_177, %c0_178] : memref<8x88xbf16, #tpu.memory_space<vmem>>, vector<8x88xbf16>
    %333 = vector.extract_strided_slice %331 {offsets = [0, 20], sizes = [8, 128], strides = [1, 1]} : vector<8x178xbf16> to vector<8x128xbf16>
    %334 = vector.extract_strided_slice %331 {offsets = [0, 21], sizes = [8, 128], strides = [1, 1]} : vector<8x178xbf16> to vector<8x128xbf16>
    %335 = vector.extract_strided_slice %331 {offsets = [0, 22], sizes = [8, 128], strides = [1, 1]} : vector<8x178xbf16> to vector<8x128xbf16>
    %336 = vector.extract_strided_slice %331 {offsets = [0, 23], sizes = [8, 128], strides = [1, 1]} : vector<8x178xbf16> to vector<8x128xbf16>
    %337 = vector.extract_strided_slice %331 {offsets = [0, 24], sizes = [8, 128], strides = [1, 1]} : vector<8x178xbf16> to vector<8x128xbf16>
    %338 = vector.extract_strided_slice %331 {offsets = [0, 25], sizes = [8, 128], strides = [1, 1]} : vector<8x178xbf16> to vector<8x128xbf16>
    %339 = vector.extract_strided_slice %331 {offsets = [0, 26], sizes = [8, 128], strides = [1, 1]} : vector<8x178xbf16> to vector<8x128xbf16>
    %340 = vector.extract_strided_slice %331 {offsets = [0, 27], sizes = [8, 128], strides = [1, 1]} : vector<8x178xbf16> to vector<8x128xbf16>
    %341 = vector.extract_strided_slice %331 {offsets = [0, 28], sizes = [8, 128], strides = [1, 1]} : vector<8x178xbf16> to vector<8x128xbf16>
    %342 = vector.extract_strided_slice %331 {offsets = [0, 29], sizes = [8, 128], strides = [1, 1]} : vector<8x178xbf16> to vector<8x128xbf16>
    %343 = vector.extract_strided_slice %331 {offsets = [0, 30], sizes = [8, 128], strides = [1, 1]} : vector<8x178xbf16> to vector<8x128xbf16>
    %344 = tpu.concatenate %333, %334, %335, %336, %337, %338, %339, %340, %341, %342, %343 in 0 : vector<8x128xbf16>, vector<8x128xbf16>, vector<8x128xbf16>, vector<8x128xbf16>, vector<8x128xbf16>, vector<8x128xbf16>, vector<8x128xbf16>, vector<8x128xbf16>, vector<8x128xbf16>, vector<8x128xbf16>, vector<8x128xbf16> -> vector<88x128xbf16>
    %cst_179 = arith.constant dense<0.000000e+00> : vector<8x128xf32>
    %345 = tpu.matmul %332, %344, %cst_179 {dimension_numbers = #tpu.dot_dimension_numbers<[1], [0], [0], [1], [0, 0, 1, 1], [], []>} : vector<8x88xbf16>, vector<88x128xbf16>, vector<8x128xf32> -> vector<8x128xf32>
    %c0_180 = arith.constant 0 : index
    %c0_181 = arith.constant 0 : index
    %346 = vector.load %arg33[%c0_180, %c0_181] : memref<8x1xf32, #tpu.memory_space<vmem>>, vector<8x1xf32>
    %347 = vector.broadcast %346 : vector<8x1xf32> to vector<8x128xf32>
    %348 = arith.addf %345, %347 : vector<8x128xf32>
    %349 = arith.addf %298, %348 : vector<8x128xf32>
    %cst_182 = arith.constant 0.000000e+00 : f32
    %350 = vector.broadcast %cst_182 : f32 to vector<8x128xf32>
    %351 = arith.cmpf oge, %349, %350 : vector<8x128xf32>
    %cst_183 = arith.constant 1.000000e-01 : f32
    %352 = vector.broadcast %cst_183 : f32 to vector<8x128xf32>
    %353 = arith.mulf %352, %349 : vector<8x128xf32>
    %354 = arith.select %351, %349, %353 : vector<8x128xi1>, vector<8x128xf32>
    %355 = arith.truncf %354 : vector<8x128xf32> to vector<8x128xbf16>
    %c0_184 = arith.constant 0 : index
    %c25_185 = arith.constant 25 : index
    %356 = vector.load %arg40[%c0_184, %c25_185] : memref<8x178xbf16, #tpu.memory_space<vmem>>, vector<8x128xbf16>
    tpu.vector_store %arg40[%c0_184, %c25_185], %355 {strides = array<i32>} : memref<8x178xbf16, #tpu.memory_space<vmem>>, vector<8x128xbf16>,
    %c0_186 = arith.constant 0 : index
    %c0_187 = arith.constant 0 : index
    %357 = vector.load %arg40[%c0_186, %c0_187] : memref<8x178xbf16, #tpu.memory_space<vmem>>, vector<8x178xbf16>
    %c0_188 = arith.constant 0 : index
    %c0_189 = arith.constant 0 : index
    %358 = vector.load %arg34[%c0_188, %c0_189] : memref<8x88xbf16, #tpu.memory_space<vmem>>, vector<8x88xbf16>
    %359 = vector.extract_strided_slice %357 {offsets = [0, 0], sizes = [8, 128], strides = [1, 1]} : vector<8x178xbf16> to vector<8x128xbf16>
    %360 = vector.extract_strided_slice %357 {offsets = [0, 5], sizes = [8, 128], strides = [1, 1]} : vector<8x178xbf16> to vector<8x128xbf16>
    %361 = vector.extract_strided_slice %357 {offsets = [0, 10], sizes = [8, 128], strides = [1, 1]} : vector<8x178xbf16> to vector<8x128xbf16>
    %362 = vector.extract_strided_slice %357 {offsets = [0, 15], sizes = [8, 128], strides = [1, 1]} : vector<8x178xbf16> to vector<8x128xbf16>
    %363 = vector.extract_strided_slice %357 {offsets = [0, 20], sizes = [8, 128], strides = [1, 1]} : vector<8x178xbf16> to vector<8x128xbf16>
    %364 = vector.extract_strided_slice %357 {offsets = [0, 25], sizes = [8, 128], strides = [1, 1]} : vector<8x178xbf16> to vector<8x128xbf16>
    %365 = vector.extract_strided_slice %357 {offsets = [0, 30], sizes = [8, 128], strides = [1, 1]} : vector<8x178xbf16> to vector<8x128xbf16>
    %366 = vector.extract_strided_slice %357 {offsets = [0, 35], sizes = [8, 128], strides = [1, 1]} : vector<8x178xbf16> to vector<8x128xbf16>
    %367 = vector.extract_strided_slice %357 {offsets = [0, 40], sizes = [8, 128], strides = [1, 1]} : vector<8x178xbf16> to vector<8x128xbf16>
    %368 = vector.extract_strided_slice %357 {offsets = [0, 45], sizes = [8, 128], strides = [1, 1]} : vector<8x178xbf16> to vector<8x128xbf16>
    %369 = vector.extract_strided_slice %357 {offsets = [0, 50], sizes = [8, 128], strides = [1, 1]} : vector<8x178xbf16> to vector<8x128xbf16>
    %370 = tpu.concatenate %359, %360, %361, %362, %363, %364, %365, %366, %367, %368, %369 in 0 : vector<8x128xbf16>, vector<8x128xbf16>, vector<8x128xbf16>, vector<8x128xbf16>, vector<8x128xbf16>, vector<8x128xbf16>, vector<8x128xbf16>, vector<8x128xbf16>, vector<8x128xbf16>, vector<8x128xbf16>, vector<8x128xbf16> -> vector<88x128xbf16>
    %cst_190 = arith.constant dense<0.000000e+00> : vector<8x128xf32>
    %371 = tpu.matmul %358, %370, %cst_190 {dimension_numbers = #tpu.dot_dimension_numbers<[1], [0], [0], [1], [0, 0, 1, 1], [], []>} : vector<8x88xbf16>, vector<88x128xbf16>, vector<8x128xf32> -> vector<8x128xf32>
    %c0_191 = arith.constant 0 : index
    %c0_192 = arith.constant 0 : index
    %372 = vector.load %arg35[%c0_191, %c0_192] : memref<8x1xf32, #tpu.memory_space<vmem>>, vector<8x1xf32>
    %373 = vector.broadcast %372 : vector<8x1xf32> to vector<8x128xf32>
    %374 = arith.addf %371, %373 : vector<8x128xf32>
    %cst_193 = arith.constant 0.000000e+00 : f32
    %375 = vector.broadcast %cst_193 : f32 to vector<8x128xf32>
    %376 = arith.cmpf oge, %374, %375 : vector<8x128xf32>
    %cst_194 = arith.constant 1.000000e-01 : f32
    %377 = vector.broadcast %cst_194 : f32 to vector<8x128xf32>
    %378 = arith.mulf %377, %374 : vector<8x128xf32>
    %379 = arith.select %376, %374, %378 : vector<8x128xi1>, vector<8x128xf32>
    %380 = arith.truncf %379 : vector<8x128xf32> to vector<8x128xbf16>
    %c0_195 = arith.constant 0 : index
    %c25_196 = arith.constant 25 : index
    %381 = vector.load %arg40[%c0_195, %c25_196] : memref<8x178xbf16, #tpu.memory_space<vmem>>, vector<8x128xbf16>
    tpu.vector_store %arg40[%c0_195, %c25_196], %380 {strides = array<i32>} : memref<8x178xbf16, #tpu.memory_space<vmem>>, vector<8x128xbf16>,
    %c0_197 = arith.constant 0 : index
    %c0_198 = arith.constant 0 : index
    %382 = vector.load %arg40[%c0_197, %c0_198] : memref<8x178xbf16, #tpu.memory_space<vmem>>, vector<8x178xbf16>
    %c0_199 = arith.constant 0 : index
    %c0_200 = arith.constant 0 : index
    %383 = vector.load %arg36[%c0_199, %c0_200] : memref<8x88xbf16, #tpu.memory_space<vmem>>, vector<8x88xbf16>
    %384 = vector.extract_strided_slice %382 {offsets = [0, 20], sizes = [8, 128], strides = [1, 1]} : vector<8x178xbf16> to vector<8x128xbf16>
    %385 = vector.extract_strided_slice %382 {offsets = [0, 21], sizes = [8, 128], strides = [1, 1]} : vector<8x178xbf16> to vector<8x128xbf16>
    %386 = vector.extract_strided_slice %382 {offsets = [0, 22], sizes = [8, 128], strides = [1, 1]} : vector<8x178xbf16> to vector<8x128xbf16>
    %387 = vector.extract_strided_slice %382 {offsets = [0, 23], sizes = [8, 128], strides = [1, 1]} : vector<8x178xbf16> to vector<8x128xbf16>
    %388 = vector.extract_strided_slice %382 {offsets = [0, 24], sizes = [8, 128], strides = [1, 1]} : vector<8x178xbf16> to vector<8x128xbf16>
    %389 = vector.extract_strided_slice %382 {offsets = [0, 25], sizes = [8, 128], strides = [1, 1]} : vector<8x178xbf16> to vector<8x128xbf16>
    %390 = vector.extract_strided_slice %382 {offsets = [0, 26], sizes = [8, 128], strides = [1, 1]} : vector<8x178xbf16> to vector<8x128xbf16>
    %391 = vector.extract_strided_slice %382 {offsets = [0, 27], sizes = [8, 128], strides = [1, 1]} : vector<8x178xbf16> to vector<8x128xbf16>
    %392 = vector.extract_strided_slice %382 {offsets = [0, 28], sizes = [8, 128], strides = [1, 1]} : vector<8x178xbf16> to vector<8x128xbf16>
    %393 = vector.extract_strided_slice %382 {offsets = [0, 29], sizes = [8, 128], strides = [1, 1]} : vector<8x178xbf16> to vector<8x128xbf16>
    %394 = vector.extract_strided_slice %382 {offsets = [0, 30], sizes = [8, 128], strides = [1, 1]} : vector<8x178xbf16> to vector<8x128xbf16>
    %395 = tpu.concatenate %384, %385, %386, %387, %388, %389, %390, %391, %392, %393, %394 in 0 : vector<8x128xbf16>, vector<8x128xbf16>, vector<8x128xbf16>, vector<8x128xbf16>, vector<8x128xbf16>, vector<8x128xbf16>, vector<8x128xbf16>, vector<8x128xbf16>, vector<8x128xbf16>, vector<8x128xbf16>, vector<8x128xbf16> -> vector<88x128xbf16>
    %cst_201 = arith.constant dense<0.000000e+00> : vector<8x128xf32>
    %396 = tpu.matmul %383, %395, %cst_201 {dimension_numbers = #tpu.dot_dimension_numbers<[1], [0], [0], [1], [0, 0, 1, 1], [], []>} : vector<8x88xbf16>, vector<88x128xbf16>, vector<8x128xf32> -> vector<8x128xf32>
    %c0_202 = arith.constant 0 : index
    %c0_203 = arith.constant 0 : index
    %397 = vector.load %arg37[%c0_202, %c0_203] : memref<8x1xf32, #tpu.memory_space<vmem>>, vector<8x1xf32>
    %398 = vector.broadcast %397 : vector<8x1xf32> to vector<8x128xf32>
    %399 = arith.addf %396, %398 : vector<8x128xf32>
    %400 = arith.addf %349, %399 : vector<8x128xf32>
    %401 = arith.addf %247, %400 : vector<8x128xf32>
    %cst_204 = arith.constant 0.333333343 : f32
    %402 = vector.broadcast %cst_204 : f32 to vector<8x128xf32>
    %403 = arith.mulf %401, %402 : vector<8x128xf32>
    %cst_205 = arith.constant 0.000000e+00 : f32
    %404 = vector.broadcast %cst_205 : f32 to vector<8x128xf32>
    %405 = arith.cmpf oge, %403, %404 : vector<8x128xf32>
    %cst_206 = arith.constant 1.000000e-01 : f32
    %406 = vector.broadcast %cst_206 : f32 to vector<8x128xf32>
    %407 = arith.mulf %406, %403 : vector<8x128xf32>
    %408 = arith.select %405, %403, %407 : vector<8x128xi1>, vector<8x128xf32>
    %409 = arith.truncf %408 : vector<8x128xf32> to vector<8x128xbf16>
    %c0_207 = arith.constant 0 : index
    %c25_208 = arith.constant 25 : index
    %410 = vector.load %arg40[%c0_207, %c25_208] : memref<8x178xbf16, #tpu.memory_space<vmem>>, vector<8x128xbf16>
    tpu.vector_store %arg40[%c0_207, %c25_208], %409 {strides = array<i32>} : memref<8x178xbf16, #tpu.memory_space<vmem>>, vector<8x128xbf16>,
    %c0_209 = arith.constant 0 : index
    %c0_210 = arith.constant 0 : index
    %411 = vector.load %arg40[%c0_209, %c0_210] : memref<8x178xbf16, #tpu.memory_space<vmem>>, vector<8x178xbf16>
    %c0_211 = arith.constant 0 : index
    %c0_212 = arith.constant 0 : index
    %412 = vector.load %arg38[%c0_211, %c0_212] : memref<1x56xbf16, #tpu.memory_space<vmem>>, vector<1x56xbf16>
    %413 = vector.extract_strided_slice %411 {offsets = [0, 22], sizes = [8, 128], strides = [1, 1]} : vector<8x178xbf16> to vector<8x128xbf16>
    %414 = vector.extract_strided_slice %411 {offsets = [0, 23], sizes = [8, 128], strides = [1, 1]} : vector<8x178xbf16> to vector<8x128xbf16>
    %415 = vector.extract_strided_slice %411 {offsets = [0, 24], sizes = [8, 128], strides = [1, 1]} : vector<8x178xbf16> to vector<8x128xbf16>
    %416 = vector.extract_strided_slice %411 {offsets = [0, 25], sizes = [8, 128], strides = [1, 1]} : vector<8x178xbf16> to vector<8x128xbf16>
    %417 = vector.extract_strided_slice %411 {offsets = [0, 26], sizes = [8, 128], strides = [1, 1]} : vector<8x178xbf16> to vector<8x128xbf16>
    %418 = vector.extract_strided_slice %411 {offsets = [0, 27], sizes = [8, 128], strides = [1, 1]} : vector<8x178xbf16> to vector<8x128xbf16>
    %419 = vector.extract_strided_slice %411 {offsets = [0, 28], sizes = [8, 128], strides = [1, 1]} : vector<8x178xbf16> to vector<8x128xbf16>
    %420 = tpu.concatenate %413, %414, %415, %416, %417, %418, %419 in 0 : vector<8x128xbf16>, vector<8x128xbf16>, vector<8x128xbf16>, vector<8x128xbf16>, vector<8x128xbf16>, vector<8x128xbf16>, vector<8x128xbf16> -> vector<56x128xbf16>
    %cst_213 = arith.constant dense<0.000000e+00> : vector<1x128xf32>
    %421 = tpu.matmul %412, %420, %cst_213 {dimension_numbers = #tpu.dot_dimension_numbers<[1], [0], [0], [1], [0, 0, 1, 1], [], []>} : vector<1x56xbf16>, vector<56x128xbf16>, vector<1x128xf32> -> vector<1x128xf32>
    %422 = math.tanh %421 : vector<1x128xf32>
    %c0_214 = arith.constant 0 : index
    %c0_215 = arith.constant 0 : index
    %c0_216 = arith.constant 0 : index
    %423 = vector.load %arg39[%c0_214, %c0_215, %c0_216] : memref<1x1x128xf32, #tpu.memory_space<vmem>>, vector<1x1x128xf32>
    %424 = vector.shape_cast %423 : vector<1x1x128xf32> to vector<1x128xf32>
    %425 = vector.shape_cast %422 : vector<1x128xf32> to vector<1x1x128xf32>
    tpu.vector_store %arg39[%c0_214, %c0_215, %c0_216], %425 {strides = array<i32>} : memref<1x1x128xf32, #tpu.memory_space<vmem>>, vector<1x1x128xf32>,
    return
  }
  func.func @transform_0(%arg0: i32) -> (i32, i32, i32) {
    %c0_i32 = arith.constant 0 : i32
    %c0_i32_0 = arith.constant 0 : i32
    %c0_i32_1 = arith.constant 0 : i32
    return %arg0, %c0_i32, %c0_i32_0 : i32, i32, i32
  }
  func.func @transform_1(%arg0: i32) -> (i32, i32) {
    %c0_i32 = arith.constant 0 : i32
    %c0_i32_0 = arith.constant 0 : i32
    %c0_i32_1 = arith.constant 0 : i32
    return %c0_i32, %c0_i32_0 : i32, i32
  }
  func.func @transform_2(%arg0: i32) -> (i32, i32) {
    %c0_i32 = arith.constant 0 : i32
    %c0_i32_0 = arith.constant 0 : i32
    %c0_i32_1 = arith.constant 0 : i32
    return %c0_i32, %c0_i32_0 : i32, i32
  }
  func.func @transform_3(%arg0: i32) -> (i32, i32) {
    %c0_i32 = arith.constant 0 : i32
    %c0_i32_0 = arith.constant 0 : i32
    %c0_i32_1 = arith.constant 0 : i32
    return %c0_i32, %c0_i32_0 : i32, i32
  }
  func.func @transform_4(%arg0: i32) -> (i32, i32) {
    %c0_i32 = arith.constant 0 : i32
    %c0_i32_0 = arith.constant 0 : i32
    %c0_i32_1 = arith.constant 0 : i32
    return %c0_i32, %c0_i32_0 : i32, i32
  }
  func.func @transform_5(%arg0: i32) -> (i32, i32) {
    %c0_i32 = arith.constant 0 : i32
    %c0_i32_0 = arith.constant 0 : i32
    %c0_i32_1 = arith.constant 0 : i32
    return %c0_i32, %c0_i32_0 : i32, i32
  }
  func.func @transform_6(%arg0: i32) -> (i32, i32) {
    %c0_i32 = arith.constant 0 : i32
    %c0_i32_0 = arith.constant 0 : i32
    %c0_i32_1 = arith.constant 0 : i32
    return %c0_i32, %c0_i32_0 : i32, i32
  }
  func.func @transform_7(%arg0: i32) -> (i32, i32) {
    %c0_i32 = arith.constant 0 : i32
    %c0_i32_0 = arith.constant 0 : i32
    %c0_i32_1 = arith.constant 0 : i32
    return %c0_i32, %c0_i32_0 : i32, i32
  }
  func.func @transform_8(%arg0: i32) -> (i32, i32) {
    %c0_i32 = arith.constant 0 : i32
    %c0_i32_0 = arith.constant 0 : i32
    %c0_i32_1 = arith.constant 0 : i32
    return %c0_i32, %c0_i32_0 : i32, i32
  }
  func.func @transform_9(%arg0: i32) -> (i32, i32) {
    %c0_i32 = arith.constant 0 : i32
    %c0_i32_0 = arith.constant 0 : i32
    %c0_i32_1 = arith.constant 0 : i32
    return %c0_i32, %c0_i32_0 : i32, i32
  }
  func.func @transform_10(%arg0: i32) -> (i32, i32) {
    %c0_i32 = arith.constant 0 : i32
    %c0_i32_0 = arith.constant 0 : i32
    %c0_i32_1 = arith.constant 0 : i32
    return %c0_i32, %c0_i32_0 : i32, i32
  }
  func.func @transform_11(%arg0: i32) -> (i32, i32) {
    %c0_i32 = arith.constant 0 : i32
    %c0_i32_0 = arith.constant 0 : i32
    %c0_i32_1 = arith.constant 0 : i32
    return %c0_i32, %c0_i32_0 : i32, i32
  }
  func.func @transform_12(%arg0: i32) -> (i32, i32) {
    %c0_i32 = arith.constant 0 : i32
    %c0_i32_0 = arith.constant 0 : i32
    %c0_i32_1 = arith.constant 0 : i32
    return %c0_i32, %c0_i32_0 : i32, i32
  }
  func.func @transform_13(%arg0: i32) -> (i32, i32) {
    %c0_i32 = arith.constant 0 : i32
    %c0_i32_0 = arith.constant 0 : i32
    %c0_i32_1 = arith.constant 0 : i32
    return %c0_i32, %c0_i32_0 : i32, i32
  }
  func.func @transform_14(%arg0: i32) -> (i32, i32) {
    %c0_i32 = arith.constant 0 : i32
    %c0_i32_0 = arith.constant 0 : i32
    %c0_i32_1 = arith.constant 0 : i32
    return %c0_i32, %c0_i32_0 : i32, i32
  }
  func.func @transform_15(%arg0: i32) -> (i32, i32) {
    %c0_i32 = arith.constant 0 : i32
    %c0_i32_0 = arith.constant 0 : i32
    %c0_i32_1 = arith.constant 0 : i32
    return %c0_i32, %c0_i32_0 : i32, i32
  }
  func.func @transform_16(%arg0: i32) -> (i32, i32) {
    %c0_i32 = arith.constant 0 : i32
    %c0_i32_0 = arith.constant 0 : i32
    %c0_i32_1 = arith.constant 0 : i32
    return %c0_i32, %c0_i32_0 : i32, i32
  }
  func.func @transform_17(%arg0: i32) -> (i32, i32) {
    %c0_i32 = arith.constant 0 : i32
    %c0_i32_0 = arith.constant 0 : i32
    %c0_i32_1 = arith.constant 0 : i32
    return %c0_i32, %c0_i32_0 : i32, i32
  }
  func.func @transform_18(%arg0: i32) -> (i32, i32) {
    %c0_i32 = arith.constant 0 : i32
    %c0_i32_0 = arith.constant 0 : i32
    %c0_i32_1 = arith.constant 0 : i32
    return %c0_i32, %c0_i32_0 : i32, i32
  }
  func.func @transform_19(%arg0: i32) -> (i32, i32) {
    %c0_i32 = arith.constant 0 : i32
    %c0_i32_0 = arith.constant 0 : i32
    %c0_i32_1 = arith.constant 0 : i32
    return %c0_i32, %c0_i32_0 : i32, i32
  }
  func.func @transform_20(%arg0: i32) -> (i32, i32) {
    %c0_i32 = arith.constant 0 : i32
    %c0_i32_0 = arith.constant 0 : i32
    %c0_i32_1 = arith.constant 0 : i32
    return %c0_i32, %c0_i32_0 : i32, i32
  }
  func.func @transform_21(%arg0: i32) -> (i32, i32) {
    %c0_i32 = arith.constant 0 : i32
    %c0_i32_0 = arith.constant 0 : i32
    %c0_i32_1 = arith.constant 0 : i32
    return %c0_i32, %c0_i32_0 : i32, i32
  }
  func.func @transform_22(%arg0: i32) -> (i32, i32) {
    %c0_i32 = arith.constant 0 : i32
    %c0_i32_0 = arith.constant 0 : i32
    %c0_i32_1 = arith.constant 0 : i32
    return %c0_i32, %c0_i32_0 : i32, i32
  }
  func.func @transform_23(%arg0: i32) -> (i32, i32) {
    %c0_i32 = arith.constant 0 : i32
    %c0_i32_0 = arith.constant 0 : i32
    %c0_i32_1 = arith.constant 0 : i32
    return %c0_i32, %c0_i32_0 : i32, i32
  }
  func.func @transform_24(%arg0: i32) -> (i32, i32) {
    %c0_i32 = arith.constant 0 : i32
    %c0_i32_0 = arith.constant 0 : i32
    %c0_i32_1 = arith.constant 0 : i32
    return %c0_i32, %c0_i32_0 : i32, i32
  }
  func.func @transform_25(%arg0: i32) -> (i32, i32) {
    %c0_i32 = arith.constant 0 : i32
    %c0_i32_0 = arith.constant 0 : i32
    %c0_i32_1 = arith.constant 0 : i32
    return %c0_i32, %c0_i32_0 : i32, i32
  }
  func.func @transform_26(%arg0: i32) -> (i32, i32) {
    %c0_i32 = arith.constant 0 : i32
    %c0_i32_0 = arith.constant 0 : i32
    %c0_i32_1 = arith.constant 0 : i32
    return %c0_i32, %c0_i32_0 : i32, i32
  }
  func.func @transform_27(%arg0: i32) -> (i32, i32) {
    %c0_i32 = arith.constant 0 : i32
    %c0_i32_0 = arith.constant 0 : i32
    %c0_i32_1 = arith.constant 0 : i32
    return %c0_i32, %c0_i32_0 : i32, i32
  }
  func.func @transform_28(%arg0: i32) -> (i32, i32) {
    %c0_i32 = arith.constant 0 : i32
    %c0_i32_0 = arith.constant 0 : i32
    %c0_i32_1 = arith.constant 0 : i32
    return %c0_i32, %c0_i32_0 : i32, i32
  }
  func.func @transform_29(%arg0: i32) -> (i32, i32) {
    %c0_i32 = arith.constant 0 : i32
    %c0_i32_0 = arith.constant 0 : i32
    %c0_i32_1 = arith.constant 0 : i32
    return %c0_i32, %c0_i32_0 : i32, i32
  }
  func.func @transform_30(%arg0: i32) -> (i32, i32) {
    %c0_i32 = arith.constant 0 : i32
    %c0_i32_0 = arith.constant 0 : i32
    %c0_i32_1 = arith.constant 0 : i32
    return %c0_i32, %c0_i32_0 : i32, i32
  }
  func.func @transform_31(%arg0: i32) -> (i32, i32) {
    %c0_i32 = arith.constant 0 : i32
    %c0_i32_0 = arith.constant 0 : i32
    %c0_i32_1 = arith.constant 0 : i32
    return %c0_i32, %c0_i32_0 : i32, i32
  }
  func.func @transform_32(%arg0: i32) -> (i32, i32) {
    %c0_i32 = arith.constant 0 : i32
    %c0_i32_0 = arith.constant 0 : i32
    %c0_i32_1 = arith.constant 0 : i32
    return %c0_i32, %c0_i32_0 : i32, i32
  }
  func.func @transform_33(%arg0: i32) -> (i32, i32) {
    %c0_i32 = arith.constant 0 : i32
    %c0_i32_0 = arith.constant 0 : i32
    %c0_i32_1 = arith.constant 0 : i32
    return %c0_i32, %c0_i32_0 : i32, i32
  }
  func.func @transform_34(%arg0: i32) -> (i32, i32) {
    %c0_i32 = arith.constant 0 : i32
    %c0_i32_0 = arith.constant 0 : i32
    %c0_i32_1 = arith.constant 0 : i32
    return %c0_i32, %c0_i32_0 : i32, i32
  }
  func.func @transform_35(%arg0: i32) -> (i32, i32) {
    %c0_i32 = arith.constant 0 : i32
    %c0_i32_0 = arith.constant 0 : i32
    %c0_i32_1 = arith.constant 0 : i32
    return %c0_i32, %c0_i32_0 : i32, i32
  }
  func.func @transform_36(%arg0: i32) -> (i32, i32) {
    %c0_i32 = arith.constant 0 : i32
    %c0_i32_0 = arith.constant 0 : i32
    %c0_i32_1 = arith.constant 0 : i32
    return %c0_i32, %c0_i32_0 : i32, i32
  }
  func.func @transform_37(%arg0: i32) -> (i32, i32) {
    %c0_i32 = arith.constant 0 : i32
    %c0_i32_0 = arith.constant 0 : i32
    %c0_i32_1 = arith.constant 0 : i32
    return %c0_i32, %c0_i32_0 : i32, i32
  }
  func.func @transform_38(%arg0: i32) -> (i32, i32, i32) {
    %c0_i32 = arith.constant 0 : i32
    %c0_i32_0 = arith.constant 0 : i32
    %c0_i32_1 = arith.constant 0 : i32
    return %arg0, %c0_i32, %c0_i32_0 : i32, i32, i32
  }
}

</mosaic_0001>

<bundles_post_ra>
// kernel: hifigan_forward.3
= control target key start
LH: loop header
LB: loop body
LE: loop exit
PB: predicated region body
PF: predicated region fallthrough
CT: control target
= control target key end

     0   :  { %s1132_s27 = smov 0   ;;  %s1310_s0 = inlined_call_operand.vmem [shape: f32[2,8,8], index: 0, kind: input, shape index: {}]   ;;  %s1311_s1 = inlined_call_operand.vmem [shape: f32[2,8,8], index: 1, kind: input, shape index: {}]   ;;  %s1312_s2 = inlined_call_operand.vmem [shape: bf16[32,56], index: 2, kind: input, shape index: {}]   ;;  %s1313_s3 = inlined_call_operand.vmem [shape: f32[32,1], index: 3, kind: input, shape index: {}]   ;;  %s1314_s4 = inlined_call_operand.vmem [shape: bf16[32,8], index: 4, kind: input, shape index: {}]   ;;  %s1315_s5 = inlined_call_operand.vmem [shape: f32[32,1], index: 5, kind: input, shape index: {}]   ;;  %s1316_s6 = inlined_call_operand.vmem [shape: bf16[128,96], index: 6, kind: input, shape index: {}]   ;;  %s1317_s7 = inlined_call_operand.vmem [shape: f32[128,1], index: 7, kind: input, shape index: {}]   ;;  %s1318_s8 = inlined_call_operand.vmem [shape: bf16[2,8,128], index: 8, kind: output, shape index: {}]  }
   0x1 LB: > { %s940_s28 = sadd.s32 4294967295, %s1074_s27   ;;  %p944_p0 = scmp.ge.s32.totalorder %s1074_s27, 1  ;;  %s1074_s27 = sphi %s1132_s27, %s18_s27  }
   0x2   : > { %p270_p1 = scmp.lt.s32.totalorder %s1074_s27, 3 }
   0x4   : > { %p271_p2 = pnand %p944_p0, %p270_p1 }
   0x5   : > { %p306_p3 = scmp.lt.s32.totalorder (!%p271_p2), %s940_s28, 1  ;;  %s1077_s11 = smov (!%p271_p2), 3  }
   0x6   : > { %274 = sbr.rel (%p271_p2) target bundleno = 1210 (0x4ba), region = 52  ;;  %s1078_s12 = smov (!%p271_p2), 126  }
   0x7   : > { %s1079_s13 = smov (!%p271_p2), 124   ;;  %s1080_s14 = smov (!%p271_p2), 122  }
   0x8   : > { %s1081_s15 = smov (!%p271_p2), 125   ;;  %s1082_s16 = smov (!%p271_p2), 123  }
   0x9   : > { %s1083_s17 = smov (!%p271_p2), 127   ;;  %s1084_s26 = smov (!%p271_p2), 1  }
   0xb   : > { %vm319_vm0 = vcmask 19456   ;;  %vm321_vm1 = vcmask 109656   ;;  %v1076_v0 = vmov 0   ;;  %s1320_s28 = smov (!%p306_p3, %s940_s28), 1  ;;  %vm339_vm2 = vcmask 85016   ;;  %v1022_v10 = vld [vmem:[%s1314_s4] sm:$0xff] }
   0xc   : > { %320 = vst.msk [vmem:[#allocation2] sm:$0xf] %vm319_vm0, %v1076_v0  ;;  %1067 = vset.pattern.permute.xlu0 %v1076_v0  ;;  %1065 = vset.pattern.permute.xlu1 %v1076_v0  ;;  %s945_s29 = sshll.u32 %s1320_s28, 3  ;;  %vm361_vm3 = vcmask 1043456   ;;  %vm453_vm4 = vcmask 64512   ;;  %v376_v11 = vld [vmem:[%s1313_s3 + $0x10] sm:$0xff] }
   0xd   : > { %322 = vst.msk [vmem:[#allocation2] sm:$0xf] %vm321_vm1, %v1076_v0  ;;  %1066 = vset.pattern.permute.xlu2 %v1076_v0  ;;  %s309_s10 = scalar_lea.vmem %s1310_s0, %s945_s29  ;;  %s313_s20 = scalar_lea.vmem %s1311_s1, %s945_s29  ;;  %v374_v12 = vld [vmem:[%s1313_s3] sm:$0xff]  ;;  %v1023_v13 = vld [vmem:[%s1314_s4 + $0x8] sm:$0xff]  ;;  %v377_v19 = vld [vmem:[%s1313_s3 + $0x18] sm:$0xff]  ;;  %vm408_vm5 = vcmask 457728  }
   0xe   : > { %v333_v1 = vld [vmem:[%s309_s10] sm:$0xff]  ;;  %v375_v18 = vld [vmem:[%s1313_s3 + $0x8] sm:$0xff]  ;;  %v489_v24 = vld [vmem:[%s1315_s5 + $0x18] sm:$0xff]  ;;  %vm323_vm6 = vcmask 3072   ;;  %vm328_vm7 = vcmask 76872   ;;  %vm546_vm12 = vcmask 68616  }
   0xf   : > { %v334_v2 = vpack.c.bf16 %v333_v1, %v333_v1  ;;  %v441_v7 = vld [vmem:[%s313_s20] sm:$0xff]  ;;  %v487_v20 = vld [vmem:[%s1315_s5 + $0x8] sm:$0xff]  ;;  %v488_v25 = vld [vmem:[%s1315_s5 + $0x10] sm:$0xff]  ;;  %327 = vst.msk [vmem:[#allocation3 + $0xc] sm:$0xf] %vm323_vm6, %v1076_v0  ;;  %s1085_s29 = smov 2  }
  0x10   : > { %v442_v8 = vpack.c.bf16 %v441_v7, %v441_v7  ;;  %v1020_v29 = vld [vmem:[%s1312_s2] sm:$0xff]  ;;  %v1021_v31 = vld [vmem:[%s1312_s2 + $0x8] sm:$0xff]  ;;  %332 = vst.msk [vmem:[#allocation3 + $0xc] sm:$0xf] %vm328_vm7, %v1076_v0  ;;  %vm743_vm13 = vcmask 785408  }
  0x11   : > { %336 = vrot.lane.b32.xlu0 %v334_v2, %s1077_s11  ;;  %v486_v30 = vld [vmem:[%s1315_s5] sm:$0xff]  ;;  %324 = vst.msk [vmem:[#allocation3] sm:$0xf] %vm323_vm6, %v1076_v0 }
  0x12   : > { %v461_v9 = vsel %vm361_vm3, %v442_v8, 0  ;;  %325 = vst.msk [vmem:[#allocation3 + $0x4] sm:$0xf] %vm323_vm6, %v1076_v0 }
  0x13   : > { %470 = vmatpush.bf16.msra.mxu1 %v461_v9  ;;  %326 = vst.msk [vmem:[#allocation3 + $0x8] sm:$0xf] %vm323_vm6, %v1076_v0 }
  0x14   : > { %329 = vst.msk [vmem:[#allocation3] sm:$0xf] %vm328_vm7, %v1076_v0 }
  0x15   : > { %330 = vst.msk [vmem:[#allocation3 + $0x4] sm:$0xf] %vm328_vm7, %v1076_v0 }
  0x16   : > { %966 = vmatmul.msk.bf16.vlgmr.msra.gmra.mxu1 %vm453_vm4, %v1022_v10  ;;  %331 = vst.msk [vmem:[#allocation3 + $0x8] sm:$0xf] %vm328_vm7, %v1076_v0 }
  0x26   : > { %967 = vmatmul.msk.bf16.gmra.mxu1 %vm453_vm4, %v1023_v13 }
  0x83   : > { %v337_v3 = vpop.permute.xlu0 %336 }
  0x84   : > { %340 = vst.msk [vmem:[#allocation2] sm:$0xf] %vm339_vm2, %v337_v3 }
  0x8b   : > { %v341_v4 = vld [vmem:[#allocation2] sm:$0xf] }
  0x8c   : > { %v347_v5 = vunpack.c.l.b16 %v341_v4 }
  0x8e   : > { %v348_v6 = vpack.c.b16 %v347_v5, %v347_v5 }
  0x90   : > { %351 = vrot.lane.b32.xlu2 %v348_v6, %s1078_s12  ;;  %355 = vrot.lane.b32.xlu1 %v348_v6, %s1079_s13 }
  0x91   : > { %359 = vrot.lane.b32.xlu0 %v348_v6, %s1080_s14 }
  0x93   : > { %v472_v34 = vpop.f32.mrf.mxu1 }
  0x98   : > { %353 = vrot.lane.b32.xlu2 %v348_v6, %s1081_s15  ;;  %357 = vrot.lane.b32.xlu1 %v348_v6, %s1082_s16 }
  0x99   : > { %349 = vrot.lane.b32.xlu0 %v348_v6, %s1083_s17  ;;  %s947_s17 = sshll.u32 %s1320_s28, 2 }
  0x9a   : > { %s317_s20 = scalar_lea.vmem %s1318_s8, %s947_s17 }
  0x9b   : > { %v474_v42 = vpop.f32.mrf.mxu1 }
  0xa0   : > { %390 = vperm.xlu1 %1065, %v376_v11   ;;  %395 = vperm.xlu2 %1066, %v377_v19   ;;  %v597_v19 = vld [vmem:[%s1317_s7 + $0x40] sm:$0xff] }
  0xa1   : > { %380 = vperm.xlu0 %1067, %v374_v12  }
  0xa3   : > { %v477_v49 = vpop.f32.mrf.mxu1 }
  0xa8   : > { %385 = vperm.xlu1 %1065, %v375_v18   ;;  %502 = vperm.xlu2 %1066, %v488_v25   ;;  %v604_v25 = vld [vmem:[%s1317_s7 + $0x78] sm:$0xff] }
  0xa9   : > { %497 = vperm.xlu0 %1067, %v487_v20  }
  0xab   : > { %v479_v61 = vpop.f32.mrf.mxu1 }
  0xb0   : > { %507 = vperm.xlu1 %1065, %v489_v24   ;;  %492 = vperm.xlu2 %1066, %v486_v30   ;;  %v591_v24 = vld [vmem:[%s1317_s7 + $0x10] sm:$0xff]  ;;  %v598_v30 = vld [vmem:[%s1317_s7 + $0x48] sm:$0xff] }
  0xea   : > { %v352_v14 = vpop.permute.xlu2 %351 }
  0xf2   : > { %v354_v23 = vpop.permute.xlu2 %353 }
  0xf3   : > { %v368_v26 = vsel %vm361_vm3, %v352_v14, %v354_v23  ;;  %v600_v23 = vld [vmem:[%s1317_s7 + $0x58] sm:$0xff] }
  0xfa   : > { %v396_v32 = vpop.permute.xlu2 %395 }
 0x102   : > { %v356_v15 = vpop.permute.xlu1 %355  ;;  %v503_v33 = vpop.permute.xlu2 %502 }
 0x103   : > { %v360_v16 = vpop.permute.xlu0 %359 }
 0x104   : > { %v416_v17 = vsel %vm361_vm3, %v360_v16, 0  ;;  %v603_v16 = vld [vmem:[%s1317_s7 + $0x70] sm:$0xff] }
 0x105   : > { %422 = vmatpush.bf16.msra.mxu0 %v416_v17  ;;  %v602_v17 = vld [vmem:[%s1317_s7 + $0x68] sm:$0xff] }
 0x10a   : > { %v358_v21 = vpop.permute.xlu1 %357  ;;  %v493_v39 = vpop.permute.xlu2 %492 }
 0x10b   : > { %v372_v22 = vsel %vm361_vm3, %v356_v15, %v358_v21  ;;  %v350_v27 = vpop.permute.xlu0 %349  ;;  %v601_v21 = vld [vmem:[%s1317_s7 + $0x60] sm:$0xff] }
 0x10c   : > { %423 = vmatpush.bf16.msra.mxu0 %v372_v22  ;;  %v364_v28 = vsel %vm361_vm3, %v341_v4, %v350_v27  ;;  %v596_v22 = vld [vmem:[%s1317_s7 + $0x38] sm:$0xff]  ;;  %v590_v27 = vld [vmem:[%s1317_s7 + $0x8] sm:$0xff] }
 0x110   : > { %424 = vmatpush.bf16.msra.mxu0 %v368_v26  ;;  %v595_v26 = vld [vmem:[%s1317_s7 + $0x30] sm:$0xff] }
 0x112   : > { %v391_v38 = vpop.permute.xlu1 %390 }
 0x113   : > { %v381_v35 = vpop.permute.xlu0 %380 }
 0x114   : > { %425 = vmatpush.bf16.msra.mxu0 %v364_v28  ;;  %v599_v28 = vld [vmem:[%s1317_s7 + $0x50] sm:$0xff] }
 0x117   : > { %956 = vmatmul.msk.bf16.vlgmr.msra.gmra.mxu0 %vm408_vm5, %v1020_v29  ;;  %v594_v29 = vld [vmem:[%s1317_s7 + $0x28] sm:$0xff] }
 0x11a   : > { %v386_v47 = vpop.permute.xlu1 %385 }
 0x11b   : > { %v498_v54 = vpop.permute.xlu0 %497 }
 0x122   : > { %v508_v0 = vpop.permute.xlu1 %507 }
 0x127   : > { %957 = vmatmul.msk.bf16.gmra.mxu0 %vm408_vm5, %v1021_v31  ;;  %v589_v31 = vld [vmem:[%s1317_s7] sm:$0xff] }
 0x194   : > { %v427_v36 = vpop.f32.mrf.mxu0 }
 0x195   : > { %v428_v37 = vadd.f32 %v427_v36, %v381_v35 }
 0x197   : > { %v482_v40 = vadd.f32 %v472_v34, %v428_v37 }
 0x199   : > { %v510_v41 = vadd.f32 %v493_v39, %v482_v40  ;;  %v1026_v40 = vld [vmem:[%s1316_s6] sm:$0xff] }
 0x19b   : > { %vm514_vm8 = vcmp.ge.f32.partialorder %v510_v41, 0.0  ;;  %v518_v43 = vmul.f32 0.1, %v510_v41 }
 0x19c   : > { %v429_v44 = vpop.f32.mrf.mxu0 }
 0x19d   : > { %v522_v45 = vsel %vm514_vm8, %v510_v41, %v518_v43  ;;  %v430_v48 = vadd.f32 %v429_v44, %v386_v47  ;;  %v1027_v41 = vld [vmem:[%s1316_s6 + $0x8] sm:$0xff]  ;;  %v1028_v43 = vld [vmem:[%s1316_s6 + $0x10] sm:$0xff]  ;;  %v1033_v47 = vld [vmem:[%s1316_s6 + $0x38] sm:$0xff] }
 0x19e   : > { %v526_v46 = vpack.c.bf16 %v522_v45, %v522_v45  ;;  %v1031_v44 = vld [vmem:[%s1316_s6 + $0x28] sm:$0xff]  ;;  %v1029_v45 = vld [vmem:[%s1316_s6 + $0x18] sm:$0xff] }
 0x19f   : > { %v483_v52 = vadd.f32 %v474_v42, %v430_v48  ;;  %v1030_v42 = vld [vmem:[%s1316_s6 + $0x20] sm:$0xff] }
 0x1a0   : > { %534 = vrot.lane.b32.xlu0 %v526_v46, %s1084_s26  ;;  %v1032_v46 = vld [vmem:[%s1316_s6 + $0x30] sm:$0xff] }
 0x1a1   : > { %v511_v56 = vadd.f32 %v498_v54, %v483_v52 }
 0x1a3   : > { %v519_v63 = vmul.f32 0.1, %v511_v56  ;;  %vm515_vm10 = vcmp.ge.f32.partialorder %v511_v56, 0.0 }
 0x1a4   : > { %v432_v50 = vpop.f32.mrf.mxu0 }
 0x1a5   : > { %v433_v51 = vadd.f32 %v432_v50, %v391_v38  ;;  %v523_v4 = vsel %vm515_vm10, %v511_v56, %v519_v63 }
 0x1a6   : > { %v527_v7 = vpack.c.bf16 %v523_v4, %v523_v4 }
 0x1a7   : > { %v484_v53 = vadd.f32 %v477_v49, %v433_v51 }
 0x1a9   : > { %v512_v55 = vadd.f32 %v503_v33, %v484_v53  ;;  %v592_v33 = vld [vmem:[%s1317_s7 + $0x18] sm:$0xff] }
 0x1ab   : > { %vm516_vm9 = vcmp.ge.f32.partialorder %v512_v55, 0.0  ;;  %v520_v57 = vmul.f32 0.1, %v512_v55 }
 0x1ac   : > { %v434_v58 = vpop.f32.mrf.mxu0 }
 0x1ad   : > { %v435_v59 = vadd.f32 %v434_v58, %v396_v32  ;;  %v524_v60 = vsel %vm516_vm9, %v512_v55, %v520_v57  ;;  %v593_v32 = vld [vmem:[%s1317_s7 + $0x20] sm:$0xff] }
 0x1ae   : > { %v528_v62 = vpack.c.bf16 %v524_v60, %v524_v60 }
 0x1af   : > { %v485_v1 = vadd.f32 %v479_v61, %v435_v59 }
 0x1b0   : > { %538 = vrot.lane.b32.xlu1 %v528_v62, %s1084_s26 }
 0x1b1   : > { %v513_v2 = vadd.f32 %v508_v0, %v485_v1 }
 0x1b3   : > { %vm517_vm11 = vcmp.ge.f32.partialorder %v513_v2, 0.0  ;;  %v521_v3 = vmul.f32 0.1, %v513_v2 }
 0x1b5   : > { %v525_v5 = vsel %vm517_vm11, %v513_v2, %v521_v3 }
 0x1b6   : > { %v529_v6 = vpack.c.bf16 %v525_v5, %v525_v5 }
 0x1b8   : > { %540 = vrot.lane.b32.xlu2 %v529_v6, %s1084_s26  ;;  %536 = vrot.lane.b32.xlu1 %v527_v7, %s1084_s26 }
 0x212   : > { %v541_v8 = vpop.permute.xlu2 %540  ;;  %v535_v9 = vpop.permute.xlu0 %534 }
 0x213   : > { %550 = vst.msk [vmem:[#allocation3 + $0xc] sm:$0xf] %vm546_vm12, %v541_v8 }
 0x214   : > { %547 = vst.msk [vmem:[#allocation3] sm:$0xf] %vm546_vm12, %v535_v9 }
 0x222   : > { %v539_v10 = vpop.permute.xlu1 %538 }
 0x223   : > { %549 = vst.msk [vmem:[#allocation3 + $0x8] sm:$0xf] %vm546_vm12, %v539_v10 }
 0x22a   : > { %v537_v11 = vpop.permute.xlu1 %536  ;;  %v1025_v12 = vld [vmem:[#allocation3 + $0x8] sm:$0xff] }
 0x22b   : > { %548 = vst.msk [vmem:[#allocation3 + $0x4] sm:$0xf] %vm546_vm12, %v537_v11  ;;  %587 = vrot.lane.b32.xlu2 %v1025_v12, %s1085_s29  ;;  %583 = vrot.lane.b32.xlu1 %v1025_v12, %s1084_s26 }
 0x232   : > { %v1024_v13 = vld [vmem:[#allocation3] sm:$0xff] }
 0x233   : > { %581 = vrot.lane.b32.xlu2 %v1024_v13, %s1084_s26  ;;  %585 = vrot.lane.b32.xlu0 %v1024_v13, %s1085_s29 }
 0x285   : > { %v588_v14 = vpop.permute.xlu2 %587 }
 0x286   : > { %735 = vrot.lane.b32.xlu0 %v588_v14, %s1078_s12 }
 0x28d   : > { %v582_v15 = vpop.permute.xlu2 %581 }
 0x28e   : > { %729 = vrot.lane.b32.xlu0 %v582_v15, %s1078_s12 }
 0x296   : > { %677 = vperm.xlu0 %1067, %v603_v16  }
 0x29d   : > { %v584_v18 = vpop.permute.xlu1 %583 }
 0x29e   : > { %731 = vrot.lane.b32.xlu2 %v584_v18, %s1078_s12  ;;  %672 = vperm.xlu0 %1067, %v602_v17  }
 0x2a5   : > { %v586_v20 = vpop.permute.xlu0 %585 }
 0x2a6   : > { %725 = vrot.lane.b32.xlu2 %v1024_v13, %s1078_s12  ;;  %647 = vperm.xlu0 %1067, %v597_v19  }
 0x2a7   : > { %733 = vrot.lane.b32.xlu1 %v586_v20, %s1078_s12 }
 0x2ae   : > { %667 = vperm.xlu2 %1066, %v601_v21   ;;  %642 = vperm.xlu0 %1067, %v596_v22  }
 0x2af   : > { %727 = vrot.lane.b32.xlu1 %v1025_v12, %s1078_s12 }
 0x2b6   : > { %662 = vperm.xlu2 %1066, %v600_v23   ;;  %617 = vperm.xlu0 %1067, %v591_v24  }
 0x2b7   : > { %682 = vperm.xlu1 %1065, %v604_v25  }
 0x2be   : > { %637 = vperm.xlu2 %1066, %v595_v26   ;;  %612 = vperm.xlu0 %1067, %v590_v27  }
 0x2bf   : > { %657 = vperm.xlu1 %1065, %v599_v28  }
 0x2c6   : > { %632 = vperm.xlu2 %1066, %v594_v29  }
 0x2c7   : > { %652 = vperm.xlu1 %1065, %v598_v30  }
 0x2ce   : > { %607 = vperm.xlu2 %1066, %v589_v31  }
 0x2cf   : > { %627 = vperm.xlu1 %1065, %v593_v32  }
 0x2d7   : > { %622 = vperm.xlu1 %1065, %v592_v33  }
 0x2f8   : > { %v736_v34 = vpop.permute.xlu0 %735  ;;  %v732_v36 = vpop.permute.xlu2 %731 }
 0x2f9   : > { %770 = vmatpush.bf16.msrb.mxu0 %v736_v34  ;;  %1034 = vmatpush.bf16.msrb.mxu1 %v736_v34 }
 0x2fa   : > { %1035 = vmatpush.bf16.msra.mxu2 %v736_v34 }
 0x300   : > { %v730_v37 = vpop.permute.xlu0 %729  ;;  %v726_v39 = vpop.permute.xlu2 %725 }
 0x308   : > { %v678_v48 = vpop.permute.xlu0 %677  ;;  %v668_v6 = vpop.permute.xlu2 %667 }
 0x310   : > { %v673_v50 = vpop.permute.xlu0 %672  ;;  %v663_v13 = vpop.permute.xlu2 %662 }
 0x318   : > { %v648_v53 = vpop.permute.xlu0 %647  ;;  %v638_v20 = vpop.permute.xlu2 %637 }
 0x319   : > { %v734_v35 = vpop.permute.xlu1 %733 }
 0x31a   : > { %771 = vmatpush.bf16.msrb.mxu0 %v734_v35  ;;  %1036 = vmatpush.bf16.msrb.mxu1 %v734_v35 }
 0x31b   : > { %1037 = vmatpush.bf16.msra.mxu2 %v734_v35 }
 0x31e   : > { %772 = vmatpush.bf16.msrb.mxu0 %v732_v36  ;;  %1038 = vmatpush.bf16.msrb.mxu1 %v732_v36 }
 0x31f   : > { %1039 = vmatpush.bf16.msra.mxu2 %v732_v36 }
 0x320   : > { %v643_v22 = vpop.permute.xlu0 %642  ;;  %v633_v28 = vpop.permute.xlu2 %632 }
 0x321   : > { %v728_v38 = vpop.permute.xlu1 %727 }
 0x322   : > { %773 = vmatpush.bf16.msrb.mxu0 %v730_v37  ;;  %1040 = vmatpush.bf16.msrb.mxu1 %v730_v37 }
 0x323   : > { %1041 = vmatpush.bf16.msra.mxu2 %v730_v37 }
 0x326   : > { %774 = vmatpush.bf16.msrb.mxu0 %v728_v38  ;;  %1042 = vmatpush.bf16.msrb.mxu1 %v728_v38 }
 0x327   : > { %1043 = vmatpush.bf16.msra.mxu2 %v728_v38 }
 0x328   : > { %v618_v34 = vpop.permute.xlu0 %617 }
 0x329   : > { %v683_v49 = vpop.permute.xlu1 %682 }
 0x32a   : > { %775 = vmatpush.bf16.msrb.mxu0 %v726_v39  ;;  %1044 = vmatpush.bf16.msrb.mxu1 %v726_v39 }
 0x32b   : > { %1045 = vmatpush.bf16.msra.mxu2 %v726_v39 }
 0x32d   : > { %1008 = vmatmul.msk.bf16.vlgmr.msrb.gmra.mxu0 %vm743_vm13, %v1026_v40  ;;  %1009 = vmatmul.msk.bf16.vlgmr.msrb.gmra.mxu1 %vm743_vm13, %v1027_v41  ;;  %v817_v41 = vlaneseq }
 0x32e   : > { %1012 = vmatmul.msk.bf16.vlgmr.msra.gmra.mxu2 %vm743_vm13, %v1030_v42 }
 0x330   : > { %v613_v42 = vpop.permute.xlu0 %612 }
 0x331   : > { %v658_v51 = vpop.permute.xlu1 %657 }
 0x339   : > { %v653_v54 = vpop.permute.xlu1 %652 }
 0x33d   : > { %1010 = vmatmul.msk.bf16.gmra.mxu1 %vm743_vm13, %v1028_v43 }
 0x33e   : > { %1013 = vmatmul.msk.bf16.gmra.mxu2 %vm743_vm13, %v1031_v44 }
 0x341   : > { %v628_v27 = vpop.permute.xlu1 %627 }
 0x349   : > { %v623_v35 = vpop.permute.xlu1 %622 }
 0x34d   : > { %1011 = vmatmul.msk.bf16.gmra.mxu1 %vm743_vm13, %v1029_v45  ;;  %v608_v45 = vpop.permute.xlu2 %607 }
 0x34e   : > { %1014 = vmatmul.msk.bf16.gmra.mxu2 %vm743_vm13, %v1032_v46 }
 0x35e   : > { %1015 = vmatmul.msk.bf16.gmra.mxu2 %vm743_vm13, %v1033_v47  ;;  %v818_v47 = vshrl.u32 %v817_v41, 7 }
 0x3aa   : > { %v782_v61 = vpop.f32.mrf.mxu1  ;;  %v777_v32 = vpop.f32.mrf.mxu0 }
 0x3ab   : > { %v783_v38 = vadd.f32 %v782_v61, %v618_v34  ;;  %v778_v46 = vadd.f32 %v777_v32, %v608_v45 }
 0x3b1   : > { %v797_v52 = vpop.f32.mrf.mxu2 }
 0x3b2   : > { %v798_v56 = vadd.f32 %v797_v52, %v648_v53  ;;  %v784_v1 = vpop.f32.mrf.mxu1  ;;  %v779_v40 = vpop.f32.mrf.mxu0 }
 0x3b3   : > { %v785_v36 = vadd.f32 %v784_v1, %v623_v35  ;;  %v780_v43 = vadd.f32 %v779_v40, %v613_v42 }
 0x3b5   : > { %v826_v39 = vpack.c.bf16 %v785_v36, %v783_v38 }
 0x3b7   : > { %v840_v44 = vsel %vm453_vm4, %v826_v39, 0 }
 0x3b9   : > { %v799_v55 = vpop.f32.mrf.mxu2 }
 0x3ba   : > { %v800_v57 = vadd.f32 %v799_v55, %v653_v54  ;;  %v787_v2 = vpop.f32.mrf.mxu1 }
 0x3bb   : > { %v788_v31 = vadd.f32 %v787_v2, %v628_v27 }
 0x3bc   : > { %v829_v58 = vpack.c.bf16 %v800_v57, %v798_v56 }
 0x3be   : > { %v849_v24 = vsel %vm453_vm4, %v829_v58, 0 }
 0x3c1   : > { %v802_v59 = vpop.f32.mrf.mxu2 }
 0x3c2   : > { %v789_v10 = vpop.f32.mrf.mxu1  ;;  %v803_v16 = vadd.f32 %v802_v59, %v658_v51  ;;  %v1086_v51 = vmov 0.0  }
 0x3c3   : > { %v790_v29 = vadd.f32 %v789_v10, %v633_v28 }
 0x3c5   : > { %v827_v33 = vpack.c.bf16 %v790_v29, %v788_v31 }
 0x3c7   : > { %v843_v37 = vsel %vm453_vm4, %v827_v33, 0 }
 0x3c9   : > { %v804_v60 = vpop.f32.mrf.mxu2 }
 0x3ca   : > { %v805_v14 = vadd.f32 %v804_v60, %v663_v13  ;;  %v792_v17 = vpop.f32.mrf.mxu1 }
 0x3cb   : > { %v793_v25 = vadd.f32 %v792_v17, %v638_v20 }
 0x3cc   : > { %v830_v18 = vpack.c.bf16 %v805_v14, %v803_v16 }
 0x3ce   : > { %v852_v19 = vsel %vm453_vm4, %v830_v18, 0 }
 0x3d1   : > { %v807_v62 = vpop.f32.mrf.mxu2 }
 0x3d2   : > { %v808_v11 = vadd.f32 %v807_v62, %v668_v6  ;;  %v794_v21 = vpop.f32.mrf.mxu1 }
 0x3d3   : > { %v795_v23 = vadd.f32 %v794_v21, %v643_v22 }
 0x3d5   : > { %v828_v26 = vpack.c.bf16 %v795_v23, %v793_v25 }
 0x3d7   : > { %v846_v30 = vsel %vm453_vm4, %v828_v26, 0 }
 0x3d9   : > { %v809_v63 = vpop.f32.mrf.mxu2 }
 0x3da   : > { %v810_v8 = vadd.f32 %v809_v63, %v673_v50 }
 0x3dc   : > { %v831_v12 = vpack.c.bf16 %v810_v8, %v808_v11 }
 0x3de   : > { %v855_v15 = vsel %vm453_vm4, %v831_v12, 0 }
 0x3e1   : > { %v812_v0 = vpop.f32.mrf.mxu2 }
 0x3e2   : > { %v813_v4 = vadd.f32 %v812_v0, %v678_v48  ;;  %v820_v48 = vand.u32 127, %v817_v41 }
 0x3e4   : > { %vm821_vm14 = vcmp.eq.s32.totalorder %v818_v47, %v820_v48 }
 0x3e5   : > { %v1016_v52 = vsel %vm821_vm14, 1.0, %v1086_v51 }
 0x3e6   : > { %v824_v53 = vpack.c.bf16 %v1016_v52, %v1016_v52 }
 0x3e9   : > { %v814_v3 = vpop.f32.mrf.mxu2 }
 0x3ea   : > { %v815_v5 = vadd.f32 %v814_v3, %v683_v49  ;;  %v825_v49 = vpack.c.bf16 %v780_v43, %v778_v46 }
 0x3ec   : > { %v832_v7 = vpack.c.bf16 %v815_v5, %v813_v4  ;;  %v837_v50 = vsel %vm453_vm4, %v825_v49, 0 }
 0x3ee   : > { %v858_v9 = vsel %vm453_vm4, %v832_v7, 0 }
 0x3ef   : > { %860 = vmatpush.bf16.xpose.msra.mxu3 %v858_v9 }
 0x3f7   : > { %861 = vmatpush.bf16.xpose.msra.mxu3 %v855_v15 }
 0x3ff   : > { %862 = vmatpush.bf16.xpose.msra.mxu3 %v852_v19 }
 0x407   : > { %863 = vmatpush.bf16.xpose.msra.mxu3 %v849_v24 }
 0x40f   : > { %864 = vmatpush.bf16.xpose.msra.mxu3 %v846_v30 }
 0x417   : > { %865 = vmatpush.bf16.xpose.msra.mxu3 %v843_v37 }
 0x41f   : > { %866 = vmatpush.bf16.xpose.msra.mxu3 %v840_v44 }
 0x427   : > { %867 = vmatpush.bf16.xpose.msra.mxu3 %v837_v50 }
 0x42e   : > { %1017 = vmatmul.msk.bf16.vlgmr.msra.gmra.mxu3 %vm453_vm4, %v824_v53 }
 0x4b1   : > { %v869_v54 = vpop.f32.mrf.mxu3 }
 0x4b2   : > { %v873_v55 = vpack.c.bf16 %v869_v54, %v869_v54 }
 0x4b4   : > { %874 = vst [vmem:[%s317_s20] sm:$0xf] %v873_v55 }
 0x4b9   : > { %v871_v56 = vpop.f32.mrf.mxu3 }
 0x4ba PF: > { %s18_s27 = sadd.s32 1, %s1074_s27  }
 0x4bb   : > { %p15_p4 = scmp.ge.s32.totalorder %s18_s27, 4  }
 0x4bd   :  { %17 = sbr.rel (!%p15_p4) target bundleno = 1 (0x1), region = 85 }

// kernel: hifigan_forward.5
= control target key start
LH: loop header
LB: loop body
LE: loop exit
PB: predicated region body
PF: predicated region fallthrough
CT: control target
= control target key end

     0   :  { %s3858_s6 = smov 1   ;;  %s3859_s10 = smov 2   ;;  %s5257_s0 = inlined_call_operand.smem [shape: u32[39], index: -1, kind: input, shape index: {}] }
   0x1   :  { %s3932_s5 = sld [smem:[%s5257_s0]]   ;;  %s3860_s14 = smov 3  }
   0x2   :  { %s3937_s9 = sld [smem:[%s5257_s0 + %s3858_s6]]   ;;  %s3861_s18 = smov 4  }
   0x3   :  { %s3942_s13 = sld [smem:[%s5257_s0 + %s3859_s10]]   ;;  %s3862_s22 = smov 5  }
   0x4   :  { %s3947_s17 = sld [smem:[%s5257_s0 + %s3860_s14]]   ;;  %s3863_s26 = smov 6  }
   0x5   :  { %s3952_s21 = sld [smem:[%s5257_s0 + %s3861_s18]]   ;;  %s3864_s30 = smov 7  }
   0x6   :  { %s3957_s25 = sld [smem:[%s5257_s0 + %s3862_s22]]   ;;  %s3865_s4 = smov 8  }
   0x7   :  { %5311 = sst [smem:[#allocation6_spill]] %s3932_s5  ;;  %s3866_s10 = smov 9  }
   0x8   :  { %5312 = sst [smem:[#allocation7_spill]] %s3937_s9  ;;  %s3867_s15 = smov 10  }
   0x9   :  { %5313 = sst [smem:[#allocation8_spill]] %s3942_s13  ;;  %s3868_s20 = smov 11  }
   0xa   :  { %5314 = sst [smem:[#allocation9_spill]] %s3947_s17  ;;  %s3870_s1 = smov 13  }
   0xb   :  { %5315 = sst [smem:[#allocation10_spill]] %s3952_s21  ;;  %s3871_s7 = smov 14  }
   0xc   :  { %5316 = sst [smem:[#allocation11_spill]] %s3957_s25  ;;  %s3873_s22 = smov 16  }
   0xd   :  { %s3962_s29 = sld [smem:[%s5257_s0 + %s3863_s26]]   ;;  %s3869_s26 = smov 12  }
   0xe   :  { %s3967_s3 = sld [smem:[%s5257_s0 + %s3864_s30]]   ;;  %s3874_s28 = smov 17  }
   0xf   :  { %s3972_s8 = sld [smem:[%s5257_s0 + %s3865_s4]]  }
  0x10   :  { %s3977_s14 = sld [smem:[%s5257_s0 + %s3866_s10]]  }
  0x11   :  { %s3982_s19 = sld [smem:[%s5257_s0 + %s3867_s15]]   ;;  %s3872_s15 = smov 15  }
  0x12   :  { %s3987_s24 = sld [smem:[%s5257_s0 + %s3868_s20]]  }
  0x13   :  { %5317 = sst [smem:[#allocation12_spill]] %s3962_s29 }
  0x14   :  { %5318 = sst [smem:[#allocation13_spill]] %s3967_s3 }
  0x15   :  { %5319 = sst [smem:[#allocation14_spill]] %s3972_s8 }
  0x16   :  { %5320 = sst [smem:[#allocation15_spill]] %s3977_s14 }
  0x17   :  { %5321 = sst [smem:[#allocation16_spill]] %s3982_s19 }
  0x18   :  { %5322 = sst [smem:[#allocation17_spill]] %s3987_s24 }
  0x19   :  { %s3992_s30 = sld [smem:[%s5257_s0 + %s3869_s26]]  }
  0x1a   :  { %s3997_s6 = sld [smem:[%s5257_s0 + %s3870_s1]]  }
  0x1b   :  { %s4002_s12 = sld [smem:[%s5257_s0 + %s3871_s7]]   ;;  %s3875_s7 = smov 18  }
  0x1c   :  { %s4007_s20 = sld [smem:[%s5257_s0 + %s3872_s15]]   ;;  %s3876_s15 = smov 19  }
  0x1d   :  { %s4012_s27 = sld [smem:[%s5257_s0 + %s3873_s22]]   ;;  %s3877_s22 = smov 20  }
  0x1e   :  { %s4017_s4 = sld [smem:[%s5257_s0 + %s3874_s28]]   ;;  %s3878_s28 = smov 21  }
  0x1f   :  { %5323 = sst [smem:[#allocation18_spill]] %s3992_s30 }
  0x20   :  { %5324 = sst [smem:[#allocation19_spill]] %s3997_s6 }
  0x21   :  { %5325 = sst [smem:[#allocation20_spill]] %s4002_s12 }
  0x22   :  { %5326 = sst [smem:[#allocation21_spill]] %s4007_s20 }
  0x23   :  { %5327 = sst [smem:[#allocation22_spill]] %s4012_s27 }
  0x24   :  { %5328 = sst [smem:[#allocation23_spill]] %s4017_s4 }
  0x25   :  { %s4022_s30 = sld [smem:[%s5257_s0 + %s3875_s7]]   ;;  %s3879_s7 = smov 22  }
  0x26   :  { %s4027_s24 = sld [smem:[%s5257_s0 + %s3876_s15]]   ;;  %s3880_s15 = smov 23  }
  0x27   :  { %s4032_s20 = sld [smem:[%s5257_s0 + %s3877_s22]]   ;;  %s3881_s22 = smov 24  }
  0x28   :  { %s4037_s4 = sld [smem:[%s5257_s0 + %s3878_s28]]   ;;  %s3882_s28 = smov 25  }
  0x2b   :  { %5329 = sst [smem:[#allocation24_spill]] %s4022_s30 }
  0x2c   :  { %5330 = sst [smem:[#allocation25_spill]] %s4027_s24 }
  0x2d   :  { %5331 = sst [smem:[#allocation26_spill]] %s4032_s20 }
  0x2e   :  { %5332 = sst [smem:[#allocation27_spill]] %s4037_s4 }
  0x2f   :  { %s4042_s30 = sld [smem:[%s5257_s0 + %s3879_s7]]   ;;  %s3883_s7 = smov 26  }
  0x30   :  { %s4047_s24 = sld [smem:[%s5257_s0 + %s3880_s15]]   ;;  %s3884_s15 = smov 27  }
  0x31   :  { %s4052_s20 = sld [smem:[%s5257_s0 + %s3881_s22]]   ;;  %s3885_s22 = smov 28  }
  0x32   :  { %s4057_s4 = sld [smem:[%s5257_s0 + %s3882_s28]]   ;;  %s3886_s28 = smov 29  }
  0x35   :  { %5333 = sst [smem:[#allocation28_spill]] %s4042_s30 }
  0x36   :  { %5334 = sst [smem:[#allocation29_spill]] %s4047_s24 }
  0x37   :  { %5335 = sst [smem:[#allocation30_spill]] %s4052_s20 }
  0x38   :  { %5336 = sst [smem:[#allocation31_spill]] %s4057_s4 }
  0x39   :  { %s4062_s30 = sld [smem:[%s5257_s0 + %s3883_s7]]   ;;  %s3887_s7 = smov 30  }
  0x3a   :  { %s4067_s24 = sld [smem:[%s5257_s0 + %s3884_s15]]   ;;  %s3888_s15 = smov 31  }
  0x3b   :  { %s4072_s20 = sld [smem:[%s5257_s0 + %s3885_s22]]   ;;  %s3889_s22 = smov 32  }
  0x3c   :  { %s4077_s4 = sld [smem:[%s5257_s0 + %s3886_s28]]   ;;  %s3890_s28 = smov 33  }
  0x3f   :  { %5337 = sst [smem:[#allocation32_spill]] %s4062_s30 }
  0x40   :  { %5338 = sst [smem:[#allocation33_spill]] %s4067_s24 }
  0x41   :  { %5339 = sst [smem:[#allocation34_spill]] %s4072_s20 }
  0x42   :  { %5340 = sst [smem:[#allocation35_spill]] %s4077_s4 }
  0x43   :  { %s4082_s30 = sld [smem:[%s5257_s0 + %s3887_s7]]   ;;  %s3891_s7 = smov 34  }
  0x44   :  { %s4087_s24 = sld [smem:[%s5257_s0 + %s3888_s15]]   ;;  %s3892_s15 = smov 35  }
  0x45   :  { %s4092_s20 = sld [smem:[%s5257_s0 + %s3889_s22]]   ;;  %s3893_s22 = smov 36  }
  0x46   :  { %s4097_s4 = sld [smem:[%s5257_s0 + %s3890_s28]]   ;;  %s3894_s28 = smov 37  }
  0x49   :  { %5341 = sst [smem:[#allocation36_spill]] %s4082_s30 }
  0x4a   :  { %5342 = sst [smem:[#allocation37_spill]] %s4087_s24 }
  0x4b   :  { %5343 = sst [smem:[#allocation38_spill]] %s4092_s20 }
  0x4c   :  { %5344 = sst [smem:[#allocation39_spill]] %s4097_s4 }
  0x4d   :  { %s4102_s30 = sld [smem:[%s5257_s0 + %s3891_s7]]   ;;  %s3895_s7 = smov 38  }
  0x4e   :  { %s4107_s24 = sld [smem:[%s5257_s0 + %s3892_s15]]  }
  0x4f   :  { %s4112_s20 = sld [smem:[%s5257_s0 + %s3893_s22]]  }
  0x50   :  { %s4117_s4 = sld [smem:[%s5257_s0 + %s3894_s28]]  }
  0x53   :  { %5345 = sst [smem:[#allocation40_spill]] %s4102_s30 }
  0x54   :  { %s4122_s30 = sld [smem:[%s5257_s0 + %s3895_s7]]  }
  0x55   :  { %82 = vsyncpa [#allocation4], 0 }
  0x56   :  { %84 = vsyncpa [#allocation4 + $0x1], 0  ;;  %s4124_s15 = smov 0   ;;  %s4126_s16 = smov 0  }
  0x57   :  { %s4128_s18 = smov 0   ;;  %s4130_s22 = smov 0  }
  0x58 LB: > { %5346 = sst [smem:[#allocation41_spill]] %s3852_s18  ;;  %s4145_s0 = sadd.s32 4294967295, %s3856_s22   ;;  %s3856_s22 = sphi %s4130_s22, %s5471_s22   ;;  %s3852_s18 = sphi %s4128_s18, %s5473_s18   ;;  %s3848_s16 = sphi %s4126_s16, %s5475_s16   ;;  %s3844_s15 = sphi %s4124_s15, %s5474_s15  }
  0x59   : > { %s3614_s23 = sadd.s32 4294967294, %s3856_s22   ;;  %s4149_s26 = sadd.s32 1, %s3856_s22  }
  0x5a   : > { %5347 = sst [smem:[#allocation42_spill]] %s4149_s26  ;;  %s900_s28 = sadd.s32 1, %s3852_s18 }
  0x5b   : > { %s897_s1 = ssub.s32 %s3856_s22, %s4149_s26  ;;  %p910_p0 = scmp.ne.s32.totalorder %s3852_s18, %s3848_s16 }
  0x5c   : > { %p898_p1 = scmp.eq.s32.totalorder %s897_s1, 0  ;;  %p911_p2 = scmp.eq.s32.totalorder %s4145_s0, 1 }
  0x5d   : > { %p916_p3 = scmp.ne.s32.totalorder %s3848_s16, %s3844_s15  ;;  %p917_p4 = scmp.eq.s32.totalorder %s3614_s23, 1 }
  0x5e   : > { %s4160_s2 = scalar_select %p898_p1, %s3852_s18, %s900_s28  }
  0x5f   : > { %p4162_p5 = por %p911_p2, %p910_p0  ;;  %p4166_p6 = por %p917_p4, %p916_p3 }
  0x60   : > { %5348 = sst [smem:[#allocation43_spill]] %s4160_s2  ;;  %p3617_p7 = scmp.ge.s32.totalorder %s3856_s22, 1 }
  0x61   : > { %p1054_p8 = scmp.lt.s32.totalorder %s3856_s22, 3 }
  0x63   : > { %p1055_p9 = pnand %p3617_p7, %p1054_p8 }
  0x64   : > { %s5351_s5 = sld [smem:[#allocation6_spill]] (!%p1055_p9)  ;;  %p1147_p10 = scmp.lt.s32.totalorder (!%p1055_p9), %s4145_s0, 1 }
  0x65   : > { %1058 = sbr.rel (%p1055_p9) target bundleno = 9147 (0x23bb), region = 172  ;;  %s5270_s1 = smov (!%p1055_p9), 25  }
  0x66   : > { %s5354_s13 = sld [smem:[#allocation8_spill]] (!%p1055_p9)  ;;  %s5415_s2 = smov (!%p1055_p9), 116  }
  0x67   : > { %s5355_s9 = sld [smem:[#allocation7_spill]] (!%p1055_p9)  ;;  %s3923_s18 = smov (!%p1055_p9), 93  }
  0x68   : > { %s5356_s21 = sld [smem:[#allocation10_spill]] (!%p1055_p9)  ;;  %s5447_s26 = smov (!%p1055_p9), 103  }
  0x69   : > { %s5357_s17 = sld [smem:[#allocation9_spill]] (!%p1055_p9) }
  0x6a   : > { %s1148_s11 = scalar_select %p1147_p10, %s4145_s0, 1  ;;  %vm1221_vm0 = vcmask 64512   ;;  %v1173_v14 = vlaneseq  ;;  %v3896_v19 = vmov 0.0   ;;  %vm1153_vm2 = vcmask 199680  }
  0x6b   : > { %vm1155_vm3 = vcmask 404680   ;;  %v3897_v22 = vmov 0   ;;  %vm1273_vm5 = vcmask 1043656   ;;  %vm1274_vm6 = vcmask 203780   ;;  %s5358_s29 = sld [smem:[#allocation12_spill]] }
  0x6c   : > { %s3675_s23 = sshll.u32 %s1148_s11, 6  ;;  %v1174_v16 = vshrl.u32 %v1173_v14, 7  ;;  %v1176_v17 = vand.u32 127, %v1173_v14  ;;  %1154 = vst.msk [vmem:[#allocation2] sm:$0xf] %vm1153_vm2, %v3897_v22  ;;  %3789 = vset.pattern.permute.xlu0 %v3897_v22  ;;  %3790 = vset.pattern.permute.xlu2 %v3897_v22  ;;  %vm1270_vm7 = vcmask 203776   ;;  %vm4190_vm8 = vmor %vm1274_vm6, %vm1273_vm5 }
  0x6d   : > { %s1151_s28 = scalar_lea.vmem %s5351_s5, %s3675_s23  ;;  %1156 = vst.msk [vmem:[#allocation2 + $0x4] sm:$0xf] %vm1155_vm3, %v3897_v22  ;;  %3791 = vset.pattern.permute.xlu1 %v3897_v22  ;;  %s5260_s11 = smov 127   ;;  %vm1294_vm9 = vcmask 1031168   ;;  %vm5304_vm10 = vcmask 1039360   ;;  %vm1296_vm11 = vcmask 1043456  }
  0x6e   : > { %v3683_v0 = vld [vmem:[%s1151_s28 + $0x38] sm:$0xff]  ;;  %v3682_v2 = vld [vmem:[%s1151_s28 + $0x30] sm:$0xff]  ;;  %v3681_v4 = vld [vmem:[%s1151_s28 + $0x28] sm:$0xff]  ;;  %vm1177_vm1 = vcmp.eq.s32.totalorder %v1174_v16, %v1176_v17  ;;  %s5262_s23 = smov 126   ;;  %vm5292_vm12 = vcmask 850944   ;;  %vm1323_vm13 = vcmask 195584  }
  0x6f   : > { %v1247_v1 = vsel %vm1221_vm0, %v3683_v0, 0  ;;  %v1244_v3 = vsel %vm1221_vm0, %v3682_v2, 0  ;;  %v1241_v5 = vsel %vm1221_vm0, %v3681_v4, 0  ;;  %v3680_v6 = vld [vmem:[%s1151_s28 + $0x20] sm:$0xff]  ;;  %v3679_v8 = vld [vmem:[%s1151_s28 + $0x18] sm:$0xff]  ;;  %v3678_v10 = vld [vmem:[%s1151_s28 + $0x10] sm:$0xff] }
  0x70   : > { %1249 = vmatpush.bf16.xpose.msra.mxu0 %v1247_v1  ;;  %v1238_v7 = vsel %vm1221_vm0, %v3680_v6, 0  ;;  %v1235_v9 = vsel %vm1221_vm0, %v3679_v8, 0  ;;  %v1232_v11 = vsel %vm1221_vm0, %v3678_v10, 0  ;;  %v3677_v12 = vld [vmem:[%s1151_s28 + $0x8] sm:$0xff]  ;;  %v3676_v15 = vld [vmem:[%s1151_s28] sm:$0xff]  ;;  %v3620_v20 = vsel %vm1177_vm1, 1.0, %v3896_v19 }
  0x71   : > { %v1229_v13 = vsel %vm1221_vm0, %v3677_v12, 0  ;;  %v1226_v18 = vsel %vm1221_vm0, %v3676_v15, 0  ;;  %v1180_v21 = vpack.c.bf16 %v3620_v20, %v3620_v20  ;;  %s5258_s28 = smov 104   ;;  %v1303_v45 = vld [vmem:[%s5354_s13] sm:$0xff]  ;;  %vm1438_vm1 = vcmask 1022976   ;;  %s5359_s25 = sld [smem:[#allocation11_spill]] }
  0x72   : > { %v1278_v53 = vld [vmem:[%s5355_s9] sm:$0xf]  ;;  %vm5303_vm2 = vcmask 867328   ;;  %s5362_s8 = sld [smem:[#allocation14_spill]]  ;;  %s5276_s5 = smov 123   ;;  %vm5284_vm5 = vcmask 965632  }
  0x73   : > { %s5364_s3 = sld [smem:[#allocation13_spill]]  ;;  %vm1586_vm6 = vcmask 1006592   ;;  %s5370_s9 = smov 125  }
  0x74   : > { %s5365_s19 = sld [smem:[#allocation16_spill]]  ;;  %s5371_s13 = smov 106  }
  0x75   : > { %s5366_s14 = sld [smem:[#allocation15_spill]] }
  0x76   : > { %s5372_s12 = sld [smem:[#allocation20_spill]] }
  0x77   : > { %s5373_s6 = sld [smem:[#allocation19_spill]] }
  0x78   : > { %1250 = vmatpush.bf16.xpose.msra.mxu0 %v1244_v3  ;;  %s5374_s27 = sld [smem:[#allocation22_spill]] }
  0x80   : > { %1251 = vmatpush.bf16.xpose.msra.mxu0 %v1241_v5 }
  0x88   : > { %1252 = vmatpush.bf16.xpose.msra.mxu0 %v1238_v7 }
  0x90   : > { %1253 = vmatpush.bf16.xpose.msra.mxu0 %v1235_v9 }
  0x98   : > { %1254 = vmatpush.bf16.xpose.msra.mxu0 %v1232_v11 }
  0xa0   : > { %1255 = vmatpush.bf16.xpose.msra.mxu0 %v1229_v13  ;;  %v1377_v13 = vld [vmem:[%s5356_s21] sm:$0xff]  ;;  %s5300_s21 = smov 121  }
  0xa8   : > { %1256 = vmatpush.bf16.xpose.msra.mxu0 %v1226_v18 }
  0xaf   : > { %3653 = vmatmul.msk.bf16.vlgmr.msra.gmra.mxu0 %vm1221_vm0, %v1180_v21  ;;  %v1355_v21 = vld [vmem:[%s5357_s17] sm:$0xf]  ;;  %vm1444_vm0 = vcmask 998400   ;;  %s5383_s17 = smov 118  }
 0x12c   : > { %v4184_v23 = vpop.f32.mrf.mxu0 }
 0x12d   : > { %vm1262_vm4 = vcmp.ge.f32.partialorder %v4184_v23, 0.0  ;;  %v1263_v24 = vmul.f32 0.1, %v4184_v23 }
 0x12f   : > { %v1264_v25 = vsel %vm1262_vm4, %v4184_v23, %v1263_v24 }
 0x130   : > { %v1265_v26 = vpack.c.bf16 %v1264_v25, %v1264_v25 }
 0x132   : > { %1267 = vrot.lane.b32.xlu0 %v1265_v26, %s5270_s1 }
 0x134   : > { %v1260_v27 = vpop.f32.mrf.mxu0 }
 0x1a4   : > { %v1268_v28 = vpop.permute.xlu0 %1267 }
 0x1a5   : > { %v1269_v30 = vrot.slane %v1268_v28, 4 }
 0x1a7   : > { %v4195_v31 = vsel %vm1270_vm7, %v1269_v30, %v1268_v28 }
 0x1a8   : > { %1276 = vst.msk [vmem:[#allocation2] sm:$0xff] %vm4190_vm8, %v4195_v31 }
 0x1af   : > { %v1277_v32 = vld [vmem:[#allocation2] sm:$0xff] }
 0x1b0   : > { %v1281_v33 = vunpack.c.h.b16 %v1277_v32  ;;  %v1280_v34 = vunpack.c.l.b16 %v1277_v32 }
 0x1b2   : > { %v1283_v35 = vpack.c.b16 %v1281_v33, %v1281_v33  ;;  %v1282_v36 = vpack.c.b16 %v1280_v34, %v1280_v34 }
 0x1b4   : > { %1286 = vrot.lane.b32.xlu2 %v1283_v35, %s5260_s11  ;;  %1292 = vrot.lane.b32.xlu1 %v1283_v35, %s5262_s23 }
 0x1b5   : > { %1290 = vrot.lane.b32.xlu0 %v1282_v36, %s5262_s23 }
 0x1bc   : > { %1284 = vrot.lane.b32.xlu1 %v1282_v36, %s5260_s11 }
 0x20e   : > { %v1287_v40 = vpop.permute.xlu2 %1286 }
 0x20f   : > { %v1302_v43 = vsel %vm1296_vm11, %v1283_v35, %v1287_v40 }
 0x226   : > { %v1293_v37 = vpop.permute.xlu1 %1292 }
 0x227   : > { %v1291_v38 = vpop.permute.xlu0 %1290  ;;  %1317 = vrot.lane.b32.xlu0 %v1293_v37, %s5258_s28 }
 0x228   : > { %v1295_v39 = vsel %vm1294_vm9, %v1291_v38, %v1293_v37 }
 0x229   : > { %1315 = vrot.lane.b32.xlu2 %v1295_v39, %s5258_s28 }
 0x22e   : > { %v1285_v41 = vpop.permute.xlu1 %1284 }
 0x22f   : > { %v1289_v42 = vsel %vm5304_vm10, %v1285_v41, %v1287_v40  ;;  %1306 = vperm.xlu0 %3789, %v1303_v45  }
 0x230   : > { %v1299_v44 = vsel %vm1296_vm11, %v1282_v36, %v1289_v42  ;;  %v1452_v42 = vld [vmem:[%s5358_s29] sm:$0xff]  ;;  %s3919_s29 = smov 107  }
 0x231   : > { %1313 = vrot.lane.b32.xlu2 %v1302_v43, %s5258_s28  ;;  %1311 = vrot.lane.b32.xlu1 %v1299_v44, %s5258_s28 }
 0x283   : > { %v1316_v46 = vpop.permute.xlu2 %1315 }
 0x28b   : > { %v1314_v50 = vpop.permute.xlu2 %1313 }
 0x299   : > { %v1318_v47 = vpop.permute.xlu0 %1317 }
 0x29a   : > { %v1321_v48 = vsel %vm5292_vm12, %v1316_v46, %v1318_v47 }
 0x29b   : > { %v1328_v49 = vsel %vm1296_vm11, %v1321_v48, 0 }
 0x29c   : > { %1336 = vmatpush.bf16.msra.mxu1 %v1328_v49 }
 0x2a1   : > { %v1307_v54 = vpop.permute.xlu0 %1306 }
 0x2a3   : > { %v1312_v51 = vpop.permute.xlu1 %1311 }
 0x2a4   : > { %v1320_v52 = vsel %vm5292_vm12, %v1312_v51, %v1314_v50 }
 0x2a5   : > { %1337 = vmatpush.bf16.msra.mxu1 %v1320_v52 }
 0x2a8   : > { %3654 = vmatmul.msk.bf16.vlgmr.msra.gmra.mxu1 %vm1323_vm13, %v1278_v53 }
 0x325   : > { %v1339_v55 = vpop.f32.mrf.mxu1 }
 0x326   : > { %v1340_v56 = vadd.f32 %v1339_v55, %v1307_v54 }
 0x328   : > { %vm1343_vm14 = vcmp.ge.f32.partialorder %v1340_v56, 0.0  ;;  %v1344_v57 = vmul.f32 0.1, %v1340_v56 }
 0x32a   : > { %v1345_v58 = vsel %vm1343_vm14, %v1340_v56, %v1344_v57  ;;  %v1428_v57 = vld [vmem:[%s5359_s25] sm:$0xf]  ;;  %vm5285_vm14 = vcmask 883712   ;;  %s5414_s25 = smov 110  }
 0x32b   : > { %v1346_v59 = vpack.c.bf16 %v1345_v58, %v1345_v58 }
 0x32d   : > { %v1341_v60 = vpop.f32.mrf.mxu1  ;;  %1348 = vrot.lane.b32.xlu1 %v1346_v59, %s5270_s1 }
 0x39f   : > { %v1349_v61 = vpop.permute.xlu1 %1348 }
 0x3a0   : > { %v1350_v62 = vrot.slane %v1349_v61, 4 }
 0x3a2   : > { %v1351_v63 = vsel %vm1270_vm7, %v1350_v62, %v1349_v61 }
 0x3a3   : > { %1353 = vst.msk [vmem:[#allocation2] sm:$0xff] %vm4190_vm8, %v1351_v63 }
 0x3aa   : > { %v1354_v0 = vld [vmem:[#allocation2] sm:$0xff] }
 0x3ab   : > { %v1358_v1 = vunpack.c.h.b16 %v1354_v0  ;;  %v1357_v2 = vunpack.c.l.b16 %v1354_v0 }
 0x3ad   : > { %v1360_v3 = vpack.c.b16 %v1358_v1, %v1358_v1  ;;  %v1359_v4 = vpack.c.b16 %v1357_v2, %v1357_v2 }
 0x3af   : > { %1363 = vrot.lane.b32.xlu0 %v1360_v3, %s5260_s11  ;;  %1368 = vrot.lane.b32.xlu1 %v1360_v3, %s5262_s23 }
 0x3b0   : > { %1366 = vrot.lane.b32.xlu2 %v1359_v4, %s5262_s23  ;;  %s5264_s23 = smov 106  }
 0x3b8   : > { %1361 = vrot.lane.b32.xlu2 %v1359_v4, %s5260_s11  ;;  %s5266_s11 = smov 125  }
 0x40a   : > { %v1367_v5 = vpop.permute.xlu2 %1366 }
 0x412   : > { %v1362_v6 = vpop.permute.xlu2 %1361 }
 0x421   : > { %v1364_v7 = vpop.permute.xlu0 %1363  ;;  %v1369_v8 = vpop.permute.xlu1 %1368 }
 0x422   : > { %v1365_v9 = vsel %vm5304_vm10, %v1362_v6, %v1364_v7  ;;  %1391 = vrot.lane.b32.xlu2 %v1369_v8, %s5258_s28  ;;  %v1370_v10 = vsel %vm1294_vm9, %v1367_v5, %v1369_v8  ;;  %v1376_v12 = vsel %vm1296_vm11, %v1360_v3, %v1364_v7 }
 0x423   : > { %1389 = vrot.lane.b32.xlu1 %v1370_v10, %s5258_s28  ;;  %v1373_v11 = vsel %vm1296_vm11, %v1359_v4, %v1365_v9 }
 0x424   : > { %1385 = vrot.lane.b32.xlu0 %v1373_v11, %s5258_s28 }
 0x42a   : > { %1380 = vperm.xlu2 %3790, %v1377_v13  }
 0x42b   : > { %1387 = vrot.lane.b32.xlu1 %v1376_v12, %s5258_s28  ;;  %s5268_s28 = smov 122  }
 0x47c   : > { %v1392_v14 = vpop.permute.xlu2 %1391 }
 0x484   : > { %v1381_v22 = vpop.permute.xlu2 %1380 }
 0x495   : > { %v1390_v15 = vpop.permute.xlu1 %1389 }
 0x496   : > { %v1394_v16 = vsel %vm5292_vm12, %v1390_v15, %v1392_v14  ;;  %v1386_v18 = vpop.permute.xlu0 %1385 }
 0x497   : > { %v1400_v17 = vsel %vm1296_vm11, %v1394_v16, 0 }
 0x498   : > { %1408 = vmatpush.bf16.msra.mxu2 %v1400_v17  ;;  %v1525_v17 = vld [vmem:[%s5362_s8] sm:$0xff]  ;;  %s5369_s8 = smov 123  }
 0x49d   : > { %v1388_v19 = vpop.permute.xlu1 %1387 }
 0x49e   : > { %v1393_v20 = vsel %vm5292_vm12, %v1386_v18, %v1388_v19 }
 0x49f   : > { %1409 = vmatpush.bf16.msra.mxu2 %v1393_v20 }
 0x4a2   : > { %3655 = vmatmul.msk.bf16.vlgmr.msra.gmra.mxu2 %vm1323_vm13, %v1355_v21 }
 0x525   : > { %v1411_v24 = vpop.f32.mrf.mxu2 }
 0x526   : > { %v1412_v25 = vadd.f32 %v1411_v24, %v1381_v22 }
 0x528   : > { %v4241_v26 = vadd.f32 %v1412_v25, %v4184_v23 }
 0x52a   : > { %vm1416_vm15 = vcmp.ge.f32.partialorder %v4241_v26, 0.0  ;;  %v1417_v27 = vmul.f32 0.1, %v4241_v26 }
 0x52c   : > { %v1418_v28 = vsel %vm1416_vm15, %v4241_v26, %v1417_v27  ;;  %v1503_v27 = vld [vmem:[%s5364_s3] sm:$0xf]  ;;  %s5272_s3 = smov 118  }
 0x52d   : > { %v1413_v30 = vpop.f32.mrf.mxu2  ;;  %v1419_v32 = vpack.c.bf16 %v1418_v28, %v1418_v28 }
 0x52f   : > { %1421 = vrot.lane.b32.xlu0 %v1419_v32, %s5270_s1 }
 0x5a1   : > { %v1422_v33 = vpop.permute.xlu0 %1421 }
 0x5a2   : > { %v1423_v34 = vrot.slane %v1422_v33, 4 }
 0x5a4   : > { %v1424_v35 = vsel %vm1270_vm7, %v1423_v34, %v1422_v33 }
 0x5a5   : > { %1426 = vst.msk [vmem:[#allocation2] sm:$0xff] %vm4190_vm8, %v1424_v35 }
 0x5ac   : > { %v1427_v36 = vld [vmem:[#allocation2] sm:$0xff] }
 0x5ad   : > { %v1431_v37 = vunpack.c.h.b16 %v1427_v36  ;;  %v1430_v38 = vunpack.c.l.b16 %v1427_v36 }
 0x5af   : > { %v1433_v39 = vpack.c.b16 %v1431_v37, %v1431_v37  ;;  %v1432_v40 = vpack.c.b16 %v1430_v38, %v1430_v38 }
 0x5b1   : > { %1442 = vrot.lane.b32.xlu2 %v1433_v39, %s5268_s28  ;;  %1434 = vrot.lane.b32.xlu0 %v1432_v40, %s5266_s11 }
 0x5b2   : > { %1440 = vrot.lane.b32.xlu1 %v1432_v40, %s5268_s28  ;;  %s5363_s28 = smov 104  }
 0x5ba   : > { %1436 = vrot.lane.b32.xlu1 %v1433_v39, %s5266_s11  ;;  %s5361_s11 = smov 127  }
 0x60b   : > { %v1443_v41 = vpop.permute.xlu2 %1442 }
 0x60c   : > { %1466 = vrot.lane.b32.xlu0 %v1443_v41, %s5264_s23 }
 0x614   : > { %1455 = vperm.xlu0 %3789, %v1452_v42  }
 0x623   : > { %v1435_v45 = vpop.permute.xlu0 %1434 }
 0x624   : > { %v1441_v43 = vpop.permute.xlu1 %1440 }
 0x625   : > { %v1445_v44 = vsel %vm1444_vm0, %v1441_v43, %v1443_v41 }
 0x626   : > { %1464 = vrot.lane.b32.xlu2 %v1445_v44, %s5264_s23 }
 0x62c   : > { %v1437_v46 = vpop.permute.xlu1 %1436 }
 0x62d   : > { %v1439_v47 = vsel %vm1438_vm1, %v1435_v45, %v1437_v46  ;;  %v1451_v48 = vsel %vm1296_vm11, %v1433_v39, %v1437_v46 }
 0x62e   : > { %1462 = vrot.lane.b32.xlu2 %v1451_v48, %s5264_s23  ;;  %v1448_v49 = vsel %vm1296_vm11, %v1432_v40, %v1439_v47  ;;  %v1600_v48 = vld [vmem:[%s5365_s19] sm:$0xff]  ;;  %s5384_s19 = smov 113  }
 0x62f   : > { %1460 = vrot.lane.b32.xlu1 %v1448_v49, %s5264_s23  ;;  %s5360_s23 = smov 126  }
 0x67e   : > { %v1467_v50 = vpop.permute.xlu0 %1466 }
 0x680   : > { %v1465_v51 = vpop.permute.xlu2 %1464 }
 0x681   : > { %v1470_v52 = vsel %vm5303_vm2, %v1465_v51, %v1467_v50 }
 0x682   : > { %v1476_v53 = vsel %vm1296_vm11, %v1470_v52, 0 }
 0x683   : > { %1484 = vmatpush.bf16.msra.mxu3 %v1476_v53 }
 0x686   : > { %v1456_v58 = vpop.permute.xlu0 %1455 }
 0x688   : > { %v1463_v54 = vpop.permute.xlu2 %1462 }
 0x6a1   : > { %v1461_v55 = vpop.permute.xlu1 %1460 }
 0x6a2   : > { %v1469_v56 = vsel %vm5303_vm2, %v1461_v55, %v1463_v54 }
 0x6a3   : > { %1485 = vmatpush.bf16.msra.mxu3 %v1469_v56 }
 0x6a6   : > { %3656 = vmatmul.msk.bf16.vlgmr.msra.gmra.mxu3 %vm1323_vm13, %v1428_v57 }
 0x729   : > { %v1487_v59 = vpop.f32.mrf.mxu3 }
 0x72a   : > { %v1488_v60 = vadd.f32 %v1487_v59, %v1456_v58 }
 0x72c   : > { %vm1491_vm3 = vcmp.ge.f32.partialorder %v1488_v60, 0.0  ;;  %v1492_v61 = vmul.f32 0.1, %v1488_v60 }
 0x72e   : > { %v1493_v62 = vsel %vm1491_vm3, %v1488_v60, %v1492_v61  ;;  %v1576_v61 = vld [vmem:[%s5366_s14] sm:$0xf]  ;;  %vm1739_vm3 = vcmask 1014784   ;;  %s5293_s14 = smov 103  }
 0x72f   : > { %v1494_v63 = vpack.c.bf16 %v1493_v62, %v1493_v62 }
 0x731   : > { %v1489_v0 = vpop.f32.mrf.mxu3  ;;  %1496 = vrot.lane.b32.xlu1 %v1494_v63, %s5270_s1 }
 0x7a3   : > { %v1497_v1 = vpop.permute.xlu1 %1496 }
 0x7a4   : > { %v1498_v2 = vrot.slane %v1497_v1, 4 }
 0x7a6   : > { %v1499_v3 = vsel %vm1270_vm7, %v1498_v2, %v1497_v1 }
 0x7a7   : > { %1501 = vst.msk [vmem:[#allocation2] sm:$0xff] %vm4190_vm8, %v1499_v3 }
 0x7ae   : > { %v1502_v4 = vld [vmem:[#allocation2] sm:$0xff] }
 0x7af   : > { %v1506_v5 = vunpack.c.h.b16 %v1502_v4  ;;  %v1505_v6 = vunpack.c.l.b16 %v1502_v4 }
 0x7b1   : > { %v1508_v7 = vpack.c.b16 %v1506_v5, %v1506_v5  ;;  %v1507_v8 = vpack.c.b16 %v1505_v6, %v1505_v6 }
 0x7b3   : > { %1516 = vrot.lane.b32.xlu0 %v1508_v7, %s5360_s23  ;;  %1509 = vrot.lane.b32.xlu1 %v1507_v8, %s5361_s11 }
 0x7b4   : > { %1514 = vrot.lane.b32.xlu2 %v1507_v8, %s5360_s23 }
 0x7bc   : > { %1511 = vrot.lane.b32.xlu2 %v1508_v7, %s5361_s11 }
 0x80e   : > { %v1515_v9 = vpop.permute.xlu2 %1514 }
 0x816   : > { %v1512_v10 = vpop.permute.xlu2 %1511 }
 0x817   : > { %v1524_v16 = vsel %vm1296_vm11, %v1508_v7, %v1512_v10 }
 0x825   : > { %v1517_v11 = vpop.permute.xlu0 %1516  ;;  %v1510_v12 = vpop.permute.xlu1 %1509 }
 0x826   : > { %v1513_v13 = vsel %vm5304_vm10, %v1510_v12, %v1512_v10  ;;  %1539 = vrot.lane.b32.xlu1 %v1517_v11, %s5363_s28  ;;  %v1518_v14 = vsel %vm1294_vm9, %v1515_v9, %v1517_v11 }
 0x827   : > { %1537 = vrot.lane.b32.xlu0 %v1518_v14, %s5363_s28  ;;  %v1521_v15 = vsel %vm1296_vm11, %v1507_v8, %v1513_v13 }
 0x828   : > { %1533 = vrot.lane.b32.xlu2 %v1521_v15, %s5363_s28 }
 0x82e   : > { %1528 = vperm.xlu1 %3791, %v1525_v17  }
 0x82f   : > { %1535 = vrot.lane.b32.xlu0 %v1524_v16, %s5363_s28 }
 0x882   : > { %v1534_v22 = vpop.permute.xlu2 %1533 }
 0x898   : > { %v1540_v18 = vpop.permute.xlu1 %1539 }
 0x899   : > { %v1538_v19 = vpop.permute.xlu0 %1537 }
 0x89a   : > { %v1542_v20 = vsel %vm5292_vm12, %v1538_v19, %v1540_v18 }
 0x89b   : > { %v1548_v21 = vsel %vm1296_vm11, %v1542_v20, 0 }
 0x89c   : > { %1556 = vmatpush.bf16.msrb.mxu1 %v1548_v21 }
 0x8a0   : > { %v1529_v28 = vpop.permute.xlu1 %1528 }
 0x8a1   : > { %v1536_v24 = vpop.permute.xlu0 %1535 }
 0x8a2   : > { %v1541_v25 = vsel %vm5292_vm12, %v1534_v22, %v1536_v24 }
 0x8a3   : > { %1557 = vmatpush.bf16.msrb.mxu1 %v1541_v25 }
 0x8a6   : > { %3657 = vmatmul.msk.bf16.vlgmr.msrb.gmra.mxu1 %vm1323_vm13, %v1503_v27 }
 0x923   : > { %v1559_v30 = vpop.f32.mrf.mxu1 }
 0x924   : > { %v1560_v32 = vadd.f32 %v1559_v30, %v1529_v28 }
 0x926   : > { %v4291_v33 = vadd.f32 %v1560_v32, %v4241_v26 }
 0x928   : > { %vm1564_vm4 = vcmp.ge.f32.partialorder %v4291_v33, 0.0  ;;  %v1565_v34 = vmul.f32 0.1, %v4291_v33 }
 0x92a   : > { %v1566_v35 = vsel %vm1564_vm4, %v4291_v33, %v1565_v34  ;;  %vm5302_vm4 = vcmask 457728  }
 0x92b   : > { %v1561_v36 = vpop.f32.mrf.mxu1  ;;  %v1567_v37 = vpack.c.bf16 %v1566_v35, %v1566_v35 }
 0x92d   : > { %1569 = vrot.lane.b32.xlu2 %v1567_v37, %s5270_s1  ;;  %s5274_s1 = smov 108  }
 0x987   : > { %v1570_v38 = vpop.permute.xlu2 %1569 }
 0x988   : > { %v1571_v39 = vrot.slane %v1570_v38, 4 }
 0x98a   : > { %v1572_v40 = vsel %vm1270_vm7, %v1571_v39, %v1570_v38 }
 0x98b   : > { %1574 = vst.msk [vmem:[#allocation2] sm:$0xff] %vm4190_vm8, %v1572_v40 }
 0x992   : > { %v1575_v41 = vld [vmem:[#allocation2] sm:$0xff] }
 0x993   : > { %v1579_v26 = vunpack.c.h.b16 %v1575_v41  ;;  %v1578_v42 = vunpack.c.l.b16 %v1575_v41 }
 0x995   : > { %v1581_v43 = vpack.c.b16 %v1579_v26, %v1579_v26  ;;  %v1580_v44 = vpack.c.b16 %v1578_v42, %v1578_v42  ;;  %v1769_v26 = vld [vmem:[%s5372_s12] sm:$0xff]  ;;  %s5289_s12 = smov 113  }
 0x997   : > { %1590 = vrot.lane.b32.xlu1 %v1581_v43, %s5272_s3  ;;  %1582 = vrot.lane.b32.xlu2 %v1580_v44, %s5276_s5 }
 0x998   : > { %1588 = vrot.lane.b32.xlu0 %v1580_v44, %s5272_s3  ;;  %s5367_s3 = smov 25  }
 0x9a0   : > { %1584 = vrot.lane.b32.xlu0 %v1581_v43, %s5276_s5  ;;  %s5278_s5 = smov 124  }
 0x9f1   : > { %v1583_v49 = vpop.permute.xlu2 %1582 }
 0xa09   : > { %v1591_v45 = vpop.permute.xlu1 %1590 }
 0xa0a   : > { %v1589_v46 = vpop.permute.xlu0 %1588  ;;  %1614 = vrot.lane.b32.xlu2 %v1591_v45, %s5274_s1 }
 0xa0b   : > { %v1593_v47 = vsel %vm5284_vm5, %v1589_v46, %v1591_v45  ;;  %vm5291_vm5 = vcmask 949248  }
 0xa0c   : > { %1612 = vrot.lane.b32.xlu1 %v1593_v47, %s5274_s1 }
 0xa12   : > { %v1585_v50 = vpop.permute.xlu0 %1584  ;;  %1603 = vperm.xlu2 %3790, %v1600_v48  }
 0xa13   : > { %v1587_v51 = vsel %vm1586_vm6, %v1583_v49, %v1585_v50  ;;  %v1599_v52 = vsel %vm1296_vm11, %v1581_v43, %v1585_v50 }
 0xa14   : > { %1610 = vrot.lane.b32.xlu1 %v1599_v52, %s5274_s1  ;;  %v1596_v53 = vsel %vm1296_vm11, %v1580_v44, %v1587_v51 }
 0xa15   : > { %1608 = vrot.lane.b32.xlu0 %v1596_v53, %s5274_s1  ;;  %s5368_s1 = smov 122  }
 0xa64   : > { %v1615_v54 = vpop.permute.xlu2 %1614 }
 0xa6c   : > { %v1604_v62 = vpop.permute.xlu2 %1603 }
 0xa7e   : > { %v1613_v55 = vpop.permute.xlu1 %1612 }
 0xa7f   : > { %v1618_v56 = vsel %vm5285_vm14, %v1613_v55, %v1615_v54 }
 0xa80   : > { %v1624_v57 = vsel %vm1296_vm11, %v1618_v56, 0  ;;  %v1714_v56 = vld [vmem:[%s5373_s6] sm:$0xf]  ;;  %s5282_s6 = smov 116  }
 0xa81   : > { %1632 = vmatpush.bf16.msrb.mxu2 %v1624_v57 }
 0xa86   : > { %v1611_v58 = vpop.permute.xlu1 %1610 }
 0xa87   : > { %v1609_v59 = vpop.permute.xlu0 %1608 }
 0xa88   : > { %v1617_v60 = vsel %vm5285_vm14, %v1609_v59, %v1611_v58  ;;  %vm5298_vm14 = vcmask 924672  }
 0xa89   : > { %1633 = vmatpush.bf16.msrb.mxu2 %v1617_v60 }
 0xa8c   : > { %3658 = vmatmul.msk.bf16.vlgmr.msrb.gmra.mxu2 %vm1323_vm13, %v1576_v61 }
 0xb0f   : > { %v1635_v63 = vpop.f32.mrf.mxu2 }
 0xb10   : > { %v1636_v0 = vadd.f32 %v1635_v63, %v1604_v62 }
 0xb12   : > { %vm1639_vm15 = vcmp.ge.f32.partialorder %v1636_v0, 0.0  ;;  %v1640_v1 = vmul.f32 0.1, %v1636_v0 }
 0xb14   : > { %v1641_v2 = vsel %vm1639_vm15, %v1636_v0, %v1640_v1 }
 0xb15   : > { %v1642_v3 = vpack.c.bf16 %v1641_v2, %v1641_v2 }
 0xb17   : > { %v1637_v4 = vpop.f32.mrf.mxu2  ;;  %1644 = vrot.lane.b32.xlu0 %v1642_v3, %s5367_s3 }
 0xb89   : > { %v1645_v5 = vpop.permute.xlu0 %1644 }
 0xb8a   : > { %v1646_v6 = vrot.slane %v1645_v5, 4 }
 0xb8c   : > { %v1647_v7 = vsel %vm1270_vm7, %v1646_v6, %v1645_v5 }
 0xb8d   : > { %1649 = vst.msk [vmem:[#allocation2] sm:$0xff] %vm4190_vm8, %v1647_v7 }
 0xb94   : > { %v4322_v8 = vld [vmem:[#allocation2] sm:$0xff] }
 0xb95   : > { %1712 = vst.msk [vmem:[#allocation2] sm:$0xff] %vm4190_vm8, %v4195_v31 }
 0xb9c   : > { %v1713_v9 = vld [vmem:[#allocation2] sm:$0xff] }
 0xb9d   : > { %v1717_v10 = vunpack.c.h.b16 %v1713_v9  ;;  %v1716_v11 = vunpack.c.l.b16 %v1713_v9 }
 0xb9f   : > { %v1719_v12 = vpack.c.b16 %v1717_v10, %v1717_v10  ;;  %v1718_v13 = vpack.c.b16 %v1716_v11, %v1716_v11 }
 0xba1   : > { %1748 = vrot.lane.b32.xlu2 %v1719_v12, %s5368_s1  ;;  %1735 = vrot.lane.b32.xlu0 %v1718_v13, %s5278_s5 }
 0xba2   : > { %1746 = vrot.lane.b32.xlu1 %v1718_v13, %s5368_s1 }
 0xba9   : > { %1741 = vrot.lane.b32.xlu2 %v1718_v13, %s5369_s8  ;;  %1743 = vrot.lane.b32.xlu0 %v1719_v12, %s5369_s8 }
 0xbaa   : > { %1737 = vrot.lane.b32.xlu1 %v1719_v12, %s5278_s5 }
 0xbb1   : > { %1727 = vrot.lane.b32.xlu2 %v1719_v12, %s5360_s23  ;;  %1730 = vrot.lane.b32.xlu0 %v1718_v13, %s5370_s9 }
 0xbb2   : > { %1725 = vrot.lane.b32.xlu1 %v1718_v13, %s5360_s23 }
 0xbb9   : > { %1720 = vrot.lane.b32.xlu2 %v1718_v13, %s5361_s11  ;;  %1722 = vrot.lane.b32.xlu0 %v1719_v12, %s5361_s11 }
 0xbba   : > { %1732 = vrot.lane.b32.xlu1 %v1719_v12, %s5370_s9 }
 0xbfb   : > { %v1749_v14 = vpop.permute.xlu2 %1748 }
 0xbfc   : > { %1795 = vrot.lane.b32.xlu2 %v1749_v14, %s5371_s13 }
 0xc03   : > { %v1742_v18 = vpop.permute.xlu2 %1741 }
 0xc0b   : > { %v1728_v27 = vpop.permute.xlu2 %1727 }
 0xc13   : > { %v1736_v15 = vpop.permute.xlu0 %1735  ;;  %v1721_v32 = vpop.permute.xlu2 %1720 }
 0xc14   : > { %v1747_v16 = vpop.permute.xlu1 %1746 }
 0xc15   : > { %v1750_v17 = vsel %vm1444_vm0, %v1747_v16, %v1749_v14 }
 0xc16   : > { %1793 = vrot.lane.b32.xlu1 %v1750_v17, %s5371_s13 }
 0xc1b   : > { %v1744_v19 = vpop.permute.xlu0 %1743 }
 0xc1c   : > { %v1745_v20 = vsel %vm1586_vm6, %v1742_v18, %v1744_v19  ;;  %v1738_v21 = vpop.permute.xlu1 %1737 }
 0xc1d   : > { %v1740_v22 = vsel %vm1739_vm3, %v1736_v15, %v1738_v21  ;;  %v1768_v24 = vsel %vm1296_vm11, %v1738_v21, %v1744_v19 }
 0xc1e   : > { %1791 = vrot.lane.b32.xlu1 %v1768_v24, %s5371_s13  ;;  %v1765_v25 = vsel %vm1296_vm11, %v1740_v22, %v1745_v20 }
 0xc1f   : > { %1789 = vrot.lane.b32.xlu0 %v1765_v25, %s5371_s13 }
 0xc23   : > { %v1731_v28 = vpop.permute.xlu0 %1730 }
 0xc24   : > { %v1726_v30 = vpop.permute.xlu1 %1725 }
 0xc25   : > { %v1729_v37 = vsel %vm1294_vm9, %v1726_v30, %v1728_v27 }
 0xc2b   : > { %v1723_v34 = vpop.permute.xlu0 %1722 }
 0xc2c   : > { %v1724_v35 = vsel %vm5304_vm10, %v1721_v32, %v1723_v34  ;;  %v1733_v36 = vpop.permute.xlu1 %1732  ;;  %v1756_v42 = vsel %vm1296_vm11, %v1719_v12, %v1723_v34 }
 0xc2d   : > { %v1734_v38 = vsel %vm1438_vm1, %v1731_v28, %v1733_v36  ;;  %v1762_v39 = vsel %vm1296_vm11, %v1728_v27, %v1733_v36  ;;  %v1753_v40 = vsel %vm1296_vm11, %v1718_v13, %v1724_v35  ;;  %v1890_v35 = vld [vmem:[%s5374_s27] sm:$0xff]  ;;  %s3918_s27 = smov 101  }
 0xc2e   : > { %1787 = vrot.lane.b32.xlu0 %v1762_v39, %s5371_s13  ;;  %1781 = vrot.lane.b32.xlu1 %v1753_v40, %s5371_s13  ;;  %v1759_v41 = vsel %vm1296_vm11, %v1729_v37, %v1734_v38  ;;  %v1654_v39 = vunpack.c.h.b16 %v4322_v8  ;;  %v1653_v40 = vunpack.c.l.b16 %v4322_v8 }
 0xc2f   : > { %1785 = vrot.lane.b32.xlu2 %v1759_v41, %s5371_s13 }
 0xc30   : > { %v4406_v41 = vpack.c.b16 %v1654_v39, %v1654_v39 }
 0xc36   : > { %1772 = vperm.xlu0 %3789, %v1769_v26   ;;  %v4408_v26 = vpack.c.b16 %v1653_v40, %v1653_v40 }
 0xc37   : > { %1783 = vrot.lane.b32.xlu2 %v1756_v42, %s5371_s13 }
 0xc56   : > { %v1796_v43 = vpop.permute.xlu2 %1795 }
 0xc88   : > { %v1794_v44 = vpop.permute.xlu1 %1793 }
 0xc89   : > { %v1800_v45 = vsel %vm5303_vm2, %v1794_v44, %v1796_v43  ;;  %v1786_v50 = vpop.permute.xlu2 %1785 }
 0xc8a   : > { %v1809_v46 = vsel %vm1296_vm11, %v1800_v45, 0 }
 0xc8b   : > { %1815 = vmatpush.bf16.msra.mxu1 %v1809_v46 }
 0xc90   : > { %v1792_v47 = vpop.permute.xlu1 %1791 }
 0xc91   : > { %v1790_v48 = vpop.permute.xlu0 %1789  ;;  %v1784_v54 = vpop.permute.xlu2 %1783 }
 0xc92   : > { %v1799_v49 = vsel %vm5303_vm2, %v1790_v48, %v1792_v47 }
 0xc93   : > { %1816 = vmatpush.bf16.msra.mxu1 %v1799_v49 }
 0xca0   : > { %v1788_v51 = vpop.permute.xlu0 %1787  ;;  %v1782_v53 = vpop.permute.xlu1 %1781 }
 0xca1   : > { %v1798_v52 = vsel %vm5303_vm2, %v1786_v50, %v1788_v51  ;;  %v1797_v55 = vsel %vm5303_vm2, %v1782_v53, %v1784_v54 }
 0xca2   : > { %1817 = vmatpush.bf16.msra.mxu1 %v1798_v52 }
 0xca6   : > { %1818 = vmatpush.bf16.msra.mxu1 %v1797_v55 }
 0xca8   : > { %v1773_v57 = vpop.permute.xlu0 %1772 }
 0xca9   : > { %3660 = vmatmul.msk.bf16.vlgmr.msra.gmra.mxu1 %vm5302_vm4, %v1714_v56 }
 0xd26   : > { %v1820_v58 = vpop.f32.mrf.mxu1 }
 0xd27   : > { %v1821_v59 = vadd.f32 %v1820_v58, %v1773_v57 }
 0xd29   : > { %vm1824_vm15 = vcmp.ge.f32.partialorder %v1821_v59, 0.0  ;;  %v1825_v60 = vmul.f32 0.1, %v1821_v59 }
 0xd2b   : > { %v1826_v61 = vsel %vm1824_vm15, %v1821_v59, %v1825_v60 }
 0xd2c   : > { %v1827_v62 = vpack.c.bf16 %v1826_v61, %v1826_v61 }
 0xd2e   : > { %v1822_v63 = vpop.f32.mrf.mxu1  ;;  %1829 = vrot.lane.b32.xlu1 %v1827_v62, %s5367_s3 }
 0xda0   : > { %v1830_v0 = vpop.permute.xlu1 %1829 }
 0xda1   : > { %v1831_v1 = vrot.slane %v1830_v0, 4 }
 0xda3   : > { %v1832_v2 = vsel %vm1270_vm7, %v1831_v1, %v1830_v0 }
 0xda4   : > { %1834 = vst.msk [vmem:[#allocation2] sm:$0xff] %vm4190_vm8, %v1832_v2 }
 0xdab   : > { %v1835_v3 = vld [vmem:[#allocation2] sm:$0xff] }
 0xdac   : > { %v1839_v4 = vunpack.c.h.b16 %v1835_v3  ;;  %v1838_v5 = vunpack.c.l.b16 %v1835_v3 }
 0xdae   : > { %v1841_v6 = vpack.c.b16 %v1839_v4, %v1839_v4  ;;  %v1840_v7 = vpack.c.b16 %v1838_v5, %v1838_v5 }
 0xdb0   : > { %1869 = vrot.lane.b32.xlu0 %v1841_v6, %s5368_s1  ;;  %1857 = vrot.lane.b32.xlu1 %v1840_v7, %s5278_s5 }
 0xdb1   : > { %1867 = vrot.lane.b32.xlu2 %v1840_v7, %s5368_s1 }
 0xdb8   : > { %1862 = vrot.lane.b32.xlu0 %v1840_v7, %s5369_s8  ;;  %1864 = vrot.lane.b32.xlu1 %v1841_v6, %s5369_s8 }
 0xdb9   : > { %1859 = vrot.lane.b32.xlu2 %v1841_v6, %s5278_s5  ;;  %s5375_s5 = sld [smem:[#allocation21_spill]] }
 0xdbf   : > { %v1836_v54 = vld [vmem:[%s5375_s5] sm:$0xf]  ;;  %s5280_s5 = smov 110  }
 0xdc0   : > { %1849 = vrot.lane.b32.xlu0 %v1841_v6, %s5360_s23  ;;  %1852 = vrot.lane.b32.xlu1 %v1840_v7, %s5370_s9 }
 0xdc1   : > { %1847 = vrot.lane.b32.xlu2 %v1840_v7, %s5360_s23 }
 0xdc8   : > { %1842 = vrot.lane.b32.xlu0 %v1840_v7, %s5361_s11  ;;  %1844 = vrot.lane.b32.xlu1 %v1841_v6, %s5361_s11 }
 0xdc9   : > { %1854 = vrot.lane.b32.xlu2 %v1841_v6, %s5370_s9 }
 0xe0b   : > { %v1868_v9 = vpop.permute.xlu2 %1867 }
 0xe13   : > { %v1860_v10 = vpop.permute.xlu2 %1859 }
 0xe1b   : > { %v1848_v14 = vpop.permute.xlu2 %1847 }
 0xe22   : > { %v1870_v11 = vpop.permute.xlu0 %1869  ;;  %v1858_v12 = vpop.permute.xlu1 %1857 }
 0xe23   : > { %1916 = vrot.lane.b32.xlu0 %v1870_v11, %s5371_s13  ;;  %v1871_v13 = vsel %vm1444_vm0, %v1868_v9, %v1870_v11  ;;  %v1861_v17 = vsel %vm1739_vm3, %v1858_v12, %v1860_v10  ;;  %v1855_v21 = vpop.permute.xlu2 %1854 }
 0xe24   : > { %1914 = vrot.lane.b32.xlu2 %v1871_v13, %s5371_s13 }
 0xe2a   : > { %v1863_v15 = vpop.permute.xlu0 %1862  ;;  %v1865_v16 = vpop.permute.xlu1 %1864 }
 0xe2b   : > { %v1866_v18 = vsel %vm1586_vm6, %v1863_v15, %v1865_v16  ;;  %v1889_v19 = vsel %vm1296_vm11, %v1860_v10, %v1865_v16 }
 0xe2c   : > { %1912 = vrot.lane.b32.xlu2 %v1889_v19, %s5371_s13  ;;  %v1886_v20 = vsel %vm1296_vm11, %v1861_v17, %v1866_v18 }
 0xe2d   : > { %1910 = vrot.lane.b32.xlu1 %v1886_v20, %s5371_s13 }
 0xe32   : > { %v1850_v22 = vpop.permute.xlu0 %1849  ;;  %v1853_v24 = vpop.permute.xlu1 %1852 }
 0xe33   : > { %v1851_v25 = vsel %vm1294_vm9, %v1848_v14, %v1850_v22  ;;  %v1856_v27 = vsel %vm1438_vm1, %v1853_v24, %v1855_v21  ;;  %v1883_v28 = vsel %vm1296_vm11, %v1850_v22, %v1855_v21 }
 0xe34   : > { %v1880_v30 = vsel %vm1296_vm11, %v1851_v25, %v1856_v27 }
 0xe35   : > { %1908 = vrot.lane.b32.xlu1 %v1883_v28, %s5371_s13  ;;  %1906 = vrot.lane.b32.xlu0 %v1880_v30, %s5371_s13 }
 0xe3a   : > { %v1843_v32 = vpop.permute.xlu0 %1842  ;;  %v1845_v34 = vpop.permute.xlu1 %1844 }
 0xe3b   : > { %v1846_v36 = vsel %vm5304_vm10, %v1843_v32, %v1845_v34  ;;  %v1877_v37 = vsel %vm1296_vm11, %v1841_v6, %v1845_v34 }
 0xe3c   : > { %v1874_v38 = vsel %vm1296_vm11, %v1840_v7, %v1846_v36 }
 0xe3d   : > { %1902 = vrot.lane.b32.xlu2 %v1874_v38, %s5371_s13  ;;  %1893 = vperm.xlu1 %3791, %v1890_v35  }
 0xe3e   : > { %1904 = vrot.lane.b32.xlu0 %v1877_v37, %s5371_s13 }
 0xe45   : > { %1664 = vrot.lane.b32.xlu1 %v4406_v41, %s5360_s23 }
 0xe46   : > { %1662 = vrot.lane.b32.xlu0 %v4408_v26, %s5360_s23 }
 0xe4e   : > { %1659 = vrot.lane.b32.xlu0 %v4406_v41, %s5361_s11 }
 0xe7e   : > { %v1915_v42 = vpop.permute.xlu2 %1914 }
 0xe86   : > { %v1913_v45 = vpop.permute.xlu2 %1912 }
 0xe95   : > { %v1917_v43 = vpop.permute.xlu0 %1916 }
 0xe96   : > { %v1921_v44 = vsel %vm5303_vm2, %v1915_v42, %v1917_v43 }
 0xe97   : > { %v1929_v8 = vsel %vm1296_vm11, %v1921_v44, 0  ;;  %v1903_v51 = vpop.permute.xlu2 %1902 }
 0xe98   : > { %1935 = vmatpush.bf16.msra.mxu2 %v1929_v8 }
 0xe9f   : > { %v1911_v46 = vpop.permute.xlu1 %1910 }
 0xea0   : > { %v1920_v47 = vsel %vm5303_vm2, %v1911_v46, %v1913_v45 }
 0xea1   : > { %1936 = vmatpush.bf16.msra.mxu2 %v1920_v47 }
 0xea7   : > { %v1909_v48 = vpop.permute.xlu1 %1908  ;;  %v1907_v49 = vpop.permute.xlu0 %1906 }
 0xea8   : > { %v1919_v50 = vsel %vm5303_vm2, %v1907_v49, %v1909_v48 }
 0xea9   : > { %1937 = vmatpush.bf16.msra.mxu2 %v1919_v50 }
 0xeaf   : > { %v1894_v55 = vpop.permute.xlu1 %1893 }
 0xeb0   : > { %v1905_v52 = vpop.permute.xlu0 %1904 }
 0xeb1   : > { %v1918_v53 = vsel %vm5303_vm2, %v1903_v51, %v1905_v52 }
 0xeb2   : > { %1938 = vmatpush.bf16.msra.mxu2 %v1918_v53 }
 0xeb5   : > { %3661 = vmatmul.msk.bf16.vlgmr.msra.gmra.mxu2 %vm5302_vm4, %v1836_v54 }
 0xeb7   : > { %v1665_v10 = vpop.permute.xlu1 %1664 }
 0xeb8   : > { %v1663_v7 = vpop.permute.xlu0 %1662 }
 0xeb9   : > { %v1666_v13 = vsel %vm1294_vm9, %v1663_v7, %v1665_v10 }
 0xec0   : > { %v1660_v11 = vpop.permute.xlu0 %1659 }
 0xec1   : > { %v1672_v15 = vsel %vm1296_vm11, %v4406_v41, %v1660_v11 }
 0xf38   : > { %v1940_v56 = vpop.f32.mrf.mxu2 }
 0xf39   : > { %v1941_v57 = vadd.f32 %v1940_v56, %v1894_v55 }
 0xf3b   : > { %v4424_v58 = vadd.f32 %v1941_v57, %v4184_v23 }
 0xf3d   : > { %vm1945_vm15 = vcmp.ge.f32.partialorder %v4424_v58, 0.0  ;;  %v1946_v59 = vmul.f32 0.1, %v4424_v58 }
 0xf3f   : > { %v1947_v60 = vsel %vm1945_vm15, %v4424_v58, %v1946_v59  ;;  %vm5288_vm15 = vcmask 900096  }
 0xf40   : > { %v1942_v61 = vpop.f32.mrf.mxu2  ;;  %v1948_v62 = vpack.c.bf16 %v1947_v60, %v1947_v60 }
 0xf42   : > { %1950 = vrot.lane.b32.xlu2 %v1948_v62, %s5367_s3 }
 0xf4a   : > { %1657 = vrot.lane.b32.xlu2 %v4408_v26, %s5361_s11 }
 0xf9c   : > { %v1951_v63 = vpop.permute.xlu2 %1950 }
 0xf9d   : > { %v1952_v0 = vrot.slane %v1951_v63, 4 }
 0xf9f   : > { %v1953_v1 = vsel %vm1270_vm7, %v1952_v0, %v1951_v63 }
 0xfa0   : > { %1955 = vst.msk [vmem:[#allocation2] sm:$0xff] %vm4190_vm8, %v1953_v1 }
 0xfa4   : > { %v1658_v9 = vpop.permute.xlu2 %1657 }
 0xfa5   : > { %v1661_v12 = vsel %vm5304_vm10, %v1658_v9, %v1660_v11 }
 0xfa6   : > { %v1669_v14 = vsel %vm1296_vm11, %v4408_v26, %v1661_v12 }
 0xfa7   : > { %v1956_v2 = vld [vmem:[#allocation2] sm:$0xff] }
 0xfa8   : > { %v1959_v3 = vunpack.c.l.b16 %v1956_v2  ;;  %v1960_v4 = vunpack.c.h.b16 %v1956_v2 }
 0xfaa   : > { %v4435_v5 = vpack.c.b16 %v1959_v3, %v1959_v3  ;;  %v4437_v6 = vpack.c.b16 %v1960_v4, %v1960_v4 }
 0xfac   : > { %1991 = vrot.lane.b32.xlu1 %v4435_v5, %s5280_s5  ;;  %1993 = vrot.lane.b32.xlu2 %v4437_v6, %s5280_s5  ;;  %s5286_s5 = smov 119  }
 0xfad   : > { %1979 = vrot.lane.b32.xlu0 %v4435_v5, %s5282_s6 }
 0xfb4   : > { %1981 = vrot.lane.b32.xlu1 %v4437_v6, %s5282_s6  ;;  %1985 = vrot.lane.b32.xlu2 %v4435_v5, %s5289_s12  ;;  %s3913_s6 = smov 112  }
 0xfb5   : > { %1987 = vrot.lane.b32.xlu0 %v4437_v6, %s5289_s12  ;;  %s5377_s12 = sld [smem:[#allocation17_spill]] }
 0xfbb   : > { %v1651_v55 = vld [vmem:[%s5377_s12] sm:$0xf]  ;;  %s5380_s12 = sld [smem:[#allocation26_spill]] }
 0xfbc   : > { %1968 = vrot.lane.b32.xlu1 %v4435_v5, %s5368_s1  ;;  %1970 = vrot.lane.b32.xlu2 %v4437_v6, %s5368_s1 }
 0xfbd   : > { %1973 = vrot.lane.b32.xlu0 %v4435_v5, %s5286_s5 }
 0xfc4   : > { %1975 = vrot.lane.b32.xlu1 %v4437_v6, %s5286_s5  ;;  %1963 = vrot.lane.b32.xlu2 %v4435_v5, %s5370_s9  ;;  %s5376_s5 = sld [smem:[#allocation24_spill]] }
 0xfc5   : > { %1965 = vrot.lane.b32.xlu0 %v4437_v6, %s5370_s9 }
 0xfca   : > { %v2015_v43 = vld [vmem:[%s5376_s5] sm:$0xff]  ;;  %s5378_s5 = sld [smem:[#allocation23_spill]] }
 0xfcc   : > { %1687 = vrot.lane.b32.xlu2 %v1665_v10, %s5363_s28  ;;  %1685 = vrot.lane.b32.xlu1 %v1666_v13, %s5363_s28 }
 0xfcd   : > { %1681 = vrot.lane.b32.xlu0 %v1669_v14, %s5363_s28 }
 0xfd0   : > { %v1957_v2 = vld [vmem:[%s5378_s5] sm:$0xf]  ;;  %s5381_s5 = sld [smem:[#allocation25_spill]] }
 0xfd4   : > { %1683 = vrot.lane.b32.xlu1 %v1672_v15, %s5363_s28 }
0x1006   : > { %v1994_v16 = vpop.permute.xlu2 %1993 }
0x1007   : > { %2041 = vrot.lane.b32.xlu0 %v1994_v16, %s3913_s6 }
0x100e   : > { %v1986_v20 = vpop.permute.xlu2 %1985 }
0x1016   : > { %v1971_v30 = vpop.permute.xlu2 %1970 }
0x101e   : > { %v1992_v17 = vpop.permute.xlu1 %1991  ;;  %v1964_v35 = vpop.permute.xlu2 %1963 }
0x101f   : > { %v1980_v18 = vpop.permute.xlu0 %1979  ;;  %v1996_v19 = vsel %vm5288_vm15, %v1992_v17, %v1994_v16  ;;  %vm1977_vm15 = vcmask 973824  }
0x1020   : > { %2039 = vrot.lane.b32.xlu2 %v1996_v19, %s3913_s6 }
0x1026   : > { %v1982_v21 = vpop.permute.xlu1 %1981  ;;  %v1688_v44 = vpop.permute.xlu2 %1687 }
0x1027   : > { %v1984_v22 = vsel %vm5291_vm5, %v1980_v18, %v1982_v21  ;;  %v1988_v24 = vpop.permute.xlu0 %1987  ;;  %vm2043_vm5 = vcmask 916480  }
0x1028   : > { %v1990_v25 = vsel %vm5298_vm14, %v1986_v20, %v1988_v24  ;;  %v2014_v27 = vsel %vm1296_vm11, %v1982_v21, %v1988_v24 }
0x1029   : > { %2037 = vrot.lane.b32.xlu2 %v2014_v27, %s3913_s6  ;;  %v2011_v28 = vsel %vm1296_vm11, %v1984_v22, %v1990_v25 }
0x102a   : > { %2035 = vrot.lane.b32.xlu1 %v2011_v28, %s3913_s6 }
0x102e   : > { %v1969_v32 = vpop.permute.xlu1 %1968 }
0x102f   : > { %v1974_v34 = vpop.permute.xlu0 %1973  ;;  %v1972_v37 = vsel %vm1444_vm0, %v1969_v32, %v1971_v30 }
0x1036   : > { %v1976_v36 = vpop.permute.xlu1 %1975 }
0x1037   : > { %v1978_v38 = vsel %vm1977_vm15, %v1974_v34, %v1976_v36  ;;  %v1966_v39 = vpop.permute.xlu0 %1965  ;;  %v2008_v40 = vsel %vm1296_vm11, %v1971_v30, %v1976_v36 }
0x1038   : > { %v1967_v41 = vsel %vm1438_vm1, %v1964_v35, %v1966_v39  ;;  %2033 = vrot.lane.b32.xlu1 %v2008_v40, %s3913_s6  ;;  %v2005_v26 = vsel %vm1296_vm11, %v1972_v37, %v1978_v38  ;;  %v2002_v47 = vsel %vm1296_vm11, %v4437_v6, %v1966_v39 }
0x1039   : > { %2031 = vrot.lane.b32.xlu0 %v2005_v26, %s3913_s6  ;;  %v1999_v42 = vsel %vm1296_vm11, %v4435_v5, %v1967_v41 }
0x103a   : > { %2027 = vrot.lane.b32.xlu2 %v1999_v42, %s3913_s6 }
0x103e   : > { %v1686_v8 = vpop.permute.xlu1 %1685 }
0x103f   : > { %v1690_v45 = vsel %vm5292_vm12, %v1686_v8, %v1688_v44  ;;  %v1682_v48 = vpop.permute.xlu0 %1681 }
0x1040   : > { %2018 = vperm.xlu1 %3791, %v2015_v43   ;;  %v1696_v46 = vsel %vm1296_vm11, %v1690_v45, 0 }
0x1041   : > { %1704 = vmatpush.bf16.msrb.mxu3 %v1696_v46  ;;  %2029 = vrot.lane.b32.xlu0 %v2002_v47, %s3913_s6  ;;  %s5379_s6 = smov 124   ;;  %v2136_v47 = vld [vmem:[%s5380_s12] sm:$0xff]  ;;  %s5296_s12 = smov 98  }
0x1046   : > { %v1684_v49 = vpop.permute.xlu1 %1683 }
0x1047   : > { %v1689_v50 = vsel %vm5292_vm12, %v1682_v48, %v1684_v49  ;;  %vm5385_vm12 = vcmask 883712  }
0x1048   : > { %1705 = vmatpush.bf16.msrb.mxu3 %v1689_v50 }
0x104b   : > { %3659 = vmatmul.msk.bf16.vlgmr.msrb.gmra.mxu3 %vm1323_vm13, %v1651_v55 }
0x1079   : > { %v2042_v51 = vpop.permute.xlu0 %2041 }
0x107a   : > { %v2040_v52 = vpop.permute.xlu2 %2039 }
0x107b   : > { %v2047_v53 = vsel %vm2043_vm5, %v2040_v52, %v2042_v51 }
0x107c   : > { %v2055_v54 = vsel %vm1296_vm11, %v2047_v53, 0 }
0x107d   : > { %2061 = vmatpush.bf16.msra.mxu3 %v2055_v54 }
0x1083   : > { %v2038_v56 = vpop.permute.xlu2 %2037 }
0x1094   : > { %v2028_v63 = vpop.permute.xlu2 %2027 }
0x109c   : > { %v2036_v57 = vpop.permute.xlu1 %2035 }
0x109d   : > { %v2046_v59 = vsel %vm2043_vm5, %v2036_v57, %v2038_v56 }
0x109e   : > { %2062 = vmatpush.bf16.msra.mxu3 %v2046_v59 }
0x10aa   : > { %v2034_v60 = vpop.permute.xlu1 %2033 }
0x10ab   : > { %v2032_v61 = vpop.permute.xlu0 %2031 }
0x10ac   : > { %v2045_v62 = vsel %vm2043_vm5, %v2032_v61, %v2034_v60 }
0x10ad   : > { %2063 = vmatpush.bf16.msra.mxu3 %v2045_v62 }
0x10b2   : > { %v2019_v5 = vpop.permute.xlu1 %2018 }
0x10b3   : > { %v2030_v0 = vpop.permute.xlu0 %2029 }
0x10b4   : > { %v2044_v1 = vsel %vm2043_vm5, %v2028_v63, %v2030_v0  ;;  %v2082_v63 = vld [vmem:[%s5381_s5] sm:$0xf]  ;;  %s5382_s5 = smov 108  }
0x10b5   : > { %2064 = vmatpush.bf16.msra.mxu3 %v2044_v1 }
0x10b8   : > { %3662 = vmatmul.msk.bf16.vlgmr.msra.gmra.mxu3 %vm5302_vm4, %v1957_v2 }
0x10ce   : > { %v4508_v3 = vpop.f32.mrf.mxu3 }
0x10d6   : > { %v1709_v4 = vpop.f32.mrf.mxu3 }
0x113b   : > { %v2066_v6 = vpop.f32.mrf.mxu3 }
0x113c   : > { %v2067_v7 = vadd.f32 %v2066_v6, %v2019_v5 }
0x113e   : > { %vm2070_vm13 = vcmp.ge.f32.partialorder %v2067_v7, 0.0  ;;  %v2071_v9 = vmul.f32 0.1, %v2067_v7 }
0x1140   : > { %v2072_v10 = vsel %vm2070_vm13, %v2067_v7, %v2071_v9  ;;  %vm5299_vm13 = vcmask 801792  }
0x1141   : > { %v2073_v11 = vpack.c.bf16 %v2072_v10, %v2072_v10 }
0x1143   : > { %v2068_v12 = vpop.f32.mrf.mxu3  ;;  %2075 = vrot.lane.b32.xlu2 %v2073_v11, %s5367_s3 }
0x119d   : > { %v2076_v13 = vpop.permute.xlu2 %2075 }
0x119e   : > { %v2077_v14 = vrot.slane %v2076_v13, 4 }
0x11a0   : > { %v2078_v15 = vsel %vm1270_vm7, %v2077_v14, %v2076_v13 }
0x11a1   : > { %2080 = vst.msk [vmem:[#allocation2] sm:$0xff] %vm4190_vm8, %v2078_v15 }
0x11a8   : > { %v2081_v16 = vld [vmem:[#allocation2] sm:$0xff] }
0x11a9   : > { %v2085_v17 = vunpack.c.h.b16 %v2081_v16  ;;  %v2084_v18 = vunpack.c.l.b16 %v2081_v16 }
0x11ab   : > { %v2087_v19 = vpack.c.b16 %v2085_v17, %v2085_v17  ;;  %v2086_v20 = vpack.c.b16 %v2084_v18, %v2084_v18 }
0x11ad   : > { %2115 = vrot.lane.b32.xlu1 %v2087_v19, %s5368_s1  ;;  %2103 = vrot.lane.b32.xlu2 %v2086_v20, %s5379_s6 }
0x11ae   : > { %2113 = vrot.lane.b32.xlu0 %v2086_v20, %s5368_s1 }
0x11b5   : > { %2108 = vrot.lane.b32.xlu1 %v2086_v20, %s5369_s8  ;;  %2110 = vrot.lane.b32.xlu2 %v2087_v19, %s5369_s8 }
0x11b6   : > { %2105 = vrot.lane.b32.xlu0 %v2087_v19, %s5379_s6 }
0x11bd   : > { %2095 = vrot.lane.b32.xlu1 %v2087_v19, %s5360_s23  ;;  %2098 = vrot.lane.b32.xlu2 %v2086_v20, %s5370_s9 }
0x11be   : > { %2093 = vrot.lane.b32.xlu0 %v2086_v20, %s5360_s23 }
0x11c5   : > { %2088 = vrot.lane.b32.xlu1 %v2086_v20, %s5361_s11  ;;  %2090 = vrot.lane.b32.xlu2 %v2087_v19, %s5361_s11 }
0x11c6   : > { %2100 = vrot.lane.b32.xlu0 %v2087_v19, %s5370_s9 }
0x1207   : > { %v2104_v21 = vpop.permute.xlu2 %2103 }
0x120f   : > { %v2111_v27 = vpop.permute.xlu2 %2110 }
0x1217   : > { %v2099_v37 = vpop.permute.xlu2 %2098 }
0x121f   : > { %v2116_v22 = vpop.permute.xlu1 %2115  ;;  %v2091_v40 = vpop.permute.xlu2 %2090 }
0x1220   : > { %v2114_v24 = vpop.permute.xlu0 %2113  ;;  %2162 = vrot.lane.b32.xlu1 %v2116_v22, %s5371_s13  ;;  %v2123_v48 = vsel %vm1296_vm11, %v2087_v19, %v2091_v40 }
0x1221   : > { %v2117_v25 = vsel %vm1444_vm0, %v2114_v24, %v2116_v22 }
0x1222   : > { %2160 = vrot.lane.b32.xlu0 %v2117_v25, %s5371_s13 }
0x1227   : > { %v2109_v28 = vpop.permute.xlu1 %2108 }
0x1228   : > { %v2112_v30 = vsel %vm1586_vm6, %v2109_v28, %v2111_v27  ;;  %v2106_v32 = vpop.permute.xlu0 %2105 }
0x1229   : > { %v2107_v34 = vsel %vm1739_vm3, %v2104_v21, %v2106_v32  ;;  %v2135_v35 = vsel %vm1296_vm11, %v2106_v32, %v2111_v27 }
0x122a   : > { %2158 = vrot.lane.b32.xlu0 %v2135_v35, %s5371_s13  ;;  %v2132_v36 = vsel %vm1296_vm11, %v2107_v34, %v2112_v30 }
0x122b   : > { %2156 = vrot.lane.b32.xlu2 %v2132_v36, %s5371_s13 }
0x122f   : > { %v2096_v38 = vpop.permute.xlu1 %2095 }
0x1230   : > { %v2094_v39 = vpop.permute.xlu0 %2093 }
0x1231   : > { %v2097_v43 = vsel %vm1294_vm9, %v2094_v39, %v2096_v38 }
0x1237   : > { %v2089_v41 = vpop.permute.xlu1 %2088 }
0x1238   : > { %v2092_v26 = vsel %vm5304_vm10, %v2089_v41, %v2091_v40  ;;  %v2101_v42 = vpop.permute.xlu0 %2100 }
0x1239   : > { %v2102_v44 = vsel %vm1438_vm1, %v2099_v37, %v2101_v42  ;;  %v2129_v8 = vsel %vm1296_vm11, %v2096_v38, %v2101_v42  ;;  %v2120_v45 = vsel %vm1296_vm11, %v2086_v20, %v2092_v26 }
0x123a   : > { %2154 = vrot.lane.b32.xlu2 %v2129_v8, %s5371_s13  ;;  %2148 = vrot.lane.b32.xlu0 %v2120_v45, %s5371_s13  ;;  %v2126_v46 = vsel %vm1296_vm11, %v2097_v43, %v2102_v44 }
0x123b   : > { %2152 = vrot.lane.b32.xlu1 %v2126_v46, %s5371_s13 }
0x1242   : > { %2139 = vperm.xlu2 %3790, %v2136_v47  }
0x1243   : > { %2150 = vrot.lane.b32.xlu1 %v2123_v48, %s5371_s13 }
0x1285   : > { %v2157_v53 = vpop.permute.xlu2 %2156 }
0x1292   : > { %v2163_v49 = vpop.permute.xlu1 %2162 }
0x1294   : > { %v2161_v50 = vpop.permute.xlu0 %2160  ;;  %v2155_v56 = vpop.permute.xlu2 %2154 }
0x1295   : > { %v2167_v51 = vsel %vm5303_vm2, %v2161_v50, %v2163_v49 }
0x1296   : > { %v2175_v52 = vsel %vm1296_vm11, %v2167_v51, 0 }
0x1297   : > { %2181 = vmatpush.bf16.msrb.mxu1 %v2175_v52 }
0x129c   : > { %v2159_v54 = vpop.permute.xlu0 %2158  ;;  %v2140_v0 = vpop.permute.xlu2 %2139 }
0x129d   : > { %v2166_v55 = vsel %vm5303_vm2, %v2157_v53, %v2159_v54 }
0x129e   : > { %2182 = vmatpush.bf16.msrb.mxu1 %v2166_v55 }
0x12ac   : > { %v2149_v60 = vpop.permute.xlu0 %2148 }
0x12ad   : > { %v2153_v57 = vpop.permute.xlu1 %2152 }
0x12ae   : > { %v2165_v59 = vsel %vm5303_vm2, %v2153_v57, %v2155_v56 }
0x12af   : > { %2183 = vmatpush.bf16.msrb.mxu1 %v2165_v59 }
0x12b5   : > { %v2151_v61 = vpop.permute.xlu1 %2150 }
0x12b6   : > { %v2164_v62 = vsel %vm5303_vm2, %v2149_v60, %v2151_v61 }
0x12b7   : > { %2184 = vmatpush.bf16.msrb.mxu1 %v2164_v62 }
0x12ba   : > { %3663 = vmatmul.msk.bf16.vlgmr.msrb.gmra.mxu1 %vm5302_vm4, %v2082_v63 }
0x1337   : > { %v2186_v1 = vpop.f32.mrf.mxu1 }
0x1338   : > { %v2187_v2 = vadd.f32 %v2186_v1, %v2140_v0 }
0x133a   : > { %v4555_v4 = vadd.f32 %v2187_v2, %v4424_v58 }
0x133c   : > { %vm2191_vm5 = vcmp.ge.f32.partialorder %v4555_v4, 0.0  ;;  %v2192_v5 = vmul.f32 0.1, %v4555_v4 }
0x133e   : > { %v2193_v6 = vsel %vm2191_vm5, %v4555_v4, %v2192_v5  ;;  %vm5295_vm5 = vcmask 842752  }
0x133f   : > { %v2188_v7 = vpop.f32.mrf.mxu1  ;;  %v2194_v9 = vpack.c.bf16 %v2193_v6, %v2193_v6 }
0x1341   : > { %2196 = vrot.lane.b32.xlu0 %v2194_v9, %s5367_s3 }
0x13b3   : > { %v2197_v10 = vpop.permute.xlu0 %2196 }
0x13b4   : > { %v2198_v11 = vrot.slane %v2197_v10, 4 }
0x13b6   : > { %v2199_v12 = vsel %vm1270_vm7, %v2198_v11, %v2197_v10 }
0x13b7   : > { %2201 = vst.msk [vmem:[#allocation2] sm:$0xff] %vm4190_vm8, %v2199_v12 }
0x13be   : > { %v2202_v13 = vld [vmem:[#allocation2] sm:$0xff] }
0x13bf   : > { %v2206_v58 = vunpack.c.h.b16 %v2202_v13  ;;  %v2205_v14 = vunpack.c.l.b16 %v2202_v13 }
0x13c1   : > { %v2208_v15 = vpack.c.b16 %v2206_v58, %v2206_v58  ;;  %v2207_v16 = vpack.c.b16 %v2205_v14, %v2205_v14 }
0x13c3   : > { %2237 = vrot.lane.b32.xlu2 %v2208_v15, %s5296_s12  ;;  %2224 = vrot.lane.b32.xlu0 %v2207_v16, %s5382_s5 }
0x13c4   : > { %2235 = vrot.lane.b32.xlu1 %v2207_v16, %s5296_s12  ;;  %s5389_s12 = sld [smem:[#allocation27_spill]] }
0x13ca   : > { %v2203_v59 = vld [vmem:[%s5389_s12] sm:$0xf]  ;;  %s5392_s12 = smov 119  }
0x13cb   : > { %2229 = vrot.lane.b32.xlu2 %v2207_v16, %s5293_s14  ;;  %2231 = vrot.lane.b32.xlu0 %v2208_v15, %s5293_s14  ;;  %s5386_s14 = sld [smem:[#allocation28_spill]] }
0x13cc   : > { %2226 = vrot.lane.b32.xlu1 %v2208_v15, %s5382_s5 }
0x13d1   : > { %v2259_v44 = vld [vmem:[%s5386_s14] sm:$0xff]  ;;  %s5305_s14 = smov 120  }
0x13d3   : > { %2216 = vrot.lane.b32.xlu2 %v2208_v15, %s5383_s17  ;;  %2219 = vrot.lane.b32.xlu0 %v2207_v16, %s5384_s19 }
0x13d4   : > { %2214 = vrot.lane.b32.xlu1 %v2207_v16, %s5383_s17 }
0x13db   : > { %2209 = vrot.lane.b32.xlu2 %v2207_v16, %s5369_s8  ;;  %2211 = vrot.lane.b32.xlu0 %v2208_v15, %s5369_s8 }
0x13dc   : > { %2221 = vrot.lane.b32.xlu1 %v2208_v15, %s5384_s19 }
0x141d   : > { %v2238_v17 = vpop.permute.xlu2 %2237 }
0x141e   : > { %2285 = vrot.lane.b32.xlu2 %v2238_v17, %s5383_s17 }
0x1425   : > { %v2230_v21 = vpop.permute.xlu2 %2229 }
0x142d   : > { %v2217_v32 = vpop.permute.xlu2 %2216 }
0x1435   : > { %v2225_v18 = vpop.permute.xlu0 %2224  ;;  %v2210_v36 = vpop.permute.xlu2 %2209 }
0x1436   : > { %v2236_v19 = vpop.permute.xlu1 %2235 }
0x1437   : > { %v2240_v20 = vsel %vm5299_vm13, %v2236_v19, %v2238_v17 }
0x1438   : > { %2283 = vrot.lane.b32.xlu1 %v2240_v20, %s5383_s17 }
0x143d   : > { %v2232_v22 = vpop.permute.xlu0 %2231 }
0x143e   : > { %v2234_v24 = vsel %vm5295_vm5, %v2230_v21, %v2232_v22  ;;  %v2227_v25 = vpop.permute.xlu1 %2226  ;;  %vm5387_vm5 = vcmask 965632  }
0x143f   : > { %v2228_v27 = vsel %vm5385_vm12, %v2225_v18, %v2227_v25  ;;  %v2258_v28 = vsel %vm1296_vm11, %v2227_v25, %v2232_v22  ;;  %vm5388_vm12 = vmmov %vm5387_vm5 }
0x1440   : > { %2281 = vrot.lane.b32.xlu1 %v2258_v28, %s5383_s17  ;;  %v2255_v30 = vsel %vm1296_vm11, %v2228_v27, %v2234_v24  ;;  %vm5391_vm13 = vmmov %vm5387_vm5 }
0x1441   : > { %2279 = vrot.lane.b32.xlu0 %v2255_v30, %s5383_s17 }
0x1445   : > { %v2220_v34 = vpop.permute.xlu0 %2219 }
0x1446   : > { %v2215_v35 = vpop.permute.xlu1 %2214 }
0x1447   : > { %v2218_v40 = vsel %vm5387_vm5, %v2215_v35, %v2217_v32 }
0x144d   : > { %v2212_v37 = vpop.permute.xlu0 %2211 }
0x144e   : > { %v2213_v38 = vsel %vm1586_vm6, %v2210_v36, %v2212_v37  ;;  %v2222_v39 = vpop.permute.xlu1 %2221  ;;  %v2246_v8 = vsel %vm1296_vm11, %v2208_v15, %v2212_v37 }
0x144f   : > { %v2223_v41 = vsel %vm5298_vm14, %v2220_v34, %v2222_v39  ;;  %v2252_v26 = vsel %vm1296_vm11, %v2217_v32, %v2222_v39  ;;  %v2243_v42 = vsel %vm1296_vm11, %v2207_v16, %v2213_v38  ;;  %vm5390_vm14 = vmmov %vm5387_vm5 }
0x1450   : > { %2277 = vrot.lane.b32.xlu0 %v2252_v26, %s5383_s17  ;;  %2271 = vrot.lane.b32.xlu1 %v2243_v42, %s5383_s17  ;;  %v2249_v43 = vsel %vm1296_vm11, %v2218_v40, %v2223_v41 }
0x1451   : > { %2275 = vrot.lane.b32.xlu2 %v2249_v43, %s5383_s17 }
0x1458   : > { %2262 = vperm.xlu0 %3789, %v2259_v44  }
0x1459   : > { %2273 = vrot.lane.b32.xlu2 %v2246_v8, %s5383_s17 }
0x1478   : > { %v2286_v45 = vpop.permute.xlu2 %2285 }
0x14aa   : > { %v2284_v46 = vpop.permute.xlu1 %2283 }
0x14ab   : > { %v2290_v47 = vsel %vm5388_vm12, %v2284_v46, %v2286_v45  ;;  %v2276_v52 = vpop.permute.xlu2 %2275 }
0x14ac   : > { %v2298_v48 = vsel %vm1296_vm11, %v2290_v47, 0 }
0x14ad   : > { %2304 = vmatpush.bf16.msrb.mxu2 %v2298_v48 }
0x14b2   : > { %v2282_v49 = vpop.permute.xlu1 %2281 }
0x14b3   : > { %v2280_v50 = vpop.permute.xlu0 %2279  ;;  %v2274_v56 = vpop.permute.xlu2 %2273 }
0x14b4   : > { %v2289_v51 = vsel %vm5387_vm5, %v2280_v50, %v2282_v49 }
0x14b5   : > { %2305 = vmatpush.bf16.msrb.mxu2 %v2289_v51 }
0x14c2   : > { %v2278_v53 = vpop.permute.xlu0 %2277  ;;  %v2272_v55 = vpop.permute.xlu1 %2271 }
0x14c3   : > { %v2288_v54 = vsel %vm5390_vm14, %v2276_v52, %v2278_v53  ;;  %v2287_v57 = vsel %vm5391_vm13, %v2272_v55, %v2274_v56  ;;  %vm5393_vm14 = vmmov %vm5387_vm5  ;;  %vm2477_vm13 = vcmask 990208   ;;  %vm5307_vm5 = vcmask 982016  }
0x14c4   : > { %2306 = vmatpush.bf16.msrb.mxu2 %v2288_v54 }
0x14c8   : > { %2307 = vmatpush.bf16.msrb.mxu2 %v2287_v57 }
0x14ca   : > { %v2263_v60 = vpop.permute.xlu0 %2262 }
0x14cb   : > { %3664 = vmatmul.msk.bf16.vlgmr.msrb.gmra.mxu2 %vm5302_vm4, %v2203_v59 }
0x154e   : > { %v2309_v61 = vpop.f32.mrf.mxu2 }
0x154f   : > { %v2310_v62 = vadd.f32 %v2309_v61, %v2263_v60 }
0x1551   : > { %vm2313_vm12 = vcmp.ge.f32.partialorder %v2310_v62, 0.0  ;;  %v2314_v63 = vmul.f32 0.1, %v2310_v62 }
0x1553   : > { %v2315_v0 = vsel %vm2313_vm12, %v2310_v62, %v2314_v63  ;;  %vm5395_vm12 = vcmask 883712  }
0x1554   : > { %v2316_v1 = vpack.c.bf16 %v2315_v0, %v2315_v0  ;;  %vm5398_vm4 = vmmov %vm5395_vm12 }
0x1555   : > { %vm5399_vm2 = vmmov %vm5398_vm4 }
0x1556   : > { %v2311_v2 = vpop.f32.mrf.mxu2  ;;  %2318 = vrot.lane.b32.xlu1 %v2316_v1, %s5367_s3 }
0x15c8   : > { %v2319_v5 = vpop.permute.xlu1 %2318 }
0x15c9   : > { %v2320_v6 = vrot.slane %v2319_v5, 4 }
0x15cb   : > { %v2321_v7 = vsel %vm1270_vm7, %v2320_v6, %v2319_v5 }
0x15cc   : > { %2323 = vst.msk [vmem:[#allocation2] sm:$0xff] %vm4190_vm8, %v2321_v7 }
0x15d3   : > { %v4608_v9 = vld [vmem:[#allocation2] sm:$0xff] }
0x15d4   : > { %2435 = vst.msk [vmem:[#allocation2] sm:$0xff] %vm4190_vm8, %v4195_v31 }
0x15db   : > { %v2436_v10 = vld [vmem:[#allocation2] sm:$0xff] }
0x15dc   : > { %v2439_v11 = vunpack.c.l.b16 %v2436_v10  ;;  %v2440_v12 = vunpack.c.h.b16 %v2436_v10 }
0x15de   : > { %v4613_v13 = vpack.c.b16 %v2439_v11, %v2439_v11  ;;  %v4615_v58 = vpack.c.b16 %v2440_v12, %v2440_v12 }
0x15e0   : > { %2492 = vrot.lane.b32.xlu0 %v4615_v58, %s5383_s17  ;;  %2479 = vrot.lane.b32.xlu1 %v4613_v13, %s5305_s14 }
0x15e1   : > { %2490 = vrot.lane.b32.xlu2 %v4613_v13, %s5383_s17 }
0x15e8   : > { %2485 = vrot.lane.b32.xlu0 %v4613_v13, %s5392_s12  ;;  %2487 = vrot.lane.b32.xlu1 %v4615_v58, %s5392_s12 }
0x15e9   : > { %2481 = vrot.lane.b32.xlu2 %v4615_v58, %s5305_s14 }
0x15f0   : > { %2470 = vrot.lane.b32.xlu0 %v4615_v58, %s5368_s1  ;;  %2473 = vrot.lane.b32.xlu1 %v4613_v13, %s5300_s21 }
0x15f1   : > { %2468 = vrot.lane.b32.xlu2 %v4613_v13, %s5368_s1 }
0x15f8   : > { %2458 = vrot.lane.b32.xlu0 %v4613_v13, %s5379_s6  ;;  %2460 = vrot.lane.b32.xlu1 %v4615_v58, %s5379_s6 }
0x15f9   : > { %2475 = vrot.lane.b32.xlu2 %v4615_v58, %s5300_s21  ;;  %s5394_s21 = sld [smem:[#allocation32_spill]] }
0x15ff   : > { %v2525_v53 = vld [vmem:[%s5394_s21] sm:$0xff]  ;;  %s5397_s21 = sld [smem:[#allocation31_spill]] }
0x1600   : > { %2465 = vrot.lane.b32.xlu0 %v4615_v58, %s5369_s8  ;;  %2448 = vrot.lane.b32.xlu1 %v4613_v13, %s5360_s23 }
0x1601   : > { %2463 = vrot.lane.b32.xlu2 %v4613_v13, %s5369_s8 }
0x1608   : > { %2453 = vrot.lane.b32.xlu0 %v4613_v13, %s5370_s9  ;;  %2455 = vrot.lane.b32.xlu1 %v4615_v58, %s5370_s9 }
0x1609   : > { %2450 = vrot.lane.b32.xlu2 %v4615_v58, %s5360_s23 }
0x1610   : > { %2445 = vrot.lane.b32.xlu0 %v4615_v58, %s5361_s11 }
0x1611   : > { %2443 = vrot.lane.b32.xlu2 %v4613_v13, %s5361_s11 }
0x163b   : > { %v2491_v31 = vpop.permute.xlu2 %2490 }
0x1643   : > { %v2482_v14 = vpop.permute.xlu2 %2481 }
0x164b   : > { %v2469_v18 = vpop.permute.xlu2 %2468 }
0x1652   : > { %v2493_v15 = vpop.permute.xlu0 %2492  ;;  %v2480_v16 = vpop.permute.xlu1 %2479 }
0x1653   : > { %2563 = vrot.lane.b32.xlu2 %v2493_v15, %s5382_s5  ;;  %v2494_v17 = vsel %vm5393_vm14, %v2491_v31, %v2493_v15  ;;  %v2476_v22 = vpop.permute.xlu2 %2475  ;;  %v2484_v35 = vsel %vm5307_vm5, %v2480_v16, %v2482_v14  ;;  %vm5396_vm14 = vmmov %vm5395_vm12  ;;  %v2437_v15 = vld [vmem:[%s5397_s21] sm:$0xf]  ;;  %s5402_s21 = smov 121  }
0x1654   : > { %2561 = vrot.lane.b32.xlu1 %v2494_v17, %s5382_s5 }
0x165a   : > { %v2486_v19 = vpop.permute.xlu0 %2485  ;;  %v2488_v20 = vpop.permute.xlu1 %2487 }
0x165b   : > { %v2524_v21 = vsel %vm1296_vm11, %v2482_v14, %v2488_v20  ;;  %v2489_v34 = vsel %vm1977_vm15, %v2486_v19, %v2488_v20  ;;  %v2464_v39 = vpop.permute.xlu2 %2463 }
0x165c   : > { %2559 = vrot.lane.b32.xlu1 %v2524_v21, %s5382_s5  ;;  %v2521_v38 = vsel %vm1296_vm11, %v2484_v35, %v2489_v34 }
0x1662   : > { %v2471_v24 = vpop.permute.xlu0 %2470  ;;  %v2474_v25 = vpop.permute.xlu1 %2473 }
0x1663   : > { %v2472_v27 = vsel %vm1444_vm0, %v2469_v18, %v2471_v24  ;;  %v2478_v28 = vsel %vm2477_vm13, %v2474_v25, %v2476_v22  ;;  %v2518_v30 = vsel %vm1296_vm11, %v2471_v24, %v2476_v22  ;;  %v2451_v8 = vpop.permute.xlu2 %2450 }
0x1664   : > { %2555 = vrot.lane.b32.xlu0 %v2518_v30, %s5382_s5  ;;  %v2515_v32 = vsel %vm1296_vm11, %v2472_v27, %v2478_v28 }
0x1665   : > { %2553 = vrot.lane.b32.xlu2 %v2515_v32, %s5382_s5 }
0x166a   : > { %v2459_v36 = vpop.permute.xlu0 %2458  ;;  %v2461_v37 = vpop.permute.xlu1 %2460 }
0x166b   : > { %v2462_v26 = vsel %vm1739_vm3, %v2459_v36, %v2461_v37  ;;  %v2444_v51 = vpop.permute.xlu2 %2443 }
0x166c   : > { %2557 = vrot.lane.b32.xlu0 %v2521_v38, %s5382_s5 }
0x1672   : > { %v2466_v40 = vpop.permute.xlu0 %2465  ;;  %v2449_v41 = vpop.permute.xlu1 %2448 }
0x1673   : > { %v2467_v42 = vsel %vm1586_vm6, %v2464_v39, %v2466_v40  ;;  %v2512_v43 = vsel %vm1296_vm11, %v2461_v37, %v2466_v40  ;;  %v2452_v47 = vsel %vm1294_vm9, %v2449_v41, %v2451_v8 }
0x1674   : > { %2551 = vrot.lane.b32.xlu2 %v2512_v43, %s5382_s5  ;;  %v2509_v44 = vsel %vm1296_vm11, %v2462_v26, %v2467_v42 }
0x1675   : > { %2549 = vrot.lane.b32.xlu1 %v2509_v44, %s5382_s5 }
0x167a   : > { %v2454_v45 = vpop.permute.xlu0 %2453  ;;  %v2456_v46 = vpop.permute.xlu1 %2455 }
0x167b   : > { %v2457_v48 = vsel %vm1438_vm1, %v2454_v45, %v2456_v46  ;;  %v2506_v49 = vsel %vm1296_vm11, %v2451_v8, %v2456_v46 }
0x167c   : > { %v2503_v50 = vsel %vm1296_vm11, %v2452_v47, %v2457_v48 }
0x167d   : > { %2547 = vrot.lane.b32.xlu1 %v2506_v49, %s5382_s5  ;;  %2545 = vrot.lane.b32.xlu0 %v2503_v50, %s5382_s5 }
0x1682   : > { %v2446_v52 = vpop.permute.xlu0 %2445 }
0x1683   : > { %v2447_v54 = vsel %vm5304_vm10, %v2444_v51, %v2446_v52  ;;  %v2500_v55 = vsel %vm1296_vm11, %v4615_v58, %v2446_v52  ;;  %vm5401_vm10 = vmmov %vm5399_vm2 }
0x1684   : > { %v2497_v56 = vsel %vm1296_vm11, %v4613_v13, %v2447_v54 }
0x1685   : > { %2528 = vperm.xlu1 %3791, %v2525_v53   ;;  %2543 = vrot.lane.b32.xlu0 %v2500_v55, %s5382_s5 }
0x1686   : > { %2541 = vrot.lane.b32.xlu2 %v2497_v56, %s5382_s5 }
0x16ad   : > { %v2564_v57 = vpop.permute.xlu2 %2563 }
0x16bf   : > { %v2554_v1 = vpop.permute.xlu2 %2553 }
0x16c6   : > { %v2562_v59 = vpop.permute.xlu1 %2561 }
0x16c7   : > { %v2570_v60 = vsel %vm5395_vm12, %v2562_v59, %v2564_v57  ;;  %vm5400_vm12 = vmmov %vm5399_vm2 }
0x16c8   : > { %v2581_v61 = vsel %vm1296_vm11, %v2570_v60, 0 }
0x16c9   : > { %2585 = vmatpush.bf16.msra.mxu1 %v2581_v61 }
0x16ce   : > { %v2560_v63 = vpop.permute.xlu1 %2559  ;;  %v2552_v6 = vpop.permute.xlu2 %2551 }
0x16d6   : > { %v2556_v62 = vpop.permute.xlu0 %2555 }
0x16d7   : > { %v2568_v5 = vsel %vm5398_vm4, %v2554_v1, %v2556_v62 }
0x16de   : > { %v2558_v0 = vpop.permute.xlu0 %2557 }
0x16df   : > { %v2569_v2 = vsel %vm5396_vm14, %v2558_v0, %v2560_v63  ;;  %vm2576_vm14 = vcmask 719872  }
0x16e0   : > { %2586 = vmatpush.bf16.msra.mxu1 %v2569_v2  ;;  %v2542_v58 = vpop.permute.xlu2 %2541 }
0x16e4   : > { %2587 = vmatpush.bf16.msra.mxu1 %v2568_v5 }
0x16e7   : > { %v2550_v7 = vpop.permute.xlu1 %2549 }
0x16e8   : > { %v2567_v10 = vsel %vm5399_vm2, %v2550_v7, %v2552_v6  ;;  %vm5405_vm2 = vcmask 1039360  }
0x16e9   : > { %2588 = vmatpush.bf16.msra.mxu1 %v2567_v10 }
0x16ef   : > { %v2548_v11 = vpop.permute.xlu1 %2547  ;;  %v2546_v12 = vpop.permute.xlu0 %2545 }
0x16f0   : > { %v2566_v13 = vsel %vm5400_vm12, %v2546_v12, %v2548_v11 }
0x16f1   : > { %2589 = vmatpush.bf16.msra.mxu1 %v2566_v13 }
0x16f7   : > { %v2544_v31 = vpop.permute.xlu0 %2543  ;;  %v2529_v16 = vpop.permute.xlu1 %2528 }
0x16f8   : > { %v2565_v14 = vsel %vm5401_vm10, %v2542_v58, %v2544_v31  ;;  %vm5403_vm10 = vcmask 965632  }
0x16f9   : > { %2590 = vmatpush.bf16.msra.mxu1 %v2565_v14  ;;  %v2327_v14 = vunpack.c.l.b16 %v4608_v9 }
0x16fc   : > { %3666 = vmatmul.msk.bf16.vlgmr.msra.gmra.mxu1 %vm2576_vm14, %v2437_v15  ;;  %v2328_v15 = vunpack.c.h.b16 %v4608_v9 }
0x1779   : > { %v2592_v17 = vpop.f32.mrf.mxu1 }
0x177a   : > { %v2593_v18 = vadd.f32 %v2592_v17, %v2529_v16  ;;  %v4786_v16 = vpack.c.b16 %v2327_v14, %v2327_v14  ;;  %v4788_v17 = vpack.c.b16 %v2328_v15, %v2328_v15 }
0x177c   : > { %vm2596_vm4 = vcmp.ge.f32.partialorder %v2593_v18, 0.0  ;;  %v2597_v19 = vmul.f32 0.1, %v2593_v18 }
0x177e   : > { %v2598_v20 = vsel %vm2596_vm4, %v2593_v18, %v2597_v19  ;;  %vm5406_vm4 = vmmov %vm5400_vm12 }
0x177f   : > { %v2599_v21 = vpack.c.bf16 %v2598_v20, %v2598_v20 }
0x1781   : > { %v2594_v22 = vpop.f32.mrf.mxu1  ;;  %2601 = vrot.lane.b32.xlu2 %v2599_v21, %s5367_s3 }
0x17db   : > { %v2602_v24 = vpop.permute.xlu2 %2601 }
0x17dc   : > { %v2603_v25 = vrot.slane %v2602_v24, 4 }
0x17de   : > { %v2604_v27 = vsel %vm1270_vm7, %v2603_v25, %v2602_v24 }
0x17df   : > { %2606 = vst.msk [vmem:[#allocation2] sm:$0xff] %vm4190_vm8, %v2604_v27 }
0x17e6   : > { %v2607_v28 = vld [vmem:[#allocation2] sm:$0xff] }
0x17e7   : > { %v2610_v30 = vunpack.c.l.b16 %v2607_v28  ;;  %v2611_v32 = vunpack.c.h.b16 %v2607_v28 }
0x17e9   : > { %v4705_v34 = vpack.c.b16 %v2610_v30, %v2610_v30  ;;  %v4707_v35 = vpack.c.b16 %v2611_v32, %v2611_v32 }
0x17eb   : > { %2661 = vrot.lane.b32.xlu1 %v4707_v35, %s5383_s17  ;;  %2649 = vrot.lane.b32.xlu2 %v4705_v34, %s5305_s14 }
0x17ec   : > { %2659 = vrot.lane.b32.xlu0 %v4705_v34, %s5383_s17 }
0x17f3   : > { %2654 = vrot.lane.b32.xlu1 %v4705_v34, %s5392_s12  ;;  %2656 = vrot.lane.b32.xlu2 %v4707_v35, %s5392_s12 }
0x17f4   : > { %2651 = vrot.lane.b32.xlu0 %v4707_v35, %s5305_s14  ;;  %s5404_s14 = sld [smem:[#allocation34_spill]] }
0x17fa   : > { %v2694_v12 = vld [vmem:[%s5404_s14] sm:$0xff]  ;;  %s5407_s14 = sld [smem:[#allocation33_spill]] }
0x17fb   : > { %2641 = vrot.lane.b32.xlu1 %v4707_v35, %s5368_s1  ;;  %2644 = vrot.lane.b32.xlu2 %v4705_v34, %s5402_s21 }
0x17fc   : > { %2639 = vrot.lane.b32.xlu0 %v4705_v34, %s5368_s1 }
0x1803   : > { %2629 = vrot.lane.b32.xlu1 %v4705_v34, %s5379_s6  ;;  %2631 = vrot.lane.b32.xlu2 %v4707_v35, %s5379_s6 }
0x1804   : > { %2646 = vrot.lane.b32.xlu0 %v4707_v35, %s5402_s21 }
0x180b   : > { %2636 = vrot.lane.b32.xlu1 %v4707_v35, %s5369_s8  ;;  %2619 = vrot.lane.b32.xlu2 %v4705_v34, %s5360_s23 }
0x180c   : > { %2634 = vrot.lane.b32.xlu0 %v4705_v34, %s5369_s8 }
0x1813   : > { %2624 = vrot.lane.b32.xlu1 %v4705_v34, %s5370_s9  ;;  %2626 = vrot.lane.b32.xlu2 %v4707_v35, %s5370_s9 }
0x1814   : > { %2621 = vrot.lane.b32.xlu0 %v4707_v35, %s5360_s23 }
0x181b   : > { %2616 = vrot.lane.b32.xlu1 %v4707_v35, %s5361_s11 }
0x181c   : > { %2614 = vrot.lane.b32.xlu0 %v4705_v34, %s5361_s11 }
0x1845   : > { %v2650_v36 = vpop.permute.xlu2 %2649 }
0x184d   : > { %v2657_v37 = vpop.permute.xlu2 %2656 }
0x1855   : > { %v2645_v42 = vpop.permute.xlu2 %2644 }
0x185d   : > { %v2662_v38 = vpop.permute.xlu1 %2661  ;;  %v2632_v45 = vpop.permute.xlu2 %2631 }
0x185e   : > { %v2660_v39 = vpop.permute.xlu0 %2659  ;;  %2732 = vrot.lane.b32.xlu0 %v2662_v38, %s5382_s5 }
0x185f   : > { %v2663_v40 = vsel %vm5403_vm10, %v2660_v39, %v2662_v38  ;;  %vm5408_vm10 = vmmov %vm5406_vm4 }
0x1860   : > { %2730 = vrot.lane.b32.xlu2 %v2663_v40, %s5382_s5 }
0x1865   : > { %v2655_v41 = vpop.permute.xlu1 %2654  ;;  %v2620_v52 = vpop.permute.xlu2 %2619 }
0x1866   : > { %v2652_v26 = vpop.permute.xlu0 %2651  ;;  %v2658_v53 = vsel %vm1977_vm15, %v2655_v41, %v2657_v37 }
0x1867   : > { %v2693_v43 = vsel %vm1296_vm11, %v2652_v26, %v2657_v37  ;;  %v2653_v54 = vsel %vm5307_vm5, %v2650_v36, %v2652_v26 }
0x1868   : > { %2728 = vrot.lane.b32.xlu2 %v2693_v43, %s5382_s5  ;;  %v2690_v61 = vsel %vm1296_vm11, %v2653_v54, %v2658_v53 }
0x186d   : > { %v2642_v44 = vpop.permute.xlu1 %2641  ;;  %v2627_v63 = vpop.permute.xlu2 %2626 }
0x186e   : > { %v2640_v8 = vpop.permute.xlu0 %2639 }
0x186f   : > { %v2643_v48 = vsel %vm1444_vm0, %v2640_v8, %v2642_v44 }
0x1875   : > { %v2630_v46 = vpop.permute.xlu1 %2629 }
0x1876   : > { %v2647_v47 = vpop.permute.xlu0 %2646  ;;  %v2633_v59 = vsel %vm1739_vm3, %v2630_v46, %v2632_v45 }
0x1877   : > { %v2648_v49 = vsel %vm2477_vm13, %v2645_v42, %v2647_v47  ;;  %v2687_v50 = vsel %vm1296_vm11, %v2642_v44, %v2647_v47  ;;  %v2608_v42 = vld [vmem:[%s5407_s14] sm:$0xf]  ;;  %s5412_s14 = smov 98  }
0x1878   : > { %2724 = vrot.lane.b32.xlu1 %v2687_v50, %s5382_s5  ;;  %v2684_v51 = vsel %vm1296_vm11, %v2643_v48, %v2648_v49 }
0x1879   : > { %2722 = vrot.lane.b32.xlu0 %v2684_v51, %s5382_s5 }
0x187d   : > { %v2637_v55 = vpop.permute.xlu1 %2636 }
0x187e   : > { %v2635_v56 = vpop.permute.xlu0 %2634  ;;  %v2681_v57 = vsel %vm1296_vm11, %v2632_v45, %v2637_v55 }
0x187f   : > { %v2638_v60 = vsel %vm1586_vm6, %v2635_v56, %v2637_v55 }
0x1880   : > { %2726 = vrot.lane.b32.xlu1 %v2690_v61, %s5382_s5  ;;  %v2678_v62 = vsel %vm1296_vm11, %v2633_v59, %v2638_v60 }
0x1881   : > { %2720 = vrot.lane.b32.xlu0 %v2681_v57, %s5382_s5  ;;  %2718 = vrot.lane.b32.xlu2 %v2678_v62, %s5382_s5 }
0x1885   : > { %v2625_v0 = vpop.permute.xlu1 %2624 }
0x1886   : > { %v2628_v1 = vsel %vm1438_vm1, %v2625_v0, %v2627_v63  ;;  %v2622_v2 = vpop.permute.xlu0 %2621 }
0x1887   : > { %v2623_v5 = vsel %vm1294_vm9, %v2620_v52, %v2622_v2  ;;  %v2675_v6 = vsel %vm1296_vm11, %v2622_v2, %v2627_v63 }
0x1888   : > { %v2672_v7 = vsel %vm1296_vm11, %v2623_v5, %v2628_v1 }
0x1889   : > { %2716 = vrot.lane.b32.xlu2 %v2675_v6, %s5382_s5  ;;  %2714 = vrot.lane.b32.xlu1 %v2672_v7, %s5382_s5 }
0x188d   : > { %v2617_v10 = vpop.permute.xlu1 %2616 }
0x188e   : > { %v2615_v11 = vpop.permute.xlu0 %2614  ;;  %v2669_v13 = vsel %vm1296_vm11, %v4707_v35, %v2617_v10 }
0x188f   : > { %v2618_v58 = vsel %vm5405_vm2, %v2615_v11, %v2617_v10  ;;  %vm5409_vm2 = vmmov %vm5406_vm4 }
0x1890   : > { %v2666_v31 = vsel %vm1296_vm11, %v4705_v34, %v2618_v58  ;;  %vm5411_vm5 = vmmov %vm5409_vm2 }
0x1891   : > { %2697 = vperm.xlu2 %3790, %v2694_v12   ;;  %2712 = vrot.lane.b32.xlu1 %v2669_v13, %s5382_s5 }
0x1892   : > { %2710 = vrot.lane.b32.xlu0 %v2666_v31, %s5382_s5 }
0x1899   : > { %2358 = vrot.lane.b32.xlu2 %v4788_v17, %s5368_s1  ;;  %2356 = vrot.lane.b32.xlu1 %v4786_v16, %s5368_s1 }
0x189a   : > { %2346 = vrot.lane.b32.xlu0 %v4786_v16, %s5379_s6 }
0x18a1   : > { %2351 = vrot.lane.b32.xlu2 %v4786_v16, %s5369_s8  ;;  %2348 = vrot.lane.b32.xlu1 %v4788_v17, %s5379_s6 }
0x18a2   : > { %2353 = vrot.lane.b32.xlu0 %v4788_v17, %s5369_s8 }
0x18a9   : > { %2338 = vrot.lane.b32.xlu2 %v4788_v17, %s5360_s23  ;;  %2336 = vrot.lane.b32.xlu1 %v4786_v16, %s5360_s23 }
0x18b1   : > { %2333 = vrot.lane.b32.xlu2 %v4788_v17, %s5361_s11  ;;  %2343 = vrot.lane.b32.xlu1 %v4788_v17, %s5370_s9 }
0x18b9   : > { %2331 = vrot.lane.b32.xlu1 %v4786_v16, %s5361_s11 }
0x18ba   : > { %v2731_v9 = vpop.permute.xlu2 %2730 }
0x18c2   : > { %v2729_v21 = vpop.permute.xlu2 %2728 }
0x18d0   : > { %v2733_v18 = vpop.permute.xlu0 %2732 }
0x18d1   : > { %v2739_v19 = vsel %vm5400_vm12, %v2731_v9, %v2733_v18  ;;  %vm5410_vm12 = vmmov %vm5409_vm2 }
0x18d2   : > { %v2749_v20 = vsel %vm1296_vm11, %v2739_v19, 0 }
0x18d3   : > { %2753 = vmatpush.bf16.msra.mxu2 %v2749_v20 }
0x18db   : > { %v2719_v22 = vpop.permute.xlu2 %2718 }
0x18e3   : > { %v2717_v24 = vpop.permute.xlu2 %2716 }
0x18ea   : > { %v2725_v25 = vpop.permute.xlu1 %2724 }
0x18eb   : > { %v2698_v27 = vpop.permute.xlu2 %2697  ;;  %v2723_v28 = vpop.permute.xlu0 %2722 }
0x18ec   : > { %v2737_v35 = vsel %vm5408_vm10, %v2723_v28, %v2725_v25  ;;  %vm5416_vm10 = vcmask 1039360  }
0x18f2   : > { %v2727_v30 = vpop.permute.xlu1 %2726 }
0x18f3   : > { %v2359_v32 = vpop.permute.xlu2 %2358  ;;  %v2738_v34 = vsel %vm5406_vm4, %v2727_v30, %v2729_v21  ;;  %v2721_v36 = vpop.permute.xlu0 %2720  ;;  %vm5413_vm4 = vcmask 867328  }
0x18f4   : > { %2754 = vmatpush.bf16.msra.mxu2 %v2738_v34  ;;  %2405 = vrot.lane.b32.xlu1 %v2359_v32, %s5371_s13  ;;  %v2736_v38 = vsel %vm5409_vm2, %v2719_v22, %v2721_v36  ;;  %vm5417_vm2 = vcmask 801792  }
0x18f8   : > { %2755 = vmatpush.bf16.msra.mxu2 %v2737_v35 }
0x18fb   : > { %v2715_v37 = vpop.permute.xlu1 %2714  ;;  %v2352_v45 = vpop.permute.xlu2 %2351 }
0x18fc   : > { %2756 = vmatpush.bf16.msra.mxu2 %v2736_v38  ;;  %v2735_v39 = vsel %vm5410_vm12, %v2715_v37, %v2717_v24  ;;  %vm2828_vm12 = vcmask 826368  }
0x1900   : > { %2757 = vmatpush.bf16.msra.mxu2 %v2735_v39 }
0x1903   : > { %v2713_v40 = vpop.permute.xlu1 %2712  ;;  %v2339_v58 = vpop.permute.xlu2 %2338 }
0x1904   : > { %v2711_v41 = vpop.permute.xlu0 %2710 }
0x1905   : > { %v2734_v26 = vsel %vm5411_vm5, %v2711_v41, %v2713_v40 }
0x1906   : > { %2758 = vmatpush.bf16.msra.mxu2 %v2734_v26 }
0x1909   : > { %3667 = vmatmul.msk.bf16.vlgmr.msra.gmra.mxu2 %vm2576_vm14, %v2608_v42 }
0x190b   : > { %v2357_v43 = vpop.permute.xlu1 %2356  ;;  %v2334_v14 = vpop.permute.xlu2 %2333 }
0x190c   : > { %v2347_v44 = vpop.permute.xlu0 %2346  ;;  %v2360_v57 = vsel %vm1444_vm0, %v2357_v43, %v2359_v32  ;;  %v2366_v22 = vsel %vm1296_vm11, %v4788_v17, %v2334_v14 }
0x1913   : > { %v4822_v8 = vpop.permute.xlu1 %2348 }
0x1914   : > { %v4824_v46 = vpop.permute.xlu0 %2353  ;;  %v2350_v47 = vsel %vm1739_vm3, %v2347_v44, %v4822_v8 }
0x1915   : > { %v2355_v48 = vsel %vm1586_vm6, %v2352_v45, %v4824_v46  ;;  %v2378_v9 = vsel %vm1296_vm11, %v4822_v8, %v4824_v46 }
0x1916   : > { %v2375_v49 = vsel %vm1296_vm11, %v2350_v47, %v2355_v48 }
0x1917   : > { %2399 = vrot.lane.b32.xlu2 %v2375_v49, %s5371_s13 }
0x191b   : > { %v2337_v59 = vpop.permute.xlu1 %2336 }
0x191c   : > { %v2340_v20 = vsel %vm1294_vm9, %v2337_v59, %v2339_v58 }
0x1971   : > { %v2400_v24 = vpop.permute.xlu2 %2399 }
0x198c   : > { %v2760_v50 = vpop.f32.mrf.mxu2 }
0x198d   : > { %v2761_v51 = vadd.f32 %v2760_v50, %v2698_v27 }
0x198f   : > { %v4833_v52 = vadd.f32 %v2761_v51, %v4184_v23  ;;  %v2344_v23 = vpop.permute.xlu1 %2343 }
0x1990   : > { %v2372_v31 = vsel %vm1296_vm11, %v2339_v58, %v2344_v23 }
0x1991   : > { %v2766_v53 = vmul.f32 0.1, %v4833_v52  ;;  %vm2765_vm5 = vcmp.ge.f32.partialorder %v4833_v52, 0.0 }
0x1993   : > { %v2767_v54 = vsel %vm2765_vm5, %v4833_v52, %v2766_v53  ;;  %vm2817_vm5 = vcmask 875520  }
0x1994   : > { %v2762_v55 = vpop.f32.mrf.mxu2  ;;  %v2768_v56 = vpack.c.bf16 %v2767_v54, %v2767_v54 }
0x1996   : > { %2770 = vrot.lane.b32.xlu0 %v2768_v56, %s5367_s3 }
0x1997   : > { %v2332_v63 = vpop.permute.xlu1 %2331 }
0x1998   : > { %v2335_v15 = vsel %vm5416_vm10, %v2332_v63, %v2334_v14  ;;  %vm5419_vm10 = vcmask 900096  }
0x1999   : > { %v2363_v18 = vsel %vm1296_vm11, %v4786_v16, %v2335_v15 }
0x199e   : > { %2341 = vrot.lane.b32.xlu0 %v4786_v16, %s5370_s9 }
0x199f   : > { %v2406_v10 = vpop.permute.xlu1 %2405 }
0x19a6   : > { %2403 = vrot.lane.b32.xlu0 %v2360_v57, %s5371_s13 }
0x1a08   : > { %v2771_v60 = vpop.permute.xlu0 %2770 }
0x1a09   : > { %v2772_v61 = vrot.slane %v2771_v60, 4 }
0x1a0b   : > { %v2773_v62 = vsel %vm1270_vm7, %v2772_v61, %v2771_v60 }
0x1a0c   : > { %2775 = vst.msk [vmem:[#allocation2] sm:$0xff] %vm4190_vm8, %v2773_v62 }
0x1a10   : > { %v2342_v0 = vpop.permute.xlu0 %2341 }
0x1a11   : > { %v2345_v19 = vsel %vm1438_vm1, %v2342_v0, %v2344_v23 }
0x1a12   : > { %v2369_v21 = vsel %vm1296_vm11, %v2340_v20, %v2345_v19 }
0x1a13   : > { %v2776_v1 = vld [vmem:[#allocation2] sm:$0xff] }
0x1a14   : > { %v2779_v2 = vunpack.c.l.b16 %v2776_v1  ;;  %v2780_v5 = vunpack.c.h.b16 %v2776_v1 }
0x1a16   : > { %v4846_v6 = vpack.c.b16 %v2779_v2, %v2779_v2  ;;  %v4848_v7 = vpack.c.b16 %v2780_v5, %v2780_v5 }
0x1a18   : > { %2821 = vrot.lane.b32.xlu1 %v4848_v7, %s5363_s28  ;;  %2832 = vrot.lane.b32.xlu0 %v4848_v7, %s5412_s14  ;;  %v2404_v11 = vpop.permute.xlu0 %2403 }
0x1a19   : > { %v2410_v12 = vsel %vm5413_vm4, %v2404_v11, %v2406_v10  ;;  %2830 = vrot.lane.b32.xlu2 %v4846_v6, %s5412_s14  ;;  %vm5418_vm4 = vcmask 850944  }
0x1a1a   : > { %v2418_v13 = vsel %vm1296_vm11, %v2410_v12, 0 }
0x1a1b   : > { %2424 = vmatpush.bf16.msrb.mxu3 %v2418_v13 }
0x1a20   : > { %2808 = vrot.lane.b32.xlu1 %v4846_v6, %s5414_s25  ;;  %2819 = vrot.lane.b32.xlu0 %v4846_v6, %s5363_s28  ;;  %s5437_s28 = sld [smem:[#allocation38_spill]] }
0x1a21   : > { %2824 = vrot.lane.b32.xlu2 %v4846_v6, %s3918_s27 }
0x1a28   : > { %2815 = vrot.lane.b32.xlu1 %v4848_v7, %s3919_s29  ;;  %2826 = vrot.lane.b32.xlu0 %v4848_v7, %s3918_s27  ;;  %s5430_s27 = sld [smem:[#allocation35_spill]] }
0x1a29   : > { %2810 = vrot.lane.b32.xlu2 %v4848_v7, %s5414_s25  ;;  %s5422_s25 = sld [smem:[#allocation36_spill]] }
0x1a2f   : > { %v2865_v1 = vld [vmem:[%s5422_s25] sm:$0xff]  ;;  %s5441_s25 = sld [smem:[#allocation37_spill]] }
0x1a30   : > { %2803 = vrot.lane.b32.xlu1 %v4846_v6, %s5384_s19  ;;  %2813 = vrot.lane.b32.xlu0 %v4846_v6, %s3919_s29  ;;  %s5424_s29 = sld [smem:[#allocation29_spill]] }
0x1a31   : > { %2798 = vrot.lane.b32.xlu2 %v4846_v6, %s5415_s2 }
0x1a38   : > { %2790 = vrot.lane.b32.xlu1 %v4848_v7, %s5368_s1  ;;  %2800 = vrot.lane.b32.xlu0 %v4848_v7, %s5415_s2  ;;  %s5434_s2 = smov 120  }
0x1a39   : > { %2805 = vrot.lane.b32.xlu2 %v4848_v7, %s5384_s19 }
0x1a40   : > { %2783 = vrot.lane.b32.xlu1 %v4846_v6, %s5370_s9  ;;  %2788 = vrot.lane.b32.xlu0 %v4846_v6, %s5368_s1 }
0x1a41   : > { %2793 = vrot.lane.b32.xlu2 %v4846_v6, %s5392_s12 }
0x1a48   : > { %2795 = vrot.lane.b32.xlu0 %v4848_v7, %s5392_s12  ;;  %2397 = vrot.lane.b32.xlu1 %v2372_v31, %s5371_s13 }
0x1a49   : > { %2785 = vrot.lane.b32.xlu2 %v4848_v7, %s5370_s9 }
0x1a50   : > { %2401 = vrot.lane.b32.xlu0 %v2378_v9, %s5371_s13 }
0x1a51   : > { %2391 = vrot.lane.b32.xlu2 %v2363_v18, %s5371_s13  ;;  %v2325_v18 = vld [vmem:[%s5424_s29] sm:$0xf]  ;;  %s3920_s29 = smov 78  }
0x1a58   : > { %2395 = vrot.lane.b32.xlu0 %v2369_v21, %s5371_s13 }
0x1a60   : > { %2393 = vrot.lane.b32.xlu0 %v2366_v22, %s5371_s13 }
0x1a73   : > { %v2831_v25 = vpop.permute.xlu2 %2830 }
0x1a7b   : > { %v2825_v27 = vpop.permute.xlu2 %2824 }
0x1a83   : > { %v2811_v28 = vpop.permute.xlu2 %2810 }
0x1a8a   : > { %v2833_v16 = vpop.permute.xlu0 %2832  ;;  %v2822_v30 = vpop.permute.xlu1 %2821 }
0x1a8b   : > { %2903 = vrot.lane.b32.xlu2 %v2833_v16, %s5383_s17  ;;  %v2834_v32 = vsel %vm5417_vm2, %v2831_v25, %v2833_v16  ;;  %v2799_v36 = vpop.permute.xlu2 %2798  ;;  %vm5420_vm2 = vcmask 924672  }
0x1a8c   : > { %2901 = vrot.lane.b32.xlu1 %v2834_v32, %s5383_s17 }
0x1a92   : > { %v2820_v34 = vpop.permute.xlu0 %2819  ;;  %v2809_v35 = vpop.permute.xlu1 %2808 }
0x1a93   : > { %v2806_v40 = vpop.permute.xlu2 %2805  ;;  %v2823_v26 = vsel %vm5418_vm4, %v2820_v34, %v2822_v30  ;;  %v2812_v44 = vsel %vm5419_vm10, %v2809_v35, %v2811_v28 }
0x1a9a   : > { %v2827_v37 = vpop.permute.xlu0 %2826  ;;  %v2816_v38 = vpop.permute.xlu1 %2815 }
0x1a9b   : > { %v2864_v17 = vsel %vm1296_vm11, %v2822_v30, %v2827_v37  ;;  %v2858_v39 = vsel %vm1296_vm11, %v2811_v28, %v2816_v38  ;;  %v2829_v41 = vsel %vm2828_vm12, %v2825_v27, %v2827_v37  ;;  %v2794_v47 = vpop.permute.xlu2 %2793  ;;  %vm5421_vm12 = vcmask 949248  }
0x1a9c   : > { %2899 = vrot.lane.b32.xlu2 %v2864_v17, %s5383_s17  ;;  %2895 = vrot.lane.b32.xlu1 %v2858_v39, %s5383_s17  ;;  %v2861_v45 = vsel %vm1296_vm11, %v2823_v26, %v2829_v41 }
0x1aa2   : > { %v2814_v42 = vpop.permute.xlu0 %2813  ;;  %v2804_v43 = vpop.permute.xlu1 %2803 }
0x1aa3   : > { %v2818_v8 = vsel %vm2817_vm5, %v2814_v42, %v2816_v38  ;;  %v2807_v50 = vsel %vm5420_vm2, %v2804_v43, %v2806_v40  ;;  %v2786_v55 = vpop.permute.xlu2 %2785  ;;  %vm5423_vm5 = vcmask 867328   ;;  %vm5427_vm2 = vcmask 965632   ;;  %v2777_v38 = vld [vmem:[%s5430_s27] sm:$0xf]  ;;  %s3921_s27 = smov 88  }
0x1aa4   : > { %2897 = vrot.lane.b32.xlu1 %v2861_v45, %s5383_s17  ;;  %v2855_v46 = vsel %vm1296_vm11, %v2812_v44, %v2818_v8  ;;  %vm5425_vm4 = vmmov %vm5423_vm5 }
0x1aa5   : > { %2893 = vrot.lane.b32.xlu0 %v2855_v46, %s5383_s17  ;;  %vm5426_vm10 = vmmov %vm5425_vm4 }
0x1aaa   : > { %v2801_v48 = vpop.permute.xlu0 %2800  ;;  %v2791_v49 = vpop.permute.xlu1 %2790 }
0x1aab   : > { %v2802_v51 = vsel %vm5421_vm12, %v2799_v36, %v2801_v48  ;;  %v2852_v53 = vsel %vm1296_vm11, %v2801_v48, %v2806_v40  ;;  %v2392_v13 = vpop.permute.xlu2 %2391  ;;  %vm5428_vm12 = vcmask 457728  }
0x1aac   : > { %v2849_v54 = vsel %vm1296_vm11, %v2802_v51, %v2807_v50 }
0x1aad   : > { %2891 = vrot.lane.b32.xlu0 %v2852_v53, %s5383_s17  ;;  %2889 = vrot.lane.b32.xlu2 %v2849_v54, %s5383_s17 }
0x1ab2   : > { %v2789_v56 = vpop.permute.xlu0 %2788  ;;  %v2784_v57 = vpop.permute.xlu1 %2783 }
0x1ab3   : > { %v2787_v59 = vsel %vm1438_vm1, %v2784_v57, %v2786_v55  ;;  %v2792_v61 = vsel %vm1444_vm0, %v2789_v56, %v2791_v49 }
0x1ab4   : > { %v2837_v23 = vsel %vm1296_vm11, %v4846_v6, %v2787_v59  ;;  %v2840_v6 = vsel %vm1296_vm11, %v4848_v7, %v2786_v55 }
0x1ab5   : > { %2881 = vrot.lane.b32.xlu0 %v2837_v23, %s5383_s17 }
0x1aba   : > { %v2796_v60 = vpop.permute.xlu0 %2795  ;;  %v2398_v10 = vpop.permute.xlu1 %2397 }
0x1abb   : > { %v2797_v62 = vsel %vm1977_vm15, %v2794_v47, %v2796_v60  ;;  %v2846_v63 = vsel %vm1296_vm11, %v2791_v49, %v2796_v60 }
0x1abc   : > { %2887 = vrot.lane.b32.xlu2 %v2846_v63, %s5383_s17  ;;  %v2843_v0 = vsel %vm1296_vm11, %v2792_v61, %v2797_v62 }
0x1abd   : > { %2885 = vrot.lane.b32.xlu1 %v2843_v0, %s5383_s17 }
0x1ac2   : > { %v2402_v2 = vpop.permute.xlu0 %2401 }
0x1ac3   : > { %v2409_v5 = vsel %vm5423_vm5, %v2400_v24, %v2402_v2  ;;  %vm5429_vm5 = vmmov %vm5427_vm2 }
0x1ac4   : > { %2425 = vmatpush.bf16.msrb.mxu3 %v2409_v5  ;;  %2868 = vperm.xlu2 %3790, %v2865_v1  }
0x1ac5   : > { %2883 = vrot.lane.b32.xlu1 %v2840_v6, %s5383_s17 }
0x1aca   : > { %v2396_v11 = vpop.permute.xlu0 %2395 }
0x1acb   : > { %v2408_v12 = vsel %vm5425_vm4, %v2396_v11, %v2398_v10  ;;  %vm5431_vm4 = vmmov %vm5427_vm2 }
0x1acc   : > { %2426 = vmatpush.bf16.msrb.mxu3 %v2408_v12 }
0x1ad2   : > { %v2394_v58 = vpop.permute.xlu0 %2393 }
0x1ad3   : > { %v2407_v31 = vsel %vm5426_vm10, %v2392_v13, %v2394_v58  ;;  %vm5432_vm10 = vmmov %vm5427_vm2 }
0x1ad4   : > { %2427 = vmatpush.bf16.msrb.mxu3 %v2407_v31 }
0x1ad7   : > { %3665 = vmatmul.msk.bf16.vlgmr.msrb.gmra.mxu3 %vm5428_vm12, %v2325_v18  ;;  %vm5433_vm12 = vmmov %vm5427_vm2 }
0x1ae5   : > { %v2904_v14 = vpop.permute.xlu2 %2903 }
0x1af6   : > { %v2900_v20 = vpop.permute.xlu2 %2899 }
0x1afe   : > { %v2902_v15 = vpop.permute.xlu1 %2901 }
0x1aff   : > { %v2910_v9 = vsel %vm5427_vm2, %v2902_v15, %v2904_v14 }
0x1b00   : > { %v2920_v7 = vsel %vm1296_vm11, %v2910_v9, 0 }
0x1b01   : > { %2924 = vmatpush.bf16.msra.mxu3 %v2920_v7 }
0x1b07   : > { %v2890_v27 = vpop.permute.xlu2 %2889 }
0x1b0e   : > { %v2896_v19 = vpop.permute.xlu1 %2895 }
0x1b16   : > { %v2898_v21 = vpop.permute.xlu1 %2897  ;;  %v2888_v30 = vpop.permute.xlu2 %2887 }
0x1b17   : > { %v2894_v22 = vpop.permute.xlu0 %2893  ;;  %v2909_v24 = vsel %vm5429_vm5, %v2898_v21, %v2900_v20 }
0x1b18   : > { %2925 = vmatpush.bf16.msra.mxu3 %v2909_v24  ;;  %v2908_v25 = vsel %vm5431_vm4, %v2894_v22, %v2896_v19  ;;  %vm5435_vm4 = vmmov %vm5427_vm2 }
0x1b1c   : > { %2926 = vmatpush.bf16.msra.mxu3 %v2908_v25 }
0x1b1e   : > { %v2869_v40 = vpop.permute.xlu2 %2868 }
0x1b1f   : > { %v2892_v28 = vpop.permute.xlu0 %2891 }
0x1b20   : > { %v2907_v16 = vsel %vm5432_vm10, %v2890_v27, %v2892_v28  ;;  %vm5436_vm10 = vcmask 982016  }
0x1b21   : > { %2927 = vmatpush.bf16.msra.mxu3 %v2907_v16 }
0x1b27   : > { %v2882_v35 = vpop.permute.xlu0 %2881 }
0x1b2f   : > { %v2886_v32 = vpop.permute.xlu1 %2885 }
0x1b30   : > { %v2906_v34 = vsel %vm5427_vm2, %v2886_v32, %v2888_v30  ;;  %vm5438_vm2 = vcmask 1039360  }
0x1b31   : > { %2928 = vmatpush.bf16.msra.mxu3 %v2906_v34  ;;  %v3033_v34 = vld [vmem:[%s5437_s28] sm:$0xff]  ;;  %s3922_s28 = smov 83  }
0x1b37   : > { %v2884_v36 = vpop.permute.xlu1 %2883 }
0x1b38   : > { %v2905_v37 = vsel %vm5433_vm12, %v2882_v35, %v2884_v36  ;;  %vm5439_vm12 = vcmask 883712  }
0x1b39   : > { %2929 = vmatpush.bf16.msra.mxu3 %v2905_v37 }
0x1b3c   : > { %3668 = vmatmul.msk.bf16.vlgmr.msra.gmra.mxu3 %vm2576_vm14, %v2777_v38 }
0x1b5a   : > { %v4952_v17 = vpop.f32.mrf.mxu3 }
0x1b62   : > { %v2431_v39 = vpop.f32.mrf.mxu3 }
0x1bbf   : > { %v2931_v41 = vpop.f32.mrf.mxu3 }
0x1bc0   : > { %v2932_v26 = vadd.f32 %v2931_v41, %v2869_v40 }
0x1bc2   : > { %vm2935_vm5 = vcmp.ge.f32.partialorder %v2932_v26, 0.0  ;;  %v2936_v42 = vmul.f32 0.1, %v2932_v26 }
0x1bc4   : > { %v2937_v43 = vsel %vm2935_vm5, %v2932_v26, %v2936_v42  ;;  %vm5440_vm5 = vmmov %vm5439_vm12 }
0x1bc5   : > { %v2938_v44 = vpack.c.bf16 %v2937_v43, %v2937_v43 }
0x1bc7   : > { %v2933_v8 = vpop.f32.mrf.mxu3  ;;  %2940 = vrot.lane.b32.xlu0 %v2938_v44, %s5367_s3 }
0x1c39   : > { %v2941_v45 = vpop.permute.xlu0 %2940 }
0x1c3a   : > { %v2942_v46 = vrot.slane %v2941_v45, 4 }
0x1c3c   : > { %v2943_v47 = vsel %vm1270_vm7, %v2942_v46, %v2941_v45 }
0x1c3d   : > { %2945 = vst.msk [vmem:[#allocation2] sm:$0xff] %vm4190_vm8, %v2943_v47 }
0x1c44   : > { %v2946_v48 = vld [vmem:[#allocation2] sm:$0xff] }
0x1c45   : > { %v2949_v49 = vunpack.c.l.b16 %v2946_v48  ;;  %v2950_v50 = vunpack.c.h.b16 %v2946_v48 }
0x1c47   : > { %v4958_v51 = vpack.c.b16 %v2949_v49, %v2949_v49  ;;  %v4960_v53 = vpack.c.b16 %v2950_v50, %v2950_v50 }
0x1c49   : > { %3000 = vrot.lane.b32.xlu2 %v4960_v53, %s5383_s17  ;;  %2988 = vrot.lane.b32.xlu0 %v4958_v51, %s5434_s2 }
0x1c4a   : > { %2998 = vrot.lane.b32.xlu1 %v4958_v51, %s5383_s17 }
0x1c51   : > { %2993 = vrot.lane.b32.xlu2 %v4958_v51, %s5392_s12  ;;  %2995 = vrot.lane.b32.xlu0 %v4960_v53, %s5392_s12 }
0x1c52   : > { %2990 = vrot.lane.b32.xlu1 %v4960_v53, %s5434_s2 }
0x1c59   : > { %2980 = vrot.lane.b32.xlu2 %v4960_v53, %s5368_s1  ;;  %2983 = vrot.lane.b32.xlu0 %v4958_v51, %s5402_s21 }
0x1c5a   : > { %2978 = vrot.lane.b32.xlu1 %v4958_v51, %s5368_s1 }
0x1c61   : > { %2968 = vrot.lane.b32.xlu2 %v4958_v51, %s5379_s6  ;;  %2970 = vrot.lane.b32.xlu0 %v4960_v53, %s5379_s6 }
0x1c62   : > { %2985 = vrot.lane.b32.xlu1 %v4960_v53, %s5402_s21 }
0x1c69   : > { %2975 = vrot.lane.b32.xlu2 %v4960_v53, %s5369_s8  ;;  %2958 = vrot.lane.b32.xlu0 %v4958_v51, %s5360_s23 }
0x1c6a   : > { %2973 = vrot.lane.b32.xlu1 %v4958_v51, %s5369_s8 }
0x1c71   : > { %2963 = vrot.lane.b32.xlu2 %v4958_v51, %s5370_s9  ;;  %2965 = vrot.lane.b32.xlu0 %v4960_v53, %s5370_s9 }
0x1c72   : > { %2960 = vrot.lane.b32.xlu1 %v4960_v53, %s5360_s23 }
0x1c79   : > { %2955 = vrot.lane.b32.xlu2 %v4960_v53, %s5361_s11 }
0x1c7a   : > { %2953 = vrot.lane.b32.xlu1 %v4958_v51, %s5361_s11 }
0x1ca3   : > { %v3001_v54 = vpop.permute.xlu2 %3000 }
0x1ca4   : > { %3071 = vrot.lane.b32.xlu1 %v3001_v54, %s5382_s5 }
0x1cab   : > { %v2994_v55 = vpop.permute.xlu2 %2993 }
0x1cb3   : > { %v2981_v23 = vpop.permute.xlu2 %2980 }
0x1cbb   : > { %v2989_v56 = vpop.permute.xlu0 %2988  ;;  %v2969_v1 = vpop.permute.xlu2 %2968 }
0x1cbc   : > { %v2999_v57 = vpop.permute.xlu1 %2998 }
0x1cbd   : > { %v3002_v59 = vsel %vm5435_vm4, %v2999_v57, %v3001_v54  ;;  %vm5442_vm4 = vmmov %vm5440_vm5 }
0x1cbe   : > { %3069 = vrot.lane.b32.xlu0 %v3002_v59, %s5382_s5 }
0x1cc3   : > { %v2996_v60 = vpop.permute.xlu0 %2995  ;;  %v2976_v13 = vpop.permute.xlu2 %2975 }
0x1cc4   : > { %v2991_v61 = vpop.permute.xlu1 %2990  ;;  %v2997_v58 = vsel %vm1977_vm15, %v2994_v55, %v2996_v60 }
0x1cc5   : > { %v3032_v62 = vsel %vm1296_vm11, %v2991_v61, %v2996_v60  ;;  %v2992_v31 = vsel %vm5436_vm10, %v2989_v56, %v2991_v61  ;;  %vm5443_vm10 = vmmov %vm5442_vm4  ;;  %v2947_v56 = vld [vmem:[%s5441_s25] sm:$0xf]  ;;  %s5446_s25 = sld [smem:[#allocation40_spill]] }
0x1cc6   : > { %3067 = vrot.lane.b32.xlu0 %v3032_v62, %s5382_s5  ;;  %v3029_v18 = vsel %vm1296_vm11, %v2992_v31, %v2997_v58 }
0x1ccb   : > { %v2984_v63 = vpop.permute.xlu0 %2983  ;;  %v2964_v21 = vpop.permute.xlu2 %2963 }
0x1ccc   : > { %v2979_v0 = vpop.permute.xlu1 %2978 }
0x1ccd   : > { %v2982_v6 = vsel %vm1444_vm0, %v2979_v0, %v2981_v23 }
0x1cd3   : > { %v2971_v2 = vpop.permute.xlu0 %2970  ;;  %v2956_v30 = vpop.permute.xlu2 %2955 }
0x1cd4   : > { %v2986_v5 = vpop.permute.xlu1 %2985  ;;  %v2972_v9 = vsel %vm1739_vm3, %v2969_v1, %v2971_v2  ;;  %v3020_v19 = vsel %vm1296_vm11, %v2971_v2, %v2976_v13  ;;  %v3008_v36 = vsel %vm1296_vm11, %v4960_v53, %v2956_v30 }
0x1cd5   : > { %v2987_v10 = vsel %vm2477_vm13, %v2984_v63, %v2986_v5  ;;  %v3026_v11 = vsel %vm1296_vm11, %v2981_v23, %v2986_v5 }
0x1cd6   : > { %3063 = vrot.lane.b32.xlu2 %v3026_v11, %s5382_s5  ;;  %v3023_v12 = vsel %vm1296_vm11, %v2982_v6, %v2987_v10 }
0x1cd7   : > { %3061 = vrot.lane.b32.xlu1 %v3023_v12, %s5382_s5 }
0x1cdb   : > { %v2959_v14 = vpop.permute.xlu0 %2958 }
0x1cdc   : > { %v2974_v15 = vpop.permute.xlu1 %2973 }
0x1cdd   : > { %v2977_v7 = vsel %vm1586_vm6, %v2974_v15, %v2976_v13  ;;  %v3196_v13 = vld [vmem:[%s5446_s25] sm:$0xff] }
0x1cde   : > { %3065 = vrot.lane.b32.xlu2 %v3029_v18, %s5382_s5  ;;  %v3017_v20 = vsel %vm1296_vm11, %v2972_v9, %v2977_v7 }
0x1cdf   : > { %3059 = vrot.lane.b32.xlu1 %v3020_v19, %s5382_s5  ;;  %3057 = vrot.lane.b32.xlu0 %v3017_v20, %s5382_s5 }
0x1ce3   : > { %v2966_v22 = vpop.permute.xlu0 %2965 }
0x1ce4   : > { %v2967_v24 = vsel %vm1438_vm1, %v2964_v21, %v2966_v22  ;;  %v2961_v25 = vpop.permute.xlu1 %2960 }
0x1ce5   : > { %v2962_v27 = vsel %vm1294_vm9, %v2959_v14, %v2961_v25  ;;  %v3014_v28 = vsel %vm1296_vm11, %v2961_v25, %v2966_v22 }
0x1ce6   : > { %v3011_v16 = vsel %vm1296_vm11, %v2962_v27, %v2967_v24 }
0x1ce7   : > { %3055 = vrot.lane.b32.xlu0 %v3014_v28, %s5382_s5  ;;  %3053 = vrot.lane.b32.xlu2 %v3011_v16, %s5382_s5 }
0x1cec   : > { %v2954_v32 = vpop.permute.xlu1 %2953 }
0x1ced   : > { %v2957_v35 = vsel %vm5438_vm2, %v2954_v32, %v2956_v30  ;;  %vm5444_vm2 = vmmov %vm5442_vm4 }
0x1cee   : > { %v3005_v37 = vsel %vm1296_vm11, %v4958_v51, %v2957_v35 }
0x1cef   : > { %3036 = vperm.xlu0 %3789, %v3033_v34   ;;  %3051 = vrot.lane.b32.xlu2 %v3008_v36, %s5382_s5 }
0x1cf0   : > { %3049 = vrot.lane.b32.xlu1 %v3005_v37, %s5382_s5 }
0x1d16   : > { %v3072_v38 = vpop.permute.xlu1 %3071 }
0x1d30   : > { %v3070_v39 = vpop.permute.xlu0 %3069  ;;  %v3064_v40 = vpop.permute.xlu2 %3063 }
0x1d31   : > { %v3078_v41 = vsel %vm5439_vm12, %v3070_v39, %v3072_v38  ;;  %vm5445_vm12 = vmmov %vm5444_vm2 }
0x1d32   : > { %v3088_v26 = vsel %vm1296_vm11, %v3078_v41, 0 }
0x1d33   : > { %3092 = vmatpush.bf16.msrb.mxu0 %v3088_v26 }
0x1d38   : > { %v3068_v42 = vpop.permute.xlu0 %3067  ;;  %v3066_v43 = vpop.permute.xlu2 %3065 }
0x1d39   : > { %v3077_v44 = vsel %vm5440_vm5, %v3066_v43, %v3068_v42 }
0x1d3a   : > { %3093 = vmatpush.bf16.msrb.mxu0 %v3077_v44 }
0x1d41   : > { %v3054_v49 = vpop.permute.xlu2 %3053 }
0x1d49   : > { %v3062_v8 = vpop.permute.xlu1 %3061  ;;  %v3052_v53 = vpop.permute.xlu2 %3051 }
0x1d4a   : > { %v3076_v45 = vsel %vm5442_vm4, %v3062_v8, %v3064_v40  ;;  %vm3174_vm4 = vcmask 637952  }
0x1d4b   : > { %3094 = vmatpush.bf16.msrb.mxu0 %v3076_v45 }
0x1d51   : > { %v3058_v46 = vpop.permute.xlu0 %3057  ;;  %v3060_v47 = vpop.permute.xlu1 %3059 }
0x1d52   : > { %v3075_v48 = vsel %vm5443_vm10, %v3058_v46, %v3060_v47  ;;  %vm3168_vm10 = vcmask 678912  }
0x1d53   : > { %3095 = vmatpush.bf16.msrb.mxu0 %v3075_v48 }
0x1d59   : > { %v3056_v50 = vpop.permute.xlu0 %3055 }
0x1d5a   : > { %v3074_v51 = vsel %vm5444_vm2, %v3054_v49, %v3056_v50  ;;  %vm3156_vm2 = vcmask 760832  }
0x1d5b   : > { %3096 = vmatpush.bf16.msrb.mxu0 %v3074_v51 }
0x1d61   : > { %v3037_v57 = vpop.permute.xlu0 %3036 }
0x1d62   : > { %v3050_v54 = vpop.permute.xlu1 %3049 }
0x1d63   : > { %v3073_v55 = vsel %vm5445_vm12, %v3050_v54, %v3052_v53  ;;  %vm5448_vm12 = vcmask 801792  }
0x1d64   : > { %3097 = vmatpush.bf16.msrb.mxu0 %v3073_v55 }
0x1d67   : > { %3669 = vmatmul.msk.bf16.vlgmr.msrb.gmra.mxu0 %vm2576_vm14, %v2947_v56 }
0x1de4   : > { %v3099_v59 = vpop.f32.mrf.mxu0 }
0x1de5   : > { %v3100_v23 = vadd.f32 %v3099_v59, %v3037_v57 }
0x1de7   : > { %v5047_v60 = vadd.f32 %v3100_v23, %v4833_v52 }
0x1de9   : > { %v3105_v61 = vmul.f32 0.1, %v5047_v60  ;;  %vm3104_vm5 = vcmp.ge.f32.partialorder %v5047_v60, 0.0 }
0x1deb   : > { %v3106_v62 = vsel %vm3104_vm5, %v5047_v60, %v3105_v61  ;;  %vm5449_vm5 = vcmask 883712  }
0x1dec   : > { %v3101_v63 = vpop.f32.mrf.mxu0  ;;  %v3107_v0 = vpack.c.bf16 %v3106_v62, %v3106_v62 }
0x1dee   : > { %3109 = vrot.lane.b32.xlu1 %v3107_v0, %s5367_s3 }
0x1e60   : > { %v3110_v1 = vpop.permute.xlu1 %3109 }
0x1e61   : > { %v3111_v2 = vrot.slane %v3110_v1, 4 }
0x1e63   : > { %v3112_v5 = vsel %vm1270_vm7, %v3111_v2, %v3110_v1 }
0x1e64   : > { %3114 = vst.msk [vmem:[#allocation2] sm:$0xff] %vm4190_vm8, %v3112_v5 }
0x1e6b   : > { %v5056_v6 = vld [vmem:[#allocation2] sm:$0xff] }
0x1e6c   : > { %v3118_v52 = vunpack.c.l.b16 %v5056_v6  ;;  %v3119_v10 = vunpack.c.h.b16 %v5056_v6 }
0x1e6e   : > { %v3120_v11 = vpack.c.b16 %v3118_v52, %v3118_v52  ;;  %v3121_v12 = vpack.c.b16 %v3119_v10, %v3119_v10 }
0x1e70   : > { %3172 = vrot.lane.b32.xlu0 %v3121_v12, %s3920_s29  ;;  %3158 = vrot.lane.b32.xlu1 %v3120_v11, %s3921_s27 }
0x1e71   : > { %3170 = vrot.lane.b32.xlu2 %v3120_v11, %s3920_s29 }
0x1e78   : > { %3164 = vrot.lane.b32.xlu0 %v3120_v11, %s3922_s28  ;;  %3166 = vrot.lane.b32.xlu1 %v3121_v12, %s3922_s28 }
0x1e79   : > { %3160 = vrot.lane.b32.xlu2 %v3121_v12, %s3921_s27 }
0x1e80   : > { %3149 = vrot.lane.b32.xlu0 %v3121_v12, %s5412_s14  ;;  %3152 = vrot.lane.b32.xlu1 %v3120_v11, %s3923_s18 }
0x1e81   : > { %3147 = vrot.lane.b32.xlu2 %v3120_v11, %s5412_s14 }
0x1e88   : > { %3137 = vrot.lane.b32.xlu0 %v3120_v11, %s5382_s5  ;;  %3139 = vrot.lane.b32.xlu1 %v3121_v12, %s5382_s5 }
0x1e89   : > { %3154 = vrot.lane.b32.xlu2 %v3121_v12, %s3923_s18  ;;  %s5457_s18 = sld [smem:[#allocation30_spill]] }
0x1e90   : > { %3144 = vrot.lane.b32.xlu0 %v3121_v12, %s5447_s26  ;;  %3127 = vrot.lane.b32.xlu1 %v3120_v11, %s5383_s17 }
0x1e91   : > { %3142 = vrot.lane.b32.xlu2 %v3120_v11, %s5447_s26 }
0x1e98   : > { %3132 = vrot.lane.b32.xlu0 %v3120_v11, %s5384_s19  ;;  %3134 = vrot.lane.b32.xlu1 %v3121_v12, %s5384_s19  ;;  %s5451_s19 = sld [smem:[#allocation39_spill]] }
0x1e99   : > { %3129 = vrot.lane.b32.xlu2 %v3121_v12, %s5383_s17 }
0x1e9e   : > { %v3116_v50 = vld [vmem:[%s5451_s19] sm:$0xf] }
0x1ea0   : > { %3124 = vrot.lane.b32.xlu0 %v3121_v12, %s5369_s8  ;;  %3199 = vperm.xlu1 %3791, %v3196_v13  }
0x1ea1   : > { %3122 = vrot.lane.b32.xlu2 %v3120_v11, %s5369_s8 }
0x1ecb   : > { %v3171_v58 = vpop.permute.xlu2 %3170 }
0x1ed3   : > { %v3161_v31 = vpop.permute.xlu2 %3160 }
0x1edb   : > { %v3148_v18 = vpop.permute.xlu2 %3147 }
0x1ee2   : > { %v3173_v14 = vpop.permute.xlu0 %3172  ;;  %v3159_v15 = vpop.permute.xlu1 %3158 }
0x1ee3   : > { %v3175_v9 = vsel %vm3174_vm4, %v3171_v58, %v3173_v14  ;;  %v3163_v21 = vsel %vm2576_vm14, %v3159_v15, %v3161_v31  ;;  %v3155_v25 = vpop.permute.xlu2 %3154  ;;  %vm5450_vm4 = vcmask 842752  }
0x1ee4   : > { %v3206_v7 = vsel %vm1296_vm11, %v3175_v9, 0 }
0x1ee5   : > { %3210 = vmatpush.bf16.msrb.mxu1 %v3206_v7 }
0x1eea   : > { %v3165_v19 = vpop.permute.xlu0 %3164  ;;  %v3167_v20 = vpop.permute.xlu1 %3166 }
0x1eeb   : > { %v3169_v22 = vsel %vm3168_vm10, %v3165_v19, %v3167_v20  ;;  %v3143_v36 = vpop.permute.xlu2 %3142  ;;  %vm5452_vm10 = vcmask 965632  }
0x1eec   : > { %v3194_v24 = vsel %vm1296_vm11, %v3163_v21, %v3169_v22 }
0x1eed   : > { %3211 = vmatpush.bf16.msrb.mxu1 %v3194_v24 }
0x1ef2   : > { %v3150_v27 = vpop.permute.xlu0 %3149  ;;  %v3153_v28 = vpop.permute.xlu1 %3152 }
0x1ef3   : > { %v3151_v16 = vsel %vm5448_vm12, %v3148_v18, %v3150_v27  ;;  %v3157_v30 = vsel %vm3156_vm2, %v3153_v28, %v3155_v25  ;;  %v3130_v26 = vpop.permute.xlu2 %3129  ;;  %vm5453_vm2 = vcmask 924672  }
0x1ef4   : > { %v3190_v32 = vsel %vm1296_vm11, %v3151_v16, %v3157_v30 }
0x1ef5   : > { %3212 = vmatpush.bf16.msrb.mxu1 %v3190_v32 }
0x1efa   : > { %v3138_v34 = vpop.permute.xlu0 %3137  ;;  %v3140_v35 = vpop.permute.xlu1 %3139 }
0x1efb   : > { %v3141_v39 = vsel %vm5449_vm5, %v3138_v34, %v3140_v35  ;;  %v3123_v46 = vpop.permute.xlu2 %3122  ;;  %vm5454_vm5 = vmmov %vm5452_vm10 }
0x1f02   : > { %v3145_v37 = vpop.permute.xlu0 %3144  ;;  %v3128_v38 = vpop.permute.xlu1 %3127 }
0x1f03   : > { %v3146_v40 = vsel %vm5450_vm4, %v3143_v36, %v3145_v37  ;;  %v3131_v44 = vsel %vm5452_vm10, %v3128_v38, %v3130_v26  ;;  %vm5455_vm4 = vcmask 982016  }
0x1f04   : > { %v3186_v41 = vsel %vm1296_vm11, %v3141_v39, %v3146_v40 }
0x1f05   : > { %3213 = vmatpush.bf16.msrb.mxu1 %v3186_v41 }
0x1f0a   : > { %v3133_v42 = vpop.permute.xlu0 %3132  ;;  %v3135_v43 = vpop.permute.xlu1 %3134 }
0x1f0b   : > { %v3136_v8 = vsel %vm5453_vm2, %v3133_v42, %v3135_v43 }
0x1f0c   : > { %v3182_v45 = vsel %vm1296_vm11, %v3131_v44, %v3136_v8 }
0x1f0d   : > { %3214 = vmatpush.bf16.msrb.mxu1 %v3182_v45 }
0x1f12   : > { %v3125_v47 = vpop.permute.xlu0 %3124  ;;  %v3200_v51 = vpop.permute.xlu1 %3199 }
0x1f13   : > { %v3126_v48 = vsel %vm1586_vm6, %v3123_v46, %v3125_v47 }
0x1f14   : > { %v3178_v49 = vsel %vm1296_vm11, %v5056_v6, %v3126_v48 }
0x1f15   : > { %3215 = vmatpush.bf16.msrb.mxu1 %v3178_v49  ;;  %v3319_v49 = vld [vmem:[%s4112_s20] sm:$0xff] }
0x1f18   : > { %3670 = vmatmul.msk.bf16.vlgmr.msrb.gmra.mxu1 %vm2576_vm14, %v3116_v50  ;;  %v2379_v50 = vld [vmem:[%s5457_s18] sm:$0xff] }
0x1f95   : > { %v3217_v53 = vpop.f32.mrf.mxu1 }
0x1f96   : > { %v3218_v54 = vadd.f32 %v3217_v53, %v3200_v51 }
0x1f98   : > { %vm3221_vm12 = vcmp.ge.f32.partialorder %v3218_v54, 0.0  ;;  %v3222_v55 = vmul.f32 0.1, %v3218_v54 }
0x1f9a   : > { %v3223_v56 = vsel %vm3221_vm12, %v3218_v54, %v3222_v55 }
0x1f9b   : > { %v3224_v57 = vpack.c.bf16 %v3223_v56, %v3223_v56 }
0x1f9d   : > { %v3219_v59 = vpop.f32.mrf.mxu1  ;;  %3226 = vrot.lane.b32.xlu2 %v3224_v57, %s5367_s3 }
0x1ff7   : > { %v3227_v23 = vpop.permute.xlu2 %3226 }
0x1ff8   : > { %v3228_v61 = vrot.slane %v3227_v23, 4 }
0x1ffa   : > { %v3229_v62 = vsel %vm1270_vm7, %v3228_v61, %v3227_v23 }
0x1ffb   : > { %3231 = vst.msk [vmem:[#allocation2] sm:$0xff] %vm4190_vm8, %v3229_v62 }
0x2002   : > { %v3232_v63 = vld [vmem:[#allocation2] sm:$0xff] }
0x2003   : > { %v3235_v0 = vunpack.c.l.b16 %v3232_v63  ;;  %v3236_v1 = vunpack.c.h.b16 %v3232_v63 }
0x2005   : > { %v5093_v2 = vpack.c.b16 %v3235_v0, %v3235_v0  ;;  %v5095_v5 = vpack.c.b16 %v3236_v1, %v3236_v1 }
0x2007   : > { %3286 = vrot.lane.b32.xlu1 %v5095_v5, %s5383_s17  ;;  %3274 = vrot.lane.b32.xlu2 %v5093_v2, %s5434_s2 }
0x2008   : > { %3284 = vrot.lane.b32.xlu0 %v5093_v2, %s5383_s17  ;;  %s5456_s17 = sld [smem:[#allocation18_spill]] }
0x200e   : > { %v1673_v46 = vld [vmem:[%s5456_s17] sm:$0xff] }
0x200f   : > { %3279 = vrot.lane.b32.xlu1 %v5093_v2, %s5392_s12  ;;  %3281 = vrot.lane.b32.xlu2 %v5095_v5, %s5392_s12 }
0x2010   : > { %3276 = vrot.lane.b32.xlu0 %v5095_v5, %s5434_s2 }
0x2017   : > { %3266 = vrot.lane.b32.xlu1 %v5095_v5, %s5368_s1  ;;  %3269 = vrot.lane.b32.xlu2 %v5093_v2, %s5402_s21 }
0x2018   : > { %3264 = vrot.lane.b32.xlu0 %v5093_v2, %s5368_s1 }
0x201f   : > { %3254 = vrot.lane.b32.xlu1 %v5093_v2, %s5379_s6  ;;  %3256 = vrot.lane.b32.xlu2 %v5095_v5, %s5379_s6 }
0x2020   : > { %3271 = vrot.lane.b32.xlu0 %v5095_v5, %s5402_s21 }
0x2027   : > { %3261 = vrot.lane.b32.xlu1 %v5095_v5, %s5369_s8  ;;  %3244 = vrot.lane.b32.xlu2 %v5093_v2, %s5360_s23 }
0x2028   : > { %3259 = vrot.lane.b32.xlu0 %v5093_v2, %s5369_s8 }
0x202f   : > { %3249 = vrot.lane.b32.xlu1 %v5093_v2, %s5370_s9  ;;  %3251 = vrot.lane.b32.xlu2 %v5095_v5, %s5370_s9 }
0x2030   : > { %3246 = vrot.lane.b32.xlu0 %v5095_v5, %s5360_s23 }
0x2037   : > { %3241 = vrot.lane.b32.xlu1 %v5095_v5, %s5361_s11 }
0x2038   : > { %3239 = vrot.lane.b32.xlu0 %v5093_v2, %s5361_s11 }
0x2061   : > { %v3275_v6 = vpop.permute.xlu2 %3274 }
0x2069   : > { %v3282_v52 = vpop.permute.xlu2 %3281 }
0x2071   : > { %v3270_v31 = vpop.permute.xlu2 %3269 }
0x2079   : > { %v3287_v10 = vpop.permute.xlu1 %3286  ;;  %v3257_v7 = vpop.permute.xlu2 %3256 }
0x207a   : > { %v3285_v11 = vpop.permute.xlu0 %3284  ;;  %3357 = vrot.lane.b32.xlu0 %v3287_v10, %s5382_s5 }
0x207b   : > { %v3288_v12 = vsel %vm5454_vm5, %v3285_v11, %v3287_v10 }
0x207c   : > { %3355 = vrot.lane.b32.xlu2 %v3288_v12, %s5382_s5  ;;  %v3233_v12 = vld [vmem:[%s4107_s24] sm:$0xf] }
0x2081   : > { %v3280_v13 = vpop.permute.xlu1 %3279  ;;  %v3245_v25 = vpop.permute.xlu2 %3244 }
0x2082   : > { %v3277_v58 = vpop.permute.xlu0 %3276  ;;  %v3283_v27 = vsel %vm1977_vm15, %v3280_v13, %v3282_v52  ;;  %vm5458_vm15 = vcmask 1039360  }
0x2083   : > { %v3318_v14 = vsel %vm1296_vm11, %v3277_v58, %v3282_v52  ;;  %v3278_v28 = vsel %vm5455_vm4, %v3275_v6, %v3277_v58 }
0x2084   : > { %3353 = vrot.lane.b32.xlu2 %v3318_v14, %s5382_s5  ;;  %v3315_v36 = vsel %vm1296_vm11, %v3278_v28, %v3283_v27 }
0x2089   : > { %v3267_v15 = vpop.permute.xlu1 %3266  ;;  %v3252_v38 = vpop.permute.xlu2 %3251 }
0x208a   : > { %v3265_v9 = vpop.permute.xlu0 %3264 }
0x208b   : > { %v3268_v20 = vsel %vm1444_vm0, %v3265_v9, %v3267_v15 }
0x2091   : > { %v3255_v18 = vpop.permute.xlu1 %3254 }
0x2092   : > { %v3272_v19 = vpop.permute.xlu0 %3271  ;;  %v3258_v34 = vsel %vm1739_vm3, %v3255_v18, %v3257_v7 }
0x2093   : > { %v3273_v21 = vsel %vm2477_vm13, %v3270_v31, %v3272_v19  ;;  %v3312_v22 = vsel %vm1296_vm11, %v3267_v15, %v3272_v19  ;;  %vm5459_vm13 = vcmask 883712  }
0x2094   : > { %3349 = vrot.lane.b32.xlu1 %v3312_v22, %s5382_s5  ;;  %v3309_v24 = vsel %vm1296_vm11, %v3268_v20, %v3273_v21  ;;  %vm5460_vm10 = vmmov %vm5459_vm13 }
0x2095   : > { %3347 = vrot.lane.b32.xlu0 %v3309_v24, %s5382_s5  ;;  %vm5461_vm2 = vmmov %vm5460_vm10 }
0x2096   : > { %vm5462_vm12 = vmmov %vm5461_vm2 }
0x2097   : > { %vm5463_vm5 = vmmov %vm5461_vm2 }
0x2098   : > { %vm5464_vm4 = vmmov %vm5461_vm2 }
0x2099   : > { %v3262_v16 = vpop.permute.xlu1 %3261 }
0x209a   : > { %v3306_v30 = vsel %vm1296_vm11, %v3257_v7, %v3262_v16  ;;  %v3260_v32 = vpop.permute.xlu0 %3259 }
0x209b   : > { %v3263_v35 = vsel %vm1586_vm6, %v3260_v32, %v3262_v16 }
0x209c   : > { %3351 = vrot.lane.b32.xlu1 %v3315_v36, %s5382_s5  ;;  %v3303_v37 = vsel %vm1296_vm11, %v3258_v34, %v3263_v35 }
0x209d   : > { %3345 = vrot.lane.b32.xlu0 %v3306_v30, %s5382_s5  ;;  %3343 = vrot.lane.b32.xlu2 %v3303_v37, %s5382_s5 }
0x20a1   : > { %v3250_v39 = vpop.permute.xlu1 %3249 }
0x20a2   : > { %v3253_v40 = vsel %vm1438_vm1, %v3250_v39, %v3252_v38  ;;  %v3247_v41 = vpop.permute.xlu0 %3246 }
0x20a3   : > { %v3248_v26 = vsel %vm1294_vm9, %v3245_v25, %v3247_v41  ;;  %v3300_v42 = vsel %vm1296_vm11, %v3247_v41, %v3252_v38 }
0x20a4   : > { %v3297_v43 = vsel %vm1296_vm11, %v3248_v26, %v3253_v40 }
0x20a5   : > { %3341 = vrot.lane.b32.xlu2 %v3300_v42, %s5382_s5  ;;  %3339 = vrot.lane.b32.xlu1 %v3297_v43, %s5382_s5 }
0x20a9   : > { %v3242_v44 = vpop.permute.xlu1 %3241 }
0x20aa   : > { %v3294_v8 = vsel %vm1296_vm11, %v5095_v5, %v3242_v44  ;;  %v3240_v45 = vpop.permute.xlu0 %3239 }
0x20ab   : > { %v3243_v47 = vsel %vm5458_vm15, %v3240_v45, %v3242_v44 }
0x20ac   : > { %v3291_v48 = vsel %vm1296_vm11, %v5093_v2, %v3243_v47 }
0x20ad   : > { %1676 = vperm.xlu2 %3790, %v1673_v46   ;;  %3337 = vrot.lane.b32.xlu1 %v3294_v8, %s5382_s5 }
0x20ae   : > { %3335 = vrot.lane.b32.xlu0 %v3291_v48, %s5382_s5 }
0x20b5   : > { %3322 = vperm.xlu1 %3791, %v3319_v49  }
0x20b6   : > { %2382 = vperm.xlu0 %3789, %v2379_v50  }
0x20d6   : > { %v3356_v51 = vpop.permute.xlu2 %3355 }
0x20de   : > { %v3354_v57 = vpop.permute.xlu2 %3353 }
0x20ec   : > { %v3358_v53 = vpop.permute.xlu0 %3357 }
0x20ed   : > { %v3364_v54 = vsel %vm5459_vm13, %v3356_v51, %v3358_v53 }
0x20ee   : > { %v3374_v55 = vsel %vm1296_vm11, %v3364_v54, 0 }
0x20ef   : > { %3378 = vmatpush.bf16.msrb.mxu2 %v3374_v55 }
0x20f7   : > { %v3344_v62 = vpop.permute.xlu2 %3343 }
0x20ff   : > { %v3342_v5 = vpop.permute.xlu2 %3341 }
0x2106   : > { %v3350_v56 = vpop.permute.xlu1 %3349 }
0x2107   : > { %v3348_v59 = vpop.permute.xlu0 %3347  ;;  %v1677_v58 = vpop.permute.xlu2 %1676 }
0x2108   : > { %v3362_v63 = vsel %vm5461_vm2, %v3348_v59, %v3350_v56  ;;  %v1708_v14 = vadd.f32 %v4508_v3, %v1677_v58 }
0x210a   : > { %v1711_v18 = vadd.f32 %v1708_v14, %v4291_v33 }
0x210e   : > { %v3352_v23 = vpop.permute.xlu1 %3351 }
0x210f   : > { %v3363_v61 = vsel %vm5460_vm10, %v3352_v23, %v3354_v57  ;;  %v3346_v0 = vpop.permute.xlu0 %3345 }
0x2110   : > { %3379 = vmatpush.bf16.msrb.mxu2 %v3363_v61  ;;  %v3361_v2 = vsel %vm5462_vm12, %v3344_v62, %v3346_v0 }
0x2114   : > { %3380 = vmatpush.bf16.msrb.mxu2 %v3362_v63 }
0x2117   : > { %v3340_v1 = vpop.permute.xlu1 %3339 }
0x2118   : > { %3381 = vmatpush.bf16.msrb.mxu2 %v3361_v2  ;;  %v3360_v6 = vsel %vm5463_vm5, %v3340_v1, %v3342_v5 }
0x211c   : > { %3382 = vmatpush.bf16.msrb.mxu2 %v3360_v6 }
0x211f   : > { %v3338_v52 = vpop.permute.xlu1 %3337 }
0x2120   : > { %v3336_v10 = vpop.permute.xlu0 %3335 }
0x2121   : > { %v3359_v11 = vsel %vm5464_vm4, %v3336_v10, %v3338_v52 }
0x2122   : > { %3383 = vmatpush.bf16.msrb.mxu2 %v3359_v11  ;;  %v3404_v11 = vld [vmem:[%s4117_s4] sm:$0x1] }
0x2125   : > { %3671 = vmatmul.msk.bf16.vlgmr.msrb.gmra.mxu2 %vm2576_vm14, %v3233_v12 }
0x2127   : > { %v3323_v9 = vpop.permute.xlu1 %3322 }
0x2128   : > { %v2383_v13 = vpop.permute.xlu0 %2382 }
0x2129   : > { %v2430_v31 = vadd.f32 %v4952_v17, %v2383_v13 }
0x212b   : > { %v2433_v15 = vadd.f32 %v2430_v31, %v4555_v4 }
0x212d   : > { %v2434_v20 = vadd.f32 %v2433_v15, %v1711_v18 }
0x21a8   : > { %v3385_v7 = vpop.f32.mrf.mxu2 }
0x21a9   : > { %v3386_v19 = vadd.f32 %v3385_v7, %v3323_v9 }
0x21ab   : > { %v3389_v21 = vadd.f32 %v3386_v19, %v5047_v60 }
0x21ad   : > { %v3390_v22 = vadd.f32 %v3389_v21, %v2434_v20 }
0x21af   : > { %v3391_v24 = vmul.f32 0.33333334, %v3390_v22 }
0x21b0   : > { %v3387_v25 = vpop.f32.mrf.mxu2 }
0x21b1   : > { %vm3392_vm14 = vcmp.ge.f32.partialorder %v3391_v24, 0.0  ;;  %v3393_v27 = vmul.f32 0.1, %v3391_v24 }
0x21b3   : > { %v3394_v28 = vsel %vm3392_vm14, %v3391_v24, %v3393_v27 }
0x21b4   : > { %v3395_v16 = vpack.c.bf16 %v3394_v28, %v3394_v28 }
0x21b6   : > { %3397 = vrot.lane.b32.xlu2 %v3395_v16, %s5367_s3 }
0x2210   : > { %v3398_v3 = vpop.permute.xlu2 %3397 }
0x2211   : > { %v3399_v17 = vrot.slane %v3398_v3, 4 }
0x2213   : > { %v3400_v4 = vsel %vm1270_vm7, %v3399_v17, %v3398_v3  ;;  %vm5465_vm7 = vmmov %vm5458_vm15 }
0x2214   : > { %3402 = vst.msk [vmem:[#allocation2] sm:$0xff] %vm4190_vm8, %v3400_v4  ;;  %vm5466_vm8 = vcmask 867328  }
0x221b   : > { %v3403_v33 = vld [vmem:[#allocation2] sm:$0xff] }
0x221c   : > { %v3407_v30 = vunpack.c.h.b16 %v3403_v33  ;;  %v3406_v32 = vunpack.c.l.b16 %v3403_v33 }
0x221e   : > { %v3409_v60 = vpack.c.b16 %v3407_v30, %v3407_v30  ;;  %v3408_v34 = vpack.c.b16 %v3406_v32, %v3406_v32 }
0x2220   : > { %3437 = vrot.lane.b32.xlu1 %v3409_v60, %s5368_s1  ;;  %3425 = vrot.lane.b32.xlu2 %v3408_v34, %s5379_s6 }
0x2221   : > { %3435 = vrot.lane.b32.xlu0 %v3408_v34, %s5368_s1 }
0x2228   : > { %3430 = vrot.lane.b32.xlu1 %v3408_v34, %s5369_s8  ;;  %3432 = vrot.lane.b32.xlu2 %v3409_v60, %s5369_s8 }
0x2229   : > { %3427 = vrot.lane.b32.xlu0 %v3409_v60, %s5379_s6 }
0x2230   : > { %3417 = vrot.lane.b32.xlu1 %v3409_v60, %s5360_s23  ;;  %3420 = vrot.lane.b32.xlu2 %v3408_v34, %s5370_s9 }
0x2231   : > { %3415 = vrot.lane.b32.xlu0 %v3408_v34, %s5360_s23 }
0x2238   : > { %3410 = vrot.lane.b32.xlu1 %v3408_v34, %s5361_s11  ;;  %3412 = vrot.lane.b32.xlu2 %v3409_v60, %s5361_s11 }
0x2239   : > { %3422 = vrot.lane.b32.xlu0 %v3409_v60, %s5370_s9  ;;  %s1145_s9 = sand.u32 1, %s3848_s16  }
0x223a   : > { %s1146_s3 = scalar_lea.vmem [#allocation3], %s1145_s9  ;;  %s3509_s1 = scalar_lea.sflag [#allocation4], %s1145_s9 }
0x223b   : > { %s3519_s8 = sshll.u32 %s1146_s3, 4  ;;  %s3520_s8 = int_to_ptr.vmem [resolvable:$true] %s3519_s8 }
0x227a   : > { %v3426_v29 = vpop.permute.xlu2 %3425 }
0x2282   : > { %v3433_v38 = vpop.permute.xlu2 %3432 }
0x228a   : > { %v3421_v44 = vpop.permute.xlu2 %3420 }
0x2292   : > { %v3438_v35 = vpop.permute.xlu1 %3437  ;;  %v3413_v46 = vpop.permute.xlu2 %3412 }
0x2293   : > { %v3436_v36 = vpop.permute.xlu0 %3435  ;;  %3478 = vrot.lane.b32.xlu1 %v3438_v35, %s5371_s13  ;;  %v3445_v56 = vsel %vm1296_vm11, %v3409_v60, %v3413_v46 }
0x2294   : > { %v3439_v37 = vsel %vm1444_vm0, %v3436_v36, %v3438_v35  ;;  %vm5468_vm0 = vmmov %vm5466_vm8 }
0x2295   : > { %3476 = vrot.lane.b32.xlu0 %v3439_v37, %s5371_s13 }
0x229a   : > { %v3431_v39 = vpop.permute.xlu1 %3430 }
0x229b   : > { %v3434_v40 = vsel %vm1586_vm6, %v3431_v39, %v3433_v38  ;;  %v3428_v41 = vpop.permute.xlu0 %3427 }
0x229c   : > { %v3429_v26 = vsel %vm1739_vm3, %v3426_v29, %v3428_v41  ;;  %v3457_v42 = vsel %vm1296_vm11, %v3428_v41, %v3433_v38 }
0x229d   : > { %3474 = vrot.lane.b32.xlu0 %v3457_v42, %s5371_s13  ;;  %v3454_v43 = vsel %vm1296_vm11, %v3429_v26, %v3434_v40 }
0x229e   : > { %3472 = vrot.lane.b32.xlu2 %v3454_v43, %s5371_s13 }
0x22a2   : > { %v3418_v8 = vpop.permute.xlu1 %3417 }
0x22a3   : > { %v3416_v45 = vpop.permute.xlu0 %3415 }
0x22a4   : > { %v3419_v50 = vsel %vm1294_vm9, %v3416_v45, %v3418_v8  ;;  %vm5467_vm9 = vmmov %vm5466_vm8 }
0x22aa   : > { %v3411_v47 = vpop.permute.xlu1 %3410 }
0x22ab   : > { %v3414_v48 = vsel %vm5465_vm7, %v3411_v47, %v3413_v46  ;;  %v3423_v49 = vpop.permute.xlu0 %3422 }
0x22ac   : > { %v3424_v51 = vsel %vm1438_vm1, %v3421_v44, %v3423_v49  ;;  %v3451_v53 = vsel %vm1296_vm11, %v3418_v8, %v3423_v49  ;;  %v3442_v54 = vsel %vm1296_vm11, %v3408_v34, %v3414_v48  ;;  %vm5469_vm1 = vmmov %vm5468_vm0 }
0x22ad   : > { %3470 = vrot.lane.b32.xlu2 %v3451_v53, %s5371_s13  ;;  %3464 = vrot.lane.b32.xlu0 %v3442_v54, %s5371_s13  ;;  %v3448_v55 = vsel %vm1296_vm11, %v3419_v50, %v3424_v51 }
0x22ae   : > { %3468 = vrot.lane.b32.xlu1 %v3448_v55, %s5371_s13 }
0x22b6   : > { %3466 = vrot.lane.b32.xlu1 %v3445_v56, %s5371_s13  ;;  %s3517_s13 = scalar_lea.hbm %s4122_s30, %s4145_s0  ;;  %s3814_s0 = scalar_lea.hbm %s4122_s30, 2 }
0x22b7   : > { %s3521_s26 = sshll.u32 %s3517_s13, 4  ;;  %s3522_s26 = int_to_ptr.hbm [resolvable:$true] %s3521_s26 }
0x22b8   : > { %s3808_s11 = sshra.s32 %s3522_s26, 4  ;;  %s3809_s11 = int_to_ptr.hbm [resolvable:$true] %s3808_s11 }
0x22b9   : > { %s3810_s23 = scalar_lea.hbm %s3809_s11, 1  ;;  %p3815_p0 = scmp.lt.s32.totalorder %s3809_s11, %s4122_s30 }
0x22ba   : > { %p3811_p11 = scmp.ne.s32.totalorder %s3809_s11, %s3810_s23  ;;  %p3816_p1 = scmp.lt.s32.totalorder %s3814_s0, %s3810_s23 }
0x22bc   : > { %p3812_p12 = pnand %p3811_p11, %p4162_p5  ;;  %p3817_p2 = por %p3816_p1, %p3815_p0 }
0x22be   : > { %p3813_p13 = pneg %p3812_p12 }
0x22c0   : > { %p3818_p3 = pnand %p3817_p2, %p3813_p13 }
0x22f8   : > { %v3473_v62 = vpop.permute.xlu2 %3472 }
0x2305   : > { %v3479_v57 = vpop.permute.xlu1 %3478 }
0x2307   : > { %v3477_v59 = vpop.permute.xlu0 %3476  ;;  %v3471_v1 = vpop.permute.xlu2 %3470 }
0x2308   : > { %v3483_v23 = vsel %vm5466_vm8, %v3477_v59, %v3479_v57 }
0x2309   : > { %v3491_v61 = vsel %vm1296_vm11, %v3483_v23, 0  ;;  %vm5470_vm11 = vcmask 457728  }
0x230a   : > { %3497 = vmatpush.bf16.msrb.mxu3 %v3491_v61 }
0x230f   : > { %v3475_v63 = vpop.permute.xlu0 %3474 }
0x2310   : > { %v3482_v0 = vsel %vm5467_vm9, %v3473_v62, %v3475_v63 }
0x2311   : > { %3498 = vmatpush.bf16.msrb.mxu3 %v3482_v0 }
0x231f   : > { %v3465_v6 = vpop.permute.xlu0 %3464 }
0x2320   : > { %v3469_v2 = vpop.permute.xlu1 %3468 }
0x2321   : > { %v3481_v5 = vsel %vm5468_vm0, %v3469_v2, %v3471_v1 }
0x2322   : > { %3499 = vmatpush.bf16.msrb.mxu3 %v3481_v5 }
0x2328   : > { %v3467_v52 = vpop.permute.xlu1 %3466 }
0x2329   : > { %v3480_v10 = vsel %vm5469_vm1, %v3465_v6, %v3467_v52 }
0x232a   : > { %3500 = vmatpush.bf16.msrb.mxu3 %v3480_v10 }
0x232d   : > { %3672 = vmatmul.msk.bf16.vlgmr.msrb.gmra.mxu3 %vm5470_vm11, %v3404_v11 }
0x23b0   : > { %v3502_v12 = vpop.f32.mrf.mxu3 }
0x23b1   : > { %3792 = vtanh.f32 %v3502_v12 }
0x23b7   : > { %v3793_v13 = vpop.eup %3792 }
0x23b8   : > { %v3504_v58 = vpop.f32.mrf.mxu3  ;;  %3507 = vst [vmem:[%s1146_s3] sm:$0x1] %v3793_v13 }
0x23b9   : > { %3821 = shalt.err (!%p3818_p3)
}
0x23ba   : > { %3684 = dma.vmem_to_hbm [thread:$0]  (%p4162_p5), %s3520_s8, 16, %s3522_s26, %s3509_s1  }
0x23bb PF: > { %p3690_p4 = scmp.ge.s32.totalorder %s3856_s22, 2  ;;  %s3533_s6 = sand.u32 1, %s3844_s15  }
0x23bc   : > { %s3534_s5 = scalar_lea.sflag [#allocation4], %s3533_s6 }
0x23bd   : > { %p3687_p7 = pnand %p3690_p4, %p4166_p6 }
0x23bf   : > { %p3688_p8 = pneg %p3687_p7 }
0x23c1   : > { %3839 = dma.done.wait (%p3688_p8), %s3534_s5, 16  }
0x23c2   : > { %3841 = vsyncadd (%p3688_p8), %s3534_s5, 4294967280  ;;  %s5471_s22 = sld [smem:[#allocation42_spill]]  ;;  %s5474_s15 = smov %s3848_s16 }
0x23c3   : > { %s5472_s12 = sld [smem:[#allocation41_spill]] }
0x23c4   : > { %s5473_s18 = sld [smem:[#allocation43_spill]] }
0x23c8   : > { %p87_p9 = scmp.ge.s32.totalorder %s5471_s22, 4  }
0x23c9   : > { %s5475_s16 = smov %s5472_s12 }
0x23ca   :  { %89 = sbr.rel (!%p87_p9) target bundleno = 88 (0x58), region = 245 }
0x23cf   :  { %3539 = vsyncpa [#allocation4], 1 }
0x23d0   :  { %3541 = vsyncpa [#allocation4 + $0x1], 1 }

// kernel: hifigan_forward.4
= control target key start
LH: loop header
LB: loop body
LE: loop exit
PB: predicated region body
PF: predicated region fallthrough
CT: control target
= control target key end

     0   :  { %s4792_s6 = smov 1   ;;  %s4793_s10 = smov 2   ;;  %s5724_s0 = inlined_call_operand.smem [shape: u32[40], index: -1, kind: input, shape index: {}] }
   0x1   :  { %s4882_s5 = sld [smem:[%s5724_s0]]   ;;  %s4794_s14 = smov 3  }
   0x2   :  { %s4887_s9 = sld [smem:[%s5724_s0 + %s4792_s6]]   ;;  %s4795_s18 = smov 4  }
   0x3   :  { %s4892_s13 = sld [smem:[%s5724_s0 + %s4793_s10]]   ;;  %s4796_s22 = smov 5  }
   0x4   :  { %s4897_s17 = sld [smem:[%s5724_s0 + %s4794_s14]]   ;;  %s4797_s26 = smov 6  }
   0x5   :  { %s4902_s21 = sld [smem:[%s5724_s0 + %s4795_s18]]   ;;  %s4798_s30 = smov 7  }
   0x6   :  { %s4907_s25 = sld [smem:[%s5724_s0 + %s4796_s22]]   ;;  %s4799_s4 = smov 8  }
   0x7   :  { %5811 = sst [smem:[#allocation3_spill]] %s4882_s5  ;;  %s4800_s10 = smov 9  }
   0x8   :  { %5812 = sst [smem:[#allocation4_spill]] %s4887_s9  ;;  %s4801_s15 = smov 10  }
   0x9   :  { %5813 = sst [smem:[#allocation5_spill]] %s4892_s13  ;;  %s4802_s20 = smov 11  }
   0xa   :  { %5814 = sst [smem:[#allocation6_spill]] %s4897_s17  ;;  %s4804_s1 = smov 13  }
   0xb   :  { %5815 = sst [smem:[#allocation7_spill]] %s4902_s21  ;;  %s4805_s7 = smov 14  }
   0xc   :  { %5816 = sst [smem:[#allocation8_spill]] %s4907_s25  ;;  %s4807_s22 = smov 16  }
   0xd   :  { %s4912_s29 = sld [smem:[%s5724_s0 + %s4797_s26]]   ;;  %s4803_s26 = smov 12  }
   0xe   :  { %s4917_s3 = sld [smem:[%s5724_s0 + %s4798_s30]]   ;;  %s4808_s28 = smov 17  }
   0xf   :  { %s4922_s8 = sld [smem:[%s5724_s0 + %s4799_s4]]  }
  0x10   :  { %s4927_s14 = sld [smem:[%s5724_s0 + %s4800_s10]]  }
  0x11   :  { %s4932_s19 = sld [smem:[%s5724_s0 + %s4801_s15]]   ;;  %s4806_s15 = smov 15  }
  0x12   :  { %s4937_s24 = sld [smem:[%s5724_s0 + %s4802_s20]]  }
  0x13   :  { %5817 = sst [smem:[#allocation9_spill]] %s4912_s29 }
  0x14   :  { %5818 = sst [smem:[#allocation10_spill]] %s4917_s3 }
  0x15   :  { %5819 = sst [smem:[#allocation11_spill]] %s4922_s8 }
  0x16   :  { %5820 = sst [smem:[#allocation12_spill]] %s4927_s14 }
  0x17   :  { %5821 = sst [smem:[#allocation13_spill]] %s4932_s19 }
  0x18   :  { %5822 = sst [smem:[#allocation14_spill]] %s4937_s24 }
  0x19   :  { %s4942_s30 = sld [smem:[%s5724_s0 + %s4803_s26]]  }
  0x1a   :  { %s4947_s6 = sld [smem:[%s5724_s0 + %s4804_s1]]  }
  0x1b   :  { %s4952_s12 = sld [smem:[%s5724_s0 + %s4805_s7]]   ;;  %s4809_s7 = smov 18  }
  0x1c   :  { %s4957_s20 = sld [smem:[%s5724_s0 + %s4806_s15]]   ;;  %s4810_s15 = smov 19  }
  0x1d   :  { %s4962_s27 = sld [smem:[%s5724_s0 + %s4807_s22]]   ;;  %s4811_s22 = smov 20  }
  0x1e   :  { %s4967_s4 = sld [smem:[%s5724_s0 + %s4808_s28]]   ;;  %s4812_s28 = smov 21  }
  0x1f   :  { %5823 = sst [smem:[#allocation15_spill]] %s4942_s30 }
  0x20   :  { %5824 = sst [smem:[#allocation16_spill]] %s4947_s6 }
  0x21   :  { %5825 = sst [smem:[#allocation17_spill]] %s4952_s12 }
  0x22   :  { %5826 = sst [smem:[#allocation18_spill]] %s4957_s20 }
  0x23   :  { %5827 = sst [smem:[#allocation19_spill]] %s4962_s27 }
  0x24   :  { %5828 = sst [smem:[#allocation20_spill]] %s4967_s4 }
  0x25   :  { %s4972_s30 = sld [smem:[%s5724_s0 + %s4809_s7]]   ;;  %s4813_s7 = smov 22  }
  0x26   :  { %s4977_s24 = sld [smem:[%s5724_s0 + %s4810_s15]]   ;;  %s4814_s15 = smov 23  }
  0x27   :  { %s4982_s20 = sld [smem:[%s5724_s0 + %s4811_s22]]   ;;  %s4815_s22 = smov 24  }
  0x28   :  { %s4987_s4 = sld [smem:[%s5724_s0 + %s4812_s28]]   ;;  %s4816_s28 = smov 25  }
  0x2b   :  { %5829 = sst [smem:[#allocation21_spill]] %s4972_s30 }
  0x2c   :  { %5830 = sst [smem:[#allocation22_spill]] %s4977_s24 }
  0x2d   :  { %5831 = sst [smem:[#allocation23_spill]] %s4982_s20 }
  0x2e   :  { %5832 = sst [smem:[#allocation24_spill]] %s4987_s4 }
  0x2f   :  { %s4992_s30 = sld [smem:[%s5724_s0 + %s4813_s7]]   ;;  %s4817_s7 = smov 26  }
  0x30   :  { %s4997_s24 = sld [smem:[%s5724_s0 + %s4814_s15]]   ;;  %s4818_s15 = smov 27  }
  0x31   :  { %s5002_s20 = sld [smem:[%s5724_s0 + %s4815_s22]]   ;;  %s4819_s22 = smov 28  }
  0x32   :  { %s5007_s4 = sld [smem:[%s5724_s0 + %s4816_s28]]   ;;  %s4820_s28 = smov 29  }
  0x35   :  { %5833 = sst [smem:[#allocation25_spill]] %s4992_s30 }
  0x36   :  { %5834 = sst [smem:[#allocation26_spill]] %s4997_s24 }
  0x37   :  { %5835 = sst [smem:[#allocation27_spill]] %s5002_s20 }
  0x38   :  { %5836 = sst [smem:[#allocation28_spill]] %s5007_s4 }
  0x39   :  { %s5012_s30 = sld [smem:[%s5724_s0 + %s4817_s7]]   ;;  %s4821_s7 = smov 30  }
  0x3a   :  { %s5017_s24 = sld [smem:[%s5724_s0 + %s4818_s15]]   ;;  %s4822_s15 = smov 31  }
  0x3b   :  { %s5022_s20 = sld [smem:[%s5724_s0 + %s4819_s22]]   ;;  %s4823_s22 = smov 32  }
  0x3c   :  { %s5027_s4 = sld [smem:[%s5724_s0 + %s4820_s28]]   ;;  %s4824_s28 = smov 33  }
  0x3f   :  { %5837 = sst [smem:[#allocation29_spill]] %s5012_s30 }
  0x40   :  { %5838 = sst [smem:[#allocation30_spill]] %s5017_s24 }
  0x41   :  { %5839 = sst [smem:[#allocation31_spill]] %s5022_s20 }
  0x42   :  { %5840 = sst [smem:[#allocation32_spill]] %s5027_s4 }
  0x43   :  { %s5032_s30 = sld [smem:[%s5724_s0 + %s4821_s7]]   ;;  %s4825_s7 = smov 34  }
  0x44   :  { %s5037_s24 = sld [smem:[%s5724_s0 + %s4822_s15]]   ;;  %s4826_s15 = smov 35  }
  0x45   :  { %s5042_s20 = sld [smem:[%s5724_s0 + %s4823_s22]]   ;;  %s4827_s22 = smov 36  }
  0x46   :  { %s5047_s4 = sld [smem:[%s5724_s0 + %s4824_s28]]   ;;  %s4828_s28 = smov 37  }
  0x49   :  { %5841 = sst [smem:[#allocation33_spill]] %s5032_s30 }
  0x4a   :  { %5842 = sst [smem:[#allocation34_spill]] %s5037_s24 }
  0x4b   :  { %5843 = sst [smem:[#allocation35_spill]] %s5042_s20 }
  0x4c   :  { %5844 = sst [smem:[#allocation36_spill]] %s5047_s4 }
  0x4d   :  { %s5052_s30 = sld [smem:[%s5724_s0 + %s4825_s7]]   ;;  %s4829_s7 = smov 38  }
  0x4e   :  { %s5057_s24 = sld [smem:[%s5724_s0 + %s4826_s15]]   ;;  %s4830_s15 = smov 39  }
  0x4f   :  { %s5062_s20 = sld [smem:[%s5724_s0 + %s4827_s22]]   ;;  %s5079_s22 = smov 0  }
  0x50   :  { %s5067_s4 = sld [smem:[%s5724_s0 + %s4828_s28]]  }
  0x53   :  { %5845 = sst [smem:[#allocation37_spill]] %s5052_s30 }
  0x54   :  { %5846 = sst [smem:[#allocation38_spill]] %s5057_s24 }
  0x55   :  { %s5072_s30 = sld [smem:[%s5724_s0 + %s4829_s7]]  }
  0x56   :  { %s5077_s24 = sld [smem:[%s5724_s0 + %s4830_s15]]  }
  0x5c   :  { %5847 = sst [smem:[#allocation39_spill]] %s5077_s24 }
  0x5d LB: > { %s5848_s29 = sld [smem:[#allocation9_spill]]  ;;  %s4346_s23 = sadd.s32 4294967295, %s4790_s22   ;;  %s4790_s22 = sphi %s5079_s22, %s89_s22  }
  0x5e   : > { %s5849_s27 = sld [smem:[#allocation19_spill]]  ;;  %p4350_p0 = scmp.ge.s32.totalorder %s4790_s22, 1 }
  0x5f   : > { %s5850_s21 = sld [smem:[#allocation7_spill]]  ;;  %p1077_p1 = scmp.lt.s32.totalorder %s4790_s22, 3 }
  0x60   : > { %s5851_s19 = sld [smem:[#allocation13_spill]] }
  0x61   : > { %s5852_s13 = sld [smem:[#allocation5_spill]]  ;;  %p1078_p2 = pnand %p4350_p0, %p1077_p1 }
  0x62   : > { %s5853_s12 = sld [smem:[#allocation17_spill]] }
  0x63   : > { %s5854_s8 = sld [smem:[#allocation11_spill]]  ;;  %1081 = sbr.rel (%p1078_p2) target bundleno = 8735 (0x221f), region = 176 }
  0x64   : > { %5855 = sst [smem:[#allocation40_spill]] %s4790_s22 }
  0x68   : > { %p1173_p3 = scmp.lt.s32.totalorder %s4346_s23, 1  ;;  %s5856_s5 = sld [smem:[#allocation3_spill]]  ;;  %vm1230_vm0 = vcmask 130048   ;;  %v1198_v5 = vlaneseq  ;;  %v4831_v12 = vmov 0.0   ;;  %vm1184_vm3 = vcmask 199680   ;;  %v1292_v32 = vld [vmem:[%s5852_s13] sm:$0xff] }
  0x69   : > { %vm1187_vm4 = vcmask 929480   ;;  %v4832_v16 = vmov 0   ;;  %s5762_s28 = smov 25   ;;  %vm1276_vm7 = vcmask 724168   ;;  %s5752_s1 = smov 104   ;;  %v1293_v33 = vld [vmem:[%s5852_s13 + $0x8] sm:$0xff] }
  0x6a   : > { %s5923_s23 = smov (!%p1173_p3, %s4346_s23), 1  ;;  %v5096_v7 = vshrl.u32 %v1198_v5, 7  ;;  %v5099_v10 = vand.u32 127, %v1198_v5  ;;  %1185 = vst.msk [vmem:[#allocation2] sm:$0xf] %vm1184_vm3, %v4832_v16  ;;  %4781 = vset.pattern.permute.xlu1 %v4832_v16  ;;  %4782 = vset.pattern.permute.xlu2 %v4832_v16  ;;  %s5748_s2 = smov 126  }
  0x6b   : > { %5857 = sst [smem:[#allocation41_spill]] %s5923_s23  ;;  %s5741_s0 = sshll.u32 %s5923_s23, 5  ;;  %1188 = vst.msk [vmem:[#allocation2] sm:$0xf] %vm1187_vm4, %v4832_v16  ;;  %4783 = vset.pattern.permute.xlu0 %v4832_v16  ;;  %vm1318_vm8 = vcmask 392192   ;;  %v1367_v56 = vld [vmem:[%s5850_s21] sm:$0xff] }
  0x6c   : > { %v1200_v9 = vadd.s32 8, %v5096_v7  ;;  %vm1203_vm1 = vcmp.eq.s32.totalorder %v5096_v7, %v5099_v10  ;;  %1186 = vst.msk [vmem:[#allocation2 + $0x4] sm:$0xf] %vm1184_vm3, %v4832_v16  ;;  %s5858_s9 = sld [smem:[#allocation4_spill]]  ;;  %s5757_s7 = smov 127   ;;  %v1368_v58 = vld [vmem:[%s5850_s21 + $0x8] sm:$0xff] }
  0x6d   : > { %v4355_v13 = vsel %vm1203_vm1, 1.0, %v4831_v12  ;;  %1189 = vst.msk [vmem:[#allocation2 + $0x4] sm:$0xf] %vm1187_vm4, %v4832_v16  ;;  %s5859_s17 = sld [smem:[#allocation6_spill]]  ;;  %s5756_s10 = smov 125   ;;  %vm1773_vm4 = vcmask 916480  }
  0x6e   : > { %s1177_s26 = scalar_lea.vmem %s5856_s5, %s5741_s0  ;;  %vm1204_vm2 = vcmp.eq.s32.totalorder %v1200_v9, %v5099_v10  ;;  %s5758_s11 = smov 122  }
  0x6f   : > { %v4646_v0 = vld [vmem:[%s1177_s26 + $0x18] sm:$0xff]  ;;  %v4645_v2 = vld [vmem:[%s1177_s26 + $0x10] sm:$0xff]  ;;  %v4644_v4 = vld [vmem:[%s1177_s26 + $0x8] sm:$0xff]  ;;  %v4356_v14 = vsel %vm1204_vm2, 1.0, %v4831_v12  ;;  %s5860_s25 = sld [smem:[#allocation8_spill]]  ;;  %s5746_s15 = smov 106  }
  0x70   : > { %v1244_v1 = vsel %vm1230_vm0, %v4646_v0, 0  ;;  %v1241_v3 = vsel %vm1230_vm0, %v4645_v2, 0  ;;  %v1238_v6 = vsel %vm1230_vm0, %v4644_v4, 0  ;;  %v4643_v8 = vld [vmem:[%s1177_s26] sm:$0xff]  ;;  %v5107_v15 = vpack.c.bf16 %v4356_v14, %v4355_v13  ;;  %s5861_s3 = sld [smem:[#allocation10_spill]]  ;;  %s5750_s16 = smov 123  }
  0x71   : > { %1250 = vmatpush.bf16.xpose.msra.mxu0 %v1244_v1  ;;  %v1235_v11 = vsel %vm1230_vm0, %v4643_v8, 0  ;;  %s5742_s18 = smov 118   ;;  %s5862_s14 = sld [smem:[#allocation12_spill]] }
  0x72   : > { %v4648_v37 = vld [vmem:[%s5858_s9] sm:$0xff]  ;;  %s5744_s26 = smov 108   ;;  %s5759_s0 = smov 124  }
  0x73   : > { %v4650_v62 = vld [vmem:[%s5859_s17] sm:$0xff]  ;;  %s5863_s6 = sld [smem:[#allocation16_spill]]  ;;  %s5781_s9 = smov 102  }
  0x74   : > { %s5883_s5 = sld [smem:[#allocation28_spill]]  ;;  %s5897_s13 = smov 32  }
  0x75   : > { %s5899_s17 = smov 101   ;;  %s5901_s21 = smov 100  }
  0x76   : > { %s4865_s22 = smov 109   ;;  %s4866_s24 = smov 91  }
  0x77   : > { %s5905_s23 = sld [smem:[#allocation33_spill]] }
  0x79   : > { %1251 = vmatpush.bf16.xpose.msra.mxu0 %v1241_v3 }
  0x81   : > { %1252 = vmatpush.bf16.xpose.msra.mxu0 %v1238_v6 }
  0x89   : > { %1253 = vmatpush.bf16.xpose.msra.mxu0 %v1235_v11 }
  0x90   : > { %4373 = vmatmul.msk.bf16.vlgmr.msra.gmra.mxu0 %vm1230_vm0, %v5107_v15 }
 0x10d   : > { %v5111_v17 = vpop.f32.mrf.mxu0 }
 0x10e   : > { %vm1260_vm5 = vcmp.ge.f32.partialorder %v5111_v17, 0.0  ;;  %v1262_v18 = vmul.f32 0.1, %v5111_v17 }
 0x110   : > { %v1264_v19 = vsel %vm1260_vm5, %v5111_v17, %v1262_v18 }
 0x111   : > { %v1266_v20 = vpack.c.bf16 %v1264_v19, %v1264_v19 }
 0x113   : > { %1270 = vrot.lane.b32.xlu0 %v1266_v20, %s5762_s28 }
 0x115   : > { %v5117_v21 = vpop.f32.mrf.mxu0 }
 0x116   : > { %vm1261_vm6 = vcmp.ge.f32.partialorder %v5117_v21, 0.0  ;;  %v1263_v22 = vmul.f32 0.1, %v5117_v21 }
 0x118   : > { %v1265_v23 = vsel %vm1261_vm6, %v5117_v21, %v1263_v22 }
 0x119   : > { %v1267_v24 = vpack.c.bf16 %v1265_v23, %v1265_v23 }
 0x11b   : > { %1272 = vrot.lane.b32.xlu0 %v1267_v24, %s5762_s28 }
 0x185   : > { %v5123_v25 = vpop.permute.xlu0 %1270 }
 0x186   : > { %1277 = vst.msk [vmem:[#allocation2] sm:$0xf] %vm1276_vm7, %v5123_v25 }
 0x18d   : > { %v5127_v26 = vpop.permute.xlu0 %1272  ;;  %v4376_v27 = vld [vmem:[#allocation2] sm:$0xf] }
 0x18e   : > { %1278 = vst.msk [vmem:[#allocation2 + $0x4] sm:$0xf] %vm1276_vm7, %v5127_v26 }
 0x195   : > { %v4647_v28 = vld [vmem:[#allocation2] sm:$0xf0] }
 0x196   : > { %v4377_v29 = vor.u32 %v4647_v28, %v4376_v27  ;;  %v1443_v27 = vld [vmem:[%s5848_s29] sm:$0xff] }
 0x198   : > { %1309 = vrot.lane.b32.xlu0 %v4377_v29, %s5752_s1  ;;  %1290 = vrot.lane.b32.xlu1 %v4377_v29, %s5748_s2 }
 0x1a0   : > { %1288 = vrot.lane.b32.xlu1 %v4377_v29, %s5757_s7  ;;  %v1444_v29 = vld [vmem:[%s5848_s29 + $0x8] sm:$0xff]  ;;  %s4864_s29 = smov 97  }
 0x1a8   : > { %1296 = vperm.xlu1 %4781, %v1292_v32  }
 0x20a   : > { %v1291_v30 = vpop.permute.xlu1 %1290  ;;  %v1310_v36 = vpop.permute.xlu0 %1309 }
 0x20b   : > { %1313 = vrot.lane.b32.xlu2 %v1291_v30, %s5752_s1 }
 0x212   : > { %v1289_v31 = vpop.permute.xlu1 %1288 }
 0x213   : > { %1311 = vrot.lane.b32.xlu2 %v1289_v31, %s5752_s1 }
 0x21a   : > { %v1297_v38 = vpop.permute.xlu1 %1296 }
 0x21b   : > { %1301 = vperm.xlu2 %4782, %v1293_v33   ;;  %v4652_v33 = vld [vmem:[%s5860_s25] sm:$0xff]  ;;  %s5902_s25 = smov 99  }
 0x265   : > { %v1314_v34 = vpop.permute.xlu2 %1313 }
 0x266   : > { %1327 = vmatpush.bf16.msra.mxu3 %v1314_v34 }
 0x26d   : > { %v1312_v35 = vpop.permute.xlu2 %1311 }
 0x26e   : > { %1328 = vmatpush.bf16.msra.mxu3 %v1312_v35 }
 0x272   : > { %1329 = vmatpush.bf16.msra.mxu3 %v1310_v36 }
 0x275   : > { %4382 = vmatmul.msk.bf16.vlgmr.msra.gmra.mxu3 %vm1318_vm8, %v4648_v37  ;;  %v1302_v44 = vpop.permute.xlu2 %1301 }
 0x2f8   : > { %v1331_v39 = vpop.f32.mrf.mxu3 }
 0x2f9   : > { %v1332_v40 = vadd.f32 %v1331_v39, %v1297_v38 }
 0x2fb   : > { %vm1336_vm9 = vcmp.ge.f32.partialorder %v1332_v40, 0.0  ;;  %v1338_v41 = vmul.f32 0.1, %v1332_v40 }
 0x2fd   : > { %v1340_v42 = vsel %vm1336_vm9, %v1332_v40, %v1338_v41 }
 0x2fe   : > { %v1342_v43 = vpack.c.bf16 %v1340_v42, %v1340_v42 }
 0x300   : > { %v1333_v45 = vpop.f32.mrf.mxu3  ;;  %1346 = vrot.lane.b32.xlu0 %v1342_v43, %s5762_s28 }
 0x301   : > { %v1334_v46 = vadd.f32 %v1333_v45, %v1302_v44 }
 0x303   : > { %vm1337_vm10 = vcmp.ge.f32.partialorder %v1334_v46, 0.0  ;;  %v1339_v47 = vmul.f32 0.1, %v1334_v46 }
 0x305   : > { %v1341_v48 = vsel %vm1337_vm10, %v1334_v46, %v1339_v47 }
 0x306   : > { %v1343_v49 = vpack.c.bf16 %v1341_v48, %v1341_v48 }
 0x308   : > { %1348 = vrot.lane.b32.xlu1 %v1343_v49, %s5762_s28 }
 0x372   : > { %v1347_v50 = vpop.permute.xlu0 %1346 }
 0x373   : > { %1352 = vst.msk [vmem:[#allocation2] sm:$0xf] %vm1276_vm7, %v1347_v50 }
 0x37a   : > { %v1349_v51 = vpop.permute.xlu1 %1348  ;;  %v4385_v52 = vld [vmem:[#allocation2] sm:$0xf] }
 0x37b   : > { %1353 = vst.msk [vmem:[#allocation2 + $0x4] sm:$0xf] %vm1276_vm7, %v1349_v51 }
 0x382   : > { %v4649_v53 = vld [vmem:[#allocation2] sm:$0xf0] }
 0x383   : > { %v4386_v54 = vor.u32 %v4649_v53, %v4385_v52  ;;  %v1517_v52 = vld [vmem:[%s5854_s8] sm:$0xff] }
 0x385   : > { %1363 = vrot.lane.b32.xlu0 %v4386_v54, %s5757_s7  ;;  %1365 = vrot.lane.b32.xlu2 %v4386_v54, %s5748_s2 }
 0x38d   : > { %1384 = vrot.lane.b32.xlu0 %v4386_v54, %s5752_s1  ;;  %v1518_v54 = vld [vmem:[%s5854_s8 + $0x8] sm:$0xff]  ;;  %s5779_s8 = smov 32  }
 0x3df   : > { %v1366_v55 = vpop.permute.xlu2 %1365 }
 0x3e0   : > { %1388 = vrot.lane.b32.xlu1 %v1366_v55, %s5752_s1 }
 0x3e8   : > { %1371 = vperm.xlu1 %4781, %v1367_v56  }
 0x3f7   : > { %v1364_v57 = vpop.permute.xlu0 %1363 }
 0x3f8   : > { %1386 = vrot.lane.b32.xlu2 %v1364_v57, %s5752_s1 }
 0x3ff   : > { %v1385_v61 = vpop.permute.xlu0 %1384 }
 0x400   : > { %1376 = vperm.xlu2 %4782, %v1368_v58   ;;  %v4654_v58 = vld [vmem:[%s5861_s3] sm:$0xff]  ;;  %s5882_s3 = smov 125  }
 0x452   : > { %v1389_v59 = vpop.permute.xlu1 %1388  ;;  %v1387_v60 = vpop.permute.xlu2 %1386 }
 0x453   : > { %1401 = vmatpush.bf16.msra.mxu2 %v1389_v59 }
 0x457   : > { %1402 = vmatpush.bf16.msra.mxu2 %v1387_v60 }
 0x45a   : > { %v1372_v63 = vpop.permute.xlu1 %1371  ;;  %v1377_v5 = vpop.permute.xlu2 %1376 }
 0x45b   : > { %1403 = vmatpush.bf16.msra.mxu2 %v1385_v61 }
 0x45e   : > { %4391 = vmatmul.msk.bf16.vlgmr.msra.gmra.mxu2 %vm1318_vm8, %v4650_v62 }
 0x4e1   : > { %v1405_v0 = vpop.f32.mrf.mxu2 }
 0x4e2   : > { %v1406_v1 = vadd.f32 %v1405_v0, %v1372_v63 }
 0x4e4   : > { %v5154_v2 = vadd.f32 %v1406_v1, %v5111_v17 }
 0x4e6   : > { %vm1412_vm11 = vcmp.ge.f32.partialorder %v5154_v2, 0.0  ;;  %v1414_v3 = vmul.f32 0.1, %v5154_v2 }
 0x4e8   : > { %v1416_v4 = vsel %vm1412_vm11, %v5154_v2, %v1414_v3 }
 0x4e9   : > { %v1407_v6 = vpop.f32.mrf.mxu2  ;;  %v1418_v8 = vpack.c.bf16 %v1416_v4, %v1416_v4 }
 0x4ea   : > { %v1408_v9 = vadd.f32 %v1407_v6, %v1377_v5 }
 0x4eb   : > { %1422 = vrot.lane.b32.xlu0 %v1418_v8, %s5762_s28 }
 0x4ec   : > { %v5161_v11 = vadd.f32 %v1408_v9, %v5117_v21 }
 0x4ee   : > { %vm1413_vm12 = vcmp.ge.f32.partialorder %v5161_v11, 0.0  ;;  %v1415_v13 = vmul.f32 0.1, %v5161_v11 }
 0x4f0   : > { %v1417_v14 = vsel %vm1413_vm12, %v5161_v11, %v1415_v13 }
 0x4f1   : > { %v1419_v16 = vpack.c.bf16 %v1417_v14, %v1417_v14 }
 0x4f3   : > { %1424 = vrot.lane.b32.xlu1 %v1419_v16, %s5762_s28 }
 0x55d   : > { %v1423_v18 = vpop.permute.xlu0 %1422 }
 0x55e   : > { %1428 = vst.msk [vmem:[#allocation2] sm:$0xf] %vm1276_vm7, %v1423_v18 }
 0x565   : > { %v1425_v19 = vpop.permute.xlu1 %1424  ;;  %v4394_v20 = vld [vmem:[#allocation2] sm:$0xf] }
 0x566   : > { %1429 = vst.msk [vmem:[#allocation2 + $0x4] sm:$0xf] %vm1276_vm7, %v1425_v19 }
 0x56d   : > { %v4651_v22 = vld [vmem:[#allocation2] sm:$0xf0] }
 0x56e   : > { %v4395_v23 = vor.u32 %v4651_v22, %v4394_v20  ;;  %v1593_v20 = vld [vmem:[%s5851_s19] sm:$0xff] }
 0x570   : > { %1439 = vrot.lane.b32.xlu0 %v4395_v23, %s5756_s10  ;;  %1441 = vrot.lane.b32.xlu2 %v4395_v23, %s5758_s11 }
 0x578   : > { %1460 = vrot.lane.b32.xlu0 %v4395_v23, %s5746_s15  ;;  %v1594_v23 = vld [vmem:[%s5851_s19 + $0x8] sm:$0xff]  ;;  %s5900_s19 = smov 48  }
 0x5ca   : > { %v1442_v24 = vpop.permute.xlu2 %1441 }
 0x5cb   : > { %1464 = vrot.lane.b32.xlu1 %v1442_v24, %s5746_s15 }
 0x5d3   : > { %1447 = vperm.xlu1 %4781, %v1443_v27  }
 0x5e2   : > { %v1440_v28 = vpop.permute.xlu0 %1439 }
 0x5e3   : > { %1462 = vrot.lane.b32.xlu2 %v1440_v28, %s5746_s15 }
 0x5ea   : > { %v1461_v32 = vpop.permute.xlu0 %1460 }
 0x5eb   : > { %1452 = vperm.xlu2 %4782, %v1444_v29   ;;  %v4656_v29 = vld [vmem:[%s5862_s14] sm:$0xff]  ;;  %s5898_s14 = smov 16  }
 0x63d   : > { %v1465_v30 = vpop.permute.xlu1 %1464  ;;  %v1463_v31 = vpop.permute.xlu2 %1462 }
 0x63e   : > { %1477 = vmatpush.bf16.msrb.mxu3 %v1465_v30 }
 0x642   : > { %1478 = vmatpush.bf16.msrb.mxu3 %v1463_v31 }
 0x645   : > { %v1448_v34 = vpop.permute.xlu1 %1447  ;;  %v1453_v40 = vpop.permute.xlu2 %1452 }
 0x646   : > { %1479 = vmatpush.bf16.msrb.mxu3 %v1461_v32 }
 0x649   : > { %4400 = vmatmul.msk.bf16.vlgmr.msrb.gmra.mxu3 %vm1318_vm8, %v4652_v33 }
 0x6cc   : > { %v1481_v35 = vpop.f32.mrf.mxu3 }
 0x6cd   : > { %v1482_v36 = vadd.f32 %v1481_v35, %v1448_v34 }
 0x6cf   : > { %vm1486_vm13 = vcmp.ge.f32.partialorder %v1482_v36, 0.0  ;;  %v1488_v37 = vmul.f32 0.1, %v1482_v36 }
 0x6d1   : > { %v1490_v38 = vsel %vm1486_vm13, %v1482_v36, %v1488_v37 }
 0x6d2   : > { %v1492_v39 = vpack.c.bf16 %v1490_v38, %v1490_v38 }
 0x6d4   : > { %v1483_v41 = vpop.f32.mrf.mxu3  ;;  %1496 = vrot.lane.b32.xlu0 %v1492_v39, %s5762_s28 }
 0x6d5   : > { %v1484_v42 = vadd.f32 %v1483_v41, %v1453_v40 }
 0x6d7   : > { %vm1487_vm14 = vcmp.ge.f32.partialorder %v1484_v42, 0.0  ;;  %v1489_v43 = vmul.f32 0.1, %v1484_v42 }
 0x6d9   : > { %v1491_v44 = vsel %vm1487_vm14, %v1484_v42, %v1489_v43 }
 0x6da   : > { %v1493_v45 = vpack.c.bf16 %v1491_v44, %v1491_v44 }
 0x6dc   : > { %1498 = vrot.lane.b32.xlu1 %v1493_v45, %s5762_s28 }
 0x746   : > { %v1497_v46 = vpop.permute.xlu0 %1496 }
 0x747   : > { %1502 = vst.msk [vmem:[#allocation2] sm:$0xf] %vm1276_vm7, %v1497_v46 }
 0x74e   : > { %v1499_v47 = vpop.permute.xlu1 %1498  ;;  %v4403_v48 = vld [vmem:[#allocation2] sm:$0xf] }
 0x74f   : > { %1503 = vst.msk [vmem:[#allocation2 + $0x4] sm:$0xf] %vm1276_vm7, %v1499_v47 }
 0x756   : > { %v4653_v49 = vld [vmem:[#allocation2] sm:$0xf0] }
 0x757   : > { %v4404_v50 = vor.u32 %v4653_v49, %v4403_v48 }
 0x759   : > { %1513 = vrot.lane.b32.xlu0 %v4404_v50, %s5757_s7  ;;  %1515 = vrot.lane.b32.xlu2 %v4404_v50, %s5748_s2 }
 0x761   : > { %1534 = vrot.lane.b32.xlu0 %v4404_v50, %s5752_s1 }
 0x7b3   : > { %v1516_v51 = vpop.permute.xlu2 %1515 }
 0x7b4   : > { %1538 = vrot.lane.b32.xlu1 %v1516_v51, %s5752_s1 }
 0x7bc   : > { %1521 = vperm.xlu1 %4781, %v1517_v52  }
 0x7cb   : > { %v1514_v53 = vpop.permute.xlu0 %1513 }
 0x7cc   : > { %1536 = vrot.lane.b32.xlu2 %v1514_v53, %s5752_s1  ;;  %v1736_v53 = vld [vmem:[%s5853_s12 + $0x8] sm:$0xff] }
 0x7d3   : > { %v1535_v57 = vpop.permute.xlu0 %1534 }
 0x7d4   : > { %1526 = vperm.xlu2 %4782, %v1518_v54  }
 0x826   : > { %v1539_v55 = vpop.permute.xlu1 %1538  ;;  %v1537_v56 = vpop.permute.xlu2 %1536 }
 0x827   : > { %1551 = vmatpush.bf16.msra.mxu1 %v1539_v55  ;;  %v1735_v55 = vld [vmem:[%s5853_s12] sm:$0xff]  ;;  %s5785_s12 = smov 100  }
 0x82b   : > { %1552 = vmatpush.bf16.msra.mxu1 %v1537_v56 }
 0x82e   : > { %v1522_v59 = vpop.permute.xlu1 %1521  ;;  %v1527_v1 = vpop.permute.xlu2 %1526 }
 0x82f   : > { %1553 = vmatpush.bf16.msra.mxu1 %v1535_v57 }
 0x832   : > { %4409 = vmatmul.msk.bf16.vlgmr.msra.gmra.mxu1 %vm1318_vm8, %v4654_v58 }
 0x8af   : > { %v1555_v60 = vpop.f32.mrf.mxu1 }
 0x8b0   : > { %v1556_v61 = vadd.f32 %v1555_v60, %v1522_v59 }
 0x8b2   : > { %v5192_v62 = vadd.f32 %v1556_v61, %v5154_v2 }
 0x8b4   : > { %vm1562_vm15 = vcmp.ge.f32.partialorder %v5192_v62, 0.0  ;;  %v1564_v63 = vmul.f32 0.1, %v5192_v62 }
 0x8b6   : > { %v1566_v0 = vsel %vm1562_vm15, %v5192_v62, %v1564_v63  ;;  %v4660_v63 = vld [vmem:[%s5863_s6] sm:$0xff]  ;;  %s5886_s6 = sld [smem:[#allocation29_spill]] }
 0x8b7   : > { %v1557_v3 = vpop.f32.mrf.mxu1  ;;  %v1568_v4 = vpack.c.bf16 %v1566_v0, %v1566_v0 }
 0x8b8   : > { %v1558_v5 = vadd.f32 %v1557_v3, %v1527_v1 }
 0x8b9   : > { %1572 = vrot.lane.b32.xlu0 %v1568_v4, %s5762_s28 }
 0x8ba   : > { %v5199_v6 = vadd.f32 %v1558_v5, %v5161_v11 }
 0x8bc   : > { %vm1563_vm1 = vcmp.ge.f32.partialorder %v5199_v6, 0.0  ;;  %v1565_v2 = vmul.f32 0.1, %v5199_v6 }
 0x8be   : > { %v1567_v8 = vsel %vm1563_vm1, %v5199_v6, %v1565_v2 }
 0x8bf   : > { %v1569_v9 = vpack.c.bf16 %v1567_v8, %v1567_v8 }
 0x8c1   : > { %1574 = vrot.lane.b32.xlu1 %v1569_v9, %s5762_s28 }
 0x92b   : > { %v1573_v13 = vpop.permute.xlu0 %1572 }
 0x92c   : > { %1578 = vst.msk [vmem:[#allocation2] sm:$0xf] %vm1276_vm7, %v1573_v13 }
 0x933   : > { %v1575_v14 = vpop.permute.xlu1 %1574  ;;  %v4412_v16 = vld [vmem:[#allocation2] sm:$0xf] }
 0x934   : > { %1579 = vst.msk [vmem:[#allocation2 + $0x4] sm:$0xf] %vm1276_vm7, %v1575_v14 }
 0x93b   : > { %v4655_v11 = vld [vmem:[#allocation2] sm:$0xf0] }
 0x93c   : > { %v4413_v18 = vor.u32 %v4655_v11, %v4412_v16 }
 0x93e   : > { %1589 = vrot.lane.b32.xlu0 %v4413_v18, %s5750_s16  ;;  %1591 = vrot.lane.b32.xlu2 %v4413_v18, %s5742_s18  ;;  %s5864_s18 = sld [smem:[#allocation18_spill]] }
 0x946   : > { %1610 = vrot.lane.b32.xlu0 %v4413_v18, %s5744_s26 }
 0x998   : > { %v1592_v19 = vpop.permute.xlu2 %1591 }
 0x999   : > { %1614 = vrot.lane.b32.xlu1 %v1592_v19, %s5744_s26 }
 0x9a1   : > { %1597 = vperm.xlu1 %4781, %v1593_v20  }
 0x9b0   : > { %v1590_v22 = vpop.permute.xlu0 %1589 }
 0x9b1   : > { %1612 = vrot.lane.b32.xlu2 %v1590_v22, %s5744_s26  ;;  %s4845_s26 = smov 119  }
 0x9b8   : > { %v1611_v28 = vpop.permute.xlu0 %1610 }
 0x9b9   : > { %1602 = vperm.xlu2 %4782, %v1594_v23  }
 0xa0b   : > { %v1615_v24 = vpop.permute.xlu1 %1614  ;;  %v1613_v27 = vpop.permute.xlu2 %1612 }
 0xa0c   : > { %1627 = vmatpush.bf16.msrb.mxu2 %v1615_v24 }
 0xa10   : > { %1628 = vmatpush.bf16.msrb.mxu2 %v1613_v27 }
 0xa13   : > { %v1598_v30 = vpop.permute.xlu1 %1597  ;;  %v1603_v36 = vpop.permute.xlu2 %1602 }
 0xa14   : > { %1629 = vmatpush.bf16.msrb.mxu2 %v1611_v28 }
 0xa17   : > { %4418 = vmatmul.msk.bf16.vlgmr.msrb.gmra.mxu2 %vm1318_vm8, %v4656_v29 }
 0xa9a   : > { %v1631_v31 = vpop.f32.mrf.mxu2 }
 0xa9b   : > { %v1632_v32 = vadd.f32 %v1631_v31, %v1598_v30 }
 0xa9d   : > { %vm1636_vm2 = vcmp.ge.f32.partialorder %v1632_v32, 0.0  ;;  %v1638_v33 = vmul.f32 0.1, %v1632_v32 }
 0xa9f   : > { %v1640_v34 = vsel %vm1636_vm2, %v1632_v32, %v1638_v33  ;;  %v1831_v32 = vld [vmem:[%s5849_s27 + $0x8] sm:$0xff]  ;;  %v1830_v33 = vld [vmem:[%s5849_s27] sm:$0xff]  ;;  %s4863_s27 = smov 115  }
 0xaa0   : > { %v1642_v35 = vpack.c.bf16 %v1640_v34, %v1640_v34 }
 0xaa2   : > { %v1633_v37 = vpop.f32.mrf.mxu2  ;;  %1646 = vrot.lane.b32.xlu0 %v1642_v35, %s5762_s28 }
 0xaa3   : > { %v1634_v38 = vadd.f32 %v1633_v37, %v1603_v36 }
 0xaa5   : > { %vm1637_vm3 = vcmp.ge.f32.partialorder %v1634_v38, 0.0  ;;  %v1639_v39 = vmul.f32 0.1, %v1634_v38 }
 0xaa7   : > { %v1641_v40 = vsel %vm1637_vm3, %v1634_v38, %v1639_v39 }
 0xaa8   : > { %v1643_v41 = vpack.c.bf16 %v1641_v40, %v1641_v40 }
 0xaaa   : > { %1648 = vrot.lane.b32.xlu1 %v1643_v41, %s5762_s28 }
 0xb14   : > { %v1647_v42 = vpop.permute.xlu0 %1646 }
 0xb15   : > { %1652 = vst.msk [vmem:[#allocation2] sm:$0xf] %vm1276_vm7, %v1647_v42  ;;  %v4662_v42 = vld [vmem:[%s5864_s18] sm:$0xff]  ;;  %s4844_s18 = smov 110  }
 0xb1c   : > { %v5219_v43 = vld [vmem:[#allocation2] sm:$0xf]  ;;  %v1649_v44 = vpop.permute.xlu1 %1648 }
 0xb1d   : > { %1712 = vst.msk [vmem:[#allocation2] sm:$0xf] %vm1276_vm7, %v5123_v25 }
 0xb1e   : > { %1653 = vst.msk [vmem:[#allocation2 + $0x4] sm:$0xf] %vm1276_vm7, %v1649_v44 }
 0xb25   : > { %v5224_v45 = vld [vmem:[#allocation2] sm:$0xf0] }
 0xb26   : > { %1713 = vst.msk [vmem:[#allocation2 + $0x4] sm:$0xf] %vm1276_vm7, %v5127_v26  ;;  %v4422_v34 = vor.u32 %v5224_v45, %v5219_v43 }
 0xb2d   : > { %v4659_v46 = vld [vmem:[#allocation2] sm:$0xff] }
 0xb2e   : > { %1729 = vrot.lane.b32.xlu1 %v4659_v46, %s5759_s0  ;;  %1731 = vrot.lane.b32.xlu0 %v4659_v46, %s5750_s16 }
 0xb2f   : > { %1733 = vrot.lane.b32.xlu2 %v4659_v46, %s5758_s11 }
 0xb36   : > { %1723 = vrot.lane.b32.xlu1 %v4659_v46, %s5757_s7  ;;  %1725 = vrot.lane.b32.xlu0 %v4659_v46, %s5748_s2 }
 0xb37   : > { %1727 = vrot.lane.b32.xlu2 %v4659_v46, %s5756_s10 }
 0xb89   : > { %v1734_v47 = vpop.permute.xlu2 %1733 }
 0xb8a   : > { %1764 = vrot.lane.b32.xlu2 %v1734_v47, %s5746_s15 }
 0xb91   : > { %v1728_v48 = vpop.permute.xlu2 %1727 }
 0xb92   : > { %1758 = vrot.lane.b32.xlu2 %v1728_v48, %s5746_s15 }
 0xb9a   : > { %1752 = vrot.lane.b32.xlu2 %v4659_v46, %s5746_s15 }
 0xba0   : > { %v1730_v49 = vpop.permute.xlu1 %1729  ;;  %v1732_v50 = vpop.permute.xlu0 %1731 }
 0xba1   : > { %1760 = vrot.lane.b32.xlu1 %v1730_v49, %s5746_s15  ;;  %1762 = vrot.lane.b32.xlu0 %v1732_v50, %s5746_s15 }
 0xba8   : > { %v1724_v51 = vpop.permute.xlu1 %1723  ;;  %v1726_v52 = vpop.permute.xlu0 %1725 }
 0xba9   : > { %1754 = vrot.lane.b32.xlu1 %v1724_v51, %s5746_s15  ;;  %1756 = vrot.lane.b32.xlu0 %v1726_v52, %s5746_s15 }
 0xbb1   : > { %1744 = vperm.xlu1 %4781, %v1736_v53   ;;  %1739 = vperm.xlu0 %4783, %v1735_v55  }
 0xbe4   : > { %v1765_v54 = vpop.permute.xlu2 %1764 }
 0xbe5   : > { %1778 = vmatpush.bf16.msrb.mxu1 %v1765_v54 }
 0xbec   : > { %v1759_v58 = vpop.permute.xlu2 %1758 }
 0xbf4   : > { %v1753_v61 = vpop.permute.xlu2 %1752 }
 0xc13   : > { %v1763_v56 = vpop.permute.xlu0 %1762  ;;  %v1761_v57 = vpop.permute.xlu1 %1760 }
 0xc14   : > { %1779 = vmatpush.bf16.msrb.mxu1 %v1763_v56 }
 0xc18   : > { %1780 = vmatpush.bf16.msrb.mxu1 %v1761_v57 }
 0xc1b   : > { %v1757_v59 = vpop.permute.xlu0 %1756  ;;  %v1755_v60 = vpop.permute.xlu1 %1754 }
 0xc1c   : > { %1781 = vmatpush.bf16.msrb.mxu1 %v1759_v58 }
 0xc20   : > { %1782 = vmatpush.bf16.msrb.mxu1 %v1757_v59 }
 0xc23   : > { %v1740_v0 = vpop.permute.xlu0 %1739  ;;  %v1745_v8 = vpop.permute.xlu1 %1744 }
 0xc24   : > { %1783 = vmatpush.bf16.msrb.mxu1 %v1755_v60 }
 0xc28   : > { %1784 = vmatpush.bf16.msrb.mxu1 %v1753_v61 }
 0xc2b   : > { %4436 = vmatmul.msk.bf16.vlgmr.msrb.gmra.mxu1 %vm1773_vm4, %v4660_v63 }
 0xca8   : > { %v1786_v1 = vpop.f32.mrf.mxu1 }
 0xca9   : > { %v1787_v3 = vadd.f32 %v1786_v1, %v1740_v0 }
 0xcab   : > { %vm1791_vm5 = vcmp.ge.f32.partialorder %v1787_v3, 0.0  ;;  %v1793_v4 = vmul.f32 0.1, %v1787_v3 }
 0xcad   : > { %v1795_v5 = vsel %vm1791_vm5, %v1787_v3, %v1793_v4 }
 0xcae   : > { %v1797_v2 = vpack.c.bf16 %v1795_v5, %v1795_v5 }
 0xcb0   : > { %v1788_v9 = vpop.f32.mrf.mxu1  ;;  %1801 = vrot.lane.b32.xlu2 %v1797_v2, %s5762_s28 }
 0xcb1   : > { %v1789_v13 = vadd.f32 %v1788_v9, %v1745_v8 }
 0xcb3   : > { %vm1792_vm6 = vcmp.ge.f32.partialorder %v1789_v13, 0.0  ;;  %v1794_v14 = vmul.f32 0.1, %v1789_v13 }
 0xcb5   : > { %v1796_v16 = vsel %vm1792_vm6, %v1789_v13, %v1794_v14 }
 0xcb6   : > { %v1798_v11 = vpack.c.bf16 %v1796_v16, %v1796_v16 }
 0xcb8   : > { %1803 = vrot.lane.b32.xlu1 %v1798_v11, %s5762_s28 }
 0xd0a   : > { %v1802_v18 = vpop.permute.xlu2 %1801 }
 0xd0b   : > { %1807 = vst.msk [vmem:[#allocation2] sm:$0xf] %vm1276_vm7, %v1802_v18 }
 0xd12   : > { %v4439_v20 = vld [vmem:[#allocation2] sm:$0xf] }
 0xd2a   : > { %v1804_v19 = vpop.permute.xlu1 %1803 }
 0xd2b   : > { %1808 = vst.msk [vmem:[#allocation2 + $0x4] sm:$0xf] %vm1276_vm7, %v1804_v19 }
 0xd32   : > { %v4661_v22 = vld [vmem:[#allocation2] sm:$0xf0] }
 0xd33   : > { %v4440_v23 = vor.u32 %v4661_v22, %v4439_v20 }
 0xd35   : > { %1824 = vrot.lane.b32.xlu1 %v4440_v23, %s5759_s0  ;;  %1826 = vrot.lane.b32.xlu0 %v4440_v23, %s5750_s16  ;;  %s4847_s16 = smov 116  }
 0xd36   : > { %1828 = vrot.lane.b32.xlu2 %v4440_v23, %s5758_s11 }
 0xd3d   : > { %1818 = vrot.lane.b32.xlu1 %v4440_v23, %s5757_s7  ;;  %1820 = vrot.lane.b32.xlu0 %v4440_v23, %s5748_s2 }
 0xd3e   : > { %1822 = vrot.lane.b32.xlu2 %v4440_v23, %s5756_s10 }
 0xd90   : > { %v1829_v24 = vpop.permute.xlu2 %1828 }
 0xd91   : > { %1859 = vrot.lane.b32.xlu2 %v1829_v24, %s5746_s15 }
 0xd98   : > { %v1823_v27 = vpop.permute.xlu2 %1822 }
 0xd99   : > { %1853 = vrot.lane.b32.xlu2 %v1823_v27, %s5746_s15 }
 0xda1   : > { %1847 = vrot.lane.b32.xlu2 %v4440_v23, %s5746_s15 }
 0xda7   : > { %v1825_v28 = vpop.permute.xlu1 %1824  ;;  %v1827_v29 = vpop.permute.xlu0 %1826 }
 0xda8   : > { %1855 = vrot.lane.b32.xlu1 %v1825_v28, %s5746_s15  ;;  %1857 = vrot.lane.b32.xlu0 %v1827_v29, %s5746_s15 }
 0xdaf   : > { %v1819_v30 = vpop.permute.xlu1 %1818  ;;  %v1821_v31 = vpop.permute.xlu0 %1820 }
 0xdb0   : > { %1849 = vrot.lane.b32.xlu1 %v1819_v30, %s5746_s15  ;;  %1851 = vrot.lane.b32.xlu0 %v1821_v31, %s5746_s15  ;;  %s5760_s15 = smov 113  }
 0xdb8   : > { %1839 = vperm.xlu1 %4781, %v1831_v32   ;;  %1834 = vperm.xlu0 %4783, %v1830_v33  }
 0xdc0   : > { %1665 = vrot.lane.b32.xlu1 %v4422_v34, %s5748_s2  ;;  %s5865_s2 = sld [smem:[#allocation21_spill]] }
 0xdc6   : > { %v1927_v3 = vld [vmem:[%s5865_s2 + $0x8] sm:$0xff]  ;;  %v1926_v13 = vld [vmem:[%s5865_s2] sm:$0xff]  ;;  %s5881_s2 = smov 127  }
 0xdeb   : > { %v1860_v35 = vpop.permute.xlu2 %1859 }
 0xdec   : > { %1872 = vmatpush.bf16.msra.mxu2 %v1860_v35 }
 0xdf3   : > { %v1854_v38 = vpop.permute.xlu2 %1853 }
 0xdfb   : > { %v1848_v41 = vpop.permute.xlu2 %1847 }
 0xe1a   : > { %v1858_v36 = vpop.permute.xlu0 %1857  ;;  %v1856_v37 = vpop.permute.xlu1 %1855 }
 0xe1b   : > { %1873 = vmatpush.bf16.msra.mxu2 %v1858_v36 }
 0xe1f   : > { %1874 = vmatpush.bf16.msra.mxu2 %v1856_v37 }
 0xe22   : > { %v1852_v39 = vpop.permute.xlu0 %1851  ;;  %v1850_v40 = vpop.permute.xlu1 %1849 }
 0xe23   : > { %1875 = vmatpush.bf16.msra.mxu2 %v1854_v38 }
 0xe27   : > { %1876 = vmatpush.bf16.msra.mxu2 %v1852_v39 }
 0xe2a   : > { %v1835_v43 = vpop.permute.xlu0 %1834  ;;  %v1840_v49 = vpop.permute.xlu1 %1839 }
 0xe2b   : > { %1877 = vmatpush.bf16.msra.mxu2 %v1850_v40 }
 0xe2f   : > { %1878 = vmatpush.bf16.msra.mxu2 %v1848_v41 }
 0xe32   : > { %4445 = vmatmul.msk.bf16.vlgmr.msra.gmra.mxu2 %vm1773_vm4, %v4662_v42  ;;  %v1666_v60 = vpop.permute.xlu1 %1665 }
 0xeb5   : > { %v1880_v44 = vpop.f32.mrf.mxu2 }
 0xeb6   : > { %v1881_v45 = vadd.f32 %v1880_v44, %v1835_v43 }
 0xeb8   : > { %v5270_v46 = vadd.f32 %v1881_v45, %v5111_v17 }
 0xeba   : > { %vm1887_vm9 = vcmp.ge.f32.partialorder %v5270_v46, 0.0  ;;  %v1889_v47 = vmul.f32 0.1, %v5270_v46 }
 0xebc   : > { %v1891_v48 = vsel %vm1887_vm9, %v5270_v46, %v1889_v47 }
 0xebd   : > { %v1882_v50 = vpop.f32.mrf.mxu2  ;;  %v1893_v51 = vpack.c.bf16 %v1891_v48, %v1891_v48 }
 0xebe   : > { %v1883_v52 = vadd.f32 %v1882_v50, %v1840_v49 }
 0xebf   : > { %1897 = vrot.lane.b32.xlu2 %v1893_v51, %s5762_s28 }
 0xec0   : > { %v5277_v53 = vadd.f32 %v1883_v52, %v5117_v21 }
 0xec2   : > { %vm1888_vm10 = vcmp.ge.f32.partialorder %v5277_v53, 0.0  ;;  %v1890_v54 = vmul.f32 0.1, %v5277_v53 }
 0xec4   : > { %v1892_v55 = vsel %vm1888_vm10, %v5277_v53, %v1890_v54 }
 0xec5   : > { %v1894_v56 = vpack.c.bf16 %v1892_v55, %v1892_v55 }
 0xec7   : > { %1899 = vrot.lane.b32.xlu0 %v1894_v56, %s5762_s28 }
 0xecf   : > { %1663 = vrot.lane.b32.xlu0 %v4422_v34, %s5757_s7 }
 0xf19   : > { %v1898_v57 = vpop.permute.xlu2 %1897 }
 0xf1a   : > { %1903 = vst.msk [vmem:[#allocation2] sm:$0xf] %vm1276_vm7, %v1898_v57 }
 0xf39   : > { %v1900_v58 = vpop.permute.xlu0 %1899 }
 0xf3a   : > { %1904 = vst.msk [vmem:[#allocation2 + $0x4] sm:$0xf] %vm1276_vm7, %v1900_v58 }
 0xf41   : > { %v4663_v59 = vld [vmem:[#allocation2] sm:$0xff]  ;;  %v1664_v61 = vpop.permute.xlu0 %1663 }
 0xf42   : > { %1924 = vrot.lane.b32.xlu2 %v4663_v59, %s4844_s18  ;;  %1918 = vrot.lane.b32.xlu0 %v4663_v59, %s4845_s26  ;;  %s5754_s18 = smov 112   ;;  %s5867_s26 = sld [smem:[#allocation20_spill]] }
 0xf43   : > { %1922 = vrot.lane.b32.xlu1 %v4663_v59, %s5760_s15  ;;  %s5875_s15 = smov 118  }
 0xf48   : > { %v4664_v27 = vld [vmem:[%s5867_s26] sm:$0xff]  ;;  %s5869_s26 = smov 126  }
 0xf4a   : > { %1920 = vrot.lane.b32.xlu2 %v4663_v59, %s4847_s16  ;;  %1688 = vrot.lane.b32.xlu0 %v1666_v60, %s5752_s1  ;;  %s5866_s16 = sld [smem:[#allocation14_spill]] }
 0xf4b   : > { %1916 = vrot.lane.b32.xlu1 %v4663_v59, %s5758_s11 }
 0xf50   : > { %v4658_v11 = vld [vmem:[%s5866_s16] sm:$0xff]  ;;  %s5868_s16 = smov 123  }
 0xf52   : > { %1914 = vrot.lane.b32.xlu2 %v4663_v59, %s5756_s10 }
 0xf5a   : > { %1686 = vrot.lane.b32.xlu2 %v1664_v61, %s5752_s1 }
 0xf9c   : > { %v1925_v63 = vpop.permute.xlu2 %1924 }
 0xf9d   : > { %1955 = vrot.lane.b32.xlu1 %v1925_v63, %s5754_s18 }
 0xfa4   : > { %v1921_v0 = vpop.permute.xlu2 %1920 }
 0xfa5   : > { %1951 = vrot.lane.b32.xlu2 %v1921_v0, %s5754_s18  ;;  %1684 = vrot.lane.b32.xlu1 %v4422_v34, %s5752_s1  ;;  %s5870_s1 = sld [smem:[#allocation23_spill]] }
 0xfab   : > { %v2021_v52 = vld [vmem:[%s5870_s1 + $0x8] sm:$0xff]  ;;  %v2020_v54 = vld [vmem:[%s5870_s1] sm:$0xff]  ;;  %s5880_s1 = smov 122  }
 0xfac   : > { %v1915_v1 = vpop.permute.xlu2 %1914 }
 0xfad   : > { %1945 = vrot.lane.b32.xlu2 %v1915_v1, %s5754_s18 }
 0xfb4   : > { %v1919_v4 = vpop.permute.xlu0 %1918  ;;  %v1687_v9 = vpop.permute.xlu2 %1686 }
 0xfb5   : > { %v1923_v5 = vpop.permute.xlu1 %1922  ;;  %1935 = vperm.xlu2 %4782, %v1927_v3  }
 0xfb6   : > { %1953 = vrot.lane.b32.xlu0 %v1923_v5, %s5754_s18 }
 0xfbc   : > { %v1689_v2 = vpop.permute.xlu0 %1688 }
 0xfbd   : > { %v1917_v8 = vpop.permute.xlu1 %1916  ;;  %1701 = vmatpush.bf16.msra.mxu3 %v1689_v2 }
 0xfbe   : > { %1949 = vrot.lane.b32.xlu0 %v1919_v4, %s5754_s18  ;;  %1947 = vrot.lane.b32.xlu1 %v1917_v8, %s5754_s18 }
 0xfc1   : > { %1702 = vmatpush.bf16.msra.mxu3 %v1687_v9 }
 0xfc6   : > { %1943 = vrot.lane.b32.xlu0 %v4663_v59, %s5754_s18  ;;  %1930 = vperm.xlu1 %4781, %v1926_v13   ;;  %s5871_s18 = smov 106  }
 0xfff   : > { %v1952_v19 = vpop.permute.xlu2 %1951 }
0x1007   : > { %v1946_v23 = vpop.permute.xlu2 %1945 }
0x100f   : > { %v1956_v14 = vpop.permute.xlu1 %1955  ;;  %v1936_v36 = vpop.permute.xlu2 %1935 }
0x1017   : > { %v1685_v16 = vpop.permute.xlu1 %1684 }
0x1018   : > { %1703 = vmatpush.bf16.msra.mxu3 %v1685_v16 }
0x101b   : > { %4427 = vmatmul.msk.bf16.vlgmr.msra.gmra.mxu3 %vm1318_vm8, %v4658_v11 }
0x101c   : > { %1968 = vmatpush.bf16.msrb.mxu3 %v1956_v14 }
0x1028   : > { %v1954_v18 = vpop.permute.xlu0 %1953 }
0x1029   : > { %1969 = vmatpush.bf16.msrb.mxu3 %v1954_v18 }
0x102d   : > { %1970 = vmatpush.bf16.msrb.mxu3 %v1952_v19 }
0x1030   : > { %v1950_v20 = vpop.permute.xlu0 %1949  ;;  %v1948_v22 = vpop.permute.xlu1 %1947 }
0x1031   : > { %1971 = vmatpush.bf16.msrb.mxu3 %v1950_v20 }
0x1035   : > { %1972 = vmatpush.bf16.msrb.mxu3 %v1948_v22 }
0x1038   : > { %v1944_v24 = vpop.permute.xlu0 %1943  ;;  %v1931_v30 = vpop.permute.xlu1 %1930 }
0x1039   : > { %1973 = vmatpush.bf16.msrb.mxu3 %v1946_v23 }
0x103d   : > { %1974 = vmatpush.bf16.msrb.mxu3 %v1944_v24 }
0x1040   : > { %4454 = vmatmul.msk.bf16.vlgmr.msrb.gmra.mxu3 %vm1773_vm4, %v4664_v27 }
0x109e   : > { %v5305_v28 = vpop.f32.mrf.mxu3 }
0x10a6   : > { %v5307_v29 = vpop.f32.mrf.mxu3 }
0x10c3   : > { %v1976_v31 = vpop.f32.mrf.mxu3 }
0x10c4   : > { %v1977_v32 = vadd.f32 %v1976_v31, %v1931_v30 }
0x10c6   : > { %vm1981_vm11 = vcmp.ge.f32.partialorder %v1977_v32, 0.0  ;;  %v1983_v33 = vmul.f32 0.1, %v1977_v32 }
0x10c8   : > { %v1985_v34 = vsel %vm1981_vm11, %v1977_v32, %v1983_v33 }
0x10c9   : > { %v1987_v35 = vpack.c.bf16 %v1985_v34, %v1985_v34 }
0x10cb   : > { %v1978_v37 = vpop.f32.mrf.mxu3  ;;  %1991 = vrot.lane.b32.xlu0 %v1987_v35, %s5762_s28 }
0x10cc   : > { %v1979_v38 = vadd.f32 %v1978_v37, %v1936_v36 }
0x10ce   : > { %vm1982_vm12 = vcmp.ge.f32.partialorder %v1979_v38, 0.0  ;;  %v1984_v39 = vmul.f32 0.1, %v1979_v38 }
0x10d0   : > { %v1986_v40 = vsel %vm1982_vm12, %v1979_v38, %v1984_v39 }
0x10d1   : > { %v1988_v41 = vpack.c.bf16 %v1986_v40, %v1986_v40 }
0x10d3   : > { %1993 = vrot.lane.b32.xlu1 %v1988_v41, %s5762_s28 }
0x113d   : > { %v1992_v42 = vpop.permute.xlu0 %1991 }
0x113e   : > { %1997 = vst.msk [vmem:[#allocation2] sm:$0xf] %vm1276_vm7, %v1992_v42 }
0x1145   : > { %v1994_v43 = vpop.permute.xlu1 %1993 }
0x1146   : > { %1998 = vst.msk [vmem:[#allocation2 + $0x4] sm:$0xf] %vm1276_vm7, %v1994_v43 }
0x114d   : > { %v4665_v44 = vld [vmem:[#allocation2] sm:$0xff] }
0x114e   : > { %2014 = vrot.lane.b32.xlu1 %v4665_v44, %s5759_s0  ;;  %2016 = vrot.lane.b32.xlu0 %v4665_v44, %s5868_s16  ;;  %s5764_s0 = smov 98  }
0x114f   : > { %2018 = vrot.lane.b32.xlu2 %v4665_v44, %s5758_s11  ;;  %s5766_s11 = smov 103  }
0x1156   : > { %2008 = vrot.lane.b32.xlu1 %v4665_v44, %s5757_s7  ;;  %2010 = vrot.lane.b32.xlu0 %v4665_v44, %s5869_s26  ;;  %s5874_s7 = smov 108  }
0x1157   : > { %2012 = vrot.lane.b32.xlu2 %v4665_v44, %s5756_s10  ;;  %s5872_s10 = sld [smem:[#allocation22_spill]] }
0x115d   : > { %v4666_v63 = vld [vmem:[%s5872_s10] sm:$0xff]  ;;  %s5873_s10 = sld [smem:[#allocation25_spill]] }
0x1163   : > { %v2117_v24 = vld [vmem:[%s5873_s10 + $0x8] sm:$0xff]  ;;  %v2116_v33 = vld [vmem:[%s5873_s10] sm:$0xff]  ;;  %s5795_s10 = smov 80  }
0x11a9   : > { %v2019_v45 = vpop.permute.xlu2 %2018 }
0x11aa   : > { %2049 = vrot.lane.b32.xlu2 %v2019_v45, %s5871_s18 }
0x11b1   : > { %v2013_v47 = vpop.permute.xlu2 %2012 }
0x11b2   : > { %2043 = vrot.lane.b32.xlu2 %v2013_v47, %s5871_s18 }
0x11ba   : > { %2037 = vrot.lane.b32.xlu2 %v4665_v44, %s5871_s18 }
0x11c0   : > { %v2015_v48 = vpop.permute.xlu1 %2014  ;;  %v2017_v49 = vpop.permute.xlu0 %2016 }
0x11c1   : > { %2045 = vrot.lane.b32.xlu1 %v2015_v48, %s5871_s18  ;;  %2047 = vrot.lane.b32.xlu0 %v2017_v49, %s5871_s18 }
0x11c8   : > { %v2009_v50 = vpop.permute.xlu1 %2008  ;;  %v2011_v51 = vpop.permute.xlu0 %2010 }
0x11c9   : > { %2039 = vrot.lane.b32.xlu1 %v2009_v50, %s5871_s18  ;;  %2041 = vrot.lane.b32.xlu0 %v2011_v51, %s5871_s18 }
0x11d1   : > { %2029 = vperm.xlu1 %4781, %v2021_v52   ;;  %2024 = vperm.xlu0 %4783, %v2020_v54  }
0x1204   : > { %v2050_v55 = vpop.permute.xlu2 %2049 }
0x1205   : > { %2062 = vmatpush.bf16.msra.mxu1 %v2050_v55 }
0x120c   : > { %v2044_v58 = vpop.permute.xlu2 %2043 }
0x1214   : > { %v2038_v61 = vpop.permute.xlu2 %2037 }
0x1233   : > { %v2048_v56 = vpop.permute.xlu0 %2047  ;;  %v2046_v57 = vpop.permute.xlu1 %2045 }
0x1234   : > { %2063 = vmatpush.bf16.msra.mxu1 %v2048_v56 }
0x1238   : > { %2064 = vmatpush.bf16.msra.mxu1 %v2046_v57 }
0x123b   : > { %v2042_v59 = vpop.permute.xlu0 %2041  ;;  %v2040_v60 = vpop.permute.xlu1 %2039 }
0x123c   : > { %2065 = vmatpush.bf16.msra.mxu1 %v2044_v58 }
0x1240   : > { %2066 = vmatpush.bf16.msra.mxu1 %v2042_v59 }
0x1243   : > { %v2025_v0 = vpop.permute.xlu0 %2024  ;;  %v2030_v8 = vpop.permute.xlu1 %2029 }
0x1244   : > { %2067 = vmatpush.bf16.msra.mxu1 %v2040_v60 }
0x1248   : > { %2068 = vmatpush.bf16.msra.mxu1 %v2038_v61 }
0x124b   : > { %4463 = vmatmul.msk.bf16.vlgmr.msra.gmra.mxu1 %vm1773_vm4, %v4666_v63 }
0x12c8   : > { %v2070_v1 = vpop.f32.mrf.mxu1 }
0x12c9   : > { %v2071_v3 = vadd.f32 %v2070_v1, %v2025_v0  ;;  %v4484_v0 = vld [vmem:[%s5883_s5] sm:$0xf]  ;;  %v4673_v1 = vld [vmem:[%s5883_s5 + $0x4] sm:$0xf0] }
0x12cb   : > { %v5331_v4 = vadd.f32 %v2071_v3, %v5270_v46  ;;  %v5387_v3 = vor.u32 %v4673_v1, %v4484_v0 }
0x12cd   : > { %vm2077_vm13 = vcmp.ge.f32.partialorder %v5331_v4, 0.0  ;;  %v2079_v5 = vmul.f32 0.1, %v5331_v4 }
0x12cf   : > { %v2081_v2 = vsel %vm2077_vm13, %v5331_v4, %v2079_v5  ;;  %v2542_v5 = vld [vmem:[%s5886_s6] sm:$0xff] }
0x12d0   : > { %v2072_v9 = vpop.f32.mrf.mxu1  ;;  %v2083_v13 = vpack.c.bf16 %v2081_v2, %v2081_v2  ;;  %v4672_v2 = vld [vmem:[%s5883_s5 + $0x4] sm:$0xf] }
0x12d1   : > { %v2073_v14 = vadd.f32 %v2072_v9, %v2030_v8  ;;  %v4498_v8 = vld [vmem:[%s5883_s5 + $0x8] sm:$0xf0]  ;;  %s5895_s5 = smov 102  }
0x12d2   : > { %2087 = vrot.lane.b32.xlu2 %v2083_v13, %s5762_s28  ;;  %v5412_v9 = vor.u32 %v4672_v2, %v4498_v8 }
0x12d3   : > { %v5338_v16 = vadd.f32 %v2073_v14, %v5277_v53  ;;  %v2543_v14 = vld [vmem:[%s5886_s6 + $0x8] sm:$0xff]  ;;  %s5896_s6 = smov 64  }
0x12d5   : > { %vm2078_vm14 = vcmp.ge.f32.partialorder %v5338_v16, 0.0  ;;  %v2080_v46 = vmul.f32 0.1, %v5338_v16 }
0x12d7   : > { %v2082_v11 = vsel %vm2078_vm14, %v5338_v16, %v2080_v46 }
0x12d8   : > { %v2084_v18 = vpack.c.bf16 %v2082_v11, %v2082_v11 }
0x12da   : > { %2089 = vrot.lane.b32.xlu0 %v2084_v18, %s5762_s28  ;;  %s5876_s28 = smov 113  }
0x132c   : > { %v2088_v19 = vpop.permute.xlu2 %2087 }
0x132d   : > { %2093 = vst.msk [vmem:[#allocation2] sm:$0xf] %vm1276_vm7, %v2088_v19 }
0x134c   : > { %v2090_v20 = vpop.permute.xlu0 %2089 }
0x134d   : > { %2094 = vst.msk [vmem:[#allocation2 + $0x4] sm:$0xf] %vm1276_vm7, %v2090_v20 }
0x1354   : > { %v4667_v22 = vld [vmem:[#allocation2] sm:$0xff] }
0x1355   : > { %2110 = vrot.lane.b32.xlu0 %v4667_v22, %s5874_s7  ;;  %2112 = vrot.lane.b32.xlu2 %v4667_v22, %s5766_s11  ;;  %s5878_s11 = smov 25  }
0x1356   : > { %2114 = vrot.lane.b32.xlu1 %v4667_v22, %s5764_s0  ;;  %s5877_s0 = sld [smem:[#allocation24_spill]] }
0x135c   : > { %v4668_v40 = vld [vmem:[%s5877_s0] sm:$0xff]  ;;  %s5879_s0 = smov 124  }
0x135d   : > { %2104 = vrot.lane.b32.xlu0 %v4667_v22, %s5868_s16  ;;  %2106 = vrot.lane.b32.xlu2 %v4667_v22, %s5875_s15 }
0x135e   : > { %2108 = vrot.lane.b32.xlu1 %v4667_v22, %s5876_s28 }
0x13af   : > { %v2113_v53 = vpop.permute.xlu2 %2112 }
0x13b0   : > { %2141 = vrot.lane.b32.xlu2 %v2113_v53, %s5875_s15 }
0x13b7   : > { %v2107_v23 = vpop.permute.xlu2 %2106 }
0x13b8   : > { %2135 = vrot.lane.b32.xlu2 %v2107_v23, %s5875_s15 }
0x13c0   : > { %2125 = vperm.xlu2 %4782, %v2117_v24  }
0x13c7   : > { %v2111_v27 = vpop.permute.xlu0 %2110 }
0x13c8   : > { %v2115_v30 = vpop.permute.xlu1 %2114  ;;  %2139 = vrot.lane.b32.xlu0 %v2111_v27, %s5875_s15 }
0x13c9   : > { %2143 = vrot.lane.b32.xlu1 %v2115_v30, %s5875_s15 }
0x13cf   : > { %v2105_v31 = vpop.permute.xlu0 %2104 }
0x13d0   : > { %v2109_v32 = vpop.permute.xlu1 %2108  ;;  %2133 = vrot.lane.b32.xlu0 %v2105_v31, %s5875_s15 }
0x13d1   : > { %2137 = vrot.lane.b32.xlu1 %v2109_v32, %s5875_s15 }
0x13d9   : > { %2120 = vperm.xlu1 %4781, %v2116_v33  }
0x140a   : > { %v2142_v35 = vpop.permute.xlu2 %2141 }
0x1412   : > { %v2136_v38 = vpop.permute.xlu2 %2135 }
0x141a   : > { %v2126_v48 = vpop.permute.xlu2 %2125 }
0x143a   : > { %v2140_v36 = vpop.permute.xlu0 %2139 }
0x143b   : > { %v2144_v34 = vpop.permute.xlu1 %2143 }
0x143c   : > { %2156 = vmatpush.bf16.msrb.mxu1 %v2144_v34 }
0x1440   : > { %2157 = vmatpush.bf16.msrb.mxu1 %v2142_v35 }
0x1442   : > { %v2134_v39 = vpop.permute.xlu0 %2133 }
0x1443   : > { %v2138_v37 = vpop.permute.xlu1 %2137 }
0x1444   : > { %2158 = vmatpush.bf16.msrb.mxu1 %v2140_v36 }
0x1448   : > { %2159 = vmatpush.bf16.msrb.mxu1 %v2138_v37 }
0x144b   : > { %v2121_v41 = vpop.permute.xlu1 %2120 }
0x144c   : > { %2160 = vmatpush.bf16.msrb.mxu1 %v2136_v38 }
0x1450   : > { %2161 = vmatpush.bf16.msrb.mxu1 %v2134_v39 }
0x1454   : > { %2162 = vmatpush.bf16.msrb.mxu1 %v2107_v23 }
0x1457   : > { %4472 = vmatmul.msk.bf16.vlgmr.msrb.gmra.mxu1 %vm1773_vm4, %v4668_v40 }
0x14d4   : > { %v2164_v42 = vpop.f32.mrf.mxu1 }
0x14d5   : > { %v2165_v43 = vadd.f32 %v2164_v42, %v2121_v41 }
0x14d7   : > { %vm2169_vm15 = vcmp.ge.f32.partialorder %v2165_v43, 0.0  ;;  %v2171_v44 = vmul.f32 0.1, %v2165_v43 }
0x14d9   : > { %v2173_v45 = vsel %vm2169_vm15, %v2165_v43, %v2171_v44 }
0x14da   : > { %v2175_v47 = vpack.c.bf16 %v2173_v45, %v2173_v45 }
0x14dc   : > { %v2166_v49 = vpop.f32.mrf.mxu1  ;;  %2179 = vrot.lane.b32.xlu0 %v2175_v47, %s5878_s11 }
0x14dd   : > { %v2167_v50 = vadd.f32 %v2166_v49, %v2126_v48 }
0x14df   : > { %vm2170_vm1 = vcmp.ge.f32.partialorder %v2167_v50, 0.0  ;;  %v2172_v51 = vmul.f32 0.1, %v2167_v50 }
0x14e1   : > { %v2174_v52 = vsel %vm2170_vm1, %v2167_v50, %v2172_v51 }
0x14e2   : > { %v2176_v54 = vpack.c.bf16 %v2174_v52, %v2174_v52 }
0x14e4   : > { %2181 = vrot.lane.b32.xlu1 %v2176_v54, %s5878_s11 }
0x154e   : > { %v2180_v55 = vpop.permute.xlu0 %2179 }
0x154f   : > { %2185 = vst.msk [vmem:[#allocation2] sm:$0xf] %vm1276_vm7, %v2180_v55 }
0x1550   : > { %2267 = vst.msk [vmem:[#allocation2] sm:$0xf] %vm1276_vm7, %v5123_v25 }
0x1556   : > { %v2182_v56 = vpop.permute.xlu1 %2181 }
0x1557   : > { %2186 = vst.msk [vmem:[#allocation2 + $0x4] sm:$0xf] %vm1276_vm7, %v2182_v56 }
0x155e   : > { %v4669_v57 = vld [vmem:[#allocation2] sm:$0xff] }
0x155f   : > { %2268 = vst.msk [vmem:[#allocation2 + $0x4] sm:$0xf] %vm1276_vm7, %v5127_v26  ;;  %2202 = vrot.lane.b32.xlu1 %v4669_v57, %s5879_s0  ;;  %2204 = vrot.lane.b32.xlu0 %v4669_v57, %s5868_s16  ;;  %s5776_s0 = smov 96  }
0x1560   : > { %2206 = vrot.lane.b32.xlu2 %v4669_v57, %s5880_s1  ;;  %s5885_s1 = smov 112  }
0x1566   : > { %v4671_v60 = vld [vmem:[#allocation2] sm:$0xff] }
0x1567   : > { %2196 = vrot.lane.b32.xlu1 %v4669_v57, %s5881_s2  ;;  %2198 = vrot.lane.b32.xlu0 %v4669_v57, %s5869_s26  ;;  %s5771_s2 = smov 107   ;;  %s5773_s26 = smov 48  }
0x1568   : > { %2200 = vrot.lane.b32.xlu2 %v4669_v57, %s5882_s3  ;;  %s5884_s3 = smov 103  }
0x15ba   : > { %v2207_v25 = vpop.permute.xlu2 %2206 }
0x15bb   : > { %2237 = vrot.lane.b32.xlu2 %v2207_v25, %s5871_s18 }
0x15c2   : > { %v2201_v58 = vpop.permute.xlu2 %2200 }
0x15c3   : > { %2231 = vrot.lane.b32.xlu2 %v2201_v58, %s5871_s18 }
0x15cb   : > { %2225 = vrot.lane.b32.xlu2 %v4669_v57, %s5871_s18 }
0x15d1   : > { %v2203_v26 = vpop.permute.xlu1 %2202  ;;  %v2205_v59 = vpop.permute.xlu0 %2204 }
0x15d2   : > { %2233 = vrot.lane.b32.xlu1 %v2203_v26, %s5871_s18  ;;  %2235 = vrot.lane.b32.xlu0 %v2205_v59, %s5871_s18 }
0x15d3   : > { %2305 = vrot.lane.b32.xlu2 %v4671_v60, %s5874_s7 }
0x15d9   : > { %v2197_v61 = vpop.permute.xlu1 %2196  ;;  %v2199_v63 = vpop.permute.xlu0 %2198 }
0x15da   : > { %2227 = vrot.lane.b32.xlu1 %v2197_v61, %s5871_s18  ;;  %2229 = vrot.lane.b32.xlu0 %v2199_v63, %s5871_s18 }
0x15db   : > { %2399 = vrot.lane.b32.xlu2 %v4671_v60, %s5884_s3 }
0x15e2   : > { %2278 = vrot.lane.b32.xlu1 %v5387_v3, %s5885_s1  ;;  %2285 = vrot.lane.b32.xlu0 %v4671_v60, %s5771_s2  ;;  %s5787_s2 = smov 105  }
0x15e3   : > { %2397 = vrot.lane.b32.xlu2 %v5387_v3, %s5773_s26  ;;  %s5783_s26 = smov 101  }
0x15ea   : > { %2325 = vrot.lane.b32.xlu1 %v5387_v3, %s5776_s0  ;;  %2327 = vrot.lane.b32.xlu0 %v4671_v60, %s5871_s18  ;;  %s5887_s0 = smov 104  }
0x15eb   : > { %2421 = vrot.lane.b32.xlu2 %v5387_v3, %s5779_s8  ;;  %s5789_s8 = smov 99  }
0x15f2   : > { %2423 = vrot.lane.b32.xlu1 %v4671_v60, %s5781_s9  ;;  %2351 = vrot.lane.b32.xlu0 %v4671_v60, %s5787_s2  ;;  %s5793_s9 = smov 64   ;;  %s5889_s2 = smov 96  }
0x15f3   : > { %2447 = vrot.lane.b32.xlu2 %v4671_v60, %s5783_s26  ;;  %s5888_s26 = smov 98  }
0x15fa   : > { %2349 = vrot.lane.b32.xlu1 %v5387_v3, %s5795_s10  ;;  %2375 = vrot.lane.b32.xlu0 %v4671_v60, %s5887_s0 }
0x15fb   : > { %2472 = vrot.lane.b32.xlu2 %v4671_v60, %s5785_s12  ;;  %s5791_s12 = smov 16  }
0x1602   : > { %2496 = vrot.lane.b32.xlu1 %v4671_v60, %s5789_s8  ;;  %2373 = vrot.lane.b32.xlu0 %v5387_v3, %s5793_s9  ;;  %s5890_s8 = sld [smem:[#allocation26_spill]]  ;;  %s5893_s9 = smov 107  }
0x1603   : > { %2546 = vperm.xlu2 %4782, %v2542_v5  }
0x1608   : > { %v4670_v31 = vld [vmem:[%s5890_s8] sm:$0xff]  ;;  %s5891_s8 = sld [smem:[#allocation30_spill]] }
0x160a   : > { %2520 = vrot.lane.b32.xlu0 %v4671_v60, %s5888_s26  ;;  %2494 = vrot.lane.b32.xlu1 %v5412_v9, %s5885_s1 }
0x1612   : > { %2445 = vrot.lane.b32.xlu0 %v5387_v3, %s5791_s12  ;;  %2518 = vrot.lane.b32.xlu1 %v5412_v9, %s5889_s2  ;;  %s5892_s12 = smov 105  }
0x1615   : > { %v2238_v13 = vpop.permute.xlu2 %2237 }
0x1616   : > { %2250 = vmatpush.bf16.msrb.mxu2 %v2238_v13 }
0x161a   : > { %2551 = vperm.xlu0 %4783, %v2543_v14  }
0x161d   : > { %v2232_v46 = vpop.permute.xlu2 %2231 }
0x1625   : > { %v2226_v11 = vpop.permute.xlu2 %2225 }
0x162d   : > { %v2306_v18 = vpop.permute.xlu2 %2305 }
0x1635   : > { %v2400_v22 = vpop.permute.xlu2 %2399 }
0x163d   : > { %v2398_v24 = vpop.permute.xlu2 %2397 }
0x1644   : > { %v2234_v19 = vpop.permute.xlu1 %2233  ;;  %v2236_v20 = vpop.permute.xlu0 %2235 }
0x1645   : > { %2251 = vmatpush.bf16.msrb.mxu2 %v2236_v20  ;;  %v2422_v32 = vpop.permute.xlu2 %2421 }
0x1649   : > { %2252 = vmatpush.bf16.msrb.mxu2 %v2234_v19 }
0x164c   : > { %v2228_v53 = vpop.permute.xlu1 %2227  ;;  %v2230_v23 = vpop.permute.xlu0 %2229 }
0x164d   : > { %2253 = vmatpush.bf16.msrb.mxu2 %v2232_v46  ;;  %v2448_v35 = vpop.permute.xlu2 %2447 }
0x1651   : > { %2254 = vmatpush.bf16.msrb.mxu2 %v2230_v23 }
0x1654   : > { %v2279_v27 = vpop.permute.xlu1 %2278  ;;  %v2286_v30 = vpop.permute.xlu0 %2285 }
0x1655   : > { %2255 = vmatpush.bf16.msrb.mxu2 %v2228_v53  ;;  %2298 = vmatpush.bf16.msra.mxu3 %v2286_v30  ;;  %v2473_v40 = vpop.permute.xlu2 %2472 }
0x1658   : > { %4490 = vmatmul.msk.bf16.vlgmr.msra.gmra.mxu3 %vm1230_vm0, %v2279_v27 }
0x1659   : > { %2256 = vmatpush.bf16.msrb.mxu2 %v2226_v11 }
0x165c   : > { %v2326_v33 = vpop.permute.xlu1 %2325  ;;  %v2328_v34 = vpop.permute.xlu0 %2327  ;;  %4481 = vmatmul.msk.bf16.vlgmr.msrb.gmra.mxu2 %vm1773_vm4, %v4670_v31 }
0x165d   : > { %2318 = vmatpush.bf16.msra.mxu2 %v2306_v18  ;;  %2340 = vmatpush.bf16.msrb.mxu3 %v2328_v34 }
0x1661   : > { %2412 = vmatpush.bf16.msrb.mxu2 %v2400_v22 }
0x1664   : > { %v2424_v36 = vpop.permute.xlu1 %2423  ;;  %v2352_v37 = vpop.permute.xlu0 %2351 }
0x1665   : > { %2364 = vmatpush.bf16.msrb.mxu0 %v2352_v37  ;;  %2436 = vmatpush.bf16.msra.mxu3 %v2424_v36 }
0x1668   : > { %4492 = vmatmul.msk.bf16.vlgmr.msrb.gmra.mxu3 %vm1230_vm0, %v2326_v33  ;;  %v2547_v33 = vpop.permute.xlu2 %2546 }
0x1669   : > { %2460 = vmatpush.bf16.msra.mxu0 %v2448_v35 }
0x166c   : > { %v2350_v38 = vpop.permute.xlu1 %2349  ;;  %v2376_v39 = vpop.permute.xlu0 %2375  ;;  %4491 = vmatmul.msk.bf16.vlgmr.msra.gmra.mxu2 %vm1230_vm0, %v5387_v3 }
0x166d   : > { %2388 = vmatpush.bf16.msra.mxu1 %v2376_v39  ;;  %4493 = vmatmul.msk.bf16.vlgmr.msrb.gmra.mxu0 %vm1230_vm0, %v2350_v38 }
0x1671   : > { %2485 = vmatpush.bf16.msrb.mxu1 %v2473_v40 }
0x1674   : > { %v2497_v41 = vpop.permute.xlu1 %2496  ;;  %v2374_v42 = vpop.permute.xlu0 %2373 }
0x1675   : > { %2509 = vmatpush.bf16.msra.mxu2 %v2497_v41  ;;  %4494 = vmatmul.msk.bf16.vlgmr.msra.gmra.mxu1 %vm1230_vm0, %v2374_v42 }
0x1678   : > { %4496 = vmatmul.msk.bf16.vlgmr.msra.gmra.mxu3 %vm1230_vm0, %v2422_v32 }
0x167c   : > { %v2521_v43 = vpop.permute.xlu0 %2520  ;;  %4495 = vmatmul.msk.bf16.vlgmr.msrb.gmra.mxu2 %vm1230_vm0, %v2398_v24  ;;  %v2495_v44 = vpop.permute.xlu1 %2494 }
0x167d   : > { %2533 = vmatpush.bf16.msrb.mxu3 %v2521_v43 }
0x1684   : > { %v2446_v45 = vpop.permute.xlu0 %2445  ;;  %v2519_v47 = vpop.permute.xlu1 %2518 }
0x1685   : > { %4497 = vmatmul.msk.bf16.vlgmr.msra.gmra.mxu0 %vm1230_vm0, %v2446_v45  ;;  %4502 = vmatmul.msk.bf16.vlgmr.msrb.gmra.mxu1 %vm1230_vm0, %v5412_v9 }
0x1688   : > { %4504 = vmatmul.msk.bf16.vlgmr.msrb.gmra.mxu3 %vm1230_vm0, %v2519_v47 }
0x168c   : > { %4503 = vmatmul.msk.bf16.vlgmr.msra.gmra.mxu2 %vm1230_vm0, %v2495_v44  ;;  %v2552_v44 = vpop.permute.xlu0 %2551 }
0x16db   : > { %v2300_v48 = vpop.f32.mrf.mxu3 }
0x16df   : > { %v5437_v49 = vpop.f32.mrf.mxu2 }
0x16e3   : > { %v2302_v50 = vpop.f32.mrf.mxu3 }
0x16e7   : > { %v5439_v51 = vpop.f32.mrf.mxu2 }
0x16ea   : > { %v2366_v55 = vpop.f32.mrf.mxu0 }
0x16eb   : > { %v2342_v52 = vpop.f32.mrf.mxu3 }
0x16ef   : > { %v2320_v54 = vpop.f32.mrf.mxu2 }
0x16f0   : > { %v2321_v57 = vadd.f32 %v2320_v54, %v2300_v48  ;;  %v4676_v54 = vld [vmem:[%s5891_s8 + $0x4] sm:$0xf0] }
0x16f2   : > { %v2390_v25 = vpop.f32.mrf.mxu1  ;;  %v2347_v26 = vadd.f32 %v2342_v52, %v2321_v57  ;;  %v2368_v60 = vpop.f32.mrf.mxu0  ;;  %v4507_v52 = vld [vmem:[%s5891_s8] sm:$0xf] }
0x16f3   : > { %v2344_v56 = vpop.f32.mrf.mxu3 }
0x16f4   : > { %v2371_v61 = vadd.f32 %v2366_v55, %v2347_v26  ;;  %v4508_v55 = vor.u32 %v4676_v54, %v4507_v52  ;;  %v4521_v26 = vld [vmem:[%s5891_s8 + $0x8] sm:$0xf0] }
0x16f6   : > { %v2395_v1 = vadd.f32 %v2390_v25, %v2371_v61  ;;  %2654 = vrot.lane.b32.xlu0 %v4508_v55, %s5795_s10  ;;  %s5894_s10 = sld [smem:[#allocation31_spill]] }
0x16f7   : > { %v2322_v58 = vpop.f32.mrf.mxu2 }
0x16f8   : > { %v2323_v63 = vadd.f32 %v2322_v58, %v2302_v50  ;;  %v4675_v58 = vld [vmem:[%s5891_s8 + $0x4] sm:$0xf]  ;;  %s5903_s8 = sld [smem:[#allocation32_spill]] }
0x16fa   : > { %v2348_v3 = vadd.f32 %v2344_v56, %v2323_v63  ;;  %v2392_v5 = vpop.f32.mrf.mxu1 }
0x16fb   : > { %v2438_v59 = vpop.f32.mrf.mxu3 }
0x16fc   : > { %v2372_v8 = vadd.f32 %v2368_v60, %v2348_v3  ;;  %v2847_v60 = vld [vmem:[%s5894_s10] sm:$0xff]  ;;  %v2848_v61 = vld [vmem:[%s5894_s10 + $0x8] sm:$0xff]  ;;  %s5904_s10 = smov 80  }
0x16fe   : > { %v2396_v11 = vadd.f32 %v2392_v5, %v2372_v8 }
0x16ff   : > { %v2414_v0 = vpop.f32.mrf.mxu2 }
0x1700   : > { %v2419_v2 = vadd.f32 %v2414_v0, %v2395_v1 }
0x1702   : > { %v2462_v9 = vpop.f32.mrf.mxu0  ;;  %v2443_v14 = vadd.f32 %v2438_v59, %v2419_v2  ;;  %v2487_v18 = vpop.f32.mrf.mxu1  ;;  %v4524_v59 = vor.u32 %v4675_v58, %v4521_v26 }
0x1703   : > { %v2440_v13 = vpop.f32.mrf.mxu3 }
0x1704   : > { %v2467_v19 = vadd.f32 %v2462_v9, %v2443_v14 }
0x1706   : > { %v2492_v22 = vadd.f32 %v2487_v18, %v2467_v19 }
0x1707   : > { %v2416_v46 = vpop.f32.mrf.mxu2 }
0x1708   : > { %v2420_v20 = vadd.f32 %v2416_v46, %v2396_v11 }
0x170a   : > { %v2444_v53 = vadd.f32 %v2440_v13, %v2420_v20  ;;  %v2464_v23 = vpop.f32.mrf.mxu0  ;;  %v2489_v34 = vpop.f32.mrf.mxu1 }
0x170b   : > { %v2535_v24 = vpop.f32.mrf.mxu3 }
0x170c   : > { %v2468_v31 = vadd.f32 %v2464_v23, %v2444_v53 }
0x170e   : > { %v2493_v36 = vadd.f32 %v2489_v34, %v2468_v31 }
0x170f   : > { %v2511_v27 = vpop.f32.mrf.mxu2 }
0x1710   : > { %v2516_v30 = vadd.f32 %v2511_v27, %v2492_v22 }
0x1712   : > { %v2540_v32 = vadd.f32 %v2535_v24, %v2516_v30 }
0x1713   : > { %v2537_v41 = vpop.f32.mrf.mxu3 }
0x1714   : > { %v2554_v35 = vadd.f32 %v2547_v33, %v2540_v32 }
0x1716   : > { %vm2556_vm2 = vcmp.ge.f32.partialorder %v2554_v35, 0.0  ;;  %v2558_v37 = vmul.f32 0.1, %v2554_v35 }
0x1717   : > { %v2513_v38 = vpop.f32.mrf.mxu2 }
0x1718   : > { %v2517_v39 = vadd.f32 %v2513_v38, %v2493_v36  ;;  %v2560_v40 = vsel %vm2556_vm2, %v2554_v35, %v2558_v37 }
0x1719   : > { %v2562_v42 = vpack.c.bf16 %v2560_v40, %v2560_v40 }
0x171a   : > { %v2541_v43 = vadd.f32 %v2537_v41, %v2517_v39 }
0x171b   : > { %2566 = vrot.lane.b32.xlu1 %v2562_v42, %s5878_s11 }
0x171c   : > { %v2555_v45 = vadd.f32 %v2552_v44, %v2541_v43 }
0x171e   : > { %v2559_v47 = vmul.f32 0.1, %v2555_v45  ;;  %vm2557_vm3 = vcmp.ge.f32.partialorder %v2555_v45, 0.0 }
0x1720   : > { %v2561_v48 = vsel %vm2557_vm3, %v2555_v45, %v2559_v47 }
0x1721   : > { %v2563_v50 = vpack.c.bf16 %v2561_v48, %v2561_v48 }
0x1723   : > { %2568 = vrot.lane.b32.xlu2 %v2563_v50, %s5878_s11  ;;  %2583 = vrot.lane.b32.xlu1 %v4508_v55, %s5885_s1 }
0x172b   : > { %2630 = vrot.lane.b32.xlu2 %v4508_v55, %s5889_s2 }
0x1768   : > { %v2655_v1 = vpop.permute.xlu0 %2654 }
0x177d   : > { %v2569_v56 = vpop.permute.xlu2 %2568 }
0x177e   : > { %2573 = vst.msk [vmem:[#allocation2 + $0x4] sm:$0xf] %vm1276_vm7, %v2569_v56 }
0x1785   : > { %v2631_v63 = vpop.permute.xlu2 %2630 }
0x178d   : > { %v2567_v57 = vpop.permute.xlu1 %2566 }
0x178e   : > { %2572 = vst.msk [vmem:[#allocation2] sm:$0xf] %vm1276_vm7, %v2567_v57 }
0x1795   : > { %v4674_v25 = vld [vmem:[#allocation2] sm:$0xff]  ;;  %v2584_v3 = vpop.permute.xlu1 %2583 }
0x1796   : > { %2656 = vrot.lane.b32.xlu2 %v4674_v25, %s5892_s12  ;;  %2590 = vrot.lane.b32.xlu1 %v4674_v25, %s5893_s9 }
0x1797   : > { %2632 = vrot.lane.b32.xlu0 %v4674_v25, %s5871_s18 }
0x179e   : > { %2680 = vrot.lane.b32.xlu2 %v4674_v25, %s5887_s0  ;;  %2728 = vrot.lane.b32.xlu1 %v4674_v25, %s5895_s5 }
0x179f   : > { %2610 = vrot.lane.b32.xlu0 %v4674_v25, %s5874_s7 }
0x17a6   : > { %2678 = vrot.lane.b32.xlu2 %v4508_v55, %s5896_s6  ;;  %2704 = vrot.lane.b32.xlu1 %v4674_v25, %s5884_s3 }
0x17a7   : > { %2726 = vrot.lane.b32.xlu0 %v4508_v55, %s5897_s13 }
0x17ae   : > { %2750 = vrot.lane.b32.xlu2 %v4508_v55, %s5898_s14  ;;  %2752 = vrot.lane.b32.xlu1 %v4674_v25, %s5899_s17 }
0x17af   : > { %2702 = vrot.lane.b32.xlu0 %v4508_v55, %s5900_s19 }
0x17b6   : > { %2823 = vrot.lane.b32.xlu2 %v4524_v59, %s5889_s2  ;;  %2777 = vrot.lane.b32.xlu1 %v4674_v25, %s5901_s21 }
0x17b7   : > { %2825 = vrot.lane.b32.xlu0 %v4674_v25, %s5888_s26 }
0x17be   : > { %2851 = vperm.xlu2 %4782, %v2847_v60   ;;  %2799 = vrot.lane.b32.xlu1 %v4524_v59, %s5885_s1 }
0x17bf   : > { %2801 = vrot.lane.b32.xlu0 %v4674_v25, %s5902_s25 }
0x17c7   : > { %2856 = vperm.xlu0 %4783, %v2848_v61  }
0x17f0   : > { %v2657_v0 = vpop.permute.xlu2 %2656 }
0x17f1   : > { %2669 = vmatpush.bf16.msra.mxu3 %v2657_v0 }
0x17f4   : > { %4516 = vmatmul.msk.bf16.vlgmr.msra.gmra.mxu3 %vm1230_vm0, %v2655_v1 }
0x17f8   : > { %v2681_v2 = vpop.permute.xlu2 %2680 }
0x1800   : > { %v2679_v14 = vpop.permute.xlu2 %2678 }
0x1808   : > { %v2591_v5 = vpop.permute.xlu1 %2590  ;;  %v2751_v20 = vpop.permute.xlu2 %2750 }
0x1809   : > { %v2633_v8 = vpop.permute.xlu0 %2632  ;;  %2603 = vmatpush.bf16.msrb.mxu0 %v2591_v5 }
0x180a   : > { %2645 = vmatpush.bf16.msrb.mxu2 %v2633_v8 }
0x180c   : > { %4513 = vmatmul.msk.bf16.vlgmr.msrb.gmra.mxu0 %vm1230_vm0, %v2584_v3 }
0x180d   : > { %2693 = vmatpush.bf16.msra.mxu0 %v2681_v2  ;;  %4515 = vmatmul.msk.bf16.vlgmr.msrb.gmra.mxu2 %vm1230_vm0, %v2631_v63 }
0x1810   : > { %v2729_v9 = vpop.permute.xlu1 %2728  ;;  %v2824_v23 = vpop.permute.xlu2 %2823 }
0x1811   : > { %v2611_v13 = vpop.permute.xlu0 %2610  ;;  %2741 = vmatpush.bf16.msra.mxu2 %v2729_v9 }
0x1812   : > { %2623 = vmatpush.bf16.msra.mxu1 %v2611_v13 }
0x1815   : > { %4514 = vmatmul.msk.bf16.vlgmr.msra.gmra.mxu1 %vm1230_vm0, %v4508_v55 }
0x1818   : > { %v2705_v46 = vpop.permute.xlu1 %2704  ;;  %v2852_v8 = vpop.permute.xlu2 %2851 }
0x1819   : > { %v2727_v11 = vpop.permute.xlu0 %2726  ;;  %2717 = vmatpush.bf16.msrb.mxu1 %v2705_v46 }
0x181c   : > { %4517 = vmatmul.msk.bf16.vlgmr.msra.gmra.mxu0 %vm1230_vm0, %v2679_v14 }
0x181d   : > { %4519 = vmatmul.msk.bf16.vlgmr.msra.gmra.mxu2 %vm1230_vm0, %v2727_v11 }
0x1820   : > { %v2753_v18 = vpop.permute.xlu1 %2752 }
0x1821   : > { %v2703_v19 = vpop.permute.xlu0 %2702  ;;  %2765 = vmatpush.bf16.msrb.mxu3 %v2753_v18 }
0x1824   : > { %4520 = vmatmul.msk.bf16.vlgmr.msrb.gmra.mxu3 %vm1230_vm0, %v2751_v20 }
0x1825   : > { %4518 = vmatmul.msk.bf16.vlgmr.msrb.gmra.mxu1 %vm1230_vm0, %v2703_v19 }
0x1828   : > { %v2778_v22 = vpop.permute.xlu1 %2777 }
0x1829   : > { %v2826_v53 = vpop.permute.xlu0 %2825  ;;  %2790 = vmatpush.bf16.msrb.mxu0 %v2778_v22 }
0x182a   : > { %2838 = vmatpush.bf16.msrb.mxu2 %v2826_v53 }
0x182c   : > { %4525 = vmatmul.msk.bf16.vlgmr.msrb.gmra.mxu0 %vm1230_vm0, %v4524_v59 }
0x182d   : > { %4527 = vmatmul.msk.bf16.vlgmr.msrb.gmra.mxu2 %vm1230_vm0, %v2824_v23 }
0x1830   : > { %v2800_v27 = vpop.permute.xlu1 %2799 }
0x1831   : > { %v2802_v24 = vpop.permute.xlu0 %2801 }
0x1832   : > { %2814 = vmatpush.bf16.msra.mxu1 %v2802_v24 }
0x1835   : > { %4526 = vmatmul.msk.bf16.vlgmr.msra.gmra.mxu1 %vm1230_vm0, %v2800_v27 }
0x1839   : > { %v2857_v23 = vpop.permute.xlu0 %2856 }
0x1877   : > { %v2671_v34 = vpop.f32.mrf.mxu3 }
0x187f   : > { %v2673_v39 = vpop.f32.mrf.mxu3 }
0x1889   : > { %v2605_v30 = vpop.f32.mrf.mxu0 }
0x1890   : > { %v2647_v31 = vpop.f32.mrf.mxu2 }
0x1891   : > { %v2607_v32 = vpop.f32.mrf.mxu0 }
0x1892   : > { %v2625_v33 = vpop.f32.mrf.mxu1 }
0x1893   : > { %v2626_v38 = vadd.f32 %v2625_v33, %v2605_v30  ;;  %v4530_v33 = vld [vmem:[%s5903_s8] sm:$0xf] }
0x1895   : > { %v2652_v40 = vadd.f32 %v2647_v31, %v2626_v38  ;;  %v4678_v38 = vld [vmem:[%s5903_s8 + $0x4] sm:$0xf] }
0x1897   : > { %v2676_v45 = vadd.f32 %v2671_v34, %v2652_v40  ;;  %v4679_v34 = vld [vmem:[%s5903_s8 + $0x4] sm:$0xf0] }
0x1898   : > { %v2649_v35 = vpop.f32.mrf.mxu2 }
0x1899   : > { %v2695_v36 = vpop.f32.mrf.mxu0 }
0x189a   : > { %v2627_v37 = vpop.f32.mrf.mxu1  ;;  %v2700_v47 = vadd.f32 %v2695_v36, %v2676_v45 }
0x189b   : > { %v2628_v44 = vadd.f32 %v2627_v37, %v2607_v32 }
0x189d   : > { %v2653_v48 = vadd.f32 %v2649_v35, %v2628_v44  ;;  %v4531_v35 = vor.u32 %v4679_v34, %v4530_v33 }
0x189f   : > { %v2677_v56 = vadd.f32 %v2673_v39, %v2653_v48  ;;  %v4544_v39 = vld [vmem:[%s5903_s8 + $0x8] sm:$0xf0] }
0x18a0   : > { %v2743_v41 = vpop.f32.mrf.mxu2  ;;  %v4547_v40 = vor.u32 %v4678_v38, %v4544_v39 }
0x18a1   : > { %v2697_v42 = vpop.f32.mrf.mxu0 }
0x18a2   : > { %v2719_v43 = vpop.f32.mrf.mxu1  ;;  %v2701_v58 = vadd.f32 %v2697_v42, %v2677_v56  ;;  %v3155_v42 = vld [vmem:[%s5905_s23 + $0x8] sm:$0xff] }
0x18a3   : > { %v2724_v50 = vadd.f32 %v2719_v43, %v2700_v47 }
0x18a5   : > { %v2748_v57 = vadd.f32 %v2743_v41, %v2724_v50  ;;  %v3154_v41 = vld [vmem:[%s5905_s23] sm:$0xff]  ;;  %s4871_s23 = smov 83  }
0x18a7   : > { %v2767_v52 = vpop.f32.mrf.mxu3 }
0x18a8   : > { %v2745_v54 = vpop.f32.mrf.mxu2  ;;  %v2772_v26 = vadd.f32 %v2767_v52, %v2748_v57 }
0x18a9   : > { %v2792_v25 = vpop.f32.mrf.mxu0 }
0x18aa   : > { %v2721_v55 = vpop.f32.mrf.mxu1  ;;  %v2797_v60 = vadd.f32 %v2792_v25, %v2772_v26 }
0x18ab   : > { %v2725_v59 = vadd.f32 %v2721_v55, %v2701_v58 }
0x18ad   : > { %v2749_v1 = vadd.f32 %v2745_v54, %v2725_v59 }
0x18af   : > { %v2769_v61 = vpop.f32.mrf.mxu3 }
0x18b0   : > { %v2840_v63 = vpop.f32.mrf.mxu2  ;;  %v2773_v5 = vadd.f32 %v2769_v61, %v2749_v1 }
0x18b1   : > { %v2794_v9 = vpop.f32.mrf.mxu0 }
0x18b2   : > { %v2816_v0 = vpop.f32.mrf.mxu1  ;;  %v2798_v14 = vadd.f32 %v2794_v9, %v2773_v5 }
0x18b3   : > { %v2821_v3 = vadd.f32 %v2816_v0, %v2797_v60 }
0x18b5   : > { %v2845_v2 = vadd.f32 %v2840_v63, %v2821_v3 }
0x18b7   : > { %v2859_v13 = vadd.f32 %v2852_v8, %v2845_v2 }
0x18b8   : > { %v2842_v20 = vpop.f32.mrf.mxu2 }
0x18b9   : > { %v5483_v46 = vadd.f32 %v2859_v13, %v5111_v17 }
0x18ba   : > { %v2818_v11 = vpop.f32.mrf.mxu1 }
0x18bb   : > { %v2822_v18 = vadd.f32 %v2818_v11, %v2798_v14  ;;  %vm2863_vm4 = vcmp.ge.f32.partialorder %v5483_v46, 0.0  ;;  %v2865_v19 = vmul.f32 0.1, %v5483_v46 }
0x18bd   : > { %v2846_v22 = vadd.f32 %v2842_v20, %v2822_v18  ;;  %v2867_v53 = vsel %vm2863_vm4, %v5483_v46, %v2865_v19 }
0x18be   : > { %v2869_v24 = vpack.c.bf16 %v2867_v53, %v2867_v53 }
0x18bf   : > { %v2860_v27 = vadd.f32 %v2857_v23, %v2846_v22 }
0x18c0   : > { %2873 = vrot.lane.b32.xlu1 %v2869_v24, %s5878_s11 }
0x18c1   : > { %v5490_v17 = vadd.f32 %v2860_v27, %v5117_v21 }
0x18c3   : > { %vm2864_vm5 = vcmp.ge.f32.partialorder %v5490_v17, 0.0  ;;  %v2866_v30 = vmul.f32 0.1, %v5490_v17 }
0x18c5   : > { %v2868_v31 = vsel %vm2864_vm5, %v5490_v17, %v2866_v30  ;;  %vm4243_vm5 = vcmask 125952  }
0x18c6   : > { %v2870_v32 = vpack.c.bf16 %v2868_v31, %v2868_v31 }
0x18c8   : > { %2875 = vrot.lane.b32.xlu2 %v2870_v32, %s5878_s11  ;;  %2890 = vrot.lane.b32.xlu1 %v4531_v35, %s5885_s1 }
0x18d0   : > { %2937 = vrot.lane.b32.xlu1 %v4531_v35, %s5889_s2 }
0x18d8   : > { %2961 = vrot.lane.b32.xlu1 %v4531_v35, %s5904_s10 }
0x1922   : > { %v2876_v21 = vpop.permute.xlu2 %2875 }
0x1923   : > { %2880 = vst.msk [vmem:[#allocation2 + $0x4] sm:$0xf] %vm1276_vm7, %v2876_v21 }
0x1932   : > { %v2874_v36 = vpop.permute.xlu1 %2873 }
0x1933   : > { %2879 = vst.msk [vmem:[#allocation2] sm:$0xf] %vm1276_vm7, %v2874_v36 }
0x193a   : > { %v4677_v37 = vld [vmem:[#allocation2] sm:$0xff]  ;;  %v2891_v43 = vpop.permute.xlu1 %2890 }
0x193b   : > { %3035 = vrot.lane.b32.xlu1 %v4677_v37, %s5901_s21  ;;  %2917 = vrot.lane.b32.xlu2 %v4677_v37, %s5875_s15 }
0x193c   : > { %2897 = vrot.lane.b32.xlu0 %v4677_v37, %s4863_s27  ;;  %s5808_s27 = smov 88  }
0x1942   : > { %v2938_v45 = vpop.permute.xlu1 %2937 }
0x1943   : > { %3059 = vrot.lane.b32.xlu1 %v4677_v37, %s4864_s29  ;;  %2963 = vrot.lane.b32.xlu2 %v4677_v37, %s4865_s22  ;;  %s4867_s29 = smov 94   ;;  %s5907_s22 = sld [smem:[#allocation35_spill]] }
0x1944   : > { %2939 = vrot.lane.b32.xlu0 %v4677_v37, %s5885_s1 }
0x194a   : > { %v2962_v48 = vpop.permute.xlu1 %2961 }
0x194b   : > { %3108 = vrot.lane.b32.xlu1 %v4677_v37, %s4866_s24  ;;  %2985 = vrot.lane.b32.xlu2 %v4531_v35, %s5896_s6  ;;  %s5906_s24 = sld [smem:[#allocation34_spill]] }
0x194c   : > { %2987 = vrot.lane.b32.xlu0 %v4677_v37, %s5871_s18 }
0x1953   : > { %3009 = vrot.lane.b32.xlu2 %v4531_v35, %s5900_s19  ;;  %3130 = vrot.lane.b32.xlu1 %v4547_v40, %s5889_s2 }
0x1954   : > { %3011 = vrot.lane.b32.xlu0 %v4677_v37, %s5884_s3 }
0x195b   : > { %3084 = vrot.lane.b32.xlu2 %v4677_v37, %s4867_s29  ;;  %s5908_s29 = smov %s5907_s22 }
0x195c   : > { %3033 = vrot.lane.b32.xlu0 %v4531_v35, %s5897_s13 }
0x1963   : > { %3132 = vrot.lane.b32.xlu2 %v4677_v37, %s5808_s27 }
0x1964   : > { %3057 = vrot.lane.b32.xlu0 %v4531_v35, %s5898_s14 }
0x196b   : > { %3158 = vperm.xlu2 %4782, %v3154_v41  }
0x196c   : > { %3106 = vrot.lane.b32.xlu0 %v4547_v40, %s5885_s1 }
0x1974   : > { %3163 = vperm.xlu0 %4783, %v3155_v42  }
0x1995   : > { %v2918_v44 = vpop.permute.xlu2 %2917 }
0x1996   : > { %2930 = vmatpush.bf16.msra.mxu0 %v2918_v44 }
0x1999   : > { %4537 = vmatmul.msk.bf16.vlgmr.msra.gmra.mxu0 %vm1230_vm0, %v4531_v35 }
0x199d   : > { %v2964_v47 = vpop.permute.xlu2 %2963 }
0x199e   : > { %2976 = vmatpush.bf16.msra.mxu2 %v2964_v47 }
0x19a1   : > { %4539 = vmatmul.msk.bf16.vlgmr.msra.gmra.mxu2 %vm1230_vm0, %v2962_v48 }
0x19a5   : > { %v2986_v50 = vpop.permute.xlu2 %2985 }
0x19ad   : > { %v3036_v52 = vpop.permute.xlu1 %3035  ;;  %v3010_v54 = vpop.permute.xlu2 %3009 }
0x19ae   : > { %v2898_v55 = vpop.permute.xlu0 %2897 }
0x19af   : > { %2910 = vmatpush.bf16.msra.mxu3 %v2898_v55 }
0x19b2   : > { %4536 = vmatmul.msk.bf16.vlgmr.msra.gmra.mxu3 %vm1230_vm0, %v2891_v43 }
0x19b5   : > { %v3060_v56 = vpop.permute.xlu1 %3059  ;;  %v3085_v57 = vpop.permute.xlu2 %3084 }
0x19b6   : > { %v2940_v25 = vpop.permute.xlu0 %2939  ;;  %3072 = vmatpush.bf16.msrb.mxu2 %v3060_v56 }
0x19b7   : > { %2952 = vmatpush.bf16.msrb.mxu1 %v2940_v25 }
0x19ba   : > { %4538 = vmatmul.msk.bf16.vlgmr.msrb.gmra.mxu1 %vm1230_vm0, %v2938_v45 }
0x19bb   : > { %3048 = vmatpush.bf16.msra.mxu1 %v3036_v52 }
0x19bd   : > { %v3133_v58 = vpop.permute.xlu2 %3132  ;;  %v3109_v60 = vpop.permute.xlu1 %3108 }
0x19be   : > { %v2988_v26 = vpop.permute.xlu0 %2987 }
0x19bf   : > { %3145 = vmatpush.bf16.msrb.mxu1 %v3133_v58  ;;  %3000 = vmatpush.bf16.msrb.mxu3 %v2988_v26 }
0x19c2   : > { %4540 = vmatmul.msk.bf16.vlgmr.msrb.gmra.mxu3 %vm1230_vm0, %v2986_v50 }
0x19c3   : > { %3097 = vmatpush.bf16.msra.mxu3 %v3085_v57 }
0x19c5   : > { %v3131_v0 = vpop.permute.xlu1 %3130  ;;  %v3159_v48 = vpop.permute.xlu2 %3158 }
0x19c6   : > { %v3012_v59 = vpop.permute.xlu0 %3011 }
0x19c7   : > { %3024 = vmatpush.bf16.msrb.mxu0 %v3012_v59 }
0x19ca   : > { %4541 = vmatmul.msk.bf16.vlgmr.msrb.gmra.mxu0 %vm1230_vm0, %v3010_v54 }
0x19cb   : > { %3121 = vmatpush.bf16.msra.mxu0 %v3109_v60 }
0x19ce   : > { %v3034_v61 = vpop.permute.xlu0 %3033 }
0x19cf   : > { %4542 = vmatmul.msk.bf16.vlgmr.msra.gmra.mxu1 %vm1230_vm0, %v3034_v61 }
0x19d2   : > { %4548 = vmatmul.msk.bf16.vlgmr.msra.gmra.mxu3 %vm1230_vm0, %v4547_v40 }
0x19d6   : > { %v3058_v63 = vpop.permute.xlu0 %3057 }
0x19d7   : > { %4543 = vmatmul.msk.bf16.vlgmr.msrb.gmra.mxu2 %vm1230_vm0, %v3058_v63 }
0x19de   : > { %v3107_v1 = vpop.permute.xlu0 %3106 }
0x19df   : > { %4549 = vmatmul.msk.bf16.vlgmr.msra.gmra.mxu0 %vm1230_vm0, %v3107_v1  ;;  %4550 = vmatmul.msk.bf16.vlgmr.msrb.gmra.mxu1 %vm1230_vm0, %v3131_v0 }
0x19e6   : > { %v3164_v63 = vpop.permute.xlu0 %3163 }
0x1a16   : > { %v2932_v5 = vpop.f32.mrf.mxu0 }
0x1a1e   : > { %v2934_v9 = vpop.f32.mrf.mxu0 }
0x1a24   : > { %v2978_v11 = vpop.f32.mrf.mxu2 }
0x1a2c   : > { %v2980_v27 = vpop.f32.mrf.mxu2 }
0x1a35   : > { %v2912_v3 = vpop.f32.mrf.mxu3 }
0x1a36   : > { %v2933_v18 = vadd.f32 %v2932_v5, %v2912_v3 }
0x1a37   : > { %v2954_v2 = vpop.f32.mrf.mxu1 }
0x1a38   : > { %v2959_v22 = vadd.f32 %v2954_v2, %v2933_v18  ;;  %v4553_v2 = vld [vmem:[%s5906_s24] sm:$0xf]  ;;  %v4681_v18 = vld [vmem:[%s5906_s24 + $0x4] sm:$0xf] }
0x1a3a   : > { %v2983_v23 = vadd.f32 %v2978_v11, %v2959_v22  ;;  %v3459_v22 = vld [vmem:[%s5907_s22] sm:$0xff]  ;;  %s5909_s22 = sld [smem:[#allocation36_spill]] }
0x1a3d   : > { %v2914_v8 = vpop.f32.mrf.mxu3 }
0x1a3e   : > { %v2935_v24 = vadd.f32 %v2934_v9, %v2914_v8  ;;  %v4682_v8 = vld [vmem:[%s5906_s24 + $0x4] sm:$0xf0] }
0x1a3f   : > { %v2956_v13 = vpop.f32.mrf.mxu1  ;;  %v4554_v9 = vor.u32 %v4682_v8, %v4553_v2 }
0x1a40   : > { %v2960_v33 = vadd.f32 %v2956_v13, %v2935_v24  ;;  %s5910_s27 = smov %s5909_s22 }
0x1a42   : > { %v2984_v35 = vadd.f32 %v2980_v27, %v2960_v33 }
0x1a45   : > { %v3002_v14 = vpop.f32.mrf.mxu3 }
0x1a46   : > { %v3007_v30 = vadd.f32 %v3002_v14, %v2983_v23 }
0x1a47   : > { %v3026_v19 = vpop.f32.mrf.mxu0 }
0x1a48   : > { %v3031_v34 = vadd.f32 %v3026_v19, %v3007_v30  ;;  %v4567_v19 = vld [vmem:[%s5906_s24 + $0x8] sm:$0xf0] }
0x1a4c   : > { %v3050_v20 = vpop.f32.mrf.mxu1 }
0x1a4d   : > { %v3004_v53 = vpop.f32.mrf.mxu3  ;;  %v3055_v21 = vadd.f32 %v3050_v20, %v3031_v34  ;;  %v4570_v20 = vor.u32 %v4681_v18, %v4567_v19 }
0x1a4e   : > { %v3008_v38 = vadd.f32 %v3004_v53, %v2984_v35  ;;  %v3460_v53 = vld [vmem:[%s5908_s29 + $0x8] sm:$0xff] }
0x1a4f   : > { %v3028_v31 = vpop.f32.mrf.mxu0 }
0x1a50   : > { %v3032_v43 = vadd.f32 %v3028_v31, %v3008_v38 }
0x1a54   : > { %v3052_v32 = vpop.f32.mrf.mxu1 }
0x1a55   : > { %v3099_v36 = vpop.f32.mrf.mxu3  ;;  %v3056_v45 = vadd.f32 %v3052_v32, %v3032_v43 }
0x1a5a   : > { %v3074_v37 = vpop.f32.mrf.mxu2 }
0x1a5b   : > { %v3079_v39 = vadd.f32 %v3074_v37, %v3055_v21 }
0x1a5c   : > { %v3123_v40 = vpop.f32.mrf.mxu0  ;;  %v3147_v42 = vpop.f32.mrf.mxu1 }
0x1a5d   : > { %v3104_v41 = vadd.f32 %v3099_v36, %v3079_v39  ;;  %v3101_v55 = vpop.f32.mrf.mxu3 }
0x1a5f   : > { %v3128_v44 = vadd.f32 %v3123_v40, %v3104_v41 }
0x1a61   : > { %v3152_v47 = vadd.f32 %v3147_v42, %v3128_v44 }
0x1a62   : > { %v3076_v50 = vpop.f32.mrf.mxu2 }
0x1a63   : > { %v3166_v52 = vadd.f32 %v3159_v48, %v3152_v47  ;;  %v3080_v54 = vadd.f32 %v3076_v50, %v3056_v45 }
0x1a64   : > { %v3125_v25 = vpop.f32.mrf.mxu0  ;;  %v3149_v60 = vpop.f32.mrf.mxu1 }
0x1a65   : > { %vm3168_vm6 = vcmp.ge.f32.partialorder %v3166_v52, 0.0  ;;  %v3170_v56 = vmul.f32 0.1, %v3166_v52  ;;  %v3105_v57 = vadd.f32 %v3101_v55, %v3080_v54 }
0x1a67   : > { %v3172_v58 = vsel %vm3168_vm6, %v3166_v52, %v3170_v56  ;;  %v3129_v26 = vadd.f32 %v3125_v25, %v3105_v57 }
0x1a68   : > { %v3174_v59 = vpack.c.bf16 %v3172_v58, %v3172_v58 }
0x1a69   : > { %v3153_v61 = vadd.f32 %v3149_v60, %v3129_v26 }
0x1a6a   : > { %3178 = vrot.lane.b32.xlu1 %v3174_v59, %s5878_s11 }
0x1a6b   : > { %v3167_v0 = vadd.f32 %v3164_v63, %v3153_v61 }
0x1a6d   : > { %vm3169_vm9 = vcmp.ge.f32.partialorder %v3167_v0, 0.0  ;;  %v3171_v1 = vmul.f32 0.1, %v3167_v0 }
0x1a6f   : > { %v3173_v3 = vsel %vm3169_vm9, %v3167_v0, %v3171_v1 }
0x1a70   : > { %v3175_v5 = vpack.c.bf16 %v3173_v3, %v3173_v3 }
0x1a72   : > { %3180 = vrot.lane.b32.xlu2 %v3175_v5, %s5878_s11 }
0x1a7a   : > { %3195 = vrot.lane.b32.xlu2 %v4554_v9, %s5885_s1 }
0x1acc   : > { %v3181_v13 = vpop.permute.xlu2 %3180 }
0x1acd   : > { %3185 = vst.msk [vmem:[#allocation2 + $0x4] sm:$0xf] %vm1276_vm7, %v3181_v13 }
0x1ad4   : > { %v3196_v23 = vpop.permute.xlu2 %3195 }
0x1adc   : > { %v3179_v14 = vpop.permute.xlu1 %3178 }
0x1add   : > { %3184 = vst.msk [vmem:[#allocation2] sm:$0xf] %vm1276_vm7, %v3179_v14 }
0x1ae4   : > { %v4680_v11 = vld [vmem:[#allocation2] sm:$0xff] }
0x1ae5   : > { %3292 = vrot.lane.b32.xlu2 %v4680_v11, %s5887_s0  ;;  %3222 = vrot.lane.b32.xlu1 %v4680_v11, %s5874_s7 }
0x1ae6   : > { %3202 = vrot.lane.b32.xlu0 %v4680_v11, %s5893_s9 }
0x1aed   : > { %3268 = vrot.lane.b32.xlu2 %v4680_v11, %s5892_s12  ;;  %3242 = vrot.lane.b32.xlu1 %v4554_v9, %s5889_s2 }
0x1aee   : > { %3314 = vrot.lane.b32.xlu0 %v4554_v9, %s5900_s19 }
0x1af5   : > { %3340 = vrot.lane.b32.xlu2 %v4680_v11, %s5895_s5  ;;  %3290 = vrot.lane.b32.xlu1 %v4554_v9, %s5896_s6 }
0x1af6   : > { %3244 = vrot.lane.b32.xlu0 %v4680_v11, %s5871_s18 }
0x1afd   : > { %3413 = vrot.lane.b32.xlu2 %v4680_v11, %s5902_s25  ;;  %3266 = vrot.lane.b32.xlu1 %v4554_v9, %s5904_s10 }
0x1afe   : > { %3316 = vrot.lane.b32.xlu0 %v4680_v11, %s5884_s3 }
0x1b05   : > { %3362 = vrot.lane.b32.xlu2 %v4554_v9, %s5898_s14  ;;  %3389 = vrot.lane.b32.xlu1 %v4680_v11, %s5901_s21 }
0x1b06   : > { %3338 = vrot.lane.b32.xlu0 %v4554_v9, %s5897_s13 }
0x1b0d   : > { %3463 = vperm.xlu2 %4782, %v3459_v22   ;;  %3411 = vrot.lane.b32.xlu1 %v4570_v20, %s5885_s1 }
0x1b0e   : > { %3364 = vrot.lane.b32.xlu0 %v4680_v11, %s5899_s17 }
0x1b15   : > { %3435 = vrot.lane.b32.xlu1 %v4570_v20, %s5889_s2 }
0x1b16   : > { %3437 = vrot.lane.b32.xlu0 %v4680_v11, %s5888_s26 }
0x1b1e   : > { %3468 = vperm.xlu0 %4783, %v3460_v53  }
0x1b3f   : > { %v3293_v24 = vpop.permute.xlu2 %3292 }
0x1b47   : > { %v3269_v27 = vpop.permute.xlu2 %3268 }
0x1b48   : > { %3281 = vmatpush.bf16.msra.mxu1 %v3269_v27 }
0x1b4f   : > { %v3341_v34 = vpop.permute.xlu2 %3340 }
0x1b57   : > { %v3223_v30 = vpop.permute.xlu1 %3222  ;;  %v3414_v38 = vpop.permute.xlu2 %3413 }
0x1b58   : > { %v3203_v31 = vpop.permute.xlu0 %3202  ;;  %3235 = vmatpush.bf16.msrb.mxu3 %v3223_v30 }
0x1b59   : > { %3215 = vmatpush.bf16.msra.mxu2 %v3203_v31 }
0x1b5b   : > { %4560 = vmatmul.msk.bf16.vlgmr.msrb.gmra.mxu3 %vm1230_vm0, %v4554_v9 }
0x1b5c   : > { %4559 = vmatmul.msk.bf16.vlgmr.msra.gmra.mxu2 %vm1230_vm0, %v3196_v23 }
0x1b5d   : > { %3305 = vmatpush.bf16.msrb.mxu2 %v3293_v24 }
0x1b5f   : > { %v3243_v32 = vpop.permute.xlu1 %3242  ;;  %v3363_v43 = vpop.permute.xlu2 %3362 }
0x1b60   : > { %v3315_v33 = vpop.permute.xlu0 %3314 }
0x1b67   : > { %v3291_v35 = vpop.permute.xlu1 %3290 }
0x1b68   : > { %v3245_v21 = vpop.permute.xlu0 %3244 }
0x1b69   : > { %3257 = vmatpush.bf16.msrb.mxu0 %v3245_v21 }
0x1b6c   : > { %4561 = vmatmul.msk.bf16.vlgmr.msrb.gmra.mxu0 %vm1230_vm0, %v3243_v32  ;;  %4563 = vmatmul.msk.bf16.vlgmr.msrb.gmra.mxu2 %vm1230_vm0, %v3291_v35 }
0x1b6d   : > { %3353 = vmatpush.bf16.msra.mxu0 %v3341_v34 }
0x1b6f   : > { %v3267_v36 = vpop.permute.xlu1 %3266 }
0x1b70   : > { %v3317_v37 = vpop.permute.xlu0 %3316  ;;  %4562 = vmatmul.msk.bf16.vlgmr.msra.gmra.mxu1 %vm1230_vm0, %v3267_v36 }
0x1b71   : > { %3329 = vmatpush.bf16.msra.mxu3 %v3317_v37 }
0x1b74   : > { %4564 = vmatmul.msk.bf16.vlgmr.msra.gmra.mxu3 %vm1230_vm0, %v3315_v33  ;;  %v3464_v33 = vpop.permute.xlu2 %3463 }
0x1b75   : > { %3426 = vmatpush.bf16.msrb.mxu3 %v3414_v38 }
0x1b77   : > { %v3390_v39 = vpop.permute.xlu1 %3389 }
0x1b78   : > { %v3339_v40 = vpop.permute.xlu0 %3338  ;;  %3402 = vmatpush.bf16.msra.mxu2 %v3390_v39 }
0x1b7c   : > { %4565 = vmatmul.msk.bf16.vlgmr.msra.gmra.mxu0 %vm1230_vm0, %v3339_v40  ;;  %4571 = vmatmul.msk.bf16.vlgmr.msra.gmra.mxu2 %vm1230_vm0, %v4570_v20 }
0x1b7f   : > { %v3412_v41 = vpop.permute.xlu1 %3411 }
0x1b80   : > { %v3365_v42 = vpop.permute.xlu0 %3364 }
0x1b81   : > { %3377 = vmatpush.bf16.msrb.mxu1 %v3365_v42 }
0x1b84   : > { %4566 = vmatmul.msk.bf16.vlgmr.msrb.gmra.mxu1 %vm1230_vm0, %v3363_v43  ;;  %4572 = vmatmul.msk.bf16.vlgmr.msrb.gmra.mxu3 %vm1230_vm0, %v3412_v41 }
0x1b87   : > { %v3436_v45 = vpop.permute.xlu1 %3435 }
0x1b88   : > { %v3438_v44 = vpop.permute.xlu0 %3437 }
0x1b89   : > { %3450 = vmatpush.bf16.msrb.mxu0 %v3438_v44 }
0x1b8c   : > { %4573 = vmatmul.msk.bf16.vlgmr.msrb.gmra.mxu0 %vm1230_vm0, %v3436_v45 }
0x1b90   : > { %v3469_v43 = vpop.permute.xlu0 %3468 }
0x1bde   : > { %v3237_v48 = vpop.f32.mrf.mxu3 }
0x1bdf   : > { %v3217_v47 = vpop.f32.mrf.mxu2 }
0x1be0   : > { %v3238_v25 = vadd.f32 %v3237_v48, %v3217_v47 }
0x1be6   : > { %v3239_v55 = vpop.f32.mrf.mxu3 }
0x1be7   : > { %v3219_v50 = vpop.f32.mrf.mxu2 }
0x1be8   : > { %v3240_v0 = vadd.f32 %v3239_v55, %v3219_v50 }
0x1be9   : > { %v3259_v52 = vpop.f32.mrf.mxu0 }
0x1bea   : > { %v3264_v58 = vadd.f32 %v3259_v52, %v3238_v25  ;;  %v4576_v52 = vld [vmem:[%s5909_s22] sm:$0xf]  ;;  %s5911_s22 = sld [smem:[#allocation37_spill]]  ;;  %v4684_v25 = vld [vmem:[%s5910_s27 + $0x4] sm:$0xf] }
0x1bed   : > { %v3283_v54 = vpop.f32.mrf.mxu1 }
0x1bee   : > { %v3288_v26 = vadd.f32 %v3283_v54, %v3264_v58  ;;  %v4685_v54 = vld [vmem:[%s5910_s27 + $0x4] sm:$0xf0]  ;;  %v4590_v58 = vld [vmem:[%s5910_s27 + $0x8] sm:$0xf0] }
0x1bef   : > { %v3307_v56 = vpop.f32.mrf.mxu2  ;;  %v4577_v55 = vor.u32 %v4685_v54, %v4576_v52 }
0x1bf0   : > { %v3312_v1 = vadd.f32 %v3307_v56, %v3288_v26  ;;  %s5912_s8 = smov %s5911_s22  ;;  %v4593_v26 = vor.u32 %v4684_v25, %v4590_v58 }
0x1bf1   : > { %v3261_v57 = vpop.f32.mrf.mxu0  ;;  %3502 = vrot.lane.b32.xlu0 %v4577_v55, %s5885_s1 }
0x1bf2   : > { %v3265_v3 = vadd.f32 %v3261_v57, %v3240_v0 }
0x1bf5   : > { %v3285_v60 = vpop.f32.mrf.mxu1 }
0x1bf6   : > { %v3289_v2 = vadd.f32 %v3285_v60, %v3265_v3  ;;  %v3764_v60 = vld [vmem:[%s5912_s8] sm:$0xff] }
0x1bf7   : > { %v3331_v59 = vpop.f32.mrf.mxu3  ;;  %v3309_v61 = vpop.f32.mrf.mxu2 }
0x1bf8   : > { %v3336_v5 = vadd.f32 %v3331_v59, %v3312_v1  ;;  %v3313_v11 = vadd.f32 %v3309_v61, %v3289_v2  ;;  %v3765_v59 = vld [vmem:[%s5911_s22 + $0x8] sm:$0xff]  ;;  %s5916_s22 = sld [smem:[#allocation27_spill]] }
0x1bf9   : > { %v3355_v63 = vpop.f32.mrf.mxu0 }
0x1bfa   : > { %v3360_v9 = vadd.f32 %v3355_v63, %v3336_v5 }
0x1bff   : > { %v3333_v8 = vpop.f32.mrf.mxu3  ;;  %v3404_v19 = vpop.f32.mrf.mxu2 }
0x1c00   : > { %v3337_v20 = vadd.f32 %v3333_v8, %v3313_v11 }
0x1c01   : > { %v3357_v13 = vpop.f32.mrf.mxu0  ;;  %v3379_v14 = vpop.f32.mrf.mxu1 }
0x1c02   : > { %v3384_v18 = vadd.f32 %v3379_v14, %v3360_v9  ;;  %v3361_v23 = vadd.f32 %v3357_v13, %v3337_v20 }
0x1c04   : > { %v3409_v22 = vadd.f32 %v3404_v19, %v3384_v18 }
0x1c07   : > { %v3428_v53 = vpop.f32.mrf.mxu3  ;;  %v3406_v35 = vpop.f32.mrf.mxu2 }
0x1c08   : > { %v3433_v24 = vadd.f32 %v3428_v53, %v3409_v22 }
0x1c09   : > { %v3381_v27 = vpop.f32.mrf.mxu1  ;;  %v3452_v30 = vpop.f32.mrf.mxu0 }
0x1c0a   : > { %v3385_v31 = vadd.f32 %v3381_v27, %v3361_v23  ;;  %v3457_v32 = vadd.f32 %v3452_v30, %v3433_v24 }
0x1c0c   : > { %v3471_v34 = vadd.f32 %v3464_v33, %v3457_v32  ;;  %v3410_v36 = vadd.f32 %v3406_v35, %v3385_v31 }
0x1c0e   : > { %v5572_v21 = vadd.f32 %v3471_v34, %v5483_v46 }
0x1c0f   : > { %v3430_v37 = vpop.f32.mrf.mxu3 }
0x1c10   : > { %v3434_v38 = vadd.f32 %v3430_v37, %v3410_v36  ;;  %vm3475_vm10 = vcmp.ge.f32.partialorder %v5572_v21, 0.0  ;;  %v3477_v39 = vmul.f32 0.1, %v5572_v21 }
0x1c11   : > { %v3454_v40 = vpop.f32.mrf.mxu0 }
0x1c12   : > { %v3458_v41 = vadd.f32 %v3454_v40, %v3434_v38  ;;  %v3479_v42 = vsel %vm3475_vm10, %v5572_v21, %v3477_v39 }
0x1c13   : > { %v3481_v44 = vpack.c.bf16 %v3479_v42, %v3479_v42 }
0x1c14   : > { %v3472_v45 = vadd.f32 %v3469_v43, %v3458_v41 }
0x1c15   : > { %3485 = vrot.lane.b32.xlu1 %v3481_v44, %s5878_s11 }
0x1c16   : > { %v5579_v46 = vadd.f32 %v3472_v45, %v5490_v17 }
0x1c18   : > { %vm3476_vm11 = vcmp.ge.f32.partialorder %v5579_v46, 0.0  ;;  %v3478_v47 = vmul.f32 0.1, %v5579_v46 }
0x1c1a   : > { %v3480_v48 = vsel %vm3476_vm11, %v5579_v46, %v3478_v47 }
0x1c1b   : > { %v3482_v50 = vpack.c.bf16 %v3480_v48, %v3480_v48 }
0x1c1d   : > { %3487 = vrot.lane.b32.xlu2 %v3482_v50, %s5878_s11  ;;  %3619 = vrot.lane.b32.xlu1 %v4577_v55, %s5900_s19 }
0x1c25   : > { %3547 = vrot.lane.b32.xlu2 %v4577_v55, %s5889_s2 }
0x1c63   : > { %v3503_v1 = vpop.permute.xlu0 %3502 }
0x1c77   : > { %v3488_v17 = vpop.permute.xlu2 %3487 }
0x1c78   : > { %3492 = vst.msk [vmem:[#allocation2 + $0x4] sm:$0xf] %vm1276_vm7, %v3488_v17 }
0x1c7f   : > { %v3548_v61 = vpop.permute.xlu2 %3547 }
0x1c87   : > { %v3486_v56 = vpop.permute.xlu1 %3485 }
0x1c88   : > { %3491 = vst.msk [vmem:[#allocation2] sm:$0xf] %vm1276_vm7, %v3486_v56 }
0x1c8f   : > { %v4683_v57 = vld [vmem:[#allocation2] sm:$0xff]  ;;  %v3620_v0 = vpop.permute.xlu1 %3619 }
0x1c90   : > { %3573 = vrot.lane.b32.xlu2 %v4683_v57, %s5876_s28  ;;  %3509 = vrot.lane.b32.xlu1 %v4683_v57, %s5868_s16  ;;  %s4869_s28 = smov 78   ;;  %s5913_s16 = smov 88  }
0x1c91   : > { %3549 = vrot.lane.b32.xlu0 %v4683_v57, %s5875_s15  ;;  %3540 = vmatpush.bf16.msrb.mxu2 %v4683_v57  ;;  %s4870_s15 = smov 93  }
0x1c94   : > { %4583 = vmatmul.msk.bf16.vlgmr.msrb.gmra.mxu2 %vm1230_vm0, %v4577_v55 }
0x1c98   : > { %3597 = vrot.lane.b32.xlu2 %v4683_v57, %s5874_s7  ;;  %3621 = vrot.lane.b32.xlu1 %v4683_v57, %s5884_s3 }
0x1c99   : > { %3571 = vrot.lane.b32.xlu0 %v4577_v55, %s5904_s10 }
0x1ca0   : > { %3595 = vrot.lane.b32.xlu2 %v4577_v55, %s5896_s6  ;;  %3643 = vrot.lane.b32.xlu1 %v4577_v55, %s5897_s13 }
0x1ca1   : > { %3645 = vrot.lane.b32.xlu0 %v4683_v57, %s5888_s26 }
0x1ca8   : > { %3742 = vrot.lane.b32.xlu2 %v4683_v57, %s4869_s28  ;;  %3669 = vrot.lane.b32.xlu1 %v4683_v57, %s4870_s15  ;;  %s5917_s28 = smov %s5916_s22 }
0x1ca9   : > { %3716 = vrot.lane.b32.xlu0 %v4593_v26, %s5885_s1 }
0x1cb0   : > { %3667 = vrot.lane.b32.xlu2 %v4577_v55, %s5898_s14  ;;  %3694 = vrot.lane.b32.xlu1 %v4683_v57, %s5913_s16 }
0x1cb1   : > { %3718 = vrot.lane.b32.xlu0 %v4683_v57, %s4871_s23  ;;  %s5914_s23 = sld [smem:[#allocation38_spill]] }
0x1cb8   : > { %3773 = vperm.xlu2 %4782, %v3765_v59   ;;  %3768 = vperm.xlu1 %4781, %v3764_v60  }
0x1cb9   : > { %3740 = vrot.lane.b32.xlu0 %v4593_v26, %s5889_s2 }
0x1cea   : > { %v3574_v63 = vpop.permute.xlu2 %3573 }
0x1ceb   : > { %3586 = vmatpush.bf16.msra.mxu0 %v3574_v63 }
0x1cf2   : > { %v3598_v3 = vpop.permute.xlu2 %3597 }
0x1cfa   : > { %v3596_v8 = vpop.permute.xlu2 %3595 }
0x1d02   : > { %v3510_v5 = vpop.permute.xlu1 %3509  ;;  %v3743_v11 = vpop.permute.xlu2 %3742 }
0x1d03   : > { %v3550_v2 = vpop.permute.xlu0 %3549  ;;  %3522 = vmatpush.bf16.msra.mxu1 %v3510_v5 }
0x1d04   : > { %3562 = vmatpush.bf16.msra.mxu3 %v3550_v2 }
0x1d06   : > { %4582 = vmatmul.msk.bf16.vlgmr.msra.gmra.mxu1 %vm1230_vm0, %v3503_v1 }
0x1d07   : > { %3610 = vmatpush.bf16.msrb.mxu1 %v3598_v3  ;;  %4584 = vmatmul.msk.bf16.vlgmr.msra.gmra.mxu3 %vm1230_vm0, %v3548_v61 }
0x1d0a   : > { %v3622_v9 = vpop.permute.xlu1 %3621  ;;  %v3668_v22 = vpop.permute.xlu2 %3667 }
0x1d0b   : > { %v3572_v13 = vpop.permute.xlu0 %3571  ;;  %3634 = vmatpush.bf16.msra.mxu2 %v3622_v9 }
0x1d0c   : > { %4585 = vmatmul.msk.bf16.vlgmr.msra.gmra.mxu0 %vm1230_vm0, %v3572_v13 }
0x1d0e   : > { %4587 = vmatmul.msk.bf16.vlgmr.msra.gmra.mxu2 %vm1230_vm0, %v3620_v0 }
0x1d12   : > { %v3644_v14 = vpop.permute.xlu1 %3643 }
0x1d13   : > { %v3646_v18 = vpop.permute.xlu0 %3645 }
0x1d14   : > { %3658 = vmatpush.bf16.msrb.mxu3 %v3646_v18 }
0x1d16   : > { %4586 = vmatmul.msk.bf16.vlgmr.msrb.gmra.mxu1 %vm1230_vm0, %v3596_v8 }
0x1d17   : > { %4588 = vmatmul.msk.bf16.vlgmr.msrb.gmra.mxu3 %vm1230_vm0, %v3644_v14  ;;  %v3542_v30 = vpop.f32.mrf.mxu2 }
0x1d18   : > { %3755 = vmatpush.bf16.msra.mxu3 %v3743_v11 }
0x1d1a   : > { %v3670_v19 = vpop.permute.xlu1 %3669 }
0x1d1b   : > { %v3717_v20 = vpop.permute.xlu0 %3716  ;;  %3682 = vmatpush.bf16.msrb.mxu0 %v3670_v19 }
0x1d1e   : > { %4589 = vmatmul.msk.bf16.vlgmr.msrb.gmra.mxu0 %vm1230_vm0, %v3668_v22 }
0x1d1f   : > { %v3544_v33 = vpop.f32.mrf.mxu2 }
0x1d22   : > { %v3695_v53 = vpop.permute.xlu1 %3694 }
0x1d23   : > { %v3719_v23 = vpop.permute.xlu0 %3718  ;;  %3707 = vmatpush.bf16.msra.mxu1 %v3695_v53  ;;  %v3774_v53 = vpop.permute.xlu2 %3773 }
0x1d24   : > { %3731 = vmatpush.bf16.msrb.mxu2 %v3719_v23 }
0x1d26   : > { %4594 = vmatmul.msk.bf16.vlgmr.msra.gmra.mxu1 %vm1230_vm0, %v4593_v26 }
0x1d27   : > { %4595 = vmatmul.msk.bf16.vlgmr.msrb.gmra.mxu2 %vm1230_vm0, %v3717_v20 }
0x1d2a   : > { %v3769_v3 = vpop.permute.xlu1 %3768 }
0x1d2b   : > { %v3741_v24 = vpop.permute.xlu0 %3740 }
0x1d2c   : > { %4596 = vmatmul.msk.bf16.vlgmr.msra.gmra.mxu3 %vm1230_vm0, %v3741_v24 }
0x1d83   : > { %v3524_v27 = vpop.f32.mrf.mxu1 }
0x1d84   : > { %v3543_v37 = vadd.f32 %v3542_v30, %v3524_v27 }
0x1d89   : > { %v3588_v34 = vpop.f32.mrf.mxu0 }
0x1d8a   : > { %v3564_v31 = vpop.f32.mrf.mxu3 }
0x1d8b   : > { %v3526_v32 = vpop.f32.mrf.mxu1  ;;  %v3569_v39 = vadd.f32 %v3564_v31, %v3543_v37  ;;  %v4599_v31 = vld [vmem:[%s5914_s23] sm:$0xf]  ;;  %v4687_v37 = vld [vmem:[%s5914_s23 + $0x4] sm:$0xf] }
0x1d8c   : > { %v3545_v44 = vadd.f32 %v3544_v33, %v3526_v32  ;;  %v4688_v32 = vld [vmem:[%s5914_s23 + $0x4] sm:$0xf0] }
0x1d8d   : > { %v3593_v43 = vadd.f32 %v3588_v34, %v3569_v39  ;;  %v4600_v33 = vor.u32 %v4688_v32, %v4599_v31 }
0x1d8f   : > { %3876 = vrot.lane.b32.xlu2 %v4600_v33, %s5904_s10  ;;  %s5915_s10 = sld [smem:[#allocation15_spill]] }
0x1d91   : > { %v3636_v38 = vpop.f32.mrf.mxu2  ;;  %v3590_v40 = vpop.f32.mrf.mxu0 }
0x1d92   : > { %v3566_v35 = vpop.f32.mrf.mxu3 }
0x1d93   : > { %v3612_v36 = vpop.f32.mrf.mxu1  ;;  %v3570_v47 = vadd.f32 %v3566_v35, %v3545_v44  ;;  %v4070_v44 = vld [vmem:[%s5062_s20 + $0x8] sm:$0xff] }
0x1d94   : > { %v3617_v45 = vadd.f32 %v3612_v36, %v3593_v43 }
0x1d95   : > { %v3594_v55 = vadd.f32 %v3590_v40, %v3570_v47  ;;  %v1667_v40 = vld [vmem:[%s5915_s10] sm:$0xff]  ;;  %v1668_v43 = vld [vmem:[%s5915_s10 + $0x8] sm:$0xff] }
0x1d96   : > { %v3641_v50 = vadd.f32 %v3636_v38, %v3617_v45  ;;  %v4613_v38 = vld [vmem:[%s5914_s23 + $0x8] sm:$0xf0]  ;;  %v4069_v45 = vld [vmem:[%s5062_s20] sm:$0xff] }
0x1d97   : > { %v4616_v39 = vor.u32 %v4687_v37, %v4613_v38 }
0x1d99   : > { %v3638_v48 = vpop.f32.mrf.mxu2 }
0x1d9a   : > { %v3660_v41 = vpop.f32.mrf.mxu3 }
0x1d9b   : > { %v3614_v42 = vpop.f32.mrf.mxu1  ;;  %v3684_v52 = vpop.f32.mrf.mxu0  ;;  %v3665_v54 = vadd.f32 %v3660_v41, %v3641_v50  ;;  %v2209_v41 = vld [vmem:[%s5916_s22 + $0x8] sm:$0xff] }
0x1d9c   : > { %v3618_v57 = vadd.f32 %v3614_v42, %v3594_v55  ;;  %v2208_v42 = vld [vmem:[%s5917_s28] sm:$0xff] }
0x1d9d   : > { %v3689_v25 = vadd.f32 %v3684_v52, %v3665_v54 }
0x1d9e   : > { %v3642_v26 = vadd.f32 %v3638_v48, %v3618_v57 }
0x1da2   : > { %v3662_v17 = vpop.f32.mrf.mxu3 }
0x1da3   : > { %v3709_v56 = vpop.f32.mrf.mxu1  ;;  %v3666_v60 = vadd.f32 %v3662_v17, %v3642_v26  ;;  %v3686_v63 = vpop.f32.mrf.mxu0 }
0x1da4   : > { %v3714_v59 = vadd.f32 %v3709_v56, %v3689_v25 }
0x1da5   : > { %v3690_v2 = vadd.f32 %v3686_v63, %v3666_v60 }
0x1daa   : > { %v3733_v58 = vpop.f32.mrf.mxu2 }
0x1dab   : > { %v3738_v61 = vadd.f32 %v3733_v58, %v3714_v59  ;;  %v3711_v5 = vpop.f32.mrf.mxu1 }
0x1dac   : > { %v3715_v13 = vadd.f32 %v3711_v5, %v3690_v2 }
0x1daf   : > { %v3757_v0 = vpop.f32.mrf.mxu3 }
0x1db0   : > { %v3762_v1 = vadd.f32 %v3757_v0, %v3738_v61 }
0x1db2   : > { %v3776_v8 = vadd.f32 %v3769_v3, %v3762_v1  ;;  %v3735_v9 = vpop.f32.mrf.mxu2 }
0x1db3   : > { %v3739_v18 = vadd.f32 %v3735_v9, %v3715_v13 }
0x1db4   : > { %vm3778_vm12 = vcmp.ge.f32.partialorder %v3776_v8, 0.0  ;;  %v3780_v14 = vmul.f32 0.1, %v3776_v8 }
0x1db6   : > { %v3782_v11 = vsel %vm3778_vm12, %v3776_v8, %v3780_v14 }
0x1db7   : > { %v3784_v19 = vpack.c.bf16 %v3782_v11, %v3782_v11  ;;  %v3759_v20 = vpop.f32.mrf.mxu3 }
0x1db8   : > { %v3763_v22 = vadd.f32 %v3759_v20, %v3739_v18 }
0x1db9   : > { %3788 = vrot.lane.b32.xlu0 %v3784_v19, %s5878_s11 }
0x1dba   : > { %v3777_v23 = vadd.f32 %v3774_v53, %v3763_v22 }
0x1dbc   : > { %vm3779_vm13 = vcmp.ge.f32.partialorder %v3777_v23, 0.0  ;;  %v3781_v24 = vmul.f32 0.1, %v3777_v23 }
0x1dbe   : > { %v3783_v27 = vsel %vm3779_vm13, %v3777_v23, %v3781_v24 }
0x1dbf   : > { %v3785_v30 = vpack.c.bf16 %v3783_v27, %v3783_v27 }
0x1dc1   : > { %3790 = vrot.lane.b32.xlu1 %v3785_v30, %s5878_s11  ;;  %3805 = vrot.lane.b32.xlu0 %v4600_v33, %s5885_s1 }
0x1dc9   : > { %3852 = vrot.lane.b32.xlu1 %v4600_v33, %s5889_s2 }
0x1de9   : > { %v3877_v47 = vpop.permute.xlu2 %3876 }
0x1e2b   : > { %v3789_v34 = vpop.permute.xlu0 %3788 }
0x1e2c   : > { %3794 = vst.msk [vmem:[#allocation2] sm:$0xf] %vm1276_vm7, %v3789_v34 }
0x1e33   : > { %v3791_v35 = vpop.permute.xlu1 %3790  ;;  %v3806_v54 = vpop.permute.xlu0 %3805 }
0x1e34   : > { %3795 = vst.msk [vmem:[#allocation2 + $0x4] sm:$0xf] %vm1276_vm7, %v3791_v35 }
0x1e3b   : > { %v4686_v36 = vld [vmem:[#allocation2] sm:$0xff]  ;;  %v3853_v50 = vpop.permute.xlu1 %3852 }
0x1e3c   : > { %3878 = vrot.lane.b32.xlu1 %v4686_v36, %s5892_s12  ;;  %3812 = vrot.lane.b32.xlu0 %v4686_v36, %s5893_s9  ;;  %s4872_s9 = smov 1  }
0x1e3d   : > { %3854 = vrot.lane.b32.xlu2 %v4686_v36, %s5871_s18 }
0x1e44   : > { %3902 = vrot.lane.b32.xlu1 %v4686_v36, %s5887_s0  ;;  %3950 = vrot.lane.b32.xlu0 %v4686_v36, %s5895_s5 }
0x1e45   : > { %3832 = vrot.lane.b32.xlu2 %v4686_v36, %s5874_s7 }
0x1e4c   : > { %3900 = vrot.lane.b32.xlu1 %v4600_v33, %s5896_s6  ;;  %3926 = vrot.lane.b32.xlu0 %v4686_v36, %s5884_s3 }
0x1e4d   : > { %3948 = vrot.lane.b32.xlu2 %v4600_v33, %s5897_s13  ;;  %s4873_s13 = smov 2  }
0x1e54   : > { %3972 = vrot.lane.b32.xlu1 %v4600_v33, %s5898_s14  ;;  %3974 = vrot.lane.b32.xlu0 %v4686_v36, %s5899_s17  ;;  %s5919_s17 = sld [smem:[#allocation39_spill]] }
0x1e55   : > { %3924 = vrot.lane.b32.xlu2 %v4600_v33, %s5900_s19 }
0x1e5c   : > { %4045 = vrot.lane.b32.xlu1 %v4616_v39, %s5889_s2  ;;  %3999 = vrot.lane.b32.xlu0 %v4686_v36, %s5901_s21 }
0x1e5d   : > { %4047 = vrot.lane.b32.xlu2 %v4686_v36, %s5888_s26 }
0x1e64   : > { %1671 = vperm.xlu1 %4781, %v1667_v40   ;;  %4021 = vrot.lane.b32.xlu0 %v4616_v39, %s5885_s1 }
0x1e65   : > { %4023 = vrot.lane.b32.xlu2 %v4686_v36, %s5902_s25 }
0x1e6c   : > { %2217 = vperm.xlu1 %4781, %v2209_v41   ;;  %2212 = vperm.xlu0 %4783, %v2208_v42  }
0x1e6d   : > { %1676 = vperm.xlu2 %4782, %v1668_v43  }
0x1e74   : > { %4078 = vperm.xlu0 %4783, %v4070_v44  }
0x1e75   : > { %4073 = vperm.xlu2 %4782, %v4069_v45  }
0x1e97   : > { %v3855_v48 = vpop.permute.xlu2 %3854 }
0x1e98   : > { %3867 = vmatpush.bf16.msra.mxu2 %v3855_v48 }
0x1e9b   : > { %4607 = vmatmul.msk.bf16.vlgmr.msra.gmra.mxu2 %vm1230_vm0, %v3853_v50 }
0x1e9f   : > { %v3833_v52 = vpop.permute.xlu2 %3832 }
0x1ea0   : > { %3845 = vmatpush.bf16.msrb.mxu1 %v3833_v52 }
0x1ea3   : > { %4606 = vmatmul.msk.bf16.vlgmr.msrb.gmra.mxu1 %vm1230_vm0, %v4600_v33 }
0x1ea7   : > { %v3949_v55 = vpop.permute.xlu2 %3948 }
0x1eae   : > { %v3813_v17 = vpop.permute.xlu0 %3812  ;;  %v3879_v56 = vpop.permute.xlu1 %3878 }
0x1eaf   : > { %v3925_v57 = vpop.permute.xlu2 %3924  ;;  %3825 = vmatpush.bf16.msra.mxu0 %v3813_v17  ;;  %3891 = vmatpush.bf16.msrb.mxu3 %v3879_v56 }
0x1eb2   : > { %4605 = vmatmul.msk.bf16.vlgmr.msra.gmra.mxu0 %vm1230_vm0, %v3806_v54  ;;  %4608 = vmatmul.msk.bf16.vlgmr.msrb.gmra.mxu3 %vm1230_vm0, %v3877_v47 }
0x1eb6   : > { %v3951_v25 = vpop.permute.xlu0 %3950  ;;  %v3903_v58 = vpop.permute.xlu1 %3902 }
0x1eb7   : > { %v4048_v26 = vpop.permute.xlu2 %4047  ;;  %3915 = vmatpush.bf16.msrb.mxu0 %v3903_v58  ;;  %3963 = vmatpush.bf16.msrb.mxu2 %v3951_v25 }
0x1eba   : > { %4611 = vmatmul.msk.bf16.vlgmr.msrb.gmra.mxu2 %vm1230_vm0, %v3949_v55 }
0x1ebb   : > { %4060 = vmatpush.bf16.msra.mxu2 %v4048_v26 }
0x1ebe   : > { %v3927_v59 = vpop.permute.xlu0 %3926  ;;  %v3901_v60 = vpop.permute.xlu1 %3900 }
0x1ebf   : > { %v4024_v61 = vpop.permute.xlu2 %4023  ;;  %3939 = vmatpush.bf16.msra.mxu1 %v3927_v59 }
0x1ec2   : > { %4609 = vmatmul.msk.bf16.vlgmr.msrb.gmra.mxu0 %vm1230_vm0, %v3901_v60  ;;  %4610 = vmatmul.msk.bf16.vlgmr.msra.gmra.mxu1 %vm1230_vm0, %v3925_v57 }
0x1ec3   : > { %4036 = vmatpush.bf16.msrb.mxu1 %v4024_v61 }
0x1ec6   : > { %v3975_v63 = vpop.permute.xlu0 %3974  ;;  %v3973_v0 = vpop.permute.xlu1 %3972 }
0x1ec7   : > { %3987 = vmatpush.bf16.msra.mxu3 %v3975_v63  ;;  %v1677_v38 = vpop.permute.xlu2 %1676 }
0x1eca   : > { %4612 = vmatmul.msk.bf16.vlgmr.msra.gmra.mxu3 %vm1230_vm0, %v3973_v0 }
0x1ece   : > { %v4000_v1 = vpop.permute.xlu0 %3999  ;;  %v4046_v3 = vpop.permute.xlu1 %4045 }
0x1ecf   : > { %4012 = vmatpush.bf16.msra.mxu0 %v4000_v1  ;;  %4619 = vmatmul.msk.bf16.vlgmr.msra.gmra.mxu2 %vm1230_vm0, %v4046_v3  ;;  %v4074_v25 = vpop.permute.xlu2 %4073 }
0x1ed2   : > { %4617 = vmatmul.msk.bf16.vlgmr.msra.gmra.mxu0 %vm1230_vm0, %v4616_v39 }
0x1ed6   : > { %v4022_v5 = vpop.permute.xlu0 %4021  ;;  %v1672_v42 = vpop.permute.xlu1 %1671 }
0x1ed7   : > { %4618 = vmatmul.msk.bf16.vlgmr.msrb.gmra.mxu1 %vm1230_vm0, %v4022_v5  ;;  %v1706_v55 = vadd.f32 %v5305_v28, %v1672_v42 }
0x1ed9   : > { %v1710_v63 = vadd.f32 %v1706_v55, %v5192_v62 }
0x1ede   : > { %v2213_v45 = vpop.permute.xlu0 %2212  ;;  %v2218_v60 = vpop.permute.xlu1 %2217 }
0x1edf   : > { %v2259_v48 = vadd.f32 %v5437_v49, %v2213_v45  ;;  %v2261_v49 = vadd.f32 %v5439_v51, %v2218_v60 }
0x1ee1   : > { %v2263_v58 = vadd.f32 %v2259_v48, %v5331_v4  ;;  %v2264_v4 = vadd.f32 %v2261_v49, %v5338_v16  ;;  %v4163_v48 = vadd.s32 16, %v5096_v7 }
0x1ee3   : > { %v2265_v1 = vadd.f32 %v2263_v58, %v1710_v63  ;;  %v4167_v58 = vadd.s32 48, %v5096_v7 }
0x1ee5   : > { %vm4173_vm3 = vcmp.eq.s32.totalorder %v4167_v58, %v5099_v10 }
0x1f1e   : > { %v3869_v8 = vpop.f32.mrf.mxu2 }
0x1f20   : > { %v3847_v9 = vpop.f32.mrf.mxu1 }
0x1f26   : > { %v3871_v14 = vpop.f32.mrf.mxu2 }
0x1f28   : > { %v3849_v11 = vpop.f32.mrf.mxu1 }
0x1f2f   : > { %v3827_v2 = vpop.f32.mrf.mxu0 }
0x1f30   : > { %v3848_v19 = vadd.f32 %v3847_v9, %v3827_v2  ;;  %v1708_v2 = vadd.f32 %v5307_v29, %v1677_v38  ;;  %v4690_v38 = vld [vmem:[%s5067_s4] sm:$0xff] }
0x1f32   : > { %v3874_v22 = vadd.f32 %v3869_v8, %v3848_v19  ;;  %v1711_v62 = vadd.f32 %v1708_v2, %v5199_v6 }
0x1f34   : > { %v2266_v51 = vadd.f32 %v2264_v4, %v1711_v62 }
0x1f35   : > { %v3893_v18 = vpop.f32.mrf.mxu3 }
0x1f36   : > { %v3898_v24 = vadd.f32 %v3893_v18, %v3874_v22  ;;  %v4079_v18 = vpop.permute.xlu0 %4078 }
0x1f37   : > { %v3829_v13 = vpop.f32.mrf.mxu0 }
0x1f38   : > { %v3850_v27 = vadd.f32 %v3849_v11, %v3829_v13 }
0x1f3a   : > { %v3875_v33 = vadd.f32 %v3871_v14, %v3850_v27 }
0x1f3d   : > { %v3965_v53 = vpop.f32.mrf.mxu2  ;;  %v3895_v30 = vpop.f32.mrf.mxu3 }
0x1f3e   : > { %v3899_v35 = vadd.f32 %v3895_v30, %v3875_v33  ;;  %v4121_v33 = vld [vmem:[%s5072_s30 + $0x8] sm:$0xff] }
0x1f3f   : > { %v3917_v20 = vpop.f32.mrf.mxu0  ;;  %v3941_v23 = vpop.f32.mrf.mxu1 }
0x1f40   : > { %v3922_v31 = vadd.f32 %v3917_v20, %v3898_v24 }
0x1f42   : > { %v3946_v34 = vadd.f32 %v3941_v23, %v3922_v31 }
0x1f44   : > { %v3970_v40 = vadd.f32 %v3965_v53, %v3946_v34  ;;  %v4120_v34 = vld [vmem:[%s5072_s30] sm:$0xff] }
0x1f45   : > { %v3967_v36 = vpop.f32.mrf.mxu2 }
0x1f47   : > { %v3919_v32 = vpop.f32.mrf.mxu0  ;;  %v3943_v37 = vpop.f32.mrf.mxu1 }
0x1f48   : > { %v3923_v39 = vadd.f32 %v3919_v32, %v3899_v35 }
0x1f4a   : > { %v3947_v47 = vadd.f32 %v3943_v37, %v3923_v39 }
0x1f4c   : > { %v3971_v56 = vadd.f32 %v3967_v36, %v3947_v47 }
0x1f4d   : > { %v3989_v41 = vpop.f32.mrf.mxu3 }
0x1f4e   : > { %v3994_v43 = vadd.f32 %v3989_v41, %v3970_v40 }
0x1f4f   : > { %v4014_v44 = vpop.f32.mrf.mxu0 }
0x1f50   : > { %v4019_v50 = vadd.f32 %v4014_v44, %v3994_v43 }
0x1f52   : > { %v4062_v52 = vpop.f32.mrf.mxu2 }
0x1f54   : > { %v4038_v54 = vpop.f32.mrf.mxu1 }
0x1f55   : > { %v4043_v17 = vadd.f32 %v4038_v54, %v4019_v50  ;;  %v3991_v57 = vpop.f32.mrf.mxu3  ;;  %v4164_v50 = vadd.s32 24, %v5096_v7 }
0x1f56   : > { %v3995_v59 = vadd.f32 %v3991_v57, %v3971_v56 }
0x1f57   : > { %v4067_v26 = vadd.f32 %v4062_v52, %v4043_v17  ;;  %v4016_v61 = vpop.f32.mrf.mxu0  ;;  %vm4170_vm15 = vcmp.eq.s32.totalorder %v4164_v50, %v5099_v10  ;;  %v4165_v17 = vadd.s32 32, %v5096_v7 }
0x1f58   : > { %v4020_v5 = vadd.f32 %v4016_v61, %v3995_v59  ;;  %v4630_v54 = vsel %vm4170_vm15, 1.0, %v4831_v12  ;;  %v4633_v59 = vsel %vm4173_vm3, 1.0, %v4831_v12 }
0x1f59   : > { %v4081_v0 = vadd.f32 %v4074_v25, %v4067_v26  ;;  %vm4171_vm1 = vcmp.eq.s32.totalorder %v4165_v17, %v5099_v10  ;;  %v4168_v26 = vadd.s32 56, %v5096_v7 }
0x1f5a   : > { %v4064_v13 = vpop.f32.mrf.mxu2  ;;  %v4631_v56 = vsel %vm4171_vm1, 1.0, %v4831_v12 }
0x1f5b   : > { %v4083_v3 = vadd.f32 %v4081_v0, %v5572_v21  ;;  %vm4174_vm4 = vcmp.eq.s32.totalorder %v4168_v26, %v5099_v10 }
0x1f5c   : > { %v4040_v28 = vpop.f32.mrf.mxu1  ;;  %v4634_v60 = vsel %vm4174_vm4, 1.0, %v4831_v12 }
0x1f5d   : > { %v4085_v8 = vadd.f32 %v4083_v3, %v2265_v1  ;;  %v4044_v9 = vadd.f32 %v4040_v28, %v4020_v5  ;;  %v4189_v61 = vpack.c.bf16 %v4634_v60, %v4633_v59 }
0x1f5f   : > { %v4087_v14 = vmul.f32 0.33333334, %v4085_v8  ;;  %v4068_v11 = vadd.f32 %v4064_v13, %v4044_v9 }
0x1f61   : > { %v4082_v19 = vadd.f32 %v4079_v18, %v4068_v11  ;;  %vm4089_vm0 = vcmp.ge.f32.partialorder %v4087_v14, 0.0  ;;  %v4091_v20 = vmul.f32 0.1, %v4087_v14 }
0x1f63   : > { %v4084_v21 = vadd.f32 %v4082_v19, %v5579_v46  ;;  %v4093_v22 = vsel %vm4089_vm0, %v4087_v14, %v4091_v20 }
0x1f64   : > { %v4095_v53 = vpack.c.bf16 %v4093_v22, %v4093_v22 }
0x1f65   : > { %v4086_v23 = vadd.f32 %v4084_v21, %v2266_v51 }
0x1f66   : > { %4099 = vrot.lane.b32.xlu1 %v4095_v53, %s5878_s11 }
0x1f67   : > { %v4088_v29 = vmul.f32 0.33333334, %v4086_v23 }
0x1f69   : > { %vm4090_vm14 = vcmp.ge.f32.partialorder %v4088_v29, 0.0  ;;  %v4092_v24 = vmul.f32 0.1, %v4088_v29 }
0x1f6b   : > { %v4094_v16 = vsel %vm4090_vm14, %v4088_v29, %v4092_v24 }
0x1f6c   : > { %v4096_v27 = vpack.c.bf16 %v4094_v16, %v4094_v16 }
0x1f6e   : > { %4101 = vrot.lane.b32.xlu2 %v4096_v27, %s5878_s11 }
0x1fc8   : > { %v4102_v6 = vpop.permute.xlu2 %4101 }
0x1fc9   : > { %4106 = vst.msk [vmem:[#allocation2 + $0x4] sm:$0xf] %vm1276_vm7, %v4102_v6 }
0x1fd8   : > { %v4100_v30 = vpop.permute.xlu1 %4099 }
0x1fd9   : > { %4105 = vst.msk [vmem:[#allocation2] sm:$0xf] %vm1276_vm7, %v4100_v30  ;;  %vm4191_vm7 = vcmask 523264  }
0x1fe0   : > { %v4689_v46 = vld [vmem:[#allocation2] sm:$0xff] }
0x1fe1   : > { %4116 = vrot.lane.b32.xlu1 %v4689_v46, %s4872_s9  ;;  %4118 = vrot.lane.b32.xlu0 %v4689_v46, %s4873_s13 }
0x1fe9   : > { %4137 = vrot.lane.b32.xlu1 %v4689_v46, %s5895_s5 }
0x2053   : > { %v4117_v31 = vpop.permute.xlu1 %4116  ;;  %v4119_v32 = vpop.permute.xlu0 %4118 }
0x2054   : > { %4139 = vrot.lane.b32.xlu0 %v4117_v31, %s5895_s5  ;;  %4141 = vrot.lane.b32.xlu2 %v4119_v32, %s5895_s5  ;;  %s5918_s5 = sld [smem:[#allocation41_spill]] }
0x205a   : > { %s5920_s21 = sshll.u32 %s5918_s5, 5 }
0x205b   : > { %v4138_v37 = vpop.permute.xlu1 %4137  ;;  %s1182_s25 = scalar_lea.vmem %s5919_s17, %s5920_s21 }
0x205c   : > { %4129 = vperm.xlu0 %4783, %v4121_v33   ;;  %4124 = vperm.xlu2 %4782, %v4120_v34  }
0x20ae   : > { %v4142_v35 = vpop.permute.xlu2 %4141 }
0x20af   : > { %4154 = vmatpush.bf16.msrb.mxu3 %v4142_v35 }
0x20b6   : > { %v4125_v40 = vpop.permute.xlu2 %4124 }
0x20c6   : > { %v4140_v36 = vpop.permute.xlu0 %4139 }
0x20c7   : > { %4155 = vmatpush.bf16.msrb.mxu3 %v4140_v36 }
0x20cb   : > { %4156 = vmatpush.bf16.msrb.mxu3 %v4138_v37 }
0x20ce   : > { %4628 = vmatmul.msk.bf16.vlgmr.msrb.gmra.mxu3 %vm1318_vm8, %v4690_v38  ;;  %v4130_v41 = vpop.permute.xlu0 %4129  ;;  %vm4169_vm8 = vcmp.eq.s32.totalorder %v4163_v48, %v5099_v10 }
0x20cf   : > { %v4629_v52 = vsel %vm4169_vm8, 1.0, %v4831_v12 }
0x20d0   : > { %v4187_v55 = vpack.c.bf16 %v4630_v54, %v4629_v52 }
0x2151   : > { %v4158_v39 = vpop.f32.mrf.mxu3 }
0x2152   : > { %v4159_v43 = vadd.f32 %v4158_v39, %v4125_v40 }
0x2159   : > { %v4160_v42 = vpop.f32.mrf.mxu3 }
0x215a   : > { %v4161_v44 = vadd.f32 %v4160_v42, %v4130_v41 }
0x215c   : > { %v4190_v45 = vpack.c.bf16 %v4161_v44, %v4159_v43 }
0x215e   : > { %v4204_v47 = vsel %vm4191_vm7, %v4190_v45, 0 }
0x215f   : > { %4213 = vmatpush.bf16.xpose.msrb.mxu0 %v4204_v47 }
0x2166   : > { %4635 = vmatmul.msk.bf16.vlgmr.msrb.gmra.mxu0 %vm4191_vm7, %v5107_v15  ;;  %v4166_v15 = vadd.s32 40, %v5096_v7 }
0x2168   : > { %vm4172_vm2 = vcmp.eq.s32.totalorder %v4166_v15, %v5099_v10 }
0x2169   : > { %v4632_v57 = vsel %vm4172_vm2, 1.0, %v4831_v12 }
0x216a   : > { %v4188_v25 = vpack.c.bf16 %v4632_v57, %v4631_v56 }
0x2176   : > { %4636 = vmatmul.msk.bf16.gmra.mxu0 %vm4191_vm7, %v4187_v55 }
0x2186   : > { %4637 = vmatmul.msk.bf16.gmra.mxu0 %vm4191_vm7, %v4188_v25 }
0x2196   : > { %4638 = vmatmul.msk.bf16.gmra.mxu0 %vm4191_vm7, %v4189_v61 }
0x21e3   : > { %v4215_v63 = vpop.f32.mrf.mxu0 }
0x21e4   : > { %v4235_v0 = vpack.c.bf16 %v4215_v63, %v4215_v63 }
0x21e6   : > { %4244 = vst.msk [vmem:[%s1182_s25] sm:$0xf] %vm4243_vm5, %v4235_v0 }
0x21eb   : > { %v4217_v1 = vpop.f32.mrf.mxu0 }
0x21ec   : > { %v4236_v7 = vpack.c.bf16 %v4217_v1, %v4217_v1 }
0x21ee   : > { %4245 = vst.msk [vmem:[%s1182_s25 + $0x4] sm:$0xf] %vm4243_vm5, %v4236_v7 }
0x21f3   : > { %v4220_v49 = vpop.f32.mrf.mxu0 }
0x21f4   : > { %v4237_v10 = vpack.c.bf16 %v4220_v49, %v4220_v49 }
0x21f6   : > { %4246 = vst.msk [vmem:[%s1182_s25 + $0x8] sm:$0xf] %vm4243_vm5, %v4237_v10 }
0x21fb   : > { %v4222_v3 = vpop.f32.mrf.mxu0 }
0x21fc   : > { %v4238_v12 = vpack.c.bf16 %v4222_v3, %v4222_v3 }
0x21fe   : > { %4247 = vst.msk [vmem:[%s1182_s25 + $0xc] sm:$0xf] %vm4243_vm5, %v4238_v12 }
0x2203   : > { %v4225_v5 = vpop.f32.mrf.mxu0 }
0x2204   : > { %v4239_v28 = vpack.c.bf16 %v4225_v5, %v4225_v5 }
0x2206   : > { %4248 = vst.msk [vmem:[%s1182_s25 + $0x10] sm:$0xf] %vm4243_vm5, %v4239_v28 }
0x220b   : > { %v4227_v2 = vpop.f32.mrf.mxu0 }
0x220c   : > { %v4240_v8 = vpack.c.bf16 %v4227_v2, %v4227_v2 }
0x220e   : > { %4249 = vst.msk [vmem:[%s1182_s25 + $0x14] sm:$0xf] %vm4243_vm5, %v4240_v8 }
0x2213   : > { %v4230_v9 = vpop.f32.mrf.mxu0 }
0x2214   : > { %v4241_v13 = vpack.c.bf16 %v4230_v9, %v4230_v9 }
0x2216   : > { %4250 = vst.msk [vmem:[%s1182_s25 + $0x18] sm:$0xf] %vm4243_vm5, %v4241_v13 }
0x221b   : > { %v4232_v4 = vpop.f32.mrf.mxu0 }
0x221c   : > { %v4242_v14 = vpack.c.bf16 %v4232_v4, %v4232_v4 }
0x221e   : > { %4251 = vst.msk [vmem:[%s1182_s25 + $0x1c] sm:$0xf] %vm4243_vm5, %v4242_v14 }
0x221f PF: > { %s5921_s14 = sld [smem:[#allocation40_spill]] }
0x2225   : > { %s89_s22 = sadd.s32 1, %s5921_s14  }
0x2226   : > { %p86_p4 = scmp.ge.s32.totalorder %s89_s22, 4  }
0x2228   :  { %88 = sbr.rel (!%p86_p4) target bundleno = 93 (0x5d), region = 245 }

</bundles_post_ra>
